<compile_context>
chip_gen: v5e
topology: v5e:2x2
jax: 0.10.0
libtpu: 0.0.40
codegen_flags: <defaults>
</compile_context>

<pallas_src>
import jax
import jax.numpy as jnp
from jax.experimental import pallas as pl
from jax.experimental.pallas import tpu as pltpu

_VMEM_LIMIT_BYTES = 32 * 1024 * 1024
_DEFAULT_TILE_M = 512          # rows per grid step (sweepable)


# ---------------------------------------------------------------------------
# Small helpers
# ---------------------------------------------------------------------------
def _round_up(x, m):
    return (x + m - 1) // m * m


def _pick_tile_m(m, target=_DEFAULT_TILE_M):
    """Largest row tile <= target, multiple of 16 (bf16 sublane packing)."""
    return min(target, _round_up(m, 16))


def _pad_last(a, n_to):
    pad = n_to - a.shape[-1]
    if pad == 0:
        return a
    widths = [(0, 0)] * (a.ndim - 1) + [(0, pad)]
    return jnp.pad(a, widths)


# ---------------------------------------------------------------------------
# Pallas kernel 1: fused conv-as-matmul + BatchNorm affine + ReLU
#   out = relu((X @ W) * scale + shift)     X,W bf16; epilogue f32
# ---------------------------------------------------------------------------
def _conv_bn_relu_kernel(x_ref, w_ref, scale_ref, shift_ref, o_ref):
    acc = jnp.dot(x_ref[...], w_ref[...], preferred_element_type=jnp.float32)
    acc = acc * scale_ref[...] + shift_ref[...]
    o_ref[...] = jnp.maximum(acc, 0.0).astype(o_ref.dtype)


def fused_conv_matmul(x, w, scale, shift, *, tile_m=_DEFAULT_TILE_M):
    """x: (M, K) bf16, w: (K, Npad) bf16, scale/shift: (1, Npad) f32
    -> (Mpad, Npad) bf16 (rows/channels beyond M / true Cout are padding)."""
    M, K = x.shape
    Kw, Npad = w.shape
    assert K == Kw and Npad % 128 == 0
    tm = _pick_tile_m(M, tile_m)
    Mp = _round_up(M, tm)
    if Mp != M:
        x = jnp.pad(x, ((0, Mp - M), (0, 0)))
    return pl.pallas_call(
        _conv_bn_relu_kernel,
        out_shape=jax.ShapeDtypeStruct((Mp, Npad), jnp.bfloat16),
        grid=(Mp // tm,),
        in_specs=[
            pl.BlockSpec((tm, K), lambda i: (i, 0)),     # activations: new tile / step
            pl.BlockSpec((K, Npad), lambda i: (0, 0)),   # weights stay VMEM-resident
            pl.BlockSpec((1, Npad), lambda i: (0, 0)),
            pl.BlockSpec((1, Npad), lambda i: (0, 0)),
        ],
        out_specs=pl.BlockSpec((tm, Npad), lambda i: (i, 0)),
        compiler_params=pltpu.CompilerParams(
            dimension_semantics=("parallel",),
            vmem_limit_bytes=_VMEM_LIMIT_BYTES,
        ),
    )(x, w, scale, shift)


# ---------------------------------------------------------------------------
# Pallas kernel 2: fused fc4 (+bias, ReLU) and head (+bias)
#   h  = relu(X @ W4 + b4)          (kept in registers/VMEM)
#   out = h @ Wh + bh
# ---------------------------------------------------------------------------
def _fc4_head_kernel(x_ref, w4_ref, b4_ref, wh_ref, bh_ref, o_ref):
    h = jnp.dot(x_ref[...], w4_ref[...], preferred_element_type=jnp.float32)
    h = jnp.maximum(h + b4_ref[...], 0.0)
    out = jnp.dot(h.astype(jnp.bfloat16), wh_ref[...],
                  preferred_element_type=jnp.float32)
    o_ref[...] = (out + bh_ref[...]).astype(o_ref.dtype)


def fused_fc4_head(x, w4, b4, wh, bh, *, tile_m=_DEFAULT_TILE_M):
    """x: (M, 3136) bf16, w4: (3136, 512) bf16, wh: (512, 128) bf16 -> (Mpad, 128) f32."""
    M, K = x.shape
    Kw, H = w4.shape
    Hw, No = wh.shape
    assert K == Kw and H == Hw and No % 128 == 0
    tm = _pick_tile_m(M, tile_m)
    Mp = _round_up(M, tm)
    if Mp != M:
        x = jnp.pad(x, ((0, Mp - M), (0, 0)))
    return pl.pallas_call(
        _fc4_head_kernel,
        out_shape=jax.ShapeDtypeStruct((Mp, No), jnp.float32),
        grid=(Mp // tm,),
        in_specs=[
            pl.BlockSpec((tm, K), lambda i: (i, 0)),
            pl.BlockSpec((K, H), lambda i: (0, 0)),
            pl.BlockSpec((1, H), lambda i: (0, 0)),
            pl.BlockSpec((H, No), lambda i: (0, 0)),
            pl.BlockSpec((1, No), lambda i: (0, 0)),
        ],
        out_specs=pl.BlockSpec((tm, No), lambda i: (i, 0)),
        compiler_params=pltpu.CompilerParams(
            dimension_semantics=("parallel",),
            vmem_limit_bytes=_VMEM_LIMIT_BYTES,
        ),
    )(x, w4, b4, wh, bh)


# ---------------------------------------------------------------------------
# Glue: im2col patch extraction (JAX-level layout plumbing, bf16)
# ---------------------------------------------------------------------------
def _im2col(x_nhwc, ksize, stride):
    B, H, W, C = x_nhwc.shape
    Ho = (H - ksize) // stride + 1
    Wo = (W - ksize) // stride + 1
    h_idx = jnp.arange(Ho) * stride
    w_idx = jnp.arange(Wo) * stride
    kh = jnp.arange(ksize)
    kw = jnp.arange(ksize)
    rows = x_nhwc[:, h_idx[:, None] + kh[None, :], :, :]        # (B,Ho,K,W,C)
    patches = rows[:, :, :, w_idx[:, None] + kw[None, :], :]    # (B,Ho,K,Wo,K,C)
    patches = patches.transpose(0, 1, 3, 2, 4, 5)               # (B,Ho,Wo,K,K,C)
    return patches.reshape(B * Ho * Wo, ksize * ksize * C), Ho, Wo


def conv_bn_relu(x_nhwc, w_mat, scale, shift, *, ksize, stride, cout):
    """Conv2d (valid, stride) + BatchNorm2d (eval) + ReLU as one fused kernel."""
    B = x_nhwc.shape[0]
    patches, Ho, Wo = _im2col(x_nhwc, ksize, stride)
    out = fused_conv_matmul(patches, w_mat, scale, shift)
    out = out[: B * Ho * Wo, :cout]                 # drop padded rows / channels
    return out.reshape(B, Ho, Wo, cout)


# ---------------------------------------------------------------------------
# One-time parameter preparation (folding, permutation, padding, bf16 cast)
# ---------------------------------------------------------------------------
def prepare_params(p, eps=1e-5):
    def conv_pack(w_oihw, b, g, beta, mean, var, pre_scale=1.0):
        cout, cin, k, _ = w_oihw.shape
        npad = _round_up(cout, 128)
        # (Cout,Cin,Kh,Kw) -> (Kh,Kw,Cin,Cout) matches im2col column order (kh,kw,cin)
        w = jnp.transpose(w_oihw, (2, 3, 1, 0)).reshape(k * k * cin, cout) * pre_scale
        bn_scale = g / jnp.sqrt(var + eps)
        bn_shift = (b - mean) * bn_scale + beta
        return (_pad_last(w, npad).astype(jnp.bfloat16),
                _pad_last(bn_scale, npad)[None, :].astype(jnp.float32),
                _pad_last(bn_shift, npad)[None, :].astype(jnp.float32))

    prep = {}
    # conv1 absorbs the x/255 input scaling (exact reassociation).
    prep["w1"], prep["s1"], prep["t1"] = conv_pack(
        p["conv1_w"], p["conv1_b"], p["bn1_g"], p["bn1_b"],
        p["bn1_m"], p["bn1_v"], pre_scale=1.0 / 255.0)
    prep["w2"], prep["s2"], prep["t2"] = conv_pack(
        p["conv2_w"], p["conv2_b"], p["bn2_g"], p["bn2_b"], p["bn2_m"], p["bn2_v"])
    prep["w3"], prep["s3"], prep["t3"] = conv_pack(
        p["conv3_w"], p["conv3_b"], p["bn3_g"], p["bn3_b"], p["bn3_m"], p["bn3_v"])

    # fc4: permute the 3136 input rows from PyTorch's NCHW flatten order (c,h,w)
    # to the NHWC flatten order (h,w,c) of the conv path -> no runtime transpose.
    hidden, flat = p["fc4_w"].shape                    # (512, 7*7*64)
    w4 = p["fc4_w"].reshape(hidden, 64, 7, 7)          # (O, C, H, W)
    w4 = jnp.transpose(w4, (2, 3, 1, 0)).reshape(flat, hidden)
    prep["w4"] = w4.astype(jnp.bfloat16)
    prep["b4"] = p["fc4_b"][None, :].astype(jnp.float32)

    n_act = p["head_b"].shape[0]
    npad = _round_up(n_act, 128)
    prep["wh"] = _pad_last(p["head_w"].T, npad).astype(jnp.bfloat16)
    prep["bh"] = _pad_last(p["head_b"], npad)[None, :].astype(jnp.float32)
    return prep


# ---------------------------------------------------------------------------
# Full forward pass (expects prepared params)
# ---------------------------------------------------------------------------
def dqnbn_forward(prep, x_nchw, n_actions=14):
    # uint8 -> bf16 is exact for 0..255; the /255 lives in conv1's weights.
    x = jnp.transpose(x_nchw, (0, 2, 3, 1)).astype(jnp.bfloat16)      # NHWC
    x = conv_bn_relu(x, prep["w1"], prep["s1"], prep["t1"],
                     ksize=8, stride=4, cout=32)                      # (B,20,20,32)
    x = conv_bn_relu(x, prep["w2"], prep["s2"], prep["t2"],
                     ksize=4, stride=2, cout=64)                      # (B,9,9,64)
    x = conv_bn_relu(x, prep["w3"], prep["s3"], prep["t3"],
                     ksize=3, stride=1, cout=64)                      # (B,7,7,64)
    B = x.shape[0]
    x = x.reshape(B, -1)          # NHWC flatten; fc4 weight pre-permuted to match
    out = fused_fc4_head(x, prep["w4"], prep["b4"], prep["wh"], prep["bh"])
    return out[:B, :n_actions]


# ---------------------------------------------------------------------------
# Deterministic parameter initialization (PyTorch-style uniform bounds)
# ---------------------------------------------------------------------------
def init_params(key, in_channels=4, n_actions=14):
    ks = jax.random.split(key, 24)

    def u(k, shape, fan_in):
        bound = 1.0 / jnp.sqrt(jnp.float32(fan_in))
        return jax.random.uniform(k, shape, jnp.float32, -bound, bound)

    def bn(kg, kb, km, kv, c):
        return (1.0 + 0.1 * jax.random.normal(kg, (c,), jnp.float32),   # gamma
                0.1 * jax.random.normal(kb, (c,), jnp.float32),         # beta
                0.1 * jax.random.normal(km, (c,), jnp.float32),         # running_mean
                1.0 + 0.1 * jax.random.uniform(kv, (c,), jnp.float32))  # running_var

    p = {}
    p["conv1_w"] = u(ks[0], (32, in_channels, 8, 8), in_channels * 8 * 8)
    p["conv1_b"] = u(ks[1], (32,), in_channels * 8 * 8)
    p["bn1_g"], p["bn1_b"], p["bn1_m"], p["bn1_v"] = bn(ks[2], ks[3], ks[4], ks[5], 32)

    p["conv2_w"] = u(ks[6], (64, 32, 4, 4), 32 * 4 * 4)
    p["conv2_b"] = u(ks[7], (64,), 32 * 4 * 4)
    p["bn2_g"], p["bn2_b"], p["bn2_m"], p["bn2_v"] = bn(ks[8], ks[9], ks[10], ks[11], 64)

    p["conv3_w"] = u(ks[12], (64, 64, 3, 3), 64 * 3 * 3)
    p["conv3_b"] = u(ks[13], (64,), 64 * 3 * 3)
    p["bn3_g"], p["bn3_b"], p["bn3_m"], p["bn3_v"] = bn(ks[14], ks[15], ks[16], ks[17], 64)

    p["fc4_w"] = u(ks[18], (512, 7 * 7 * 64), 7 * 7 * 64)
    p["fc4_b"] = u(ks[19], (512,), 7 * 7 * 64)
    p["head_w"] = u(ks[20], (n_actions, 512), 512)
    p["head_b"] = u(ks[21], (n_actions,), 512)
    return p


if __name__ == "__main__":
    key = jax.random.PRNGKey(0)
    pkey, xkey = jax.random.split(key)
    params = init_params(pkey, in_channels=4, n_actions=14)
    prep = prepare_params(params)   # one-time fold/permute/pad/bf16-cast

    # batch=2, channels=4, spatial=84 (forced by fc4 = 7*7*64 in the module)
    x = jax.random.randint(xkey, (2, 4, 84, 84), 0, 256, dtype=jnp.int32).astype(jnp.uint8)

    fwd = jax.jit(dqnbn_forward)
    out = jax.block_until_ready(fwd(prep, x))
    assert out.shape == (2, 14) and out.dtype == jnp.float32
    assert bool(jnp.all(jnp.isfinite(out)))
    print("KERNEL_OK")
</pallas_src>

<mosaic_0001>
module attributes {stable_mosaic.version = 11 : i64} {
  func.func @_conv_bn_relu_kernel(%arg0: i32, %arg1: memref<512x256xbf16, #tpu.memory_space<vmem>>, %arg2: memref<256x128xbf16, #tpu.memory_space<vmem>>, %arg3: memref<1x128xf32, #tpu.memory_space<vmem>>, %arg4: memref<1x128xf32, #tpu.memory_space<vmem>>, %arg5: memref<512x128xbf16, #tpu.memory_space<vmem>>) attributes {dimension_semantics = [#tpu.dimension_semantics<parallel>], iteration_bounds = array<i64: 2>, scalar_prefetch = 0 : i64, scratch_operands = 0 : i64, tpu.core_type = #tpu.core_type<tc>, window_params = [{transform_indices = @transform_0, window_bounds = array<i64: 512, 256>}, {pipeline_mode = #tpu.pipeline_mode<synchronous>, transform_indices = @transform_1, window_bounds = array<i64: 256, 128>}, {pipeline_mode = #tpu.pipeline_mode<synchronous>, transform_indices = @transform_2, window_bounds = array<i64: 1, 128>}, {pipeline_mode = #tpu.pipeline_mode<synchronous>, transform_indices = @transform_3, window_bounds = array<i64: 1, 128>}, {transform_indices = @transform_4, window_bounds = array<i64: 512, 128>}]} {
    %c0 = arith.constant 0 : index
    %c0_0 = arith.constant 0 : index
    %0 = vector.load %arg1[%c0, %c0_0] : memref<512x256xbf16, #tpu.memory_space<vmem>>, vector<512x256xbf16>
    %c0_1 = arith.constant 0 : index
    %c0_2 = arith.constant 0 : index
    %1 = vector.load %arg2[%c0_1, %c0_2] : memref<256x128xbf16, #tpu.memory_space<vmem>>, vector<256x128xbf16>
    %cst = arith.constant dense<0.000000e+00> : vector<512x128xf32>
    %2 = tpu.matmul %0, %1, %cst {dimension_numbers = #tpu.dot_dimension_numbers<[1], [0], [0], [1], [0, 0, 1, 1], [], []>} : vector<512x256xbf16>, vector<256x128xbf16>, vector<512x128xf32> -> vector<512x128xf32>
    %c0_3 = arith.constant 0 : index
    %c0_4 = arith.constant 0 : index
    %3 = vector.load %arg3[%c0_3, %c0_4] : memref<1x128xf32, #tpu.memory_space<vmem>>, vector<1x128xf32>
    %4 = vector.broadcast %3 : vector<1x128xf32> to vector<512x128xf32>
    %5 = arith.mulf %2, %4 : vector<512x128xf32>
    %c0_5 = arith.constant 0 : index
    %c0_6 = arith.constant 0 : index
    %6 = vector.load %arg4[%c0_5, %c0_6] : memref<1x128xf32, #tpu.memory_space<vmem>>, vector<1x128xf32>
    %7 = vector.broadcast %6 : vector<1x128xf32> to vector<512x128xf32>
    %8 = arith.addf %5, %7 : vector<512x128xf32>
    %cst_7 = arith.constant 0.000000e+00 : f32
    %9 = vector.broadcast %cst_7 : f32 to vector<512x128xf32>
    %10 = arith.maximumf %8, %9 : vector<512x128xf32>
    %11 = arith.truncf %10 : vector<512x128xf32> to vector<512x128xbf16>
    %c0_8 = arith.constant 0 : index
    %c0_9 = arith.constant 0 : index
    %12 = vector.load %arg5[%c0_8, %c0_9] : memref<512x128xbf16, #tpu.memory_space<vmem>>, vector<512x128xbf16>
    tpu.vector_store %arg5[%c0_8, %c0_9], %11 {strides = array<i32>} : memref<512x128xbf16, #tpu.memory_space<vmem>>, vector<512x128xbf16>,
    return
  }
  func.func @transform_0(%arg0: i32) -> (i32, i32) {
    %c0_i32 = arith.constant 0 : i32
    %c0_i32_0 = arith.constant 0 : i32
    return %arg0, %c0_i32 : i32, i32
  }
  func.func @transform_1(%arg0: i32) -> (i32, i32) {
    %c0_i32 = arith.constant 0 : i32
    %c0_i32_0 = arith.constant 0 : i32
    %c0_i32_1 = arith.constant 0 : i32
    return %c0_i32, %c0_i32_0 : i32, i32
  }
  func.func @transform_2(%arg0: i32) -> (i32, i32) {
    %c0_i32 = arith.constant 0 : i32
    %c0_i32_0 = arith.constant 0 : i32
    %c0_i32_1 = arith.constant 0 : i32
    return %c0_i32, %c0_i32_0 : i32, i32
  }
  func.func @transform_3(%arg0: i32) -> (i32, i32) {
    %c0_i32 = arith.constant 0 : i32
    %c0_i32_0 = arith.constant 0 : i32
    %c0_i32_1 = arith.constant 0 : i32
    return %c0_i32, %c0_i32_0 : i32, i32
  }
  func.func @transform_4(%arg0: i32) -> (i32, i32) {
    %c0_i32 = arith.constant 0 : i32
    %c0_i32_0 = arith.constant 0 : i32
    return %arg0, %c0_i32 : i32, i32
  }
}

module attributes {stable_mosaic.version = 11 : i64} {
  func.func @_conv_bn_relu_kernel(%arg0: i32, %arg1: memref<176x512xbf16, #tpu.memory_space<vmem>>, %arg2: memref<512x128xbf16, #tpu.memory_space<vmem>>, %arg3: memref<1x128xf32, #tpu.memory_space<vmem>>, %arg4: memref<1x128xf32, #tpu.memory_space<vmem>>, %arg5: memref<176x128xbf16, #tpu.memory_space<vmem>>) attributes {dimension_semantics = [#tpu.dimension_semantics<parallel>], iteration_bounds = array<i64: 1>, scalar_prefetch = 0 : i64, scratch_operands = 0 : i64, tpu.core_type = #tpu.core_type<tc>, window_params = [{transform_indices = @transform_0, window_bounds = array<i64: 176, 512>}, {pipeline_mode = #tpu.pipeline_mode<synchronous>, transform_indices = @transform_1, window_bounds = array<i64: 512, 128>}, {pipeline_mode = #tpu.pipeline_mode<synchronous>, transform_indices = @transform_2, window_bounds = array<i64: 1, 128>}, {pipeline_mode = #tpu.pipeline_mode<synchronous>, transform_indices = @transform_3, window_bounds = array<i64: 1, 128>}, {transform_indices = @transform_4, window_bounds = array<i64: 176, 128>}]} {
    %c0 = arith.constant 0 : index
    %c0_0 = arith.constant 0 : index
    %0 = vector.load %arg1[%c0, %c0_0] : memref<176x512xbf16, #tpu.memory_space<vmem>>, vector<176x512xbf16>
    %c0_1 = arith.constant 0 : index
    %c0_2 = arith.constant 0 : index
    %1 = vector.load %arg2[%c0_1, %c0_2] : memref<512x128xbf16, #tpu.memory_space<vmem>>, vector<512x128xbf16>
    %cst = arith.constant dense<0.000000e+00> : vector<176x128xf32>
    %2 = tpu.matmul %0, %1, %cst {dimension_numbers = #tpu.dot_dimension_numbers<[1], [0], [0], [1], [0, 0, 1, 1], [], []>} : vector<176x512xbf16>, vector<512x128xbf16>, vector<176x128xf32> -> vector<176x128xf32>
    %c0_3 = arith.constant 0 : index
    %c0_4 = arith.constant 0 : index
    %3 = vector.load %arg3[%c0_3, %c0_4] : memref<1x128xf32, #tpu.memory_space<vmem>>, vector<1x128xf32>
    %4 = vector.broadcast %3 : vector<1x128xf32> to vector<176x128xf32>
    %5 = arith.mulf %2, %4 : vector<176x128xf32>
    %c0_5 = arith.constant 0 : index
    %c0_6 = arith.constant 0 : index
    %6 = vector.load %arg4[%c0_5, %c0_6] : memref<1x128xf32, #tpu.memory_space<vmem>>, vector<1x128xf32>
    %7 = vector.broadcast %6 : vector<1x128xf32> to vector<176x128xf32>
    %8 = arith.addf %5, %7 : vector<176x128xf32>
    %cst_7 = arith.constant 0.000000e+00 : f32
    %9 = vector.broadcast %cst_7 : f32 to vector<176x128xf32>
    %10 = arith.maximumf %8, %9 : vector<176x128xf32>
    %11 = arith.truncf %10 : vector<176x128xf32> to vector<176x128xbf16>
    %c0_8 = arith.constant 0 : index
    %c0_9 = arith.constant 0 : index
    %12 = vector.load %arg5[%c0_8, %c0_9] : memref<176x128xbf16, #tpu.memory_space<vmem>>, vector<176x128xbf16>
    tpu.vector_store %arg5[%c0_8, %c0_9], %11 {strides = array<i32>} : memref<176x128xbf16, #tpu.memory_space<vmem>>, vector<176x128xbf16>,
    return
  }
  func.func @transform_0(%arg0: i32) -> (i32, i32) {
    %c0_i32 = arith.constant 0 : i32
    %c0_i32_0 = arith.constant 0 : i32
    return %arg0, %c0_i32 : i32, i32
  }
  func.func @transform_1(%arg0: i32) -> (i32, i32) {
    %c0_i32 = arith.constant 0 : i32
    %c0_i32_0 = arith.constant 0 : i32
    %c0_i32_1 = arith.constant 0 : i32
    return %c0_i32, %c0_i32_0 : i32, i32
  }
  func.func @transform_2(%arg0: i32) -> (i32, i32) {
    %c0_i32 = arith.constant 0 : i32
    %c0_i32_0 = arith.constant 0 : i32
    %c0_i32_1 = arith.constant 0 : i32
    return %c0_i32, %c0_i32_0 : i32, i32
  }
  func.func @transform_3(%arg0: i32) -> (i32, i32) {
    %c0_i32 = arith.constant 0 : i32
    %c0_i32_0 = arith.constant 0 : i32
    %c0_i32_1 = arith.constant 0 : i32
    return %c0_i32, %c0_i32_0 : i32, i32
  }
  func.func @transform_4(%arg0: i32) -> (i32, i32) {
    %c0_i32 = arith.constant 0 : i32
    %c0_i32_0 = arith.constant 0 : i32
    return %arg0, %c0_i32 : i32, i32
  }
}

module attributes {stable_mosaic.version = 11 : i64} {
  func.func @_conv_bn_relu_kernel(%arg0: i32, %arg1: memref<112x576xbf16, #tpu.memory_space<vmem>>, %arg2: memref<576x128xbf16, #tpu.memory_space<vmem>>, %arg3: memref<1x128xf32, #tpu.memory_space<vmem>>, %arg4: memref<1x128xf32, #tpu.memory_space<vmem>>, %arg5: memref<112x128xbf16, #tpu.memory_space<vmem>>) attributes {dimension_semantics = [#tpu.dimension_semantics<parallel>], iteration_bounds = array<i64: 1>, scalar_prefetch = 0 : i64, scratch_operands = 0 : i64, tpu.core_type = #tpu.core_type<tc>, window_params = [{transform_indices = @transform_0, window_bounds = array<i64: 112, 576>}, {pipeline_mode = #tpu.pipeline_mode<synchronous>, transform_indices = @transform_1, window_bounds = array<i64: 576, 128>}, {pipeline_mode = #tpu.pipeline_mode<synchronous>, transform_indices = @transform_2, window_bounds = array<i64: 1, 128>}, {pipeline_mode = #tpu.pipeline_mode<synchronous>, transform_indices = @transform_3, window_bounds = array<i64: 1, 128>}, {transform_indices = @transform_4, window_bounds = array<i64: 112, 128>}]} {
    %c0 = arith.constant 0 : index
    %c0_0 = arith.constant 0 : index
    %0 = vector.load %arg1[%c0, %c0_0] : memref<112x576xbf16, #tpu.memory_space<vmem>>, vector<112x576xbf16>
    %c0_1 = arith.constant 0 : index
    %c0_2 = arith.constant 0 : index
    %1 = vector.load %arg2[%c0_1, %c0_2] : memref<576x128xbf16, #tpu.memory_space<vmem>>, vector<576x128xbf16>
    %cst = arith.constant dense<0.000000e+00> : vector<112x128xf32>
    %2 = tpu.matmul %0, %1, %cst {dimension_numbers = #tpu.dot_dimension_numbers<[1], [0], [0], [1], [0, 0, 1, 1], [], []>} : vector<112x576xbf16>, vector<576x128xbf16>, vector<112x128xf32> -> vector<112x128xf32>
    %c0_3 = arith.constant 0 : index
    %c0_4 = arith.constant 0 : index
    %3 = vector.load %arg3[%c0_3, %c0_4] : memref<1x128xf32, #tpu.memory_space<vmem>>, vector<1x128xf32>
    %4 = vector.broadcast %3 : vector<1x128xf32> to vector<112x128xf32>
    %5 = arith.mulf %2, %4 : vector<112x128xf32>
    %c0_5 = arith.constant 0 : index
    %c0_6 = arith.constant 0 : index
    %6 = vector.load %arg4[%c0_5, %c0_6] : memref<1x128xf32, #tpu.memory_space<vmem>>, vector<1x128xf32>
    %7 = vector.broadcast %6 : vector<1x128xf32> to vector<112x128xf32>
    %8 = arith.addf %5, %7 : vector<112x128xf32>
    %cst_7 = arith.constant 0.000000e+00 : f32
    %9 = vector.broadcast %cst_7 : f32 to vector<112x128xf32>
    %10 = arith.maximumf %8, %9 : vector<112x128xf32>
    %11 = arith.truncf %10 : vector<112x128xf32> to vector<112x128xbf16>
    %c0_8 = arith.constant 0 : index
    %c0_9 = arith.constant 0 : index
    %12 = vector.load %arg5[%c0_8, %c0_9] : memref<112x128xbf16, #tpu.memory_space<vmem>>, vector<112x128xbf16>
    tpu.vector_store %arg5[%c0_8, %c0_9], %11 {strides = array<i32>} : memref<112x128xbf16, #tpu.memory_space<vmem>>, vector<112x128xbf16>,
    return
  }
  func.func @transform_0(%arg0: i32) -> (i32, i32) {
    %c0_i32 = arith.constant 0 : i32
    %c0_i32_0 = arith.constant 0 : i32
    return %arg0, %c0_i32 : i32, i32
  }
  func.func @transform_1(%arg0: i32) -> (i32, i32) {
    %c0_i32 = arith.constant 0 : i32
    %c0_i32_0 = arith.constant 0 : i32
    %c0_i32_1 = arith.constant 0 : i32
    return %c0_i32, %c0_i32_0 : i32, i32
  }
  func.func @transform_2(%arg0: i32) -> (i32, i32) {
    %c0_i32 = arith.constant 0 : i32
    %c0_i32_0 = arith.constant 0 : i32
    %c0_i32_1 = arith.constant 0 : i32
    return %c0_i32, %c0_i32_0 : i32, i32
  }
  func.func @transform_3(%arg0: i32) -> (i32, i32) {
    %c0_i32 = arith.constant 0 : i32
    %c0_i32_0 = arith.constant 0 : i32
    %c0_i32_1 = arith.constant 0 : i32
    return %c0_i32, %c0_i32_0 : i32, i32
  }
  func.func @transform_4(%arg0: i32) -> (i32, i32) {
    %c0_i32 = arith.constant 0 : i32
    %c0_i32_0 = arith.constant 0 : i32
    return %arg0, %c0_i32 : i32, i32
  }
}

module attributes {stable_mosaic.version = 11 : i64} {
  func.func @_fc4_head_kernel(%arg0: i32, %arg1: memref<16x3136xbf16, #tpu.memory_space<vmem>>, %arg2: memref<3136x512xbf16, #tpu.memory_space<vmem>>, %arg3: memref<1x512xf32, #tpu.memory_space<vmem>>, %arg4: memref<512x128xbf16, #tpu.memory_space<vmem>>, %arg5: memref<1x128xf32, #tpu.memory_space<vmem>>, %arg6: memref<16x128xf32, #tpu.memory_space<vmem>>) attributes {dimension_semantics = [#tpu.dimension_semantics<parallel>], iteration_bounds = array<i64: 1>, scalar_prefetch = 0 : i64, scratch_operands = 0 : i64, tpu.core_type = #tpu.core_type<tc>, window_params = [{transform_indices = @transform_0, window_bounds = array<i64: 16, 3136>}, {pipeline_mode = #tpu.pipeline_mode<synchronous>, transform_indices = @transform_1, window_bounds = array<i64: 3136, 512>}, {pipeline_mode = #tpu.pipeline_mode<synchronous>, transform_indices = @transform_2, window_bounds = array<i64: 1, 512>}, {pipeline_mode = #tpu.pipeline_mode<synchronous>, transform_indices = @transform_3, window_bounds = array<i64: 512, 128>}, {pipeline_mode = #tpu.pipeline_mode<synchronous>, transform_indices = @transform_4, window_bounds = array<i64: 1, 128>}, {transform_indices = @transform_5, window_bounds = array<i64: 16, 128>}]} {
    %c0 = arith.constant 0 : index
    %c0_0 = arith.constant 0 : index
    %0 = vector.load %arg1[%c0, %c0_0] : memref<16x3136xbf16, #tpu.memory_space<vmem>>, vector<16x3136xbf16>
    %c0_1 = arith.constant 0 : index
    %c0_2 = arith.constant 0 : index
    %1 = vector.load %arg2[%c0_1, %c0_2] : memref<3136x512xbf16, #tpu.memory_space<vmem>>, vector<3136x512xbf16>
    %cst = arith.constant dense<0.000000e+00> : vector<16x512xf32>
    %2 = tpu.matmul %0, %1, %cst {dimension_numbers = #tpu.dot_dimension_numbers<[1], [0], [0], [1], [0, 0, 1, 1], [], []>} : vector<16x3136xbf16>, vector<3136x512xbf16>, vector<16x512xf32> -> vector<16x512xf32>
    %c0_3 = arith.constant 0 : index
    %c0_4 = arith.constant 0 : index
    %3 = vector.load %arg3[%c0_3, %c0_4] : memref<1x512xf32, #tpu.memory_space<vmem>>, vector<1x512xf32>
    %4 = vector.broadcast %3 : vector<1x512xf32> to vector<16x512xf32>
    %5 = arith.addf %2, %4 : vector<16x512xf32>
    %cst_5 = arith.constant 0.000000e+00 : f32
    %6 = vector.broadcast %cst_5 : f32 to vector<16x512xf32>
    %7 = arith.maximumf %5, %6 : vector<16x512xf32>
    %8 = arith.truncf %7 : vector<16x512xf32> to vector<16x512xbf16>
    %c0_6 = arith.constant 0 : index
    %c0_7 = arith.constant 0 : index
    %9 = vector.load %arg4[%c0_6, %c0_7] : memref<512x128xbf16, #tpu.memory_space<vmem>>, vector<512x128xbf16>
    %cst_8 = arith.constant dense<0.000000e+00> : vector<16x128xf32>
    %10 = tpu.matmul %8, %9, %cst_8 {dimension_numbers = #tpu.dot_dimension_numbers<[1], [0], [0], [1], [0, 0, 1, 1], [], []>} : vector<16x512xbf16>, vector<512x128xbf16>, vector<16x128xf32> -> vector<16x128xf32>
    %c0_9 = arith.constant 0 : index
    %c0_10 = arith.constant 0 : index
    %11 = vector.load %arg5[%c0_9, %c0_10] : memref<1x128xf32, #tpu.memory_space<vmem>>, vector<1x128xf32>
    %12 = vector.broadcast %11 : vector<1x128xf32> to vector<16x128xf32>
    %13 = arith.addf %10, %12 : vector<16x128xf32>
    %c0_11 = arith.constant 0 : index
    %c0_12 = arith.constant 0 : index
    %14 = vector.load %arg6[%c0_11, %c0_12] : memref<16x128xf32, #tpu.memory_space<vmem>>, vector<16x128xf32>
    tpu.vector_store %arg6[%c0_11, %c0_12], %13 {strides = array<i32>} : memref<16x128xf32, #tpu.memory_space<vmem>>, vector<16x128xf32>,
    return
  }
  func.func @transform_0(%arg0: i32) -> (i32, i32) {
    %c0_i32 = arith.constant 0 : i32
    %c0_i32_0 = arith.constant 0 : i32
    return %arg0, %c0_i32 : i32, i32
  }
  func.func @transform_1(%arg0: i32) -> (i32, i32) {
    %c0_i32 = arith.constant 0 : i32
    %c0_i32_0 = arith.constant 0 : i32
    %c0_i32_1 = arith.constant 0 : i32
    return %c0_i32, %c0_i32_0 : i32, i32
  }
  func.func @transform_2(%arg0: i32) -> (i32, i32) {
    %c0_i32 = arith.constant 0 : i32
    %c0_i32_0 = arith.constant 0 : i32
    %c0_i32_1 = arith.constant 0 : i32
    return %c0_i32, %c0_i32_0 : i32, i32
  }
  func.func @transform_3(%arg0: i32) -> (i32, i32) {
    %c0_i32 = arith.constant 0 : i32
    %c0_i32_0 = arith.constant 0 : i32
    %c0_i32_1 = arith.constant 0 : i32
    return %c0_i32, %c0_i32_0 : i32, i32
  }
  func.func @transform_4(%arg0: i32) -> (i32, i32) {
    %c0_i32 = arith.constant 0 : i32
    %c0_i32_0 = arith.constant 0 : i32
    %c0_i32_1 = arith.constant 0 : i32
    return %c0_i32, %c0_i32_0 : i32, i32
  }
  func.func @transform_5(%arg0: i32) -> (i32, i32) {
    %c0_i32 = arith.constant 0 : i32
    %c0_i32_0 = arith.constant 0 : i32
    return %arg0, %c0_i32 : i32, i32
  }
}

</mosaic_0001>

<bundles_post_ra>
// kernel: dqnbn_forward.4
= control target key start
LH: loop header
LB: loop body
LE: loop exit
PB: predicated region body
PF: predicated region fallthrough
CT: control target
= control target key end

     0   :  { %s2103_s15 = smov 0   ;;  %s2466_s0 = inlined_call_operand.vmem [shape: bf16[1024,256], index: 0, kind: input, shape index: {}]   ;;  %s2467_s1 = inlined_call_operand.vmem [shape: bf16[256,128], index: 1, kind: input, shape index: {}]   ;;  %s2468_s2 = inlined_call_operand.vmem [shape: f32[1,128], index: 2, kind: input, shape index: {}]   ;;  %s2469_s3 = inlined_call_operand.vmem [shape: f32[1,128], index: 3, kind: input, shape index: {}]   ;;  %s2470_s4 = inlined_call_operand.vmem [shape: bf16[1024,128], index: 4, kind: output, shape index: {}]  }
   0x1 LB: > { %s1438_s16 = sadd.s32 4294967295, %s2076_s15   ;;  %p1442_p0 = scmp.ge.s32.totalorder %s2076_s15, 1  ;;  %s2076_s15 = sphi %s2103_s15, %s14_s15  }
   0x2   : > { %p164_p1 = scmp.lt.s32.totalorder %s2076_s15, 3 }
   0x4   : > { %p165_p2 = pnand %p1442_p0, %p164_p1 }
   0x5   : > { %s1443_s29 = sshll.u32 (!%p165_p2), %s1438_s16, 6 }
   0x6   : > { %168 = sbr.rel (%p165_p2) target bundleno = 435 (0x1b3), region = 36  ;;  %p192_p3 = scmp.lt.s32.totalorder (!%p165_p2), %s1443_s29, 127 }
   0xb   : > { %v1842_v0 = vld [vmem:[%s2467_s1 + $0x38] sm:$0xff]  ;;  %v1841_v2 = vld [vmem:[%s2467_s1 + $0x30] sm:$0xff]  ;;  %v1840_v4 = vld [vmem:[%s2467_s1 + $0x28] sm:$0xff]  ;;  %s2472_s29 = smov (!%p192_p3, %s1443_s29), 127 }
   0xc   : > { %v1850_v1 = vld [vmem:[%s2467_s1 + $0x78] sm:$0xff]  ;;  %716 = vmatpush.bf16.msra.mxu0 %v1842_v0  ;;  %2042 = vmatpush.bf16.msra.mxu2 %v1842_v0  ;;  %v1849_v3 = vld [vmem:[%s2467_s1 + $0x70] sm:$0xff]  ;;  %v1848_v5 = vld [vmem:[%s2467_s1 + $0x68] sm:$0xff]  ;;  %s1770_s17 = sshll.u32 %s2472_s29, 3  ;;  %s1447_s8 = sshll.u32 %s2472_s29, 2 }
   0xd   : > { %885 = vmatpush.bf16.msra.mxu1 %v1850_v1  ;;  %2050 = vmatpush.bf16.msra.mxu3 %v1850_v1  ;;  %v1839_v6 = vld [vmem:[%s2467_s1 + $0x20] sm:$0xff]  ;;  %v1838_v8 = vld [vmem:[%s2467_s1 + $0x18] sm:$0xff]  ;;  %v1837_v10 = vld [vmem:[%s2467_s1 + $0x10] sm:$0xff]  ;;  %s2156_s22 = scalar_lea.vmem %s2466_s0, %s1770_s17  ;;  %s2266_s11 = scalar_lea.vmem %s2470_s4, %s1447_s8 }
   0xe   : > { %v1847_v7 = vld [vmem:[%s2467_s1 + $0x60] sm:$0xff]  ;;  %v1846_v9 = vld [vmem:[%s2467_s1 + $0x58] sm:$0xff]  ;;  %v1845_v11 = vld [vmem:[%s2467_s1 + $0x50] sm:$0xff] }
   0xf   : > { %v1836_v12 = vld [vmem:[%s2467_s1 + $0x8] sm:$0xff]  ;;  %v1835_v14 = vld [vmem:[%s2467_s1] sm:$0xff]  ;;  %v1458_v28 = vld [vmem:[%s2156_s22 + $0x10] sm:$0xf] }
  0x10   : > { %717 = vmatpush.bf16.msra.mxu0 %v1841_v2  ;;  %2043 = vmatpush.bf16.msra.mxu2 %v1841_v2  ;;  %v1844_v13 = vld [vmem:[%s2467_s1 + $0x48] sm:$0xff]  ;;  %v1843_v15 = vld [vmem:[%s2467_s1 + $0x40] sm:$0xff]  ;;  %v1774_v29 = vld [vmem:[%s2156_s22 + $0x14] sm:$0xf0] }
  0x11   : > { %886 = vmatpush.bf16.msra.mxu1 %v1849_v3  ;;  %2051 = vmatpush.bf16.msra.mxu3 %v1849_v3  ;;  %v1450_v16 = vld [vmem:[%s2156_s22] sm:$0xf]  ;;  %v1772_v17 = vld [vmem:[%s2156_s22 + $0x4] sm:$0xf0]  ;;  %v1771_v20 = vld [vmem:[%s2156_s22 + $0x4] sm:$0xf]  ;;  %v1459_v36 = vor.u32 %v1774_v29, %v1458_v28 }
  0x12   : > { %v1578_v18 = vld [vmem:[%s2156_s22 + $0x100] sm:$0xf]  ;;  %v1804_v19 = vld [vmem:[%s2156_s22 + $0x104] sm:$0xf0]  ;;  %v1452_v21 = vld [vmem:[%s2156_s22 + $0x8] sm:$0xf0]  ;;  %v1451_v24 = vor.u32 %v1772_v17, %v1450_v16 }
  0x13   : > { %v1803_v22 = vld [vmem:[%s2156_s22 + $0x104] sm:$0xf]  ;;  %v1580_v23 = vld [vmem:[%s2156_s22 + $0x108] sm:$0xf0]  ;;  %v1579_v25 = vor.u32 %v1804_v19, %v1578_v18  ;;  %v1455_v26 = vor.u32 %v1771_v20, %v1452_v21  ;;  %v1586_v30 = vld [vmem:[%s2156_s22 + $0x110] sm:$0xf] }
  0x14   : > { %718 = vmatpush.bf16.msra.mxu0 %v1840_v4  ;;  %2044 = vmatpush.bf16.msra.mxu2 %v1840_v4  ;;  %v1583_v27 = vor.u32 %v1803_v22, %v1580_v23  ;;  %v1806_v31 = vld [vmem:[%s2156_s22 + $0x114] sm:$0xf0]  ;;  %v1773_v32 = vld [vmem:[%s2156_s22 + $0x14] sm:$0xf]  ;;  %v1460_v33 = vld [vmem:[%s2156_s22 + $0x18] sm:$0xf0] }
  0x15   : > { %887 = vmatpush.bf16.msra.mxu1 %v1848_v5  ;;  %2052 = vmatpush.bf16.msra.mxu3 %v1848_v5  ;;  %v1805_v34 = vld [vmem:[%s2156_s22 + $0x114] sm:$0xf]  ;;  %v1588_v35 = vld [vmem:[%s2156_s22 + $0x118] sm:$0xf0]  ;;  %v1587_v37 = vor.u32 %v1806_v31, %v1586_v30  ;;  %v1463_v38 = vor.u32 %v1773_v32, %v1460_v33  ;;  %v1466_v40 = vld [vmem:[%s2156_s22 + $0x20] sm:$0xf] }
  0x16   : > { %v1591_v39 = vor.u32 %v1805_v34, %v1588_v35  ;;  %v1776_v41 = vld [vmem:[%s2156_s22 + $0x24] sm:$0xf0]  ;;  %v1594_v42 = vld [vmem:[%s2156_s22 + $0x120] sm:$0xf]  ;;  %v1775_v44 = vld [vmem:[%s2156_s22 + $0x24] sm:$0xf] }
  0x17   : > { %v1808_v43 = vld [vmem:[%s2156_s22 + $0x124] sm:$0xf0]  ;;  %v1468_v45 = vld [vmem:[%s2156_s22 + $0x28] sm:$0xf0]  ;;  %v1807_v46 = vld [vmem:[%s2156_s22 + $0x124] sm:$0xf]  ;;  %v1467_v48 = vor.u32 %v1776_v41, %v1466_v40 }
  0x18   : > { %719 = vmatpush.bf16.msra.mxu0 %v1839_v6  ;;  %2045 = vmatpush.bf16.msra.mxu2 %v1839_v6  ;;  %v1596_v47 = vld [vmem:[%s2156_s22 + $0x128] sm:$0xf0]  ;;  %v1595_v49 = vor.u32 %v1808_v43, %v1594_v42  ;;  %v1471_v50 = vor.u32 %v1775_v44, %v1468_v45  ;;  %v1474_v52 = vld [vmem:[%s2156_s22 + $0x30] sm:$0xf]  ;;  %v1778_v53 = vld [vmem:[%s2156_s22 + $0x34] sm:$0xf0] }
  0x19   : > { %888 = vmatpush.bf16.msra.mxu1 %v1847_v7  ;;  %2053 = vmatpush.bf16.msra.mxu3 %v1847_v7  ;;  %v1599_v51 = vor.u32 %v1807_v46, %v1596_v47  ;;  %v1602_v54 = vld [vmem:[%s2156_s22 + $0x130] sm:$0xf]  ;;  %v1810_v55 = vld [vmem:[%s2156_s22 + $0x134] sm:$0xf0]  ;;  %v1777_v56 = vld [vmem:[%s2156_s22 + $0x34] sm:$0xf]  ;;  %v1475_v60 = vor.u32 %v1778_v53, %v1474_v52 }
  0x1a   : > { %v1476_v57 = vld [vmem:[%s2156_s22 + $0x38] sm:$0xf0]  ;;  %v1809_v58 = vld [vmem:[%s2156_s22 + $0x134] sm:$0xf]  ;;  %v1603_v61 = vor.u32 %v1810_v55, %v1602_v54  ;;  %v1482_v0 = vld [vmem:[%s2156_s22 + $0x40] sm:$0xf] }
  0x1b   : > { %v1604_v59 = vld [vmem:[%s2156_s22 + $0x138] sm:$0xf0]  ;;  %v1479_v62 = vor.u32 %v1777_v56, %v1476_v57  ;;  %v1780_v1 = vld [vmem:[%s2156_s22 + $0x44] sm:$0xf0]  ;;  %v1610_v2 = vld [vmem:[%s2156_s22 + $0x140] sm:$0xf] }
  0x1c   : > { %720 = vmatpush.bf16.msra.mxu0 %v1838_v8  ;;  %2046 = vmatpush.bf16.msra.mxu2 %v1838_v8  ;;  %v1607_v63 = vor.u32 %v1809_v58, %v1604_v59  ;;  %v1812_v3 = vld [vmem:[%s2156_s22 + $0x144] sm:$0xf0]  ;;  %v1779_v4 = vld [vmem:[%s2156_s22 + $0x44] sm:$0xf]  ;;  %v1484_v5 = vld [vmem:[%s2156_s22 + $0x48] sm:$0xf0]  ;;  %v1483_v8 = vor.u32 %v1780_v1, %v1482_v0 }
  0x1d   : > { %889 = vmatpush.bf16.msra.mxu1 %v1846_v9  ;;  %2054 = vmatpush.bf16.msra.mxu3 %v1846_v9  ;;  %v1811_v6 = vld [vmem:[%s2156_s22 + $0x144] sm:$0xf]  ;;  %v1612_v7 = vld [vmem:[%s2156_s22 + $0x148] sm:$0xf0]  ;;  %v1611_v9 = vor.u32 %v1812_v3, %v1610_v2  ;;  %v1781_v16 = vld [vmem:[%s2156_s22 + $0x54] sm:$0xf] }
  0x1e   : > { %v1492_v17 = vld [vmem:[%s2156_s22 + $0x58] sm:$0xf0]  ;;  %v1813_v18 = vld [vmem:[%s2156_s22 + $0x154] sm:$0xf]  ;;  %v1783_v28 = vld [vmem:[%s2156_s22 + $0x64] sm:$0xf] }
  0x1f   : > { %v1620_v19 = vld [vmem:[%s2156_s22 + $0x158] sm:$0xf0]  ;;  %v1495_v22 = vor.u32 %v1781_v16, %v1492_v17  ;;  %v1500_v29 = vld [vmem:[%s2156_s22 + $0x68] sm:$0xf0]  ;;  %v1815_v30 = vld [vmem:[%s2156_s22 + $0x164] sm:$0xf] }
  0x20   : > { %721 = vmatpush.bf16.msra.mxu0 %v1837_v10  ;;  %2047 = vmatpush.bf16.msra.mxu2 %v1837_v10  ;;  %v1487_v10 = vor.u32 %v1779_v4, %v1484_v5  ;;  %v1623_v23 = vor.u32 %v1813_v18, %v1620_v19  ;;  %v1628_v31 = vld [vmem:[%s2156_s22 + $0x168] sm:$0xf0]  ;;  %v1503_v34 = vor.u32 %v1783_v28, %v1500_v29  ;;  %v1785_v40 = vld [vmem:[%s2156_s22 + $0x74] sm:$0xf]  ;;  %v1508_v41 = vld [vmem:[%s2156_s22 + $0x78] sm:$0xf0] }
  0x21   : > { %890 = vmatpush.bf16.msra.mxu1 %v1845_v11  ;;  %2055 = vmatpush.bf16.msra.mxu3 %v1845_v11  ;;  %v1615_v11 = vor.u32 %v1811_v6, %v1612_v7  ;;  %v1631_v35 = vor.u32 %v1815_v30, %v1628_v31  ;;  %v1817_v42 = vld [vmem:[%s2156_s22 + $0x174] sm:$0xf]  ;;  %v1636_v43 = vld [vmem:[%s2156_s22 + $0x178] sm:$0xf0]  ;;  %v1511_v46 = vor.u32 %v1785_v40, %v1508_v41  ;;  %v1787_v52 = vld [vmem:[%s2156_s22 + $0x84] sm:$0xf] }
  0x22   : > { %v1639_v47 = vor.u32 %v1817_v42, %v1636_v43  ;;  %v1516_v53 = vld [vmem:[%s2156_s22 + $0x88] sm:$0xf0]  ;;  %v1819_v54 = vld [vmem:[%s2156_s22 + $0x184] sm:$0xf]  ;;  %v2248_v3 = vld [vmem:[%s2469_s3] ss:$0 sm:$0xff] }
  0x23   : > { %v1644_v55 = vld [vmem:[%s2156_s22 + $0x188] sm:$0xf0]  ;;  %v1519_v59 = vor.u32 %v1787_v52, %v1516_v53  ;;  %v1821_v16 = vld [vmem:[%s2156_s22 + $0x194] sm:$0xf]  ;;  %v1652_v17 = vld [vmem:[%s2156_s22 + $0x198] sm:$0xf0] }
  0x24   : > { %722 = vmatpush.bf16.msra.mxu0 %v1836_v12  ;;  %2048 = vmatpush.bf16.msra.mxu2 %v1836_v12  ;;  %v1490_v12 = vld [vmem:[%s2156_s22 + $0x50] sm:$0xf]  ;;  %v1655_v29 = vor.u32 %v1821_v16, %v1652_v17  ;;  %v1791_v52 = vld [vmem:[%s2156_s22 + $0xa4] sm:$0xf]  ;;  %v1532_v53 = vld [vmem:[%s2156_s22 + $0xa8] sm:$0xf0] }
  0x25   : > { %891 = vmatpush.bf16.msra.mxu1 %v1844_v13  ;;  %2056 = vmatpush.bf16.msra.mxu3 %v1844_v13  ;;  %v1782_v13 = vld [vmem:[%s2156_s22 + $0x54] sm:$0xf0] }
  0x26   : > { %v1491_v20 = vor.u32 %v1782_v13, %v1490_v12  ;;  %v1822_v13 = vld [vmem:[%s2156_s22 + $0x194] sm:$0xf0] }
  0x28   : > { %723 = vmatpush.bf16.msra.mxu0 %v1835_v14  ;;  %2049 = vmatpush.bf16.msra.mxu2 %v1835_v14  ;;  %v1618_v14 = vld [vmem:[%s2156_s22 + $0x150] sm:$0xf] }
  0x29   : > { %892 = vmatpush.bf16.msra.mxu1 %v1843_v15  ;;  %2057 = vmatpush.bf16.msra.mxu3 %v1843_v15  ;;  %v1814_v15 = vld [vmem:[%s2156_s22 + $0x154] sm:$0xf0] }
  0x2a   : > { %v1619_v21 = vor.u32 %v1814_v15, %v1618_v14  ;;  %v1789_v14 = vld [vmem:[%s2156_s22 + $0x94] sm:$0xf]  ;;  %v1524_v15 = vld [vmem:[%s2156_s22 + $0x98] sm:$0xf0] }
  0x2b   : > { %724 = vmatmul.bf16.vlgmr.msra.gmra.mxu0 %v1451_v24  ;;  %804 = vmatmul.bf16.vlgmr.msra.gmra.mxu2 %v1579_v25  ;;  %v1498_v24 = vld [vmem:[%s2156_s22 + $0x60] sm:$0xf]  ;;  %v1784_v25 = vld [vmem:[%s2156_s22 + $0x64] sm:$0xf0] }
  0x2c   : > { %893 = vmatmul.bf16.vlgmr.msra.gmra.mxu1 %v1455_v26  ;;  %973 = vmatmul.bf16.vlgmr.msra.gmra.mxu3 %v1583_v27  ;;  %v1626_v26 = vld [vmem:[%s2156_s22 + $0x160] sm:$0xf]  ;;  %v1816_v27 = vld [vmem:[%s2156_s22 + $0x164] sm:$0xf0]  ;;  %v1499_v32 = vor.u32 %v1784_v25, %v1498_v24  ;;  %v1527_v24 = vor.u32 %v1789_v14, %v1524_v15 }
  0x2d   : > { %v1627_v33 = vor.u32 %v1816_v27, %v1626_v26 }
  0x3b   : > { %729 = vmatmul.bf16.gmra.mxu0 %v1459_v36  ;;  %809 = vmatmul.bf16.gmra.mxu2 %v1587_v37  ;;  %v1506_v36 = vld [vmem:[%s2156_s22 + $0x70] sm:$0xf]  ;;  %v1786_v37 = vld [vmem:[%s2156_s22 + $0x74] sm:$0xf0] }
  0x3c   : > { %898 = vmatmul.bf16.gmra.mxu1 %v1463_v38  ;;  %978 = vmatmul.bf16.gmra.mxu3 %v1591_v39  ;;  %v1634_v38 = vld [vmem:[%s2156_s22 + $0x170] sm:$0xf]  ;;  %v1818_v39 = vld [vmem:[%s2156_s22 + $0x174] sm:$0xf0]  ;;  %v1507_v44 = vor.u32 %v1786_v37, %v1506_v36 }
  0x3d   : > { %v1635_v45 = vor.u32 %v1818_v39, %v1634_v38 }
  0x4b   : > { %734 = vmatmul.bf16.gmra.mxu0 %v1467_v48  ;;  %814 = vmatmul.bf16.gmra.mxu2 %v1595_v49  ;;  %v1514_v48 = vld [vmem:[%s2156_s22 + $0x80] sm:$0xf]  ;;  %v1788_v49 = vld [vmem:[%s2156_s22 + $0x84] sm:$0xf0] }
  0x4c   : > { %903 = vmatmul.bf16.gmra.mxu1 %v1471_v50  ;;  %983 = vmatmul.bf16.gmra.mxu3 %v1599_v51  ;;  %v1642_v50 = vld [vmem:[%s2156_s22 + $0x180] sm:$0xf]  ;;  %v1820_v51 = vld [vmem:[%s2156_s22 + $0x184] sm:$0xf0]  ;;  %v1515_v56 = vor.u32 %v1788_v49, %v1514_v48 }
  0x4d   : > { %v1643_v57 = vor.u32 %v1820_v51, %v1642_v50  ;;  %v1658_v48 = vld [vmem:[%s2156_s22 + $0x1a0] sm:$0xf]  ;;  %v1824_v51 = vld [vmem:[%s2156_s22 + $0x1a4] sm:$0xf0] }
  0x5b   : > { %739 = vmatmul.bf16.gmra.mxu0 %v1475_v60  ;;  %819 = vmatmul.bf16.gmra.mxu2 %v1603_v61  ;;  %v1647_v60 = vor.u32 %v1819_v54, %v1644_v55  ;;  %v1823_v54 = vld [vmem:[%s2156_s22 + $0x1a4] sm:$0xf]  ;;  %v1660_v55 = vld [vmem:[%s2156_s22 + $0x1a8] sm:$0xf0] }
  0x5c   : > { %908 = vmatmul.bf16.gmra.mxu1 %v1479_v62  ;;  %988 = vmatmul.bf16.gmra.mxu3 %v1607_v63  ;;  %v2242_v63 = vld [vmem:[%s2468_s2] ss:$0 sm:$0xff] }
  0x6b   : > { %744 = vmatmul.bf16.gmra.mxu0 %v1483_v8  ;;  %824 = vmatmul.bf16.gmra.mxu2 %v1611_v9  ;;  %v1522_v8 = vld [vmem:[%s2156_s22 + $0x90] sm:$0xf]  ;;  %v1790_v9 = vld [vmem:[%s2156_s22 + $0x94] sm:$0xf0] }
  0x6c   : > { %913 = vmatmul.bf16.gmra.mxu1 %v1487_v10  ;;  %993 = vmatmul.bf16.gmra.mxu3 %v1615_v11  ;;  %v1650_v10 = vld [vmem:[%s2156_s22 + $0x190] sm:$0xf] }
  0x7b   : > { %749 = vmatmul.bf16.gmra.mxu0 %v1491_v20  ;;  %829 = vmatmul.bf16.gmra.mxu2 %v1619_v21 }
  0x7c   : > { %918 = vmatmul.bf16.gmra.mxu1 %v1495_v22  ;;  %998 = vmatmul.bf16.gmra.mxu3 %v1623_v23  ;;  %v1523_v22 = vor.u32 %v1790_v9, %v1522_v8  ;;  %v1651_v23 = vor.u32 %v1822_v13, %v1650_v10 }
  0x8b   : > { %754 = vmatmul.bf16.gmra.mxu0 %v1499_v32  ;;  %834 = vmatmul.bf16.gmra.mxu2 %v1627_v33 }
  0x8c   : > { %923 = vmatmul.bf16.gmra.mxu1 %v1503_v34  ;;  %1003 = vmatmul.bf16.gmra.mxu3 %v1631_v35 }
  0x9b   : > { %759 = vmatmul.bf16.gmra.mxu0 %v1507_v44  ;;  %839 = vmatmul.bf16.gmra.mxu2 %v1635_v45 }
  0x9c   : > { %928 = vmatmul.bf16.gmra.mxu1 %v1511_v46  ;;  %1008 = vmatmul.bf16.gmra.mxu3 %v1639_v47  ;;  %v1530_v46 = vld [vmem:[%s2156_s22 + $0xa0] sm:$0xf]  ;;  %v1792_v47 = vld [vmem:[%s2156_s22 + $0xa4] sm:$0xf0] }
  0xa8   : > { %v725_v58 = vpop.f32.mrf.mxu0 }
  0xa9   : > { %v894_v61 = vpop.f32.mrf.mxu1 }
  0xaa   : > { %v895_v62 = vadd.f32 %v894_v61, %v725_v58  ;;  %v1659_v61 = vor.u32 %v1824_v51, %v1658_v48 }
  0xab   : > { %764 = vmatmul.bf16.gmra.mxu0 %v1515_v56  ;;  %844 = vmatmul.bf16.gmra.mxu2 %v1643_v57 }
  0xac   : > { %933 = vmatmul.bf16.gmra.mxu1 %v1519_v59  ;;  %1013 = vmatmul.bf16.gmra.mxu3 %v1647_v60  ;;  %v1058_v2 = vmul.f32 %v2242_v63, %v895_v62  ;;  %v1531_v60 = vor.u32 %v1792_v47, %v1530_v46  ;;  %v1535_v62 = vor.u32 %v1791_v52, %v1532_v53 }
  0xae   : > { %v805_v0 = vpop.f32.mrf.mxu2  ;;  %v1126_v11 = vadd.f32 %v2248_v3, %v1058_v2 }
  0xaf   : > { %v974_v1 = vpop.f32.mrf.mxu3 }
  0xb0   : > { %v727_v4 = vpop.f32.mrf.mxu0  ;;  %v975_v6 = vadd.f32 %v974_v1, %v805_v0  ;;  %v1190_v25 = vmax.f32 %v1126_v11, 0.0 }
  0xb1   : > { %v896_v5 = vpop.f32.mrf.mxu1 }
  0xb2   : > { %v897_v7 = vadd.f32 %v896_v5, %v727_v4  ;;  %v1090_v18 = vmul.f32 %v2242_v63, %v975_v6  ;;  %v1663_v5 = vor.u32 %v1823_v54, %v1660_v55 }
  0xb4   : > { %v1059_v12 = vmul.f32 %v2242_v63, %v897_v7  ;;  %v1158_v31 = vadd.f32 %v2248_v3, %v1090_v18 }
  0xb6   : > { %v1127_v19 = vadd.f32 %v2248_v3, %v1059_v12  ;;  %v807_v20 = vpop.f32.mrf.mxu2  ;;  %v1222_v36 = vmax.f32 %v1158_v31, 0.0  ;;  %v1668_v31 = vld [vmem:[%s2156_s22 + $0x1b8] sm:$0xf0] }
  0xb7   : > { %v976_v21 = vpop.f32.mrf.mxu3 }
  0xb8   : > { %v1191_v26 = vmax.f32 %v1127_v19, 0.0  ;;  %v977_v27 = vadd.f32 %v976_v21, %v807_v20  ;;  %v730_v28 = vpop.f32.mrf.mxu0 }
  0xb9   : > { %v899_v30 = vpop.f32.mrf.mxu1 }
  0xba   : > { %v1854_v32 = vpack.c.bf16 %v1191_v26, %v1190_v25  ;;  %v1091_v33 = vmul.f32 %v2242_v63, %v977_v27  ;;  %v900_v35 = vadd.f32 %v899_v30, %v730_v28  ;;  %v1826_v27 = vld [vmem:[%s2156_s22 + $0x1b4] sm:$0xf0]  ;;  %v1793_v28 = vld [vmem:[%s2156_s22 + $0xb4] sm:$0xf] }
  0xbb   : > { %769 = vmatmul.bf16.gmra.mxu0 %v1523_v22  ;;  %849 = vmatmul.bf16.gmra.mxu2 %v1651_v23  ;;  %v1538_v22 = vld [vmem:[%s2156_s22 + $0xb0] sm:$0xf]  ;;  %v1794_v23 = vld [vmem:[%s2156_s22 + $0xb4] sm:$0xf0]  ;;  %v1825_v30 = vld [vmem:[%s2156_s22 + $0x1b4] sm:$0xf] }
  0xbc   : > { %1855 = vst [vmem:[%s2266_s11] sm:$0xff] %v1854_v32   ;;  %v1159_v34 = vadd.f32 %v2248_v3, %v1091_v33  ;;  %938 = vmatmul.bf16.gmra.mxu1 %v1527_v24  ;;  %1018 = vmatmul.bf16.gmra.mxu3 %v1655_v29  ;;  %v1060_v41 = vmul.f32 %v2242_v63, %v900_v35  ;;  %v1666_v24 = vld [vmem:[%s2156_s22 + $0x1b0] sm:$0xf]  ;;  %v1540_v29 = vld [vmem:[%s2156_s22 + $0xb8] sm:$0xf0] }
  0xbe   : > { %v1223_v37 = vmax.f32 %v1159_v34, 0.0  ;;  %v810_v38 = vpop.f32.mrf.mxu2  ;;  %v1128_v49 = vadd.f32 %v2248_v3, %v1060_v41 }
  0xbf   : > { %v979_v39 = vpop.f32.mrf.mxu3 }
  0xc0   : > { %v1934_v40 = vpack.c.bf16 %v1223_v37, %v1222_v36  ;;  %v732_v42 = vpop.f32.mrf.mxu0  ;;  %v980_v44 = vadd.f32 %v979_v39, %v810_v38  ;;  %v1192_v0 = vmax.f32 %v1128_v49, 0.0  ;;  %v1539_v36 = vor.u32 %v1794_v23, %v1538_v22 }
  0xc1   : > { %v901_v43 = vpop.f32.mrf.mxu1  ;;  %v1667_v37 = vor.u32 %v1826_v27, %v1666_v24  ;;  %v1543_v38 = vor.u32 %v1793_v28, %v1540_v29 }
  0xc2   : > { %2026 = vst [vmem:[%s2266_s11 + $0x80] sm:$0xff] %v1934_v40   ;;  %v902_v45 = vadd.f32 %v901_v43, %v732_v42  ;;  %v1092_v56 = vmul.f32 %v2242_v63, %v980_v44  ;;  %v1671_v43 = vor.u32 %v1825_v30, %v1668_v31 }
  0xc4   : > { %v1061_v50 = vmul.f32 %v2242_v63, %v902_v45  ;;  %v1160_v7 = vadd.f32 %v2248_v3, %v1092_v56 }
  0xc6   : > { %v1129_v57 = vadd.f32 %v2248_v3, %v1061_v50  ;;  %v812_v58 = vpop.f32.mrf.mxu2  ;;  %v1224_v12 = vmax.f32 %v1160_v7, 0.0  ;;  %v1676_v7 = vld [vmem:[%s2156_s22 + $0x1c8] sm:$0xf0] }
  0xc7   : > { %v981_v59 = vpop.f32.mrf.mxu3 }
  0xc8   : > { %v1193_v1 = vmax.f32 %v1129_v57, 0.0  ;;  %v982_v2 = vadd.f32 %v981_v59, %v812_v58  ;;  %v735_v4 = vpop.f32.mrf.mxu0 }
  0xc9   : > { %v904_v6 = vpop.f32.mrf.mxu1 }
  0xca   : > { %v1859_v8 = vpack.c.bf16 %v1193_v1, %v1192_v0  ;;  %v1093_v9 = vmul.f32 %v2242_v63, %v982_v2  ;;  %v905_v11 = vadd.f32 %v904_v6, %v735_v4  ;;  %v1828_v2 = vld [vmem:[%s2156_s22 + $0x1c4] sm:$0xf0]  ;;  %v1795_v4 = vld [vmem:[%s2156_s22 + $0xc4] sm:$0xf] }
  0xcb   : > { %774 = vmatmul.bf16.gmra.mxu0 %v1531_v60  ;;  %854 = vmatmul.bf16.gmra.mxu2 %v1659_v61  ;;  %v1546_v60 = vld [vmem:[%s2156_s22 + $0xc0] sm:$0xf]  ;;  %v1796_v61 = vld [vmem:[%s2156_s22 + $0xc4] sm:$0xf0]  ;;  %v1827_v6 = vld [vmem:[%s2156_s22 + $0x1c4] sm:$0xf] }
  0xcc   : > { %2011 = vst [vmem:[%s2266_s11 + $0x8] sm:$0xff] %v1859_v8   ;;  %v1161_v10 = vadd.f32 %v2248_v3, %v1093_v9  ;;  %943 = vmatmul.bf16.gmra.mxu1 %v1535_v62  ;;  %1023 = vmatmul.bf16.gmra.mxu3 %v1663_v5  ;;  %v1062_v17 = vmul.f32 %v2242_v63, %v905_v11  ;;  %v1674_v62 = vld [vmem:[%s2156_s22 + $0x1c0] sm:$0xf]  ;;  %v1548_v5 = vld [vmem:[%s2156_s22 + $0xc8] sm:$0xf0] }
  0xce   : > { %v1225_v13 = vmax.f32 %v1161_v10, 0.0  ;;  %v815_v14 = vpop.f32.mrf.mxu2  ;;  %v1130_v25 = vadd.f32 %v2248_v3, %v1062_v17 }
  0xcf   : > { %v984_v15 = vpop.f32.mrf.mxu3 }
  0xd0   : > { %v1939_v16 = vpack.c.bf16 %v1225_v13, %v1224_v12  ;;  %v737_v18 = vpop.f32.mrf.mxu0  ;;  %v985_v20 = vadd.f32 %v984_v15, %v815_v14  ;;  %v1194_v39 = vmax.f32 %v1130_v25, 0.0  ;;  %v1547_v12 = vor.u32 %v1796_v61, %v1546_v60 }
  0xd1   : > { %v906_v19 = vpop.f32.mrf.mxu1  ;;  %v1675_v13 = vor.u32 %v1828_v2, %v1674_v62  ;;  %v1551_v14 = vor.u32 %v1795_v4, %v1548_v5 }
  0xd2   : > { %2027 = vst [vmem:[%s2266_s11 + $0x88] sm:$0xff] %v1939_v16   ;;  %v907_v21 = vadd.f32 %v906_v19, %v737_v18  ;;  %v1094_v32 = vmul.f32 %v2242_v63, %v985_v20  ;;  %v1679_v19 = vor.u32 %v1827_v6, %v1676_v7 }
  0xd4   : > { %v1063_v26 = vmul.f32 %v2242_v63, %v907_v21  ;;  %v1162_v45 = vadd.f32 %v2248_v3, %v1094_v32 }
  0xd6   : > { %v1131_v33 = vadd.f32 %v2248_v3, %v1063_v26  ;;  %v817_v34 = vpop.f32.mrf.mxu2  ;;  %v1226_v50 = vmax.f32 %v1162_v45, 0.0  ;;  %v1684_v45 = vld [vmem:[%s2156_s22 + $0x1d8] sm:$0xf0] }
  0xd7   : > { %v986_v35 = vpop.f32.mrf.mxu3 }
  0xd8   : > { %v1195_v40 = vmax.f32 %v1131_v33, 0.0  ;;  %v987_v41 = vadd.f32 %v986_v35, %v817_v34  ;;  %v740_v42 = vpop.f32.mrf.mxu0 }
  0xd9   : > { %v909_v44 = vpop.f32.mrf.mxu1 }
  0xda   : > { %v1864_v46 = vpack.c.bf16 %v1195_v40, %v1194_v39  ;;  %v1095_v47 = vmul.f32 %v2242_v63, %v987_v41  ;;  %v910_v49 = vadd.f32 %v909_v44, %v740_v42  ;;  %v1830_v41 = vld [vmem:[%s2156_s22 + $0x1d4] sm:$0xf0]  ;;  %v1797_v42 = vld [vmem:[%s2156_s22 + $0xd4] sm:$0xf] }
  0xdb   : > { %779 = vmatmul.bf16.gmra.mxu0 %v1539_v36  ;;  %859 = vmatmul.bf16.gmra.mxu2 %v1667_v37  ;;  %v1554_v36 = vld [vmem:[%s2156_s22 + $0xd0] sm:$0xf]  ;;  %v1798_v37 = vld [vmem:[%s2156_s22 + $0xd4] sm:$0xf0]  ;;  %v1829_v44 = vld [vmem:[%s2156_s22 + $0x1d4] sm:$0xf] }
  0xdc   : > { %2012 = vst [vmem:[%s2266_s11 + $0x10] sm:$0xff] %v1864_v46   ;;  %v1163_v48 = vadd.f32 %v2248_v3, %v1095_v47  ;;  %948 = vmatmul.bf16.gmra.mxu1 %v1543_v38  ;;  %1028 = vmatmul.bf16.gmra.mxu3 %v1671_v43  ;;  %v1064_v55 = vmul.f32 %v2242_v63, %v910_v49  ;;  %v1682_v38 = vld [vmem:[%s2156_s22 + $0x1d0] sm:$0xf]  ;;  %v1556_v43 = vld [vmem:[%s2156_s22 + $0xd8] sm:$0xf0] }
  0xde   : > { %v1227_v51 = vmax.f32 %v1163_v48, 0.0  ;;  %v820_v52 = vpop.f32.mrf.mxu2  ;;  %v1132_v0 = vadd.f32 %v2248_v3, %v1064_v55 }
  0xdf   : > { %v989_v53 = vpop.f32.mrf.mxu3 }
  0xe0   : > { %v1944_v54 = vpack.c.bf16 %v1227_v51, %v1226_v50  ;;  %v742_v56 = vpop.f32.mrf.mxu0  ;;  %v990_v58 = vadd.f32 %v989_v53, %v820_v52  ;;  %v1196_v15 = vmax.f32 %v1132_v0, 0.0  ;;  %v1555_v50 = vor.u32 %v1798_v37, %v1554_v36 }
  0xe1   : > { %v911_v57 = vpop.f32.mrf.mxu1  ;;  %v1683_v51 = vor.u32 %v1830_v41, %v1682_v38  ;;  %v1559_v52 = vor.u32 %v1797_v42, %v1556_v43 }
  0xe2   : > { %2028 = vst [vmem:[%s2266_s11 + $0x90] sm:$0xff] %v1944_v54   ;;  %v912_v59 = vadd.f32 %v911_v57, %v742_v56  ;;  %v1096_v8 = vmul.f32 %v2242_v63, %v990_v58  ;;  %v1687_v57 = vor.u32 %v1829_v44, %v1684_v45 }
  0xe4   : > { %v1065_v1 = vmul.f32 %v2242_v63, %v912_v59  ;;  %v1164_v21 = vadd.f32 %v2248_v3, %v1096_v8 }
  0xe6   : > { %v1133_v9 = vadd.f32 %v2248_v3, %v1065_v1  ;;  %v822_v10 = vpop.f32.mrf.mxu2  ;;  %v1228_v26 = vmax.f32 %v1164_v21, 0.0  ;;  %v1692_v21 = vld [vmem:[%s2156_s22 + $0x1e8] sm:$0xf0] }
  0xe7   : > { %v991_v11 = vpop.f32.mrf.mxu3 }
  0xe8   : > { %v1197_v16 = vmax.f32 %v1133_v9, 0.0  ;;  %v992_v17 = vadd.f32 %v991_v11, %v822_v10  ;;  %v745_v18 = vpop.f32.mrf.mxu0 }
  0xe9   : > { %v914_v20 = vpop.f32.mrf.mxu1 }
  0xea   : > { %v1869_v22 = vpack.c.bf16 %v1197_v16, %v1196_v15  ;;  %v1097_v23 = vmul.f32 %v2242_v63, %v992_v17  ;;  %v915_v25 = vadd.f32 %v914_v20, %v745_v18  ;;  %v1832_v17 = vld [vmem:[%s2156_s22 + $0x1e4] sm:$0xf0]  ;;  %v1799_v18 = vld [vmem:[%s2156_s22 + $0xe4] sm:$0xf] }
  0xeb   : > { %784 = vmatmul.bf16.gmra.mxu0 %v1547_v12  ;;  %864 = vmatmul.bf16.gmra.mxu2 %v1675_v13  ;;  %v1562_v12 = vld [vmem:[%s2156_s22 + $0xe0] sm:$0xf]  ;;  %v1800_v13 = vld [vmem:[%s2156_s22 + $0xe4] sm:$0xf0]  ;;  %v1831_v20 = vld [vmem:[%s2156_s22 + $0x1e4] sm:$0xf] }
  0xec   : > { %2013 = vst [vmem:[%s2266_s11 + $0x18] sm:$0xff] %v1869_v22   ;;  %v1165_v24 = vadd.f32 %v2248_v3, %v1097_v23  ;;  %953 = vmatmul.bf16.gmra.mxu1 %v1551_v14  ;;  %1033 = vmatmul.bf16.gmra.mxu3 %v1679_v19  ;;  %v1066_v31 = vmul.f32 %v2242_v63, %v915_v25  ;;  %v1690_v14 = vld [vmem:[%s2156_s22 + $0x1e0] sm:$0xf]  ;;  %v1564_v19 = vld [vmem:[%s2156_s22 + $0xe8] sm:$0xf0] }
  0xee   : > { %v1229_v27 = vmax.f32 %v1165_v24, 0.0  ;;  %v825_v28 = vpop.f32.mrf.mxu2  ;;  %v1134_v39 = vadd.f32 %v2248_v3, %v1066_v31 }
  0xef   : > { %v994_v29 = vpop.f32.mrf.mxu3 }
  0xf0   : > { %v1949_v30 = vpack.c.bf16 %v1229_v27, %v1228_v26  ;;  %v747_v32 = vpop.f32.mrf.mxu0  ;;  %v995_v34 = vadd.f32 %v994_v29, %v825_v28  ;;  %v1198_v53 = vmax.f32 %v1134_v39, 0.0  ;;  %v1563_v26 = vor.u32 %v1800_v13, %v1562_v12 }
  0xf1   : > { %v916_v33 = vpop.f32.mrf.mxu1  ;;  %v1691_v27 = vor.u32 %v1832_v17, %v1690_v14  ;;  %v1567_v28 = vor.u32 %v1799_v18, %v1564_v19 }
  0xf2   : > { %2029 = vst [vmem:[%s2266_s11 + $0x98] sm:$0xff] %v1949_v30   ;;  %v917_v35 = vadd.f32 %v916_v33, %v747_v32  ;;  %v1098_v46 = vmul.f32 %v2242_v63, %v995_v34  ;;  %v1695_v33 = vor.u32 %v1831_v20, %v1692_v21 }
  0xf4   : > { %v1067_v40 = vmul.f32 %v2242_v63, %v917_v35  ;;  %v1166_v59 = vadd.f32 %v2248_v3, %v1098_v46 }
  0xf6   : > { %v1135_v47 = vadd.f32 %v2248_v3, %v1067_v40  ;;  %v827_v48 = vpop.f32.mrf.mxu2  ;;  %v1230_v1 = vmax.f32 %v1166_v59, 0.0  ;;  %v1700_v59 = vld [vmem:[%s2156_s22 + $0x1f8] sm:$0xf0] }
  0xf7   : > { %v996_v49 = vpop.f32.mrf.mxu3 }
  0xf8   : > { %v1199_v54 = vmax.f32 %v1135_v47, 0.0  ;;  %v997_v55 = vadd.f32 %v996_v49, %v827_v48  ;;  %v750_v56 = vpop.f32.mrf.mxu0 }
  0xf9   : > { %v919_v58 = vpop.f32.mrf.mxu1 }
  0xfa   : > { %v1874_v60 = vpack.c.bf16 %v1199_v54, %v1198_v53  ;;  %v1099_v61 = vmul.f32 %v2242_v63, %v997_v55  ;;  %v920_v0 = vadd.f32 %v919_v58, %v750_v56  ;;  %v1834_v55 = vld [vmem:[%s2156_s22 + $0x1f4] sm:$0xf0]  ;;  %v1801_v56 = vld [vmem:[%s2156_s22 + $0xf4] sm:$0xf] }
  0xfb   : > { %789 = vmatmul.bf16.gmra.mxu0 %v1555_v50  ;;  %869 = vmatmul.bf16.gmra.mxu2 %v1683_v51  ;;  %v1570_v50 = vld [vmem:[%s2156_s22 + $0xf0] sm:$0xf]  ;;  %v1802_v51 = vld [vmem:[%s2156_s22 + $0xf4] sm:$0xf0]  ;;  %v1833_v58 = vld [vmem:[%s2156_s22 + $0x1f4] sm:$0xf] }
  0xfc   : > { %2014 = vst [vmem:[%s2266_s11 + $0x20] sm:$0xff] %v1874_v60   ;;  %v1167_v62 = vadd.f32 %v2248_v3, %v1099_v61  ;;  %958 = vmatmul.bf16.gmra.mxu1 %v1559_v52  ;;  %1038 = vmatmul.bf16.gmra.mxu3 %v1687_v57  ;;  %v1068_v7 = vmul.f32 %v2242_v63, %v920_v0  ;;  %v1698_v52 = vld [vmem:[%s2156_s22 + $0x1f0] sm:$0xf]  ;;  %v1572_v57 = vld [vmem:[%s2156_s22 + $0xf8] sm:$0xf0] }
  0xfe   : > { %v1231_v2 = vmax.f32 %v1167_v62, 0.0  ;;  %v830_v4 = vpop.f32.mrf.mxu2  ;;  %v1136_v15 = vadd.f32 %v2248_v3, %v1068_v7 }
  0xff   : > { %v999_v5 = vpop.f32.mrf.mxu3 }
 0x100   : > { %v1954_v6 = vpack.c.bf16 %v1231_v2, %v1230_v1  ;;  %v752_v8 = vpop.f32.mrf.mxu0  ;;  %v1000_v10 = vadd.f32 %v999_v5, %v830_v4  ;;  %v1200_v29 = vmax.f32 %v1136_v15, 0.0  ;;  %v1571_v1 = vor.u32 %v1802_v51, %v1570_v50 }
 0x101   : > { %v921_v9 = vpop.f32.mrf.mxu1  ;;  %v1699_v2 = vor.u32 %v1834_v55, %v1698_v52  ;;  %v1575_v4 = vor.u32 %v1801_v56, %v1572_v57 }
 0x102   : > { %2030 = vst [vmem:[%s2266_s11 + $0xa0] sm:$0xff] %v1954_v6   ;;  %v922_v11 = vadd.f32 %v921_v9, %v752_v8  ;;  %v1100_v22 = vmul.f32 %v2242_v63, %v1000_v10  ;;  %v1703_v9 = vor.u32 %v1833_v58, %v1700_v59 }
 0x104   : > { %v1069_v16 = vmul.f32 %v2242_v63, %v922_v11  ;;  %v1168_v35 = vadd.f32 %v2248_v3, %v1100_v22 }
 0x106   : > { %v1137_v23 = vadd.f32 %v2248_v3, %v1069_v16  ;;  %v832_v24 = vpop.f32.mrf.mxu2  ;;  %v1232_v40 = vmax.f32 %v1168_v35, 0.0 }
 0x107   : > { %v1001_v25 = vpop.f32.mrf.mxu3 }
 0x108   : > { %v1201_v30 = vmax.f32 %v1137_v23, 0.0  ;;  %v1002_v31 = vadd.f32 %v1001_v25, %v832_v24  ;;  %v755_v32 = vpop.f32.mrf.mxu0 }
 0x109   : > { %v924_v34 = vpop.f32.mrf.mxu1 }
 0x10a   : > { %v1879_v36 = vpack.c.bf16 %v1201_v30, %v1200_v29  ;;  %v1101_v37 = vmul.f32 %v2242_v63, %v1002_v31  ;;  %v925_v39 = vadd.f32 %v924_v34, %v755_v32 }
 0x10b   : > { %794 = vmatmul.bf16.gmra.mxu0 %v1563_v26  ;;  %874 = vmatmul.bf16.gmra.mxu2 %v1691_v27 }
 0x10c   : > { %2015 = vst [vmem:[%s2266_s11 + $0x28] sm:$0xff] %v1879_v36   ;;  %v1169_v38 = vadd.f32 %v2248_v3, %v1101_v37  ;;  %963 = vmatmul.bf16.gmra.mxu1 %v1567_v28  ;;  %1043 = vmatmul.bf16.gmra.mxu3 %v1695_v33  ;;  %v1070_v45 = vmul.f32 %v2242_v63, %v925_v39 }
 0x10e   : > { %v1233_v41 = vmax.f32 %v1169_v38, 0.0  ;;  %v835_v42 = vpop.f32.mrf.mxu2  ;;  %v1138_v53 = vadd.f32 %v2248_v3, %v1070_v45 }
 0x10f   : > { %v1004_v43 = vpop.f32.mrf.mxu3 }
 0x110   : > { %v1959_v44 = vpack.c.bf16 %v1233_v41, %v1232_v40  ;;  %v757_v46 = vpop.f32.mrf.mxu0  ;;  %v1005_v48 = vadd.f32 %v1004_v43, %v835_v42  ;;  %v1202_v5 = vmax.f32 %v1138_v53, 0.0 }
 0x111   : > { %v926_v47 = vpop.f32.mrf.mxu1 }
 0x112   : > { %2031 = vst [vmem:[%s2266_s11 + $0xa8] sm:$0xff] %v1959_v44   ;;  %v927_v49 = vadd.f32 %v926_v47, %v757_v46  ;;  %v1102_v60 = vmul.f32 %v2242_v63, %v1005_v48 }
 0x114   : > { %v1071_v54 = vmul.f32 %v2242_v63, %v927_v49  ;;  %v1170_v11 = vadd.f32 %v2248_v3, %v1102_v60 }
 0x116   : > { %v1139_v61 = vadd.f32 %v2248_v3, %v1071_v54  ;;  %v837_v62 = vpop.f32.mrf.mxu2  ;;  %v1234_v16 = vmax.f32 %v1170_v11, 0.0 }
 0x117   : > { %v1006_v0 = vpop.f32.mrf.mxu3 }
 0x118   : > { %v1203_v6 = vmax.f32 %v1139_v61, 0.0  ;;  %v1007_v7 = vadd.f32 %v1006_v0, %v837_v62  ;;  %v760_v8 = vpop.f32.mrf.mxu0 }
 0x119   : > { %v929_v10 = vpop.f32.mrf.mxu1 }
 0x11a   : > { %v1884_v12 = vpack.c.bf16 %v1203_v6, %v1202_v5  ;;  %v1103_v13 = vmul.f32 %v2242_v63, %v1007_v7  ;;  %v930_v15 = vadd.f32 %v929_v10, %v760_v8 }
 0x11b   : > { %799 = vmatmul.bf16.gmra.mxu0 %v1571_v1  ;;  %879 = vmatmul.bf16.gmra.mxu2 %v1699_v2 }
 0x11c   : > { %2016 = vst [vmem:[%s2266_s11 + $0x30] sm:$0xff] %v1884_v12   ;;  %v1171_v14 = vadd.f32 %v2248_v3, %v1103_v13  ;;  %968 = vmatmul.bf16.gmra.mxu1 %v1575_v4  ;;  %1048 = vmatmul.bf16.gmra.mxu3 %v1703_v9  ;;  %v1072_v21 = vmul.f32 %v2242_v63, %v930_v15 }
 0x11e   : > { %v1235_v17 = vmax.f32 %v1171_v14, 0.0  ;;  %v840_v18 = vpop.f32.mrf.mxu2  ;;  %v1140_v26 = vadd.f32 %v2248_v3, %v1072_v21 }
 0x11f   : > { %v1009_v19 = vpop.f32.mrf.mxu3 }
 0x120   : > { %v1964_v20 = vpack.c.bf16 %v1235_v17, %v1234_v16  ;;  %v762_v22 = vpop.f32.mrf.mxu0  ;;  %v1010_v24 = vadd.f32 %v1009_v19, %v840_v18  ;;  %v1204_v32 = vmax.f32 %v1140_v26, 0.0 }
 0x121   : > { %v931_v23 = vpop.f32.mrf.mxu1 }
 0x122   : > { %2032 = vst [vmem:[%s2266_s11 + $0xb0] sm:$0xff] %v1964_v20   ;;  %v932_v25 = vadd.f32 %v931_v23, %v762_v22  ;;  %v1104_v28 = vmul.f32 %v2242_v63, %v1010_v24 }
 0x124   : > { %v1073_v27 = vmul.f32 %v2242_v63, %v932_v25  ;;  %v1172_v37 = vadd.f32 %v2248_v3, %v1104_v28 }
 0x126   : > { %v1141_v29 = vadd.f32 %v2248_v3, %v1073_v27  ;;  %v842_v30 = vpop.f32.mrf.mxu2  ;;  %v1236_v42 = vmax.f32 %v1172_v37, 0.0 }
 0x127   : > { %v1011_v31 = vpop.f32.mrf.mxu3 }
 0x128   : > { %v1205_v33 = vmax.f32 %v1141_v29, 0.0  ;;  %v1012_v34 = vadd.f32 %v1011_v31, %v842_v30  ;;  %v765_v35 = vpop.f32.mrf.mxu0 }
 0x129   : > { %v934_v36 = vpop.f32.mrf.mxu1 }
 0x12a   : > { %v1889_v38 = vpack.c.bf16 %v1205_v33, %v1204_v32  ;;  %v1105_v39 = vmul.f32 %v2242_v63, %v1012_v34  ;;  %v935_v41 = vadd.f32 %v934_v36, %v765_v35 }
 0x12c   : > { %2017 = vst [vmem:[%s2266_s11 + $0x38] sm:$0xff] %v1889_v38   ;;  %v1173_v40 = vadd.f32 %v2248_v3, %v1105_v39  ;;  %v1074_v47 = vmul.f32 %v2242_v63, %v935_v41 }
 0x12e   : > { %v1237_v43 = vmax.f32 %v1173_v40, 0.0  ;;  %v845_v44 = vpop.f32.mrf.mxu2  ;;  %v1142_v52 = vadd.f32 %v2248_v3, %v1074_v47 }
 0x12f   : > { %v1014_v45 = vpop.f32.mrf.mxu3 }
 0x130   : > { %v1969_v46 = vpack.c.bf16 %v1237_v43, %v1236_v42  ;;  %v767_v48 = vpop.f32.mrf.mxu0  ;;  %v1015_v50 = vadd.f32 %v1014_v45, %v845_v44  ;;  %v1206_v58 = vmax.f32 %v1142_v52, 0.0 }
 0x131   : > { %v936_v49 = vpop.f32.mrf.mxu1 }
 0x132   : > { %2033 = vst [vmem:[%s2266_s11 + $0xb8] sm:$0xff] %v1969_v46   ;;  %v937_v51 = vadd.f32 %v936_v49, %v767_v48  ;;  %v1106_v54 = vmul.f32 %v2242_v63, %v1015_v50 }
 0x134   : > { %v1075_v53 = vmul.f32 %v2242_v63, %v937_v51  ;;  %v1174_v0 = vadd.f32 %v2248_v3, %v1106_v54 }
 0x136   : > { %v1143_v55 = vadd.f32 %v2248_v3, %v1075_v53  ;;  %v847_v56 = vpop.f32.mrf.mxu2  ;;  %v1238_v6 = vmax.f32 %v1174_v0, 0.0 }
 0x137   : > { %v1016_v57 = vpop.f32.mrf.mxu3 }
 0x138   : > { %v1207_v59 = vmax.f32 %v1143_v55, 0.0  ;;  %v1017_v60 = vadd.f32 %v1016_v57, %v847_v56  ;;  %v770_v61 = vpop.f32.mrf.mxu0 }
 0x139   : > { %v939_v62 = vpop.f32.mrf.mxu1 }
 0x13a   : > { %v1894_v1 = vpack.c.bf16 %v1207_v59, %v1206_v58  ;;  %v1107_v2 = vmul.f32 %v2242_v63, %v1017_v60  ;;  %v940_v5 = vadd.f32 %v939_v62, %v770_v61 }
 0x13c   : > { %2018 = vst [vmem:[%s2266_s11 + $0x40] sm:$0xff] %v1894_v1   ;;  %v1175_v4 = vadd.f32 %v2248_v3, %v1107_v2  ;;  %v1076_v11 = vmul.f32 %v2242_v63, %v940_v5 }
 0x13e   : > { %v1239_v7 = vmax.f32 %v1175_v4, 0.0  ;;  %v850_v8 = vpop.f32.mrf.mxu2  ;;  %v1144_v16 = vadd.f32 %v2248_v3, %v1076_v11 }
 0x13f   : > { %v1019_v9 = vpop.f32.mrf.mxu3 }
 0x140   : > { %v1974_v10 = vpack.c.bf16 %v1239_v7, %v1238_v6  ;;  %v772_v12 = vpop.f32.mrf.mxu0  ;;  %v1020_v14 = vadd.f32 %v1019_v9, %v850_v8  ;;  %v1208_v22 = vmax.f32 %v1144_v16, 0.0 }
 0x141   : > { %v941_v13 = vpop.f32.mrf.mxu1 }
 0x142   : > { %2034 = vst [vmem:[%s2266_s11 + $0xc0] sm:$0xff] %v1974_v10   ;;  %v942_v15 = vadd.f32 %v941_v13, %v772_v12  ;;  %v1108_v18 = vmul.f32 %v2242_v63, %v1020_v14 }
 0x144   : > { %v1077_v17 = vmul.f32 %v2242_v63, %v942_v15  ;;  %v1176_v27 = vadd.f32 %v2248_v3, %v1108_v18 }
 0x146   : > { %v1145_v19 = vadd.f32 %v2248_v3, %v1077_v17  ;;  %v852_v20 = vpop.f32.mrf.mxu2  ;;  %v1240_v32 = vmax.f32 %v1176_v27, 0.0 }
 0x147   : > { %v1021_v21 = vpop.f32.mrf.mxu3 }
 0x148   : > { %v1209_v23 = vmax.f32 %v1145_v19, 0.0  ;;  %v1022_v24 = vadd.f32 %v1021_v21, %v852_v20  ;;  %v775_v25 = vpop.f32.mrf.mxu0 }
 0x149   : > { %v944_v26 = vpop.f32.mrf.mxu1 }
 0x14a   : > { %v1899_v28 = vpack.c.bf16 %v1209_v23, %v1208_v22  ;;  %v1109_v29 = vmul.f32 %v2242_v63, %v1022_v24  ;;  %v945_v31 = vadd.f32 %v944_v26, %v775_v25 }
 0x14c   : > { %2019 = vst [vmem:[%s2266_s11 + $0x48] sm:$0xff] %v1899_v28   ;;  %v1177_v30 = vadd.f32 %v2248_v3, %v1109_v29  ;;  %v1078_v37 = vmul.f32 %v2242_v63, %v945_v31 }
 0x14e   : > { %v1241_v33 = vmax.f32 %v1177_v30, 0.0  ;;  %v855_v34 = vpop.f32.mrf.mxu2  ;;  %v1146_v42 = vadd.f32 %v2248_v3, %v1078_v37 }
 0x14f   : > { %v1024_v35 = vpop.f32.mrf.mxu3 }
 0x150   : > { %v1979_v36 = vpack.c.bf16 %v1241_v33, %v1240_v32  ;;  %v777_v38 = vpop.f32.mrf.mxu0  ;;  %v1025_v40 = vadd.f32 %v1024_v35, %v855_v34  ;;  %v1210_v48 = vmax.f32 %v1146_v42, 0.0 }
 0x151   : > { %v946_v39 = vpop.f32.mrf.mxu1 }
 0x152   : > { %2035 = vst [vmem:[%s2266_s11 + $0xc8] sm:$0xff] %v1979_v36   ;;  %v947_v41 = vadd.f32 %v946_v39, %v777_v38  ;;  %v1110_v44 = vmul.f32 %v2242_v63, %v1025_v40 }
 0x154   : > { %v1079_v43 = vmul.f32 %v2242_v63, %v947_v41  ;;  %v1178_v53 = vadd.f32 %v2248_v3, %v1110_v44 }
 0x156   : > { %v1147_v45 = vadd.f32 %v2248_v3, %v1079_v43  ;;  %v857_v46 = vpop.f32.mrf.mxu2  ;;  %v1242_v58 = vmax.f32 %v1178_v53, 0.0 }
 0x157   : > { %v1026_v47 = vpop.f32.mrf.mxu3 }
 0x158   : > { %v1211_v49 = vmax.f32 %v1147_v45, 0.0  ;;  %v1027_v50 = vadd.f32 %v1026_v47, %v857_v46  ;;  %v780_v51 = vpop.f32.mrf.mxu0 }
 0x159   : > { %v949_v52 = vpop.f32.mrf.mxu1 }
 0x15a   : > { %v1904_v54 = vpack.c.bf16 %v1211_v49, %v1210_v48  ;;  %v1111_v55 = vmul.f32 %v2242_v63, %v1027_v50  ;;  %v950_v57 = vadd.f32 %v949_v52, %v780_v51 }
 0x15c   : > { %2020 = vst [vmem:[%s2266_s11 + $0x50] sm:$0xff] %v1904_v54   ;;  %v1179_v56 = vadd.f32 %v2248_v3, %v1111_v55  ;;  %v1080_v0 = vmul.f32 %v2242_v63, %v950_v57 }
 0x15e   : > { %v1243_v59 = vmax.f32 %v1179_v56, 0.0  ;;  %v860_v60 = vpop.f32.mrf.mxu2  ;;  %v1148_v6 = vadd.f32 %v2248_v3, %v1080_v0 }
 0x15f   : > { %v1029_v61 = vpop.f32.mrf.mxu3 }
 0x160   : > { %v1984_v62 = vpack.c.bf16 %v1243_v59, %v1242_v58  ;;  %v782_v1 = vpop.f32.mrf.mxu0  ;;  %v1030_v4 = vadd.f32 %v1029_v61, %v860_v60  ;;  %v1212_v12 = vmax.f32 %v1148_v6, 0.0 }
 0x161   : > { %v951_v2 = vpop.f32.mrf.mxu1 }
 0x162   : > { %2036 = vst [vmem:[%s2266_s11 + $0xd0] sm:$0xff] %v1984_v62   ;;  %v952_v5 = vadd.f32 %v951_v2, %v782_v1  ;;  %v1112_v8 = vmul.f32 %v2242_v63, %v1030_v4 }
 0x164   : > { %v1081_v7 = vmul.f32 %v2242_v63, %v952_v5  ;;  %v1180_v17 = vadd.f32 %v2248_v3, %v1112_v8 }
 0x166   : > { %v1149_v9 = vadd.f32 %v2248_v3, %v1081_v7  ;;  %v862_v10 = vpop.f32.mrf.mxu2  ;;  %v1244_v22 = vmax.f32 %v1180_v17, 0.0 }
 0x167   : > { %v1031_v11 = vpop.f32.mrf.mxu3 }
 0x168   : > { %v1213_v13 = vmax.f32 %v1149_v9, 0.0  ;;  %v1032_v14 = vadd.f32 %v1031_v11, %v862_v10  ;;  %v785_v15 = vpop.f32.mrf.mxu0 }
 0x169   : > { %v954_v16 = vpop.f32.mrf.mxu1 }
 0x16a   : > { %v1909_v18 = vpack.c.bf16 %v1213_v13, %v1212_v12  ;;  %v1113_v19 = vmul.f32 %v2242_v63, %v1032_v14  ;;  %v955_v21 = vadd.f32 %v954_v16, %v785_v15 }
 0x16c   : > { %2021 = vst [vmem:[%s2266_s11 + $0x58] sm:$0xff] %v1909_v18   ;;  %v1181_v20 = vadd.f32 %v2248_v3, %v1113_v19  ;;  %v1082_v27 = vmul.f32 %v2242_v63, %v955_v21 }
 0x16e   : > { %v1245_v23 = vmax.f32 %v1181_v20, 0.0  ;;  %v865_v24 = vpop.f32.mrf.mxu2  ;;  %v1150_v32 = vadd.f32 %v2248_v3, %v1082_v27 }
 0x16f   : > { %v1034_v25 = vpop.f32.mrf.mxu3 }
 0x170   : > { %v1989_v26 = vpack.c.bf16 %v1245_v23, %v1244_v22  ;;  %v787_v28 = vpop.f32.mrf.mxu0  ;;  %v1035_v30 = vadd.f32 %v1034_v25, %v865_v24  ;;  %v1214_v38 = vmax.f32 %v1150_v32, 0.0  ;;  %v2068_v23 = vld [vmem:[%s2468_s2] ss:$0 sm:$0xff] }
 0x171   : > { %v956_v29 = vpop.f32.mrf.mxu1 }
 0x172   : > { %2037 = vst [vmem:[%s2266_s11 + $0xd8] sm:$0xff] %v1989_v26   ;;  %v957_v31 = vadd.f32 %v956_v29, %v787_v28  ;;  %v1114_v34 = vmul.f32 %v2242_v63, %v1035_v30  ;;  %v2069_v26 = vld [vmem:[%s2469_s3] ss:$0 sm:$0xff] }
 0x174   : > { %v1083_v33 = vmul.f32 %v2242_v63, %v957_v31  ;;  %v1182_v43 = vadd.f32 %v2248_v3, %v1114_v34 }
 0x176   : > { %v1151_v35 = vadd.f32 %v2248_v3, %v1083_v33  ;;  %v867_v36 = vpop.f32.mrf.mxu2  ;;  %v1246_v48 = vmax.f32 %v1182_v43, 0.0 }
 0x177   : > { %v1036_v37 = vpop.f32.mrf.mxu3 }
 0x178   : > { %v1215_v39 = vmax.f32 %v1151_v35, 0.0  ;;  %v1037_v40 = vadd.f32 %v1036_v37, %v867_v36  ;;  %v790_v41 = vpop.f32.mrf.mxu0 }
 0x179   : > { %v959_v42 = vpop.f32.mrf.mxu1 }
 0x17a   : > { %v1914_v44 = vpack.c.bf16 %v1215_v39, %v1214_v38  ;;  %v1115_v45 = vmul.f32 %v2242_v63, %v1037_v40  ;;  %v960_v47 = vadd.f32 %v959_v42, %v790_v41 }
 0x17c   : > { %2022 = vst [vmem:[%s2266_s11 + $0x60] sm:$0xff] %v1914_v44   ;;  %v1183_v46 = vadd.f32 %v2248_v3, %v1115_v45  ;;  %v1084_v53 = vmul.f32 %v2242_v63, %v960_v47 }
 0x17e   : > { %v1247_v49 = vmax.f32 %v1183_v46, 0.0  ;;  %v870_v50 = vpop.f32.mrf.mxu2  ;;  %v1152_v58 = vadd.f32 %v2248_v3, %v1084_v53 }
 0x17f   : > { %v1039_v51 = vpop.f32.mrf.mxu3 }
 0x180   : > { %v1994_v52 = vpack.c.bf16 %v1247_v49, %v1246_v48  ;;  %v792_v54 = vpop.f32.mrf.mxu0  ;;  %v1040_v56 = vadd.f32 %v1039_v51, %v870_v50  ;;  %v1216_v1 = vmax.f32 %v1152_v58, 0.0 }
 0x181   : > { %v961_v55 = vpop.f32.mrf.mxu1 }
 0x182   : > { %2038 = vst [vmem:[%s2266_s11 + $0xe0] sm:$0xff] %v1994_v52   ;;  %v962_v57 = vadd.f32 %v961_v55, %v792_v54  ;;  %v1116_v60 = vmul.f32 %v2242_v63, %v1040_v56 }
 0x184   : > { %v1085_v59 = vmul.f32 %v2242_v63, %v962_v57  ;;  %v1184_v7 = vadd.f32 %v2248_v3, %v1116_v60 }
 0x186   : > { %v1153_v61 = vadd.f32 %v2248_v3, %v1085_v59  ;;  %v872_v62 = vpop.f32.mrf.mxu2  ;;  %v1248_v12 = vmax.f32 %v1184_v7, 0.0 }
 0x187   : > { %v1041_v0 = vpop.f32.mrf.mxu3 }
 0x188   : > { %v1217_v2 = vmax.f32 %v1153_v61, 0.0  ;;  %v1042_v4 = vadd.f32 %v1041_v0, %v872_v62  ;;  %v795_v5 = vpop.f32.mrf.mxu0 }
 0x189   : > { %v964_v6 = vpop.f32.mrf.mxu1 }
 0x18a   : > { %v1919_v8 = vpack.c.bf16 %v1217_v2, %v1216_v1  ;;  %v1117_v9 = vmul.f32 %v2242_v63, %v1042_v4  ;;  %v965_v11 = vadd.f32 %v964_v6, %v795_v5 }
 0x18c   : > { %2023 = vst [vmem:[%s2266_s11 + $0x68] sm:$0xff] %v1919_v8   ;;  %v1185_v10 = vadd.f32 %v2248_v3, %v1117_v9  ;;  %v1086_v17 = vmul.f32 %v2242_v63, %v965_v11 }
 0x18e   : > { %v1249_v13 = vmax.f32 %v1185_v10, 0.0  ;;  %v875_v14 = vpop.f32.mrf.mxu2  ;;  %v1154_v22 = vadd.f32 %v2248_v3, %v1086_v17 }
 0x18f   : > { %v1044_v15 = vpop.f32.mrf.mxu3 }
 0x190   : > { %v1999_v16 = vpack.c.bf16 %v1249_v13, %v1248_v12  ;;  %v797_v18 = vpop.f32.mrf.mxu0  ;;  %v1045_v20 = vadd.f32 %v1044_v15, %v875_v14  ;;  %v1218_v29 = vmax.f32 %v1154_v22, 0.0 }
 0x191   : > { %v966_v19 = vpop.f32.mrf.mxu1 }
 0x192   : > { %2039 = vst [vmem:[%s2266_s11 + $0xe8] sm:$0xff] %v1999_v16   ;;  %v967_v21 = vadd.f32 %v966_v19, %v797_v18  ;;  %v1118_v25 = vmul.f32 %v2068_v23, %v1045_v20 }
 0x194   : > { %v1087_v24 = vmul.f32 %v2068_v23, %v967_v21  ;;  %v1186_v33 = vadd.f32 %v2069_v26, %v1118_v25 }
 0x196   : > { %v1155_v27 = vadd.f32 %v2069_v26, %v1087_v24  ;;  %v877_v63 = vpop.f32.mrf.mxu2  ;;  %v1250_v38 = vmax.f32 %v1186_v33, 0.0 }
 0x197   : > { %v1046_v28 = vpop.f32.mrf.mxu3 }
 0x198   : > { %v1219_v30 = vmax.f32 %v1155_v27, 0.0  ;;  %v1047_v31 = vadd.f32 %v1046_v28, %v877_v63  ;;  %v800_v32 = vpop.f32.mrf.mxu0 }
 0x199   : > { %v969_v3 = vpop.f32.mrf.mxu1 }
 0x19a   : > { %v1924_v34 = vpack.c.bf16 %v1219_v30, %v1218_v29  ;;  %v1119_v35 = vmul.f32 %v2068_v23, %v1047_v31  ;;  %v970_v37 = vadd.f32 %v969_v3, %v800_v32 }
 0x19c   : > { %2024 = vst [vmem:[%s2266_s11 + $0x70] sm:$0xff] %v1924_v34   ;;  %v1187_v36 = vadd.f32 %v2069_v26, %v1119_v35  ;;  %v1088_v43 = vmul.f32 %v2068_v23, %v970_v37 }
 0x19e   : > { %v1251_v39 = vmax.f32 %v1187_v36, 0.0  ;;  %v880_v40 = vpop.f32.mrf.mxu2  ;;  %v1156_v48 = vadd.f32 %v2069_v26, %v1088_v43 }
 0x19f   : > { %v1049_v41 = vpop.f32.mrf.mxu3 }
 0x1a0   : > { %v2004_v42 = vpack.c.bf16 %v1251_v39, %v1250_v38  ;;  %v802_v44 = vpop.f32.mrf.mxu0  ;;  %v1050_v46 = vadd.f32 %v1049_v41, %v880_v40  ;;  %v1220_v54 = vmax.f32 %v1156_v48, 0.0 }
 0x1a1   : > { %v971_v45 = vpop.f32.mrf.mxu1 }
 0x1a2   : > { %2040 = vst [vmem:[%s2266_s11 + $0xf0] sm:$0xff] %v2004_v42   ;;  %v972_v47 = vadd.f32 %v971_v45, %v802_v44  ;;  %v1120_v50 = vmul.f32 %v2068_v23, %v1050_v46 }
 0x1a4   : > { %v1089_v49 = vmul.f32 %v2068_v23, %v972_v47  ;;  %v1188_v57 = vadd.f32 %v2069_v26, %v1120_v50 }
 0x1a6   : > { %v1157_v51 = vadd.f32 %v2069_v26, %v1089_v49  ;;  %v882_v52 = vpop.f32.mrf.mxu2  ;;  %v1252_v61 = vmax.f32 %v1188_v57, 0.0 }
 0x1a7   : > { %v1051_v53 = vpop.f32.mrf.mxu3 }
 0x1a8   : > { %v1221_v55 = vmax.f32 %v1157_v51, 0.0  ;;  %v1052_v56 = vadd.f32 %v1051_v53, %v882_v52 }
 0x1aa   : > { %v1929_v58 = vpack.c.bf16 %v1221_v55, %v1220_v54  ;;  %v1121_v59 = vmul.f32 %v2068_v23, %v1052_v56 }
 0x1ac   : > { %2025 = vst [vmem:[%s2266_s11 + $0x78] sm:$0xff] %v1929_v58   ;;  %v1189_v60 = vadd.f32 %v2069_v26, %v1121_v59 }
 0x1ae   : > { %v1253_v62 = vmax.f32 %v1189_v60, 0.0 }
 0x1b0   : > { %v2009_v0 = vpack.c.bf16 %v1253_v62, %v1252_v61 }
 0x1b2   : > { %2041 = vst [vmem:[%s2266_s11 + $0xf8] sm:$0xff] %v2009_v0  }
 0x1b3 PF: > { %s14_s15 = sadd.s32 1, %s2076_s15  }
 0x1b4   : > { %p11_p4 = scmp.ge.s32.totalorder %s14_s15, 4  }
 0x1b6   :  { %13 = sbr.rel (!%p11_p4) target bundleno = 1 (0x1), region = 66 }

// kernel: dqnbn_forward.5
= control target key start
LH: loop header
LB: loop body
LE: loop exit
PB: predicated region body
PF: predicated region fallthrough
CT: control target
= control target key end

     0   :  { %s1834_s1 = inlined_call_operand.vmem [shape: bf16[512,128], index: 1, kind: input, shape index: {}]   ;;  %s1835_s0 = inlined_call_operand.vmem [shape: bf16[176,512], index: 0, kind: input, shape index: {}]   ;;  %s1836_s2 = inlined_call_operand.vmem [shape: f32[1,128], index: 2, kind: input, shape index: {}]   ;;  %s1837_s3 = inlined_call_operand.vmem [shape: f32[1,128], index: 3, kind: input, shape index: {}]   ;;  %s1838_s4 = inlined_call_operand.vmem [shape: bf16[176,128], index: 4, kind: output, shape index: {}]  }
   0x1   :  { %v1270_v0 = vld [vmem:[%s1834_s1 + $0x38] sm:$0xff]  ;;  %v1269_v4 = vld [vmem:[%s1834_s1 + $0x30] sm:$0xff]  ;;  %v1268_v8 = vld [vmem:[%s1834_s1 + $0x28] sm:$0xff] }
   0x2   :  { %v1278_v1 = vld [vmem:[%s1834_s1 + $0x78] sm:$0xff]  ;;  %537 = vmatpush.bf16.msra.mxu0 %v1270_v0  ;;  %v1277_v5 = vld [vmem:[%s1834_s1 + $0x70] sm:$0xff]  ;;  %v1276_v9 = vld [vmem:[%s1834_s1 + $0x68] sm:$0xff] }
   0x3   :  { %v1286_v2 = vld [vmem:[%s1834_s1 + $0xb8] sm:$0xff]  ;;  %601 = vmatpush.bf16.msra.mxu1 %v1278_v1  ;;  %v1285_v6 = vld [vmem:[%s1834_s1 + $0xb0] sm:$0xff]  ;;  %v1284_v10 = vld [vmem:[%s1834_s1 + $0xa8] sm:$0xff] }
   0x4   :  { %v1294_v3 = vld [vmem:[%s1834_s1 + $0xf8] sm:$0xff]  ;;  %665 = vmatpush.bf16.msra.mxu2 %v1286_v2  ;;  %v1293_v7 = vld [vmem:[%s1834_s1 + $0xf0] sm:$0xff]  ;;  %v1292_v11 = vld [vmem:[%s1834_s1 + $0xe8] sm:$0xff] }
   0x5   :  { %729 = vmatpush.bf16.msra.mxu3 %v1294_v3  ;;  %v1267_v12 = vld [vmem:[%s1834_s1 + $0x20] sm:$0xff]  ;;  %v1266_v16 = vld [vmem:[%s1834_s1 + $0x18] sm:$0xff]  ;;  %v1265_v20 = vld [vmem:[%s1834_s1 + $0x10] sm:$0xff] }
   0x6   :  { %538 = vmatpush.bf16.msra.mxu0 %v1269_v4  ;;  %v1275_v13 = vld [vmem:[%s1834_s1 + $0x60] sm:$0xff]  ;;  %v1274_v17 = vld [vmem:[%s1834_s1 + $0x58] sm:$0xff]  ;;  %v1273_v21 = vld [vmem:[%s1834_s1 + $0x50] sm:$0xff] }
   0x7   :  { %602 = vmatpush.bf16.msra.mxu1 %v1277_v5  ;;  %v1283_v14 = vld [vmem:[%s1834_s1 + $0xa0] sm:$0xff]  ;;  %v1282_v18 = vld [vmem:[%s1834_s1 + $0x98] sm:$0xff]  ;;  %v1281_v22 = vld [vmem:[%s1834_s1 + $0x90] sm:$0xff] }
   0x8   :  { %666 = vmatpush.bf16.msra.mxu2 %v1285_v6  ;;  %v1291_v15 = vld [vmem:[%s1834_s1 + $0xe0] sm:$0xff]  ;;  %v1290_v19 = vld [vmem:[%s1834_s1 + $0xd8] sm:$0xff]  ;;  %v1289_v23 = vld [vmem:[%s1834_s1 + $0xd0] sm:$0xff] }
   0x9   :  { %730 = vmatpush.bf16.msra.mxu3 %v1293_v7  ;;  %v1264_v24 = vld [vmem:[%s1834_s1 + $0x8] sm:$0xff]  ;;  %v1263_v28 = vld [vmem:[%s1834_s1] sm:$0xff]  ;;  %v1221_v33 = vld [vmem:[%s1835_s0 + $0xc] sm:$0xf0] }
   0xa   :  { %539 = vmatpush.bf16.msra.mxu0 %v1268_v8  ;;  %v1272_v25 = vld [vmem:[%s1834_s1 + $0x48] sm:$0xff]  ;;  %v1271_v29 = vld [vmem:[%s1834_s1 + $0x40] sm:$0xff]  ;;  %v919_v35 = vld [vmem:[%s1835_s0 + $0x10] sm:$0xf0] }
   0xb   :  { %603 = vmatpush.bf16.msra.mxu1 %v1276_v9  ;;  %v1280_v26 = vld [vmem:[%s1834_s1 + $0x88] sm:$0xff]  ;;  %v1279_v30 = vld [vmem:[%s1834_s1 + $0x80] sm:$0xff]  ;;  %v1222_v37 = vld [vmem:[%s1835_s0 + $0x14] sm:$0xf0] }
   0xc   :  { %667 = vmatpush.bf16.msra.mxu2 %v1284_v10  ;;  %v1288_v27 = vld [vmem:[%s1834_s1 + $0xc8] sm:$0xff]  ;;  %v1287_v31 = vld [vmem:[%s1834_s1 + $0xc0] sm:$0xff]  ;;  %v927_v39 = vld [vmem:[%s1835_s0 + $0x18] sm:$0xf0] }
   0xd   :  { %731 = vmatpush.bf16.msra.mxu3 %v1292_v11  ;;  %v917_v32 = vld [vmem:[%s1835_s0] sm:$0xf]  ;;  %v1219_v34 = vld [vmem:[%s1835_s0 + $0x4] sm:$0xf]  ;;  %v925_v36 = vld [vmem:[%s1835_s0 + $0x8] sm:$0xf] }
   0xe   :  { %540 = vmatpush.bf16.msra.mxu0 %v1267_v12  ;;  %v1220_v38 = vld [vmem:[%s1835_s0 + $0xc] sm:$0xf]  ;;  %v918_v40 = vor.u32 %v1221_v33, %v917_v32  ;;  %v922_v41 = vor.u32 %v1219_v34, %v919_v35  ;;  %v926_v42 = vor.u32 %v1222_v37, %v925_v36  ;;  %v933_v44 = vld [vmem:[%s1835_s0 + $0x20] sm:$0xf]  ;;  %v1225_v45 = vld [vmem:[%s1835_s0 + $0x2c] sm:$0xf0] }
   0xf   :  { %604 = vmatpush.bf16.msra.mxu1 %v1275_v13  ;;  %v930_v43 = vor.u32 %v1220_v38, %v927_v39  ;;  %v1223_v46 = vld [vmem:[%s1835_s0 + $0x24] sm:$0xf]  ;;  %v935_v47 = vld [vmem:[%s1835_s0 + $0x30] sm:$0xf0]  ;;  %v941_v48 = vld [vmem:[%s1835_s0 + $0x28] sm:$0xf]  ;;  %v934_v52 = vor.u32 %v1225_v45, %v933_v44 }
  0x10   :  { %668 = vmatpush.bf16.msra.mxu2 %v1283_v14  ;;  %v1226_v49 = vld [vmem:[%s1835_s0 + $0x34] sm:$0xf0]  ;;  %v1224_v50 = vld [vmem:[%s1835_s0 + $0x2c] sm:$0xf]  ;;  %v943_v51 = vld [vmem:[%s1835_s0 + $0x38] sm:$0xf0]  ;;  %v938_v53 = vor.u32 %v1223_v46, %v935_v47 }
  0x11   :  { %732 = vmatpush.bf16.msra.mxu3 %v1291_v15  ;;  %v942_v54 = vor.u32 %v1226_v49, %v941_v48  ;;  %v946_v55 = vor.u32 %v1224_v50, %v943_v51  ;;  %v949_v56 = vld [vmem:[%s1835_s0 + $0x40] sm:$0xf]  ;;  %v1229_v57 = vld [vmem:[%s1835_s0 + $0x4c] sm:$0xf0]  ;;  %v1227_v58 = vld [vmem:[%s1835_s0 + $0x44] sm:$0xf] }
  0x12   :  { %541 = vmatpush.bf16.msra.mxu0 %v1266_v16  ;;  %v951_v59 = vld [vmem:[%s1835_s0 + $0x50] sm:$0xf0]  ;;  %v957_v60 = vld [vmem:[%s1835_s0 + $0x48] sm:$0xf]  ;;  %v1230_v61 = vld [vmem:[%s1835_s0 + $0x54] sm:$0xf0]  ;;  %v950_v0 = vor.u32 %v1229_v57, %v949_v56 }
  0x13   :  { %605 = vmatpush.bf16.msra.mxu1 %v1274_v17  ;;  %v1228_v62 = vld [vmem:[%s1835_s0 + $0x4c] sm:$0xf]  ;;  %v959_v63 = vld [vmem:[%s1835_s0 + $0x58] sm:$0xf0]  ;;  %v954_v1 = vor.u32 %v1227_v58, %v951_v59  ;;  %v958_v2 = vor.u32 %v1230_v61, %v957_v60  ;;  %v965_v4 = vld [vmem:[%s1835_s0 + $0x60] sm:$0xf] }
  0x14   :  { %669 = vmatpush.bf16.msra.mxu2 %v1282_v18  ;;  %v962_v3 = vor.u32 %v1228_v62, %v959_v63  ;;  %v1233_v5 = vld [vmem:[%s1835_s0 + $0x6c] sm:$0xf0]  ;;  %v1231_v6 = vld [vmem:[%s1835_s0 + $0x64] sm:$0xf]  ;;  %v967_v7 = vld [vmem:[%s1835_s0 + $0x70] sm:$0xf0] }
  0x15   :  { %733 = vmatpush.bf16.msra.mxu3 %v1290_v19  ;;  %v973_v8 = vld [vmem:[%s1835_s0 + $0x68] sm:$0xf]  ;;  %v1234_v9 = vld [vmem:[%s1835_s0 + $0x74] sm:$0xf0]  ;;  %v1232_v10 = vld [vmem:[%s1835_s0 + $0x6c] sm:$0xf]  ;;  %v966_v12 = vor.u32 %v1233_v5, %v965_v4  ;;  %v970_v13 = vor.u32 %v1231_v6, %v967_v7 }
  0x16   :  { %542 = vmatpush.bf16.msra.mxu0 %v1265_v20  ;;  %v975_v11 = vld [vmem:[%s1835_s0 + $0x78] sm:$0xf0]  ;;  %v974_v14 = vor.u32 %v1234_v9, %v973_v8  ;;  %v981_v16 = vld [vmem:[%s1835_s0 + $0x80] sm:$0xf]  ;;  %v1237_v17 = vld [vmem:[%s1835_s0 + $0x8c] sm:$0xf0] }
  0x17   :  { %606 = vmatpush.bf16.msra.mxu1 %v1273_v21  ;;  %v978_v15 = vor.u32 %v1232_v10, %v975_v11  ;;  %v1235_v18 = vld [vmem:[%s1835_s0 + $0x84] sm:$0xf]  ;;  %v983_v19 = vld [vmem:[%s1835_s0 + $0x90] sm:$0xf0]  ;;  %v989_v20 = vld [vmem:[%s1835_s0 + $0x88] sm:$0xf] }
  0x18   :  { %670 = vmatpush.bf16.msra.mxu2 %v1281_v22  ;;  %v1238_v21 = vld [vmem:[%s1835_s0 + $0x94] sm:$0xf0]  ;;  %v1236_v22 = vld [vmem:[%s1835_s0 + $0x8c] sm:$0xf]  ;;  %v1005_v32 = vld [vmem:[%s1835_s0 + $0xa8] sm:$0xf] }
  0x19   :  { %734 = vmatpush.bf16.msra.mxu3 %v1289_v23  ;;  %v991_v23 = vld [vmem:[%s1835_s0 + $0x98] sm:$0xf0]  ;;  %v1242_v33 = vld [vmem:[%s1835_s0 + $0xb4] sm:$0xf0]  ;;  %v1240_v34 = vld [vmem:[%s1835_s0 + $0xac] sm:$0xf] }
  0x1a   :  { %543 = vmatpush.bf16.msra.mxu0 %v1264_v24  ;;  %v982_v24 = vor.u32 %v1237_v17, %v981_v16  ;;  %v1007_v35 = vld [vmem:[%s1835_s0 + $0xb8] sm:$0xf0]  ;;  %v1006_v38 = vor.u32 %v1242_v33, %v1005_v32  ;;  %v1021_v44 = vld [vmem:[%s1835_s0 + $0xc8] sm:$0xf]  ;;  %v1246_v45 = vld [vmem:[%s1835_s0 + $0xd4] sm:$0xf0] }
  0x1b   :  { %607 = vmatpush.bf16.msra.mxu1 %v1272_v25  ;;  %v986_v25 = vor.u32 %v1235_v18, %v983_v19  ;;  %v1010_v39 = vor.u32 %v1240_v34, %v1007_v35  ;;  %v1244_v46 = vld [vmem:[%s1835_s0 + $0xcc] sm:$0xf]  ;;  %v1023_v47 = vld [vmem:[%s1835_s0 + $0xd8] sm:$0xf0]  ;;  %v1022_v50 = vor.u32 %v1246_v45, %v1021_v44  ;;  %v1037_v56 = vld [vmem:[%s1835_s0 + $0xe8] sm:$0xf] }
  0x1c   :  { %671 = vmatpush.bf16.msra.mxu2 %v1280_v26  ;;  %v990_v26 = vor.u32 %v1238_v21, %v989_v20  ;;  %v1026_v51 = vor.u32 %v1244_v46, %v1023_v47  ;;  %v1250_v57 = vld [vmem:[%s1835_s0 + $0xf4] sm:$0xf0]  ;;  %v1248_v58 = vld [vmem:[%s1835_s0 + $0xec] sm:$0xf]  ;;  %v1039_v59 = vld [vmem:[%s1835_s0 + $0xf8] sm:$0xf0] }
  0x1d   :  { %735 = vmatpush.bf16.msra.mxu3 %v1288_v27  ;;  %v994_v27 = vor.u32 %v1236_v22, %v991_v23  ;;  %v1038_v62 = vor.u32 %v1250_v57, %v1037_v56  ;;  %v1042_v63 = vor.u32 %v1248_v58, %v1039_v59  ;;  %v1053_v4 = vld [vmem:[%s1835_s0 + $0x108] sm:$0xf]  ;;  %v1254_v5 = vld [vmem:[%s1835_s0 + $0x114] sm:$0xf0]  ;;  %v1252_v6 = vld [vmem:[%s1835_s0 + $0x10c] sm:$0xf] }
  0x1e   :  { %544 = vmatpush.bf16.msra.mxu0 %v1263_v28  ;;  %v997_v28 = vld [vmem:[%s1835_s0 + $0xa0] sm:$0xf]  ;;  %v1055_v7 = vld [vmem:[%s1835_s0 + $0x118] sm:$0xf0]  ;;  %v1257_v22 = vld [vmem:[%s1835_s0 + $0x12c] sm:$0xf0] }
  0x1f   :  { %608 = vmatpush.bf16.msra.mxu1 %v1271_v29  ;;  %v1241_v29 = vld [vmem:[%s1835_s0 + $0xac] sm:$0xf0]  ;;  %v1702_v20 = vld [vmem:[%s1836_s2] ss:$0 sm:$0xff]  ;;  %v1259_v58 = vld [vmem:[%s1835_s0 + $0x144] sm:$0xf] }
  0x20   :  { %672 = vmatpush.bf16.msra.mxu2 %v1279_v30  ;;  %v1239_v30 = vld [vmem:[%s1835_s0 + $0xa4] sm:$0xf]  ;;  %v998_v36 = vor.u32 %v1241_v29, %v997_v28  ;;  %v1061_v21 = vld [vmem:[%s1835_s0 + $0x120] sm:$0xf]  ;;  %v1256_v28 = vld [vmem:[%s1835_s0 + $0x12c] sm:$0xf] }
  0x21   :  { %736 = vmatpush.bf16.msra.mxu3 %v1287_v31  ;;  %545 = vmatmul.bf16.vlgmr.msra.gmra.mxu0 %v918_v40  ;;  %v999_v31 = vld [vmem:[%s1835_s0 + $0xb0] sm:$0xf0]  ;;  %v1013_v40 = vld [vmem:[%s1835_s0 + $0xc0] sm:$0xf]  ;;  %v1071_v29 = vld [vmem:[%s1835_s0 + $0x138] sm:$0xf0]  ;;  %v1062_v33 = vor.u32 %v1257_v22, %v1061_v21 }
  0x22   :  { %609 = vmatmul.bf16.vlgmr.msra.gmra.mxu1 %v922_v41  ;;  %v1002_v37 = vor.u32 %v1239_v30, %v999_v31  ;;  %v1245_v41 = vld [vmem:[%s1835_s0 + $0xcc] sm:$0xf0]  ;;  %v1079_v59 = vld [vmem:[%s1835_s0 + $0x150] sm:$0xf0] }
  0x23   :  { %673 = vmatmul.bf16.vlgmr.msra.gmra.mxu2 %v926_v42  ;;  %v1243_v42 = vld [vmem:[%s1835_s0 + $0xc4] sm:$0xf]  ;;  %v1014_v48 = vor.u32 %v1245_v41, %v1013_v40  ;;  %v1074_v41 = vor.u32 %v1256_v28, %v1071_v29  ;;  %v1261_v56 = vld [vmem:[%s1835_s0 + $0x14c] sm:$0xf0] }
  0x24   :  { %737 = vmatmul.bf16.vlgmr.msra.gmra.mxu3 %v930_v43  ;;  %v1015_v43 = vld [vmem:[%s1835_s0 + $0xd0] sm:$0xf0] }
  0x25   :  { %v1018_v49 = vor.u32 %v1243_v42, %v1015_v43 }
  0x31   :  { %550 = vmatmul.bf16.gmra.mxu0 %v934_v52  ;;  %v1029_v52 = vld [vmem:[%s1835_s0 + $0xe0] sm:$0xf] }
  0x32   :  { %614 = vmatmul.bf16.gmra.mxu1 %v938_v53  ;;  %v1249_v53 = vld [vmem:[%s1835_s0 + $0xec] sm:$0xf0] }
  0x33   :  { %678 = vmatmul.bf16.gmra.mxu2 %v942_v54  ;;  %v1247_v54 = vld [vmem:[%s1835_s0 + $0xe4] sm:$0xf]  ;;  %v1030_v60 = vor.u32 %v1249_v53, %v1029_v52 }
  0x34   :  { %742 = vmatmul.bf16.gmra.mxu3 %v946_v55  ;;  %v1031_v55 = vld [vmem:[%s1835_s0 + $0xf0] sm:$0xf0] }
  0x35   :  { %v1034_v61 = vor.u32 %v1247_v54, %v1031_v55  ;;  %v1077_v55 = vld [vmem:[%s1835_s0 + $0x140] sm:$0xf] }
  0x41   :  { %555 = vmatmul.bf16.gmra.mxu0 %v950_v0  ;;  %v1045_v0 = vld [vmem:[%s1835_s0 + $0x100] sm:$0xf] }
  0x42   :  { %619 = vmatmul.bf16.gmra.mxu1 %v954_v1  ;;  %v1253_v1 = vld [vmem:[%s1835_s0 + $0x10c] sm:$0xf0] }
  0x43   :  { %683 = vmatmul.bf16.gmra.mxu2 %v958_v2  ;;  %v1251_v2 = vld [vmem:[%s1835_s0 + $0x104] sm:$0xf]  ;;  %v1046_v8 = vor.u32 %v1253_v1, %v1045_v0 }
  0x44   :  { %747 = vmatmul.bf16.gmra.mxu3 %v962_v3  ;;  %v1047_v3 = vld [vmem:[%s1835_s0 + $0x110] sm:$0xf0] }
  0x45   :  { %v1050_v9 = vor.u32 %v1251_v2, %v1047_v3  ;;  %v1078_v3 = vor.u32 %v1261_v56, %v1077_v55 }
  0x51   :  { %560 = vmatmul.bf16.gmra.mxu0 %v966_v12  ;;  %v1054_v12 = vor.u32 %v1254_v5, %v1053_v4  ;;  %v1082_v4 = vor.u32 %v1259_v58, %v1079_v59 }
  0x52   :  { %624 = vmatmul.bf16.gmra.mxu1 %v970_v13  ;;  %v1058_v13 = vor.u32 %v1252_v6, %v1055_v7 }
  0x53   :  { %688 = vmatmul.bf16.gmra.mxu2 %v974_v14 }
  0x54   :  { %752 = vmatmul.bf16.gmra.mxu3 %v978_v15 }
  0x61   :  { %565 = vmatmul.bf16.gmra.mxu0 %v982_v24  ;;  %v1255_v24 = vld [vmem:[%s1835_s0 + $0x124] sm:$0xf] }
  0x62   :  { %629 = vmatmul.bf16.gmra.mxu1 %v986_v25  ;;  %v1063_v25 = vld [vmem:[%s1835_s0 + $0x130] sm:$0xf0] }
  0x63   :  { %693 = vmatmul.bf16.gmra.mxu2 %v990_v26  ;;  %v1069_v26 = vld [vmem:[%s1835_s0 + $0x128] sm:$0xf]  ;;  %v1066_v34 = vor.u32 %v1255_v24, %v1063_v25 }
  0x64   :  { %757 = vmatmul.bf16.gmra.mxu3 %v994_v27  ;;  %v1258_v27 = vld [vmem:[%s1835_s0 + $0x134] sm:$0xf0] }
  0x65   :  { %v1070_v40 = vor.u32 %v1258_v27, %v1069_v26 }
  0x71   :  { %570 = vmatmul.bf16.gmra.mxu0 %v998_v36  ;;  %v1732_v36 = vld [vmem:[%s1837_s3] ss:$0 sm:$0xff] }
  0x72   :  { %634 = vmatmul.bf16.gmra.mxu1 %v1002_v37 }
  0x73   :  { %698 = vmatmul.bf16.gmra.mxu2 %v1006_v38 }
  0x74   :  { %762 = vmatmul.bf16.gmra.mxu3 %v1010_v39 }
  0x81   :  { %575 = vmatmul.bf16.gmra.mxu0 %v1014_v48 }
  0x82   :  { %639 = vmatmul.bf16.gmra.mxu1 %v1018_v49 }
  0x83   :  { %703 = vmatmul.bf16.gmra.mxu2 %v1022_v50 }
  0x84   :  { %767 = vmatmul.bf16.gmra.mxu3 %v1026_v51 }
  0x91   :  { %580 = vmatmul.bf16.gmra.mxu0 %v1030_v60  ;;  %v1085_v60 = vld [vmem:[%s1835_s0 + $0x148] sm:$0xf] }
  0x92   :  { %644 = vmatmul.bf16.gmra.mxu1 %v1034_v61  ;;  %v1262_v61 = vld [vmem:[%s1835_s0 + $0x154] sm:$0xf0] }
  0x93   :  { %708 = vmatmul.bf16.gmra.mxu2 %v1038_v62  ;;  %v1260_v62 = vld [vmem:[%s1835_s0 + $0x14c] sm:$0xf] }
  0x94   :  { %772 = vmatmul.bf16.gmra.mxu3 %v1042_v63  ;;  %v1087_v63 = vld [vmem:[%s1835_s0 + $0x158] sm:$0xf0] }
  0x9e   :  { %v546_v10 = vpop.f32.mrf.mxu0 }
  0x9f   :  { %v610_v11 = vpop.f32.mrf.mxu1 }
  0xa0   :  { %v611_v14 = vadd.f32 %v610_v11, %v546_v10  ;;  %v1090_v10 = vor.u32 %v1260_v62, %v1087_v63 }
  0xa1   :  { %585 = vmatmul.bf16.gmra.mxu0 %v1046_v8 }
  0xa2   :  { %649 = vmatmul.bf16.gmra.mxu1 %v1050_v9  ;;  %v1086_v9 = vor.u32 %v1262_v61, %v1085_v60 }
  0xa3   :  { %713 = vmatmul.bf16.gmra.mxu2 %v1054_v12 }
  0xa4   :  { %777 = vmatmul.bf16.gmra.mxu3 %v1058_v13 }
  0xa6   :  { %v674_v15 = vpop.f32.mrf.mxu2  ;;  %v548_v18 = vpop.f32.mrf.mxu0 }
  0xa7   :  { %v738_v16 = vpop.f32.mrf.mxu3  ;;  %v675_v17 = vadd.f32 %v674_v15, %v611_v14  ;;  %v612_v19 = vpop.f32.mrf.mxu1 }
  0xa8   :  { %v613_v30 = vadd.f32 %v612_v19, %v548_v18 }
  0xa9   :  { %v739_v23 = vadd.f32 %v738_v16, %v675_v17 }
  0xab   :  { %v797_v35 = vmul.f32 %v1702_v20, %v739_v23 }
  0xad   :  { %v823_v43 = vadd.f32 %v1732_v36, %v797_v35 }
  0xae   :  { %v676_v31 = vpop.f32.mrf.mxu2  ;;  %v551_v38 = vpop.f32.mrf.mxu0 }
  0xaf   :  { %v740_v32 = vpop.f32.mrf.mxu3  ;;  %v677_v37 = vadd.f32 %v676_v31, %v613_v30  ;;  %v615_v39 = vpop.f32.mrf.mxu1  ;;  %v845_v49 = vmax.f32 %v823_v43, 0.0 }
  0xb0   :  { %v616_v45 = vadd.f32 %v615_v39, %v551_v38 }
  0xb1   :  { %v741_v42 = vadd.f32 %v740_v32, %v677_v37  ;;  %590 = vmatmul.bf16.gmra.mxu0 %v1062_v33 }
  0xb2   :  { %654 = vmatmul.bf16.gmra.mxu1 %v1066_v34 }
  0xb3   :  { %v798_v44 = vmul.f32 %v1702_v20, %v741_v42  ;;  %718 = vmatmul.bf16.gmra.mxu2 %v1070_v40 }
  0xb4   :  { %782 = vmatmul.bf16.gmra.mxu3 %v1074_v41 }
  0xb5   :  { %v824_v46 = vadd.f32 %v1732_v36, %v798_v44 }
  0xb6   :  { %v679_v47 = vpop.f32.mrf.mxu2  ;;  %v553_v52 = vpop.f32.mrf.mxu0 }
  0xb7   :  { %v743_v48 = vpop.f32.mrf.mxu3  ;;  %v846_v50 = vmax.f32 %v824_v46, 0.0  ;;  %v680_v51 = vadd.f32 %v679_v47, %v616_v45  ;;  %v617_v53 = vpop.f32.mrf.mxu1 }
  0xb8   :  { %v618_v0 = vadd.f32 %v617_v53, %v553_v52 }
  0xb9   :  { %v1298_v54 = vpack.c.bf16 %v846_v50, %v845_v49  ;;  %v744_v57 = vadd.f32 %v743_v48, %v680_v51 }
  0xbb   :  { %1299 = vst [vmem:[%s1838_s4] sm:$0xff] %v1298_v54   ;;  %v799_v5 = vmul.f32 %v1702_v20, %v744_v57 }
  0xbd   :  { %v825_v12 = vadd.f32 %v1732_v36, %v799_v5 }
  0xbe   :  { %v681_v1 = vpop.f32.mrf.mxu2  ;;  %v556_v7 = vpop.f32.mrf.mxu0 }
  0xbf   :  { %v745_v2 = vpop.f32.mrf.mxu3  ;;  %v682_v6 = vadd.f32 %v681_v1, %v618_v0  ;;  %v620_v8 = vpop.f32.mrf.mxu1  ;;  %v847_v18 = vmax.f32 %v825_v12, 0.0 }
  0xc0   :  { %v621_v14 = vadd.f32 %v620_v8, %v556_v7 }
  0xc1   :  { %v746_v11 = vadd.f32 %v745_v2, %v682_v6  ;;  %595 = vmatmul.bf16.gmra.mxu0 %v1078_v3 }
  0xc2   :  { %659 = vmatmul.bf16.gmra.mxu1 %v1082_v4 }
  0xc3   :  { %v800_v13 = vmul.f32 %v1702_v20, %v746_v11  ;;  %723 = vmatmul.bf16.gmra.mxu2 %v1086_v9 }
  0xc4   :  { %787 = vmatmul.bf16.gmra.mxu3 %v1090_v10 }
  0xc5   :  { %v826_v15 = vadd.f32 %v1732_v36, %v800_v13 }
  0xc6   :  { %v684_v16 = vpop.f32.mrf.mxu2  ;;  %v558_v22 = vpop.f32.mrf.mxu0 }
  0xc7   :  { %v748_v17 = vpop.f32.mrf.mxu3  ;;  %v848_v19 = vmax.f32 %v826_v15, 0.0  ;;  %v685_v21 = vadd.f32 %v684_v16, %v621_v14  ;;  %v622_v23 = vpop.f32.mrf.mxu1 }
  0xc8   :  { %v623_v26 = vadd.f32 %v622_v23, %v558_v22 }
  0xc9   :  { %v1303_v24 = vpack.c.bf16 %v848_v19, %v847_v18  ;;  %v749_v25 = vadd.f32 %v748_v17, %v685_v21 }
  0xcb   :  { %1350 = vst [vmem:[%s1838_s4 + $0x8] sm:$0xff] %v1303_v24   ;;  %v801_v29 = vmul.f32 %v1702_v20, %v749_v25 }
  0xcd   :  { %v827_v34 = vadd.f32 %v1732_v36, %v801_v29 }
  0xce   :  { %v686_v27 = vpop.f32.mrf.mxu2  ;;  %v561_v31 = vpop.f32.mrf.mxu0 }
  0xcf   :  { %v750_v28 = vpop.f32.mrf.mxu3  ;;  %v687_v30 = vadd.f32 %v686_v27, %v623_v26  ;;  %v625_v32 = vpop.f32.mrf.mxu1  ;;  %v849_v41 = vmax.f32 %v827_v34, 0.0 }
  0xd0   :  { %v626_v37 = vadd.f32 %v625_v32, %v561_v31 }
  0xd1   :  { %v751_v33 = vadd.f32 %v750_v28, %v687_v30 }
  0xd3   :  { %v802_v35 = vmul.f32 %v1702_v20, %v751_v33 }
  0xd5   :  { %v828_v38 = vadd.f32 %v1732_v36, %v802_v35 }
  0xd6   :  { %v689_v39 = vpop.f32.mrf.mxu2  ;;  %v563_v44 = vpop.f32.mrf.mxu0 }
  0xd7   :  { %v753_v40 = vpop.f32.mrf.mxu3  ;;  %v850_v42 = vmax.f32 %v828_v38, 0.0  ;;  %v690_v43 = vadd.f32 %v689_v39, %v626_v37  ;;  %v627_v45 = vpop.f32.mrf.mxu1 }
  0xd8   :  { %v628_v48 = vadd.f32 %v627_v45, %v563_v44 }
  0xd9   :  { %v1308_v46 = vpack.c.bf16 %v850_v42, %v849_v41  ;;  %v754_v47 = vadd.f32 %v753_v40, %v690_v43 }
  0xdb   :  { %1351 = vst [vmem:[%s1838_s4 + $0x10] sm:$0xff] %v1308_v46   ;;  %v803_v51 = vmul.f32 %v1702_v20, %v754_v47 }
  0xdd   :  { %v829_v56 = vadd.f32 %v1732_v36, %v803_v51 }
  0xde   :  { %v691_v49 = vpop.f32.mrf.mxu2  ;;  %v566_v53 = vpop.f32.mrf.mxu0 }
  0xdf   :  { %v755_v50 = vpop.f32.mrf.mxu3  ;;  %v692_v52 = vadd.f32 %v691_v49, %v628_v48  ;;  %v630_v54 = vpop.f32.mrf.mxu1  ;;  %v851_v62 = vmax.f32 %v829_v56, 0.0 }
  0xe0   :  { %v631_v58 = vadd.f32 %v630_v54, %v566_v53 }
  0xe1   :  { %v756_v55 = vadd.f32 %v755_v50, %v692_v52 }
  0xe3   :  { %v804_v57 = vmul.f32 %v1702_v20, %v756_v55 }
  0xe5   :  { %v830_v59 = vadd.f32 %v1732_v36, %v804_v57 }
  0xe6   :  { %v694_v60 = vpop.f32.mrf.mxu2  ;;  %v568_v1 = vpop.f32.mrf.mxu0 }
  0xe7   :  { %v758_v61 = vpop.f32.mrf.mxu3  ;;  %v852_v63 = vmax.f32 %v830_v59, 0.0  ;;  %v695_v0 = vadd.f32 %v694_v60, %v631_v58  ;;  %v632_v2 = vpop.f32.mrf.mxu1 }
  0xe8   :  { %v633_v5 = vadd.f32 %v632_v2, %v568_v1 }
  0xe9   :  { %v1313_v3 = vpack.c.bf16 %v852_v63, %v851_v62  ;;  %v759_v4 = vadd.f32 %v758_v61, %v695_v0 }
  0xeb   :  { %1352 = vst [vmem:[%s1838_s4 + $0x18] sm:$0xff] %v1313_v3   ;;  %v805_v8 = vmul.f32 %v1702_v20, %v759_v4 }
  0xed   :  { %v831_v13 = vadd.f32 %v1732_v36, %v805_v8 }
  0xee   :  { %v696_v6 = vpop.f32.mrf.mxu2  ;;  %v571_v10 = vpop.f32.mrf.mxu0 }
  0xef   :  { %v760_v7 = vpop.f32.mrf.mxu3  ;;  %v697_v9 = vadd.f32 %v696_v6, %v633_v5  ;;  %v635_v11 = vpop.f32.mrf.mxu1  ;;  %v853_v19 = vmax.f32 %v831_v13, 0.0 }
  0xf0   :  { %v636_v15 = vadd.f32 %v635_v11, %v571_v10 }
  0xf1   :  { %v761_v12 = vadd.f32 %v760_v7, %v697_v9 }
  0xf3   :  { %v806_v14 = vmul.f32 %v1702_v20, %v761_v12 }
  0xf5   :  { %v832_v16 = vadd.f32 %v1732_v36, %v806_v14 }
  0xf6   :  { %v699_v17 = vpop.f32.mrf.mxu2  ;;  %v573_v23 = vpop.f32.mrf.mxu0 }
  0xf7   :  { %v763_v18 = vpop.f32.mrf.mxu3  ;;  %v854_v21 = vmax.f32 %v832_v16, 0.0  ;;  %v700_v22 = vadd.f32 %v699_v17, %v636_v15  ;;  %v637_v24 = vpop.f32.mrf.mxu1 }
  0xf8   :  { %v638_v27 = vadd.f32 %v637_v24, %v573_v23 }
  0xf9   :  { %v1318_v25 = vpack.c.bf16 %v854_v21, %v853_v19  ;;  %v764_v26 = vadd.f32 %v763_v18, %v700_v22 }
  0xfb   :  { %1353 = vst [vmem:[%s1838_s4 + $0x20] sm:$0xff] %v1318_v25   ;;  %v807_v30 = vmul.f32 %v1702_v20, %v764_v26 }
  0xfd   :  { %v833_v35 = vadd.f32 %v1732_v36, %v807_v30 }
  0xfe   :  { %v701_v28 = vpop.f32.mrf.mxu2  ;;  %v576_v32 = vpop.f32.mrf.mxu0 }
  0xff   :  { %v765_v29 = vpop.f32.mrf.mxu3  ;;  %v702_v31 = vadd.f32 %v701_v28, %v638_v27  ;;  %v640_v33 = vpop.f32.mrf.mxu1  ;;  %v855_v42 = vmax.f32 %v833_v35, 0.0 }
 0x100   :  { %v641_v38 = vadd.f32 %v640_v33, %v576_v32 }
 0x101   :  { %v766_v34 = vadd.f32 %v765_v29, %v702_v31 }
 0x103   :  { %v808_v37 = vmul.f32 %v1702_v20, %v766_v34 }
 0x105   :  { %v834_v39 = vadd.f32 %v1732_v36, %v808_v37 }
 0x106   :  { %v704_v40 = vpop.f32.mrf.mxu2  ;;  %v578_v45 = vpop.f32.mrf.mxu0 }
 0x107   :  { %v768_v41 = vpop.f32.mrf.mxu3  ;;  %v856_v43 = vmax.f32 %v834_v39, 0.0  ;;  %v705_v44 = vadd.f32 %v704_v40, %v641_v38  ;;  %v642_v46 = vpop.f32.mrf.mxu1 }
 0x108   :  { %v643_v49 = vadd.f32 %v642_v46, %v578_v45 }
 0x109   :  { %v1323_v47 = vpack.c.bf16 %v856_v43, %v855_v42  ;;  %v769_v48 = vadd.f32 %v768_v41, %v705_v44 }
 0x10b   :  { %1354 = vst [vmem:[%s1838_s4 + $0x28] sm:$0xff] %v1323_v47   ;;  %v809_v52 = vmul.f32 %v1702_v20, %v769_v48 }
 0x10d   :  { %v835_v57 = vadd.f32 %v1732_v36, %v809_v52 }
 0x10e   :  { %v706_v50 = vpop.f32.mrf.mxu2  ;;  %v581_v54 = vpop.f32.mrf.mxu0 }
 0x10f   :  { %v770_v51 = vpop.f32.mrf.mxu3  ;;  %v707_v53 = vadd.f32 %v706_v50, %v643_v49  ;;  %v645_v55 = vpop.f32.mrf.mxu1  ;;  %v857_v63 = vmax.f32 %v835_v57, 0.0 }
 0x110   :  { %v646_v59 = vadd.f32 %v645_v55, %v581_v54 }
 0x111   :  { %v771_v56 = vadd.f32 %v770_v51, %v707_v53 }
 0x113   :  { %v810_v58 = vmul.f32 %v1702_v20, %v771_v56 }
 0x115   :  { %v836_v60 = vadd.f32 %v1732_v36, %v810_v58 }
 0x116   :  { %v709_v61 = vpop.f32.mrf.mxu2  ;;  %v583_v2 = vpop.f32.mrf.mxu0 }
 0x117   :  { %v773_v62 = vpop.f32.mrf.mxu3  ;;  %v858_v0 = vmax.f32 %v836_v60, 0.0  ;;  %v710_v1 = vadd.f32 %v709_v61, %v646_v59  ;;  %v647_v3 = vpop.f32.mrf.mxu1 }
 0x118   :  { %v648_v6 = vadd.f32 %v647_v3, %v583_v2 }
 0x119   :  { %v1328_v4 = vpack.c.bf16 %v858_v0, %v857_v63  ;;  %v774_v5 = vadd.f32 %v773_v62, %v710_v1 }
 0x11b   :  { %1355 = vst [vmem:[%s1838_s4 + $0x30] sm:$0xff] %v1328_v4   ;;  %v811_v9 = vmul.f32 %v1702_v20, %v774_v5 }
 0x11d   :  { %v837_v14 = vadd.f32 %v1732_v36, %v811_v9 }
 0x11e   :  { %v711_v7 = vpop.f32.mrf.mxu2  ;;  %v586_v11 = vpop.f32.mrf.mxu0 }
 0x11f   :  { %v775_v8 = vpop.f32.mrf.mxu3  ;;  %v712_v10 = vadd.f32 %v711_v7, %v648_v6  ;;  %v650_v12 = vpop.f32.mrf.mxu1  ;;  %v859_v21 = vmax.f32 %v837_v14, 0.0 }
 0x120   :  { %v651_v16 = vadd.f32 %v650_v12, %v586_v11 }
 0x121   :  { %v776_v13 = vadd.f32 %v775_v8, %v712_v10 }
 0x123   :  { %v812_v15 = vmul.f32 %v1702_v20, %v776_v13 }
 0x125   :  { %v838_v17 = vadd.f32 %v1732_v36, %v812_v15 }
 0x126   :  { %v714_v18 = vpop.f32.mrf.mxu2  ;;  %v588_v24 = vpop.f32.mrf.mxu0 }
 0x127   :  { %v778_v19 = vpop.f32.mrf.mxu3  ;;  %v860_v22 = vmax.f32 %v838_v17, 0.0  ;;  %v715_v23 = vadd.f32 %v714_v18, %v651_v16  ;;  %v652_v25 = vpop.f32.mrf.mxu1 }
 0x128   :  { %v653_v28 = vadd.f32 %v652_v25, %v588_v24 }
 0x129   :  { %v1333_v26 = vpack.c.bf16 %v860_v22, %v859_v21  ;;  %v779_v27 = vadd.f32 %v778_v19, %v715_v23 }
 0x12b   :  { %1356 = vst [vmem:[%s1838_s4 + $0x38] sm:$0xff] %v1333_v26   ;;  %v813_v31 = vmul.f32 %v1702_v20, %v779_v27 }
 0x12d   :  { %v839_v37 = vadd.f32 %v1732_v36, %v813_v31 }
 0x12e   :  { %v716_v29 = vpop.f32.mrf.mxu2  ;;  %v591_v33 = vpop.f32.mrf.mxu0 }
 0x12f   :  { %v780_v30 = vpop.f32.mrf.mxu3  ;;  %v717_v32 = vadd.f32 %v716_v29, %v653_v28  ;;  %v655_v34 = vpop.f32.mrf.mxu1  ;;  %v861_v43 = vmax.f32 %v839_v37, 0.0 }
 0x130   :  { %v656_v39 = vadd.f32 %v655_v34, %v591_v33 }
 0x131   :  { %v781_v35 = vadd.f32 %v780_v30, %v717_v32 }
 0x133   :  { %v814_v38 = vmul.f32 %v1702_v20, %v781_v35 }
 0x135   :  { %v840_v40 = vadd.f32 %v1732_v36, %v814_v38 }
 0x136   :  { %v719_v41 = vpop.f32.mrf.mxu2  ;;  %v593_v46 = vpop.f32.mrf.mxu0 }
 0x137   :  { %v783_v42 = vpop.f32.mrf.mxu3  ;;  %v862_v44 = vmax.f32 %v840_v40, 0.0  ;;  %v720_v45 = vadd.f32 %v719_v41, %v656_v39  ;;  %v657_v47 = vpop.f32.mrf.mxu1 }
 0x138   :  { %v658_v50 = vadd.f32 %v657_v47, %v593_v46 }
 0x139   :  { %v1338_v48 = vpack.c.bf16 %v862_v44, %v861_v43  ;;  %v784_v49 = vadd.f32 %v783_v42, %v720_v45 }
 0x13b   :  { %1357 = vst [vmem:[%s1838_s4 + $0x40] sm:$0xff] %v1338_v48   ;;  %v815_v53 = vmul.f32 %v1702_v20, %v784_v49 }
 0x13d   :  { %v841_v58 = vadd.f32 %v1732_v36, %v815_v53 }
 0x13e   :  { %v721_v51 = vpop.f32.mrf.mxu2  ;;  %v596_v55 = vpop.f32.mrf.mxu0 }
 0x13f   :  { %v785_v52 = vpop.f32.mrf.mxu3  ;;  %v722_v54 = vadd.f32 %v721_v51, %v658_v50  ;;  %v660_v56 = vpop.f32.mrf.mxu1  ;;  %v863_v0 = vmax.f32 %v841_v58, 0.0 }
 0x140   :  { %v661_v60 = vadd.f32 %v660_v56, %v596_v55 }
 0x141   :  { %v786_v57 = vadd.f32 %v785_v52, %v722_v54 }
 0x143   :  { %v816_v59 = vmul.f32 %v1702_v20, %v786_v57 }
 0x145   :  { %v842_v61 = vadd.f32 %v1732_v36, %v816_v59 }
 0x146   :  { %v724_v62 = vpop.f32.mrf.mxu2  ;;  %v598_v4 = vpop.f32.mrf.mxu0 }
 0x147   :  { %v788_v63 = vpop.f32.mrf.mxu3  ;;  %v864_v1 = vmax.f32 %v842_v61, 0.0  ;;  %v725_v2 = vadd.f32 %v724_v62, %v661_v60  ;;  %v662_v5 = vpop.f32.mrf.mxu1 }
 0x148   :  { %v663_v7 = vadd.f32 %v662_v5, %v598_v4 }
 0x149   :  { %v1343_v3 = vpack.c.bf16 %v864_v1, %v863_v0  ;;  %v789_v6 = vadd.f32 %v788_v63, %v725_v2 }
 0x14b   :  { %1358 = vst [vmem:[%s1838_s4 + $0x48] sm:$0xff] %v1343_v3   ;;  %v817_v9 = vmul.f32 %v1702_v20, %v789_v6 }
 0x14d   :  { %v843_v13 = vadd.f32 %v1732_v36, %v817_v9 }
 0x14e   :  { %v726_v8 = vpop.f32.mrf.mxu2 }
 0x14f   :  { %v727_v10 = vadd.f32 %v726_v8, %v663_v7  ;;  %v790_v11 = vpop.f32.mrf.mxu3  ;;  %v865_v16 = vmax.f32 %v843_v13, 0.0 }
 0x151   :  { %v791_v12 = vadd.f32 %v790_v11, %v727_v10 }
 0x153   :  { %v818_v14 = vmul.f32 %v1702_v20, %v791_v12 }
 0x155   :  { %v844_v15 = vadd.f32 %v1732_v36, %v818_v14 }
 0x157   :  { %v866_v17 = vmax.f32 %v844_v15, 0.0 }
 0x159   :  { %v1348_v18 = vpack.c.bf16 %v866_v17, %v865_v16 }
 0x15b   :  { %1359 = vst [vmem:[%s1838_s4 + $0x50] sm:$0xff] %v1348_v18  }

// kernel: dqnbn_forward.6
= control target key start
LH: loop header
LB: loop body
LE: loop exit
PB: predicated region body
PF: predicated region fallthrough
CT: control target
= control target key end

     0   :  { %vm523_vm0 = vcmask 523264   ;;  %s1715_s1 = inlined_call_operand.vmem [shape: bf16[576,128], index: 1, kind: input, shape index: {}]   ;;  %s1716_s0 = inlined_call_operand.vmem [shape: bf16[112,576], index: 0, kind: input, shape index: {}]   ;;  %s1717_s2 = inlined_call_operand.vmem [shape: f32[1,128], index: 2, kind: input, shape index: {}]   ;;  %s1718_s3 = inlined_call_operand.vmem [shape: f32[1,128], index: 3, kind: input, shape index: {}]   ;;  %s1719_s4 = inlined_call_operand.vmem [shape: bf16[112,128], index: 4, kind: output, shape index: {}]  }
   0x1   :  { %v1180_v0 = vld [vmem:[%s1715_s1 + $0x38] sm:$0xff]  ;;  %v1179_v1 = vld [vmem:[%s1715_s1 + $0x30] sm:$0xff]  ;;  %v1178_v2 = vld [vmem:[%s1715_s1 + $0x28] sm:$0xff] }
   0x2   :  { %1250 = vmatpush.bf16.msra.mxu1 %v1180_v0  ;;  %1251 = vmatpush.bf16.msra.mxu2 %v1180_v0  ;;  %v1177_v3 = vld [vmem:[%s1715_s1 + $0x20] sm:$0xff]  ;;  %v1176_v4 = vld [vmem:[%s1715_s1 + $0x18] sm:$0xff]  ;;  %v1175_v5 = vld [vmem:[%s1715_s1 + $0x10] sm:$0xff] }
   0x3   :  { %1252 = vmatpush.bf16.msra.mxu3 %v1180_v0  ;;  %545 = vmatpush.bf16.msra.mxu0 %v1180_v0  ;;  %v1174_v6 = vld [vmem:[%s1715_s1 + $0x8] sm:$0xff]  ;;  %v1173_v7 = vld [vmem:[%s1715_s1] sm:$0xff]  ;;  %v889_v8 = vld [vmem:[%s1716_s0 + $0x50] sm:$0xf] }
   0x4   :  { %v1150_v9 = vld [vmem:[%s1716_s0 + $0x60] sm:$0xf0]  ;;  %v929_v10 = vld [vmem:[%s1716_s0 + $0xa0] sm:$0xf]  ;;  %v1160_v11 = vld [vmem:[%s1716_s0 + $0xb0] sm:$0xf0] }
   0x5   :  { %v1204_v12 = vld [vmem:[%s1715_s1 + $0xf8] sm:$0xff]  ;;  %v849_v13 = vld [vmem:[%s1716_s0] sm:$0xf]  ;;  %v1140_v14 = vld [vmem:[%s1716_s0 + $0x10] sm:$0xf0]  ;;  %v890_v18 = vor.u32 %v1150_v9, %v889_v8  ;;  %v930_v19 = vor.u32 %v1160_v11, %v929_v10 }
   0x6   :  { %1253 = vmatpush.bf16.msra.mxu1 %v1179_v1  ;;  %1254 = vmatpush.bf16.msra.mxu2 %v1179_v1  ;;  %v1196_v15 = vld [vmem:[%s1715_s1 + $0xb8] sm:$0xff]  ;;  %v969_v16 = vld [vmem:[%s1716_s0 + $0xf0] sm:$0xf]  ;;  %v1170_v17 = vld [vmem:[%s1716_s0 + $0x100] sm:$0xf0]  ;;  %v850_v21 = vor.u32 %v1140_v14, %v849_v13 }
   0x7   :  { %1255 = vmatpush.bf16.msra.mxu3 %v1179_v1  ;;  %546 = vmatpush.bf16.msra.mxu0 %v1179_v1  ;;  %v1188_v20 = vld [vmem:[%s1715_s1 + $0x78] sm:$0xff]  ;;  %v970_v22 = vor.u32 %v1170_v17, %v969_v16  ;;  %v1203_v24 = vld [vmem:[%s1715_s1 + $0xf0] sm:$0xff]  ;;  %v1202_v28 = vld [vmem:[%s1715_s1 + $0xe8] sm:$0xff] }
   0x8   :  { %v1208_v23 = vld [vmem:[%s1715_s1 + $0x118] sm:$0xff]  ;;  %v1195_v25 = vld [vmem:[%s1715_s1 + $0xb0] sm:$0xff]  ;;  %v1194_v29 = vld [vmem:[%s1715_s1 + $0xa8] sm:$0xff] }
   0x9   :  { %v1187_v26 = vld [vmem:[%s1715_s1 + $0x70] sm:$0xff]  ;;  %v1186_v30 = vld [vmem:[%s1715_s1 + $0x68] sm:$0xff]  ;;  %v1201_v32 = vld [vmem:[%s1715_s1 + $0xe0] sm:$0xff] }
   0xa   :  { %1256 = vmatpush.bf16.msra.mxu1 %v1178_v2  ;;  %1257 = vmatpush.bf16.msra.mxu2 %v1178_v2  ;;  %v1207_v27 = vld [vmem:[%s1715_s1 + $0x110] sm:$0xff]  ;;  %v1206_v31 = vld [vmem:[%s1715_s1 + $0x108] sm:$0xff]  ;;  %v1193_v33 = vld [vmem:[%s1715_s1 + $0xa0] sm:$0xff] }
   0xb   :  { %1258 = vmatpush.bf16.msra.mxu3 %v1178_v2  ;;  %547 = vmatpush.bf16.msra.mxu0 %v1178_v2  ;;  %v1185_v34 = vld [vmem:[%s1715_s1 + $0x60] sm:$0xff]  ;;  %v909_v35 = vld [vmem:[%s1716_s0 + $0x78] sm:$0xf]  ;;  %v1155_v36 = vld [vmem:[%s1716_s0 + $0x88] sm:$0xf0] }
   0xc   :  { %v949_v37 = vld [vmem:[%s1716_s0 + $0xc8] sm:$0xf]  ;;  %v1165_v38 = vld [vmem:[%s1716_s0 + $0xd8] sm:$0xf0]  ;;  %v1205_v41 = vld [vmem:[%s1715_s1 + $0x100] sm:$0xff]  ;;  %v910_v44 = vor.u32 %v1155_v36, %v909_v35 }
   0xd   :  { %v869_v39 = vld [vmem:[%s1716_s0 + $0x28] sm:$0xf]  ;;  %v1145_v40 = vld [vmem:[%s1716_s0 + $0x38] sm:$0xf0]  ;;  %v950_v45 = vor.u32 %v1165_v38, %v949_v37  ;;  %v1199_v48 = vld [vmem:[%s1715_s1 + $0xd0] sm:$0xff] }
   0xe   :  { %1259 = vmatpush.bf16.msra.mxu1 %v1177_v3  ;;  %1260 = vmatpush.bf16.msra.mxu2 %v1177_v3  ;;  %v1200_v42 = vld [vmem:[%s1715_s1 + $0xd8] sm:$0xff]  ;;  %v870_v47 = vor.u32 %v1145_v40, %v869_v39  ;;  %v1191_v49 = vld [vmem:[%s1715_s1 + $0x90] sm:$0xff]  ;;  %v1198_v51 = vld [vmem:[%s1715_s1 + $0xc8] sm:$0xff] }
   0xf   :  { %1261 = vmatpush.bf16.msra.mxu3 %v1177_v3  ;;  %548 = vmatpush.bf16.msra.mxu0 %v1177_v3  ;;  %v1192_v43 = vld [vmem:[%s1715_s1 + $0x98] sm:$0xff]  ;;  %v1183_v50 = vld [vmem:[%s1715_s1 + $0x50] sm:$0xff]  ;;  %v1190_v52 = vld [vmem:[%s1715_s1 + $0x88] sm:$0xff] }
  0x10   :  { %v1184_v46 = vld [vmem:[%s1715_s1 + $0x58] sm:$0xff]  ;;  %v1182_v53 = vld [vmem:[%s1715_s1 + $0x48] sm:$0xff]  ;;  %v1197_v54 = vld [vmem:[%s1715_s1 + $0xc0] sm:$0xff] }
  0x11   :  { %v1189_v55 = vld [vmem:[%s1715_s1 + $0x80] sm:$0xff]  ;;  %v1139_v56 = vld [vmem:[%s1716_s0 + $0xc] sm:$0xf]  ;;  %v851_v60 = vld [vmem:[%s1716_s0 + $0x14] sm:$0xf0] }
  0x12   :  { %1262 = vmatpush.bf16.msra.mxu1 %v1176_v4  ;;  %1263 = vmatpush.bf16.msra.mxu2 %v1176_v4  ;;  %v859_v57 = vld [vmem:[%s1716_s0 + $0x1c] sm:$0xf0]  ;;  %v1138_v59 = vld [vmem:[%s1716_s0 + $0x4] sm:$0xf]  ;;  %v857_v61 = vld [vmem:[%s1716_s0 + $0x8] sm:$0xf] }
  0x13   :  { %1264 = vmatpush.bf16.msra.mxu3 %v1176_v4  ;;  %549 = vmatpush.bf16.msra.mxu0 %v1176_v4  ;;  %v1181_v58 = vld [vmem:[%s1715_s1 + $0x40] sm:$0xff]  ;;  %v1141_v62 = vld [vmem:[%s1716_s0 + $0x18] sm:$0xf0]  ;;  %v862_v63 = vor.u32 %v1139_v56, %v859_v57  ;;  %v865_v0 = vld [vmem:[%s1716_s0 + $0x10] sm:$0xf]  ;;  %v854_v2 = vor.u32 %v1138_v59, %v851_v60 }
  0x14   :  { %v1142_v1 = vld [vmem:[%s1716_s0 + $0x20] sm:$0xf0]  ;;  %v858_v3 = vor.u32 %v1141_v62, %v857_v61  ;;  %v871_v8 = vld [vmem:[%s1716_s0 + $0x3c] sm:$0xf0]  ;;  %v877_v9 = vld [vmem:[%s1716_s0 + $0x30] sm:$0xf] }
  0x15   :  { %v866_v4 = vor.u32 %v1142_v1, %v865_v0  ;;  %v1146_v10 = vld [vmem:[%s1716_s0 + $0x40] sm:$0xf0]  ;;  %v1147_v13 = vld [vmem:[%s1716_s0 + $0x48] sm:$0xf0]  ;;  %v1149_v17 = vld [vmem:[%s1716_s0 + $0x5c] sm:$0xf] }
  0x16   :  { %1265 = vmatpush.bf16.msra.mxu1 %v1175_v5  ;;  %1266 = vmatpush.bf16.msra.mxu2 %v1175_v5  ;;  %v925_v36 = vld [vmem:[%s1716_s0 + $0x88] sm:$0xf]  ;;  %v1157_v37 = vld [vmem:[%s1716_s0 + $0x98] sm:$0xf0]  ;;  %v951_v56 = vld [vmem:[%s1716_s0 + $0xdc] sm:$0xf0] }
  0x17   :  { %1267 = vmatpush.bf16.msra.mxu3 %v1175_v5  ;;  %550 = vmatpush.bf16.msra.mxu0 %v1175_v5  ;;  %v1144_v5 = vld [vmem:[%s1716_s0 + $0x34] sm:$0xf]  ;;  %v926_v40 = vor.u32 %v1157_v37, %v925_v36  ;;  %v957_v57 = vld [vmem:[%s1716_s0 + $0xd0] sm:$0xf]  ;;  %v965_v60 = vld [vmem:[%s1716_s0 + $0xd8] sm:$0xf] }
  0x18   :  { %v1167_v61 = vld [vmem:[%s1716_s0 + $0xe8] sm:$0xf0]  ;;  %v1169_v1 = vld [vmem:[%s1716_s0 + $0xfc] sm:$0xf] }
  0x19   :  { %v966_v0 = vor.u32 %v1167_v61, %v965_v60 }
  0x1a   :  { %1268 = vmatpush.bf16.msra.mxu1 %v1174_v6  ;;  %1269 = vmatpush.bf16.msra.mxu2 %v1174_v6 }
  0x1b   :  { %1270 = vmatpush.bf16.msra.mxu3 %v1174_v6  ;;  %551 = vmatpush.bf16.msra.mxu0 %v1174_v6  ;;  %v879_v6 = vld [vmem:[%s1716_s0 + $0x44] sm:$0xf0] }
  0x1c   :  { %v882_v11 = vor.u32 %v1144_v5, %v879_v6  ;;  %v977_v5 = vld [vmem:[%s1716_s0 + $0xf8] sm:$0xf]  ;;  %v1171_v6 = vld [vmem:[%s1716_s0 + $0x108] sm:$0xf0] }
  0x1e   :  { %1271 = vmatpush.bf16.msra.mxu1 %v1173_v7  ;;  %1272 = vmatpush.bf16.msra.mxu2 %v1173_v7 }
  0x1f   :  { %1273 = vmatpush.bf16.msra.mxu3 %v1173_v7  ;;  %552 = vmatpush.bf16.msra.mxu0 %v1173_v7  ;;  %v1143_v7 = vld [vmem:[%s1716_s0 + $0x2c] sm:$0xf] }
  0x20   :  { %v874_v14 = vor.u32 %v1143_v7, %v871_v8  ;;  %v985_v8 = vld [vmem:[%s1716_s0 + $0x100] sm:$0xf] }
  0x21   :  { %563 = vmatmul.bf16.vlgmr.msra.gmra.mxu1 %v890_v18  ;;  %573 = vmatmul.bf16.vlgmr.msra.gmra.mxu2 %v930_v19  ;;  %v899_v18 = vld [vmem:[%s1716_s0 + $0x6c] sm:$0xf0]  ;;  %v1148_v19 = vld [vmem:[%s1716_s0 + $0x54] sm:$0xf] }
  0x22   :  { %633 = vmatpush.bf16.msrb.mxu2 %v1196_v15  ;;  %589 = vmatpush.bf16.msrb.mxu1 %v1188_v20  ;;  %v878_v15 = vor.u32 %v1146_v10, %v877_v9  ;;  %v891_v20 = vld [vmem:[%s1716_s0 + $0x64] sm:$0xf0]  ;;  %v1172_v9 = vld [vmem:[%s1716_s0 + $0x110] sm:$0xf0] }
  0x23   :  { %677 = vmatpush.bf16.msrb.mxu3 %v1204_v12  ;;  %553 = vmatmul.bf16.vlgmr.msra.gmra.mxu0 %v850_v21  ;;  %v885_v12 = vld [vmem:[%s1716_s0 + $0x38] sm:$0xf] }
  0x24   :  { %583 = vmatmul.bf16.vlgmr.msra.gmra.mxu3 %v970_v22  ;;  %725 = vmatpush.bf16.msrb.mxu0 %v1208_v23  ;;  %v886_v16 = vor.u32 %v1147_v13, %v885_v12  ;;  %v897_v21 = vld [vmem:[%s1716_s0 + $0x58] sm:$0xf]  ;;  %v1151_v22 = vld [vmem:[%s1716_s0 + $0x68] sm:$0xf0]  ;;  %v902_v23 = vor.u32 %v1149_v17, %v899_v18  ;;  %v986_v13 = vor.u32 %v1172_v9, %v985_v8 }
  0x26   :  { %634 = vmatpush.bf16.msrb.mxu2 %v1195_v25  ;;  %590 = vmatpush.bf16.msrb.mxu1 %v1187_v26  ;;  %v1152_v25 = vld [vmem:[%s1716_s0 + $0x70] sm:$0xf0]  ;;  %v894_v26 = vor.u32 %v1148_v19, %v891_v20 }
  0x27   :  { %678 = vmatpush.bf16.msrb.mxu3 %v1203_v24  ;;  %v905_v24 = vld [vmem:[%s1716_s0 + $0x60] sm:$0xf] }
  0x28   :  { %726 = vmatpush.bf16.msrb.mxu0 %v1207_v27  ;;  %v898_v27 = vor.u32 %v1151_v22, %v897_v21 }
  0x2a   :  { %635 = vmatpush.bf16.msrb.mxu2 %v1194_v29  ;;  %591 = vmatpush.bf16.msrb.mxu1 %v1186_v30  ;;  %v1154_v29 = vld [vmem:[%s1716_s0 + $0x84] sm:$0xf]  ;;  %v919_v30 = vld [vmem:[%s1716_s0 + $0x94] sm:$0xf0] }
  0x2b   :  { %679 = vmatpush.bf16.msrb.mxu3 %v1202_v28  ;;  %v906_v28 = vor.u32 %v1152_v25, %v905_v24  ;;  %v922_v35 = vor.u32 %v1154_v29, %v919_v30 }
  0x2c   :  { %727 = vmatpush.bf16.msrb.mxu0 %v1206_v31  ;;  %v1153_v31 = vld [vmem:[%s1716_s0 + $0x7c] sm:$0xf] }
  0x2e   :  { %636 = vmatpush.bf16.msrb.mxu2 %v1193_v33  ;;  %592 = vmatpush.bf16.msrb.mxu1 %v1185_v34  ;;  %v917_v33 = vld [vmem:[%s1716_s0 + $0x80] sm:$0xf]  ;;  %v1156_v34 = vld [vmem:[%s1716_s0 + $0x90] sm:$0xf0] }
  0x2f   :  { %680 = vmatpush.bf16.msrb.mxu3 %v1201_v32  ;;  %v911_v32 = vld [vmem:[%s1716_s0 + $0x8c] sm:$0xf0]  ;;  %v918_v39 = vor.u32 %v1156_v34, %v917_v33 }
  0x30   :  { %728 = vmatpush.bf16.msrb.mxu0 %v1205_v41  ;;  %v914_v38 = vor.u32 %v1153_v31, %v911_v32  ;;  %v1159_v41 = vld [vmem:[%s1716_s0 + $0xac] sm:$0xf] }
  0x31   :  { %568 = vmatmul.bf16.gmra.mxu1 %v910_v44  ;;  %578 = vmatmul.bf16.gmra.mxu2 %v950_v45  ;;  %v931_v44 = vld [vmem:[%s1716_s0 + $0xb4] sm:$0xf0]  ;;  %v937_v45 = vld [vmem:[%s1716_s0 + $0xa8] sm:$0xf] }
  0x32   :  { %637 = vmatpush.bf16.msrb.mxu2 %v1192_v43  ;;  %593 = vmatpush.bf16.msrb.mxu1 %v1184_v46  ;;  %v1158_v43 = vld [vmem:[%s1716_s0 + $0xa4] sm:$0xf]  ;;  %v1161_v46 = vld [vmem:[%s1716_s0 + $0xb8] sm:$0xf0] }
  0x33   :  { %681 = vmatpush.bf16.msrb.mxu3 %v1200_v42  ;;  %558 = vmatmul.bf16.gmra.mxu0 %v870_v47  ;;  %v939_v42 = vld [vmem:[%s1716_s0 + $0xbc] sm:$0xf0] }
  0x34   :  { %v942_v47 = vor.u32 %v1159_v41, %v939_v42 }
  0x36   :  { %638 = vmatpush.bf16.msrb.mxu2 %v1191_v49  ;;  %594 = vmatpush.bf16.msrb.mxu1 %v1183_v50  ;;  %v1162_v49 = vld [vmem:[%s1716_s0 + $0xc0] sm:$0xf0]  ;;  %v934_v50 = vor.u32 %v1158_v43, %v931_v44  ;;  %v1655_v44 = vld [vmem:[%s1718_s3] ss:$0 sm:$0xff] }
  0x37   :  { %682 = vmatpush.bf16.msrb.mxu3 %v1199_v48  ;;  %v945_v48 = vld [vmem:[%s1716_s0 + $0xb0] sm:$0xf] }
  0x3a   :  { %639 = vmatpush.bf16.msrb.mxu2 %v1190_v52  ;;  %595 = vmatpush.bf16.msrb.mxu1 %v1182_v53  ;;  %v946_v52 = vor.u32 %v1162_v49, %v945_v48  ;;  %v1164_v53 = vld [vmem:[%s1716_s0 + $0xd4] sm:$0xf] }
  0x3b   :  { %683 = vmatpush.bf16.msrb.mxu3 %v1198_v51  ;;  %v938_v51 = vor.u32 %v1161_v46, %v937_v45 }
  0x3e   :  { %640 = vmatpush.bf16.msrb.mxu2 %v1189_v55  ;;  %596 = vmatpush.bf16.msrb.mxu1 %v1181_v58  ;;  %v1163_v55 = vld [vmem:[%s1716_s0 + $0xcc] sm:$0xf]  ;;  %v1166_v58 = vld [vmem:[%s1716_s0 + $0xe0] sm:$0xf0] }
  0x3f   :  { %684 = vmatpush.bf16.msrb.mxu3 %v1197_v54  ;;  %v959_v54 = vld [vmem:[%s1716_s0 + $0xe4] sm:$0xf0]  ;;  %v954_v62 = vor.u32 %v1163_v55, %v951_v56 }
  0x40   :  { %v962_v59 = vor.u32 %v1164_v53, %v959_v54 }
  0x41   :  { %597 = vmatmul.bf16.vlgmr.msrb.gmra.mxu1 %v854_v2  ;;  %641 = vmatmul.bf16.vlgmr.msrb.gmra.mxu2 %v858_v3  ;;  %v979_v2 = vld [vmem:[%s1716_s0 + $0x10c] sm:$0xf0]  ;;  %v1168_v3 = vld [vmem:[%s1716_s0 + $0xf4] sm:$0xf] }
  0x42   :  { %685 = vmatmul.bf16.vlgmr.msrb.gmra.mxu3 %v862_v63  ;;  %v958_v63 = vor.u32 %v1166_v58, %v957_v57  ;;  %v982_v7 = vor.u32 %v1169_v1, %v979_v2 }
  0x43   :  { %1131 = vmatmul.msk.bf16.vlgmr.msrb.gmra.mxu0 %vm523_vm0, %v866_v4  ;;  %v971_v4 = vld [vmem:[%s1716_s0 + $0x104] sm:$0xf0] }
  0x44   :  { %v974_v10 = vor.u32 %v1168_v3, %v971_v4 }
  0x51   :  { %602 = vmatmul.bf16.gmra.mxu1 %v874_v14  ;;  %646 = vmatmul.bf16.gmra.mxu2 %v878_v15 }
  0x52   :  { %690 = vmatmul.bf16.gmra.mxu3 %v882_v11  ;;  %v978_v11 = vor.u32 %v1171_v6, %v977_v5 }
  0x53   :  { %1132 = vmatmul.msk.bf16.gmra.mxu0 %vm523_vm0, %v886_v16 }
  0x61   :  { %607 = vmatmul.bf16.gmra.mxu1 %v894_v26  ;;  %651 = vmatmul.bf16.gmra.mxu2 %v898_v27 }
  0x62   :  { %695 = vmatmul.bf16.gmra.mxu3 %v902_v23 }
  0x63   :  { %1133 = vmatmul.msk.bf16.gmra.mxu0 %vm523_vm0, %v906_v28 }
  0x71   :  { %612 = vmatmul.bf16.gmra.mxu1 %v914_v38  ;;  %656 = vmatmul.bf16.gmra.mxu2 %v918_v39  ;;  %v1649_v38 = vld [vmem:[%s1717_s2] ss:$0 sm:$0xff] }
  0x72   :  { %700 = vmatmul.bf16.gmra.mxu3 %v922_v35 }
  0x73   :  { %1134 = vmatmul.msk.bf16.gmra.mxu0 %vm523_vm0, %v926_v40 }
  0x81   :  { %617 = vmatmul.bf16.gmra.mxu1 %v934_v50  ;;  %661 = vmatmul.bf16.gmra.mxu2 %v938_v51 }
  0x82   :  { %705 = vmatmul.bf16.gmra.mxu3 %v942_v47 }
  0x83   :  { %1135 = vmatmul.msk.bf16.gmra.mxu0 %vm523_vm0, %v946_v52 }
  0x91   :  { %622 = vmatmul.bf16.gmra.mxu1 %v954_v62  ;;  %666 = vmatmul.bf16.gmra.mxu2 %v958_v63 }
  0x92   :  { %710 = vmatmul.bf16.gmra.mxu3 %v962_v59 }
  0x93   :  { %1136 = vmatmul.msk.bf16.gmra.mxu0 %vm523_vm0, %v966_v0 }
  0x9e   :  { %v1625_v12 = vpop.f32.mrf.mxu1 }
  0xa0   :  { %v554_v14 = vpop.f32.mrf.mxu0 }
  0xa1   :  { %627 = vmatmul.bf16.gmra.mxu1 %v974_v10  ;;  %671 = vmatmul.bf16.gmra.mxu2 %v978_v11 }
  0xa2   :  { %715 = vmatmul.bf16.gmra.mxu3 %v982_v7 }
  0xa3   :  { %1137 = vmatmul.msk.bf16.gmra.mxu0 %vm523_vm0, %v986_v13 }
  0xa4   :  { %v1628_v15 = vpop.f32.mrf.mxu2 }
  0xa6   :  { %v1630_v16 = vpop.f32.mrf.mxu1 }
  0xa7   :  { %v1636_v21 = vpop.f32.mrf.mxu3 }
  0xa8   :  { %v556_v17 = vpop.f32.mrf.mxu0 }
  0xac   :  { %v1632_v18 = vpop.f32.mrf.mxu2 }
  0xae   :  { %v1634_v19 = vpop.f32.mrf.mxu1 }
  0xaf   :  { %v1642_v25 = vpop.f32.mrf.mxu3 }
  0xb0   :  { %v559_v20 = vpop.f32.mrf.mxu0 }
  0xb4   :  { %v1638_v22 = vpop.f32.mrf.mxu2 }
  0xb6   :  { %v1640_v23 = vpop.f32.mrf.mxu1 }
  0xb8   :  { %v561_v24 = vpop.f32.mrf.mxu0 }
  0xbc   :  { %v1644_v26 = vpop.f32.mrf.mxu2 }
  0xbe   :  { %v598_v27 = vpop.f32.mrf.mxu1 }
  0xbf   :  { %v599_v30 = vadd.f32 %v598_v27, %v554_v14 }
  0xc0   :  { %v730_v28 = vpop.f32.mrf.mxu0 }
  0xc4   :  { %v642_v31 = vpop.f32.mrf.mxu2 }
  0xc5   :  { %v686_v29 = vpop.f32.mrf.mxu3  ;;  %v643_v32 = vadd.f32 %v642_v31, %v599_v30 }
  0xc6   :  { %v600_v33 = vpop.f32.mrf.mxu1 }
  0xc7   :  { %v687_v34 = vadd.f32 %v686_v29, %v643_v32  ;;  %v601_v39 = vadd.f32 %v600_v33, %v556_v17 }
  0xc8   :  { %v732_v35 = vpop.f32.mrf.mxu0 }
  0xc9   :  { %v731_v37 = vadd.f32 %v730_v28, %v687_v34 }
  0xcb   :  { %v769_v43 = vmul.f32 %v1649_v38, %v731_v37 }
  0xcc   :  { %v644_v40 = vpop.f32.mrf.mxu2 }
  0xcd   :  { %v688_v36 = vpop.f32.mrf.mxu3  ;;  %v645_v41 = vadd.f32 %v644_v40, %v601_v39  ;;  %v787_v49 = vadd.f32 %v1655_v44, %v769_v43 }
  0xce   :  { %v603_v42 = vpop.f32.mrf.mxu1 }
  0xcf   :  { %v689_v45 = vadd.f32 %v688_v36, %v645_v41  ;;  %v604_v51 = vadd.f32 %v603_v42, %v559_v20  ;;  %v801_v56 = vmax.f32 %v787_v49, 0.0 }
  0xd0   :  { %v735_v46 = vpop.f32.mrf.mxu0 }
  0xd1   :  { %v733_v47 = vadd.f32 %v732_v35, %v689_v45 }
  0xd3   :  { %v770_v50 = vmul.f32 %v1649_v38, %v733_v47 }
  0xd4   :  { %v647_v52 = vpop.f32.mrf.mxu2 }
  0xd5   :  { %v691_v48 = vpop.f32.mrf.mxu3  ;;  %v788_v53 = vadd.f32 %v1655_v44, %v770_v50  ;;  %v648_v54 = vadd.f32 %v647_v52, %v604_v51 }
  0xd6   :  { %v605_v55 = vpop.f32.mrf.mxu1 }
  0xd7   :  { %v802_v57 = vmax.f32 %v788_v53, 0.0  ;;  %v692_v58 = vadd.f32 %v691_v48, %v648_v54  ;;  %v606_v63 = vadd.f32 %v605_v55, %v561_v24 }
  0xd8   :  { %v737_v59 = vpop.f32.mrf.mxu0 }
  0xd9   :  { %v1212_v60 = vpack.c.bf16 %v802_v57, %v801_v56  ;;  %v736_v62 = vadd.f32 %v735_v46, %v692_v58 }
  0xdb   :  { %1213 = vst [vmem:[%s1719_s4] sm:$0xff] %v1212_v60   ;;  %v771_v3 = vmul.f32 %v1649_v38, %v736_v62 }
  0xdc   :  { %v649_v0 = vpop.f32.mrf.mxu2 }
  0xdd   :  { %v693_v61 = vpop.f32.mrf.mxu3  ;;  %v650_v1 = vadd.f32 %v649_v0, %v606_v63  ;;  %v789_v8 = vadd.f32 %v1655_v44, %v771_v3 }
  0xde   :  { %v608_v2 = vpop.f32.mrf.mxu1 }
  0xdf   :  { %v694_v4 = vadd.f32 %v693_v61, %v650_v1  ;;  %v609_v10 = vadd.f32 %v608_v2, %v1625_v12  ;;  %v803_v20 = vmax.f32 %v789_v8, 0.0 }
  0xe0   :  { %v740_v5 = vpop.f32.mrf.mxu0 }
  0xe1   :  { %v738_v6 = vadd.f32 %v737_v59, %v694_v4 }
  0xe3   :  { %v772_v9 = vmul.f32 %v1649_v38, %v738_v6 }
  0xe4   :  { %v652_v11 = vpop.f32.mrf.mxu2 }
  0xe5   :  { %v696_v7 = vpop.f32.mrf.mxu3  ;;  %v790_v13 = vadd.f32 %v1655_v44, %v772_v9  ;;  %v653_v14 = vadd.f32 %v652_v11, %v609_v10 }
  0xe6   :  { %v610_v17 = vpop.f32.mrf.mxu1 }
  0xe7   :  { %v804_v24 = vmax.f32 %v790_v13, 0.0  ;;  %v697_v27 = vadd.f32 %v696_v7, %v653_v14  ;;  %v611_v32 = vadd.f32 %v610_v17, %v1630_v16 }
  0xe8   :  { %v742_v28 = vpop.f32.mrf.mxu0 }
  0xe9   :  { %v1217_v29 = vpack.c.bf16 %v804_v24, %v803_v20  ;;  %v741_v31 = vadd.f32 %v740_v5, %v697_v27 }
  0xeb   :  { %1244 = vst [vmem:[%s1719_s4 + $0x8] sm:$0xff] %v1217_v29   ;;  %v773_v35 = vmul.f32 %v1649_v38, %v741_v31 }
  0xec   :  { %v654_v33 = vpop.f32.mrf.mxu2 }
  0xed   :  { %v698_v30 = vpop.f32.mrf.mxu3  ;;  %v655_v12 = vadd.f32 %v654_v33, %v611_v32  ;;  %v791_v41 = vadd.f32 %v1655_v44, %v773_v35 }
  0xee   :  { %v613_v34 = vpop.f32.mrf.mxu1 }
  0xef   :  { %v699_v36 = vadd.f32 %v698_v30, %v655_v12  ;;  %v614_v43 = vadd.f32 %v613_v34, %v1634_v19  ;;  %v805_v48 = vmax.f32 %v791_v41, 0.0 }
  0xf0   :  { %v745_v37 = vpop.f32.mrf.mxu0 }
  0xf1   :  { %v743_v39 = vadd.f32 %v742_v28, %v699_v36 }
  0xf3   :  { %v774_v42 = vmul.f32 %v1649_v38, %v743_v39 }
  0xf4   :  { %v657_v45 = vpop.f32.mrf.mxu2 }
  0xf5   :  { %v701_v40 = vpop.f32.mrf.mxu3  ;;  %v792_v46 = vadd.f32 %v1655_v44, %v774_v42  ;;  %v658_v47 = vadd.f32 %v657_v45, %v614_v43 }
  0xf6   :  { %v615_v16 = vpop.f32.mrf.mxu1 }
  0xf7   :  { %v806_v49 = vmax.f32 %v792_v46, 0.0  ;;  %v702_v50 = vadd.f32 %v701_v40, %v658_v47  ;;  %v616_v55 = vadd.f32 %v615_v16, %v1640_v23 }
  0xf8   :  { %v747_v51 = vpop.f32.mrf.mxu0 }
  0xf9   :  { %v1222_v52 = vpack.c.bf16 %v806_v49, %v805_v48  ;;  %v746_v54 = vadd.f32 %v745_v37, %v702_v50 }
  0xfb   :  { %1245 = vst [vmem:[%s1719_s4 + $0x10] sm:$0xff] %v1222_v52   ;;  %v775_v58 = vmul.f32 %v1649_v38, %v746_v54 }
  0xfc   :  { %v659_v56 = vpop.f32.mrf.mxu2 }
  0xfd   :  { %v703_v53 = vpop.f32.mrf.mxu3  ;;  %v660_v19 = vadd.f32 %v659_v56, %v616_v55  ;;  %v793_v63 = vadd.f32 %v1655_v44, %v775_v58 }
  0xfe   :  { %v618_v57 = vpop.f32.mrf.mxu1 }
  0xff   :  { %v704_v59 = vadd.f32 %v703_v53, %v660_v19  ;;  %v619_v1 = vadd.f32 %v618_v57, %v1628_v15  ;;  %v807_v5 = vmax.f32 %v793_v63, 0.0 }
 0x100   :  { %v750_v60 = vpop.f32.mrf.mxu0 }
 0x101   :  { %v748_v61 = vadd.f32 %v747_v51, %v704_v59 }
 0x103   :  { %v776_v0 = vmul.f32 %v1649_v38, %v748_v61 }
 0x104   :  { %v662_v2 = vpop.f32.mrf.mxu2 }
 0x105   :  { %v706_v62 = vpop.f32.mrf.mxu3  ;;  %v794_v3 = vadd.f32 %v1655_v44, %v776_v0  ;;  %v663_v4 = vadd.f32 %v662_v2, %v619_v1 }
 0x106   :  { %v620_v23 = vpop.f32.mrf.mxu1 }
 0x107   :  { %v808_v6 = vmax.f32 %v794_v3, 0.0  ;;  %v707_v7 = vadd.f32 %v706_v62, %v663_v4  ;;  %v621_v13 = vadd.f32 %v620_v23, %v1632_v18 }
 0x108   :  { %v752_v8 = vpop.f32.mrf.mxu0 }
 0x109   :  { %v1227_v9 = vpack.c.bf16 %v808_v6, %v807_v5  ;;  %v751_v11 = vadd.f32 %v750_v60, %v707_v7 }
 0x10b   :  { %1246 = vst [vmem:[%s1719_s4 + $0x18] sm:$0xff] %v1227_v9   ;;  %v777_v20 = vmul.f32 %v1649_v38, %v751_v11 }
 0x10c   :  { %v664_v14 = vpop.f32.mrf.mxu2 }
 0x10d   :  { %v708_v10 = vpop.f32.mrf.mxu3  ;;  %v665_v15 = vadd.f32 %v664_v14, %v621_v13  ;;  %v795_v30 = vadd.f32 %v1655_v44, %v777_v20 }
 0x10e   :  { %v623_v17 = vpop.f32.mrf.mxu1 }
 0x10f   :  { %v709_v24 = vadd.f32 %v708_v10, %v665_v15  ;;  %v624_v32 = vadd.f32 %v623_v17, %v1638_v22  ;;  %v809_v35 = vmax.f32 %v795_v30, 0.0 }
 0x110   :  { %v755_v28 = vpop.f32.mrf.mxu0 }
 0x111   :  { %v753_v27 = vadd.f32 %v752_v8, %v709_v24 }
 0x113   :  { %v778_v31 = vmul.f32 %v1649_v38, %v753_v27 }
 0x114   :  { %v667_v33 = vpop.f32.mrf.mxu2 }
 0x115   :  { %v711_v29 = vpop.f32.mrf.mxu3  ;;  %v796_v12 = vadd.f32 %v1655_v44, %v778_v31  ;;  %v668_v34 = vadd.f32 %v667_v33, %v624_v32 }
 0x116   :  { %v625_v18 = vpop.f32.mrf.mxu1 }
 0x117   :  { %v810_v36 = vmax.f32 %v796_v12, 0.0  ;;  %v712_v37 = vadd.f32 %v711_v29, %v668_v34  ;;  %v626_v42 = vadd.f32 %v625_v18, %v1644_v26 }
 0x118   :  { %v757_v43 = vpop.f32.mrf.mxu0 }
 0x119   :  { %v1232_v39 = vpack.c.bf16 %v810_v36, %v809_v35  ;;  %v756_v41 = vadd.f32 %v755_v28, %v712_v37 }
 0x11b   :  { %1247 = vst [vmem:[%s1719_s4 + $0x20] sm:$0xff] %v1232_v39   ;;  %v779_v47 = vmul.f32 %v1649_v38, %v756_v41 }
 0x11c   :  { %v669_v45 = vpop.f32.mrf.mxu2 }
 0x11d   :  { %v713_v40 = vpop.f32.mrf.mxu3  ;;  %v670_v22 = vadd.f32 %v669_v45, %v626_v42  ;;  %v797_v49 = vadd.f32 %v1655_v44, %v779_v47 }
 0x11e   :  { %v628_v46 = vpop.f32.mrf.mxu1 }
 0x11f   :  { %v714_v16 = vadd.f32 %v713_v40, %v670_v22  ;;  %v629_v51 = vadd.f32 %v628_v46, %v1636_v21  ;;  %v811_v56 = vmax.f32 %v797_v49, 0.0 }
 0x120   :  { %v760_v26 = vpop.f32.mrf.mxu0 }
 0x121   :  { %v758_v48 = vadd.f32 %v757_v43, %v714_v16 }
 0x123   :  { %v780_v50 = vmul.f32 %v1649_v38, %v758_v48 }
 0x124   :  { %v672_v53 = vpop.f32.mrf.mxu2 }
 0x125   :  { %v716_v52 = vpop.f32.mrf.mxu3  ;;  %v798_v54 = vadd.f32 %v1655_v44, %v780_v50  ;;  %v673_v55 = vadd.f32 %v672_v53, %v629_v51 }
 0x126   :  { %v630_v58 = vpop.f32.mrf.mxu1 }
 0x127   :  { %v812_v19 = vmax.f32 %v798_v54, 0.0  ;;  %v717_v57 = vadd.f32 %v716_v52, %v673_v55  ;;  %v631_v61 = vadd.f32 %v630_v58, %v1642_v25 }
 0x128   :  { %v762_v2 = vpop.f32.mrf.mxu0 }
 0x129   :  { %v1237_v59 = vpack.c.bf16 %v812_v19, %v811_v56  ;;  %v761_v60 = vadd.f32 %v760_v26, %v717_v57 }
 0x12b   :  { %1248 = vst [vmem:[%s1719_s4 + $0x28] sm:$0xff] %v1237_v59   ;;  %v781_v0 = vmul.f32 %v1649_v38, %v761_v60 }
 0x12c   :  { %v674_v62 = vpop.f32.mrf.mxu2 }
 0x12d   :  { %v675_v21 = vadd.f32 %v674_v62, %v631_v61  ;;  %v718_v63 = vpop.f32.mrf.mxu3  ;;  %v799_v4 = vadd.f32 %v1655_v44, %v781_v0 }
 0x12f   :  { %v719_v1 = vadd.f32 %v718_v63, %v675_v21  ;;  %v813_v6 = vmax.f32 %v799_v4, 0.0 }
 0x131   :  { %v763_v3 = vadd.f32 %v762_v2, %v719_v1 }
 0x133   :  { %v782_v23 = vmul.f32 %v1649_v38, %v763_v3 }
 0x135   :  { %v800_v5 = vadd.f32 %v1655_v44, %v782_v23 }
 0x137   :  { %v814_v7 = vmax.f32 %v800_v5, 0.0 }
 0x139   :  { %v1242_v8 = vpack.c.bf16 %v814_v7, %v813_v6 }
 0x13b   :  { %1249 = vst [vmem:[%s1719_s4 + $0x30] sm:$0xff] %v1242_v8  }

// kernel: dqnbn_forward.7
= control target key start
LH: loop header
LB: loop body
LE: loop exit
PB: predicated region body
PF: predicated region fallthrough
CT: control target
= control target key end

     0   :  { %vm4886_vm0 = vcmask 523264   ;;  %s16306_s1 = inlined_call_operand.vmem [shape: bf16[3136,512], index: 1, kind: input, shape index: {}]   ;;  %s16307_s0 = inlined_call_operand.vmem [shape: bf16[16,3136], index: 0, kind: input, shape index: {}]   ;;  %s16308_s2 = inlined_call_operand.vmem [shape: f32[1,512], index: 2, kind: input, shape index: {}]   ;;  %s16309_s3 = inlined_call_operand.vmem [shape: bf16[512,128], index: 3, kind: input, shape index: {}]   ;;  %s16310_s4 = inlined_call_operand.vmem [shape: f32[1,128], index: 4, kind: input, shape index: {}]   ;;  %s16311_s5 = inlined_call_operand.vmem [shape: f32[16,128], index: 5, kind: output, shape index: {}]  }
   0x1   :  { %v6838_v0 = vld [vmem:[%s16306_s1 + $0xe0] sm:$0xf]  ;;  %v10047_v1 = vld [vmem:[%s16306_s1 + $0xec] sm:$0xf0] }
   0x2   :  { %v6966_v2 = vld [vmem:[%s16306_s1 + $0x1e0] sm:$0xf]  ;;  %v6839_v3 = vor.u32 %v10047_v1, %v6838_v0  ;;  %v10079_v4 = vld [vmem:[%s16306_s1 + $0x1ec] sm:$0xf0] }
   0x3   :  { %v7094_v5 = vld [vmem:[%s16306_s1 + $0x2e0] sm:$0xf]  ;;  %v10111_v6 = vld [vmem:[%s16306_s1 + $0x2ec] sm:$0xf0]  ;;  %v6967_v7 = vor.u32 %v10079_v4, %v6966_v2 }
   0x4   :  { %v7095_v8 = vor.u32 %v10111_v6, %v7094_v5  ;;  %v7222_v9 = vld [vmem:[%s16306_s1 + $0x3e0] sm:$0xf]  ;;  %v10143_v10 = vld [vmem:[%s16306_s1 + $0x3ec] sm:$0xf0]  ;;  %4890 = vmatpush.bf16.msra.mxu0 %v6839_v3 }
   0x5   :  { %v6822_v11 = vld [vmem:[%s16306_s1 + $0xc0] sm:$0xf]  ;;  %v7223_v12 = vor.u32 %v10143_v10, %v7222_v9  ;;  %v10043_v13 = vld [vmem:[%s16306_s1 + $0xcc] sm:$0xf0]  ;;  %4904 = vmatpush.bf16.msra.mxu1 %v6967_v7 }
   0x6   :  { %v6950_v14 = vld [vmem:[%s16306_s1 + $0x1c0] sm:$0xf]  ;;  %v10075_v15 = vld [vmem:[%s16306_s1 + $0x1cc] sm:$0xf0]  ;;  %4918 = vmatpush.bf16.msra.mxu2 %v7095_v8  ;;  %v6823_v16 = vor.u32 %v10043_v13, %v6822_v11 }
   0x7   :  { %v6951_v17 = vor.u32 %v10075_v15, %v6950_v14  ;;  %v7078_v18 = vld [vmem:[%s16306_s1 + $0x2c0] sm:$0xf]  ;;  %v10107_v19 = vld [vmem:[%s16306_s1 + $0x2cc] sm:$0xf0]  ;;  %4932 = vmatpush.bf16.msra.mxu3 %v7223_v12 }
   0x8   :  { %v7206_v20 = vld [vmem:[%s16306_s1 + $0x3c0] sm:$0xf]  ;;  %v7079_v21 = vor.u32 %v10107_v19, %v7078_v18  ;;  %v10139_v22 = vld [vmem:[%s16306_s1 + $0x3cc] sm:$0xf0]  ;;  %4891 = vmatpush.bf16.msra.mxu0 %v6823_v16 }
   0x9   :  { %v6806_v23 = vld [vmem:[%s16306_s1 + $0xa0] sm:$0xf]  ;;  %v10039_v24 = vld [vmem:[%s16306_s1 + $0xac] sm:$0xf0]  ;;  %v7207_v25 = vor.u32 %v10139_v22, %v7206_v20  ;;  %4905 = vmatpush.bf16.msra.mxu1 %v6951_v17 }
   0xa   :  { %v6934_v26 = vld [vmem:[%s16306_s1 + $0x1a0] sm:$0xf]  ;;  %v10071_v27 = vld [vmem:[%s16306_s1 + $0x1ac] sm:$0xf0]  ;;  %v6807_v29 = vor.u32 %v10039_v24, %v6806_v23  ;;  %4919 = vmatpush.bf16.msra.mxu2 %v7079_v21 }
   0xb   :  { %v7062_v28 = vld [vmem:[%s16306_s1 + $0x2a0] sm:$0xf]  ;;  %v10103_v30 = vld [vmem:[%s16306_s1 + $0x2ac] sm:$0xf0]  ;;  %v6935_v33 = vor.u32 %v10071_v27, %v6934_v26  ;;  %4933 = vmatpush.bf16.msra.mxu3 %v7207_v25 }
   0xc   :  { %v7190_v31 = vld [vmem:[%s16306_s1 + $0x3a0] sm:$0xf]  ;;  %v10135_v32 = vld [vmem:[%s16306_s1 + $0x3ac] sm:$0xf0]  ;;  %v7063_v34 = vor.u32 %v10103_v30, %v7062_v28  ;;  %4892 = vmatpush.bf16.msra.mxu0 %v6807_v29 }
   0xd   :  { %v6790_v35 = vld [vmem:[%s16306_s1 + $0x80] sm:$0xf]  ;;  %v10035_v36 = vld [vmem:[%s16306_s1 + $0x8c] sm:$0xf0]  ;;  %v7191_v38 = vor.u32 %v10135_v32, %v7190_v31  ;;  %4906 = vmatpush.bf16.msra.mxu1 %v6935_v33 }
   0xe   :  { %v6918_v37 = vld [vmem:[%s16306_s1 + $0x180] sm:$0xf]  ;;  %v10067_v39 = vld [vmem:[%s16306_s1 + $0x18c] sm:$0xf0]  ;;  %v6791_v44 = vor.u32 %v10035_v36, %v6790_v35  ;;  %4920 = vmatpush.bf16.msra.mxu2 %v7063_v34 }
   0xf   :  { %v7046_v40 = vld [vmem:[%s16306_s1 + $0x280] sm:$0xf]  ;;  %v10099_v41 = vld [vmem:[%s16306_s1 + $0x28c] sm:$0xf0]  ;;  %v6919_v45 = vor.u32 %v10067_v39, %v6918_v37  ;;  %4934 = vmatpush.bf16.msra.mxu3 %v7191_v38 }
  0x10   :  { %v7174_v42 = vld [vmem:[%s16306_s1 + $0x380] sm:$0xf]  ;;  %v10131_v43 = vld [vmem:[%s16306_s1 + $0x38c] sm:$0xf0]  ;;  %v7047_v46 = vor.u32 %v10099_v41, %v7046_v40  ;;  %4893 = vmatpush.bf16.msra.mxu0 %v6791_v44 }
  0x11   :  { %v6774_v47 = vld [vmem:[%s16306_s1 + $0x60] sm:$0xf]  ;;  %v10031_v48 = vld [vmem:[%s16306_s1 + $0x6c] sm:$0xf0]  ;;  %v7175_v50 = vor.u32 %v10131_v43, %v7174_v42  ;;  %4907 = vmatpush.bf16.msra.mxu1 %v6919_v45 }
  0x12   :  { %v6902_v49 = vld [vmem:[%s16306_s1 + $0x160] sm:$0xf]  ;;  %v10063_v51 = vld [vmem:[%s16306_s1 + $0x16c] sm:$0xf0]  ;;  %v6775_v56 = vor.u32 %v10031_v48, %v6774_v47  ;;  %4921 = vmatpush.bf16.msra.mxu2 %v7047_v46 }
  0x13   :  { %v7030_v52 = vld [vmem:[%s16306_s1 + $0x260] sm:$0xf]  ;;  %v10095_v53 = vld [vmem:[%s16306_s1 + $0x26c] sm:$0xf0]  ;;  %v6903_v57 = vor.u32 %v10063_v51, %v6902_v49  ;;  %4935 = vmatpush.bf16.msra.mxu3 %v7175_v50 }
  0x14   :  { %v7158_v54 = vld [vmem:[%s16306_s1 + $0x360] sm:$0xf]  ;;  %v10127_v55 = vld [vmem:[%s16306_s1 + $0x36c] sm:$0xf0]  ;;  %v7031_v58 = vor.u32 %v10095_v53, %v7030_v52  ;;  %4894 = vmatpush.bf16.msra.mxu0 %v6775_v56  ;;  %v10004_v53 = vld [vmem:[%s16307_s0 + $0x60] sm:$0xf0] }
  0x15   :  { %v6758_v59 = vld [vmem:[%s16306_s1 + $0x40] sm:$0xf]  ;;  %v10027_v60 = vld [vmem:[%s16306_s1 + $0x4c] sm:$0xf0]  ;;  %v7159_v62 = vor.u32 %v10127_v55, %v7158_v54  ;;  %4908 = vmatpush.bf16.msra.mxu1 %v6903_v57  ;;  %v6634_v54 = vld [vmem:[%s16307_s0 + $0x8] sm:$0xf] }
  0x16   :  { %v6886_v61 = vld [vmem:[%s16306_s1 + $0x140] sm:$0xf]  ;;  %v10059_v63 = vld [vmem:[%s16306_s1 + $0x14c] sm:$0xf0]  ;;  %v6759_v4 = vor.u32 %v10027_v60, %v6758_v59  ;;  %4922 = vmatpush.bf16.msra.mxu2 %v7031_v58  ;;  %v10005_v59 = vld [vmem:[%s16307_s0 + $0x68] sm:$0xf0] }
  0x17   :  { %v7014_v0 = vld [vmem:[%s16306_s1 + $0x240] sm:$0xf]  ;;  %v10091_v1 = vld [vmem:[%s16306_s1 + $0x24c] sm:$0xf0]  ;;  %v6887_v5 = vor.u32 %v10059_v63, %v6886_v61  ;;  %4936 = vmatpush.bf16.msra.mxu3 %v7159_v62 }
  0x18   :  { %v7142_v2 = vld [vmem:[%s16306_s1 + $0x340] sm:$0xf]  ;;  %v10123_v3 = vld [vmem:[%s16306_s1 + $0x34c] sm:$0xf0]  ;;  %v7015_v6 = vor.u32 %v10091_v1, %v7014_v0  ;;  %4895 = vmatpush.bf16.msra.mxu0 %v6759_v4  ;;  %v11135_v1 = vor.u32 %v10005_v59, %v6634_v54 }
  0x19   :  { %v6742_v7 = vld [vmem:[%s16306_s1 + $0x20] sm:$0xf]  ;;  %v10023_v8 = vld [vmem:[%s16306_s1 + $0x2c] sm:$0xf0]  ;;  %v7143_v10 = vor.u32 %v10123_v3, %v7142_v2  ;;  %4909 = vmatpush.bf16.msra.mxu1 %v6887_v5 }
  0x1a   :  { %v6870_v9 = vld [vmem:[%s16306_s1 + $0x120] sm:$0xf]  ;;  %v10055_v11 = vld [vmem:[%s16306_s1 + $0x12c] sm:$0xf0]  ;;  %v6743_v16 = vor.u32 %v10023_v8, %v6742_v7  ;;  %4923 = vmatpush.bf16.msra.mxu2 %v7015_v6  ;;  %v9992_v6 = vld [vmem:[%s16307_s0 + $0x4] sm:$0xf] }
  0x1b   :  { %v6998_v12 = vld [vmem:[%s16306_s1 + $0x220] sm:$0xf]  ;;  %v10087_v13 = vld [vmem:[%s16306_s1 + $0x22c] sm:$0xf0]  ;;  %v6871_v19 = vor.u32 %v10055_v11, %v6870_v9  ;;  %4937 = vmatpush.bf16.msra.mxu3 %v7143_v10  ;;  %v6628_v7 = vld [vmem:[%s16307_s0 + $0x64] sm:$0xf0] }
  0x1c   :  { %v7126_v14 = vld [vmem:[%s16306_s1 + $0x320] sm:$0xf]  ;;  %v10119_v15 = vld [vmem:[%s16306_s1 + $0x32c] sm:$0xf0]  ;;  %v6999_v20 = vor.u32 %v10087_v13, %v6998_v12  ;;  %4896 = vmatpush.bf16.msra.mxu0 %v6743_v16  ;;  %v9993_v8 = vld [vmem:[%s16307_s0 + $0xc] sm:$0xf]  ;;  %v11157_v10 = vor.u32 %v9992_v6, %v6628_v7 }
  0x1d   :  { %v6726_v17 = vld [vmem:[%s16306_s1] sm:$0xf]  ;;  %v10019_v18 = vld [vmem:[%s16306_s1 + $0xc] sm:$0xf0]  ;;  %v7127_v24 = vor.u32 %v10119_v15, %v7126_v14  ;;  %4910 = vmatpush.bf16.msra.mxu1 %v6871_v19 }
  0x1e   :  { %v6854_v21 = vld [vmem:[%s16306_s1 + $0x100] sm:$0xf]  ;;  %v10051_v22 = vld [vmem:[%s16306_s1 + $0x10c] sm:$0xf0]  ;;  %v6727_v31 = vor.u32 %v10019_v18, %v6726_v17  ;;  %4924 = vmatpush.bf16.msra.mxu2 %v6999_v20 }
  0x1f   :  { %v6982_v23 = vld [vmem:[%s16306_s1 + $0x200] sm:$0xf]  ;;  %v10083_v25 = vld [vmem:[%s16306_s1 + $0x20c] sm:$0xf0]  ;;  %v6855_v35 = vor.u32 %v10051_v22, %v6854_v21  ;;  %4938 = vmatpush.bf16.msra.mxu3 %v7127_v24 }
  0x20   :  { %v7110_v26 = vld [vmem:[%s16306_s1 + $0x300] sm:$0xf]  ;;  %v10115_v27 = vld [vmem:[%s16306_s1 + $0x30c] sm:$0xf0]  ;;  %v6983_v36 = vor.u32 %v10083_v25, %v6982_v23  ;;  %4897 = vmatpush.bf16.msra.mxu0 %v6727_v31 }
  0x21   :  { %v7350_v28 = vld [vmem:[%s16306_s1 + $0x4e0] sm:$0xf]  ;;  %v10175_v29 = vld [vmem:[%s16306_s1 + $0x4ec] sm:$0xf0]  ;;  %v7111_v39 = vor.u32 %v10115_v27, %v7110_v26  ;;  %4911 = vmatpush.bf16.msra.mxu1 %v6855_v35 }
  0x22   :  { %v7478_v30 = vld [vmem:[%s16306_s1 + $0x5e0] sm:$0xf]  ;;  %v10207_v32 = vld [vmem:[%s16306_s1 + $0x5ec] sm:$0xf0]  ;;  %v7351_v40 = vor.u32 %v10175_v29, %v7350_v28  ;;  %4925 = vmatpush.bf16.msra.mxu2 %v6983_v36 }
  0x23   :  { %v7606_v33 = vld [vmem:[%s16306_s1 + $0x6e0] sm:$0xf]  ;;  %v10239_v34 = vld [vmem:[%s16306_s1 + $0x6ec] sm:$0xf0]  ;;  %v7479_v43 = vor.u32 %v10207_v32, %v7478_v30  ;;  %4939 = vmatpush.bf16.msra.mxu3 %v7111_v39 }
  0x24   :  { %v7734_v37 = vld [vmem:[%s16306_s1 + $0x7e0] sm:$0xf]  ;;  %v10271_v38 = vld [vmem:[%s16306_s1 + $0x7ec] sm:$0xf0]  ;;  %v7607_v44 = vor.u32 %v10239_v34, %v7606_v33  ;;  %4946 = vmatpush.bf16.msrb.mxu0 %v7351_v40  ;;  %4912 = vmatmul.bf16.vlgmr.msra.gmra.mxu1 %v11157_v10 }
  0x25   :  { %v7334_v41 = vld [vmem:[%s16306_s1 + $0x4c0] sm:$0xf]  ;;  %v10171_v42 = vld [vmem:[%s16306_s1 + $0x4cc] sm:$0xf0]  ;;  %v7735_v48 = vor.u32 %v10271_v38, %v7734_v37  ;;  %4960 = vmatpush.bf16.msrb.mxu1 %v7479_v43  ;;  %4926 = vmatmul.bf16.vlgmr.msra.gmra.mxu2 %v11135_v1 }
  0x26   :  { %v7462_v45 = vld [vmem:[%s16306_s1 + $0x5c0] sm:$0xf]  ;;  %v10203_v46 = vld [vmem:[%s16306_s1 + $0x5cc] sm:$0xf0]  ;;  %v7335_v55 = vor.u32 %v10171_v42, %v7334_v41  ;;  %4974 = vmatpush.bf16.msrb.mxu2 %v7607_v44 }
  0x27   :  { %v7590_v47 = vld [vmem:[%s16306_s1 + $0x6c0] sm:$0xf]  ;;  %v10235_v49 = vld [vmem:[%s16306_s1 + $0x6cc] sm:$0xf0]  ;;  %v7463_v60 = vor.u32 %v10203_v46, %v7462_v45  ;;  %4988 = vmatpush.bf16.msrb.mxu3 %v7735_v48 }
  0x28   :  { %v7718_v50 = vld [vmem:[%s16306_s1 + $0x7c0] sm:$0xf]  ;;  %v10267_v51 = vld [vmem:[%s16306_s1 + $0x7cc] sm:$0xf0]  ;;  %v7591_v61 = vor.u32 %v10235_v49, %v7590_v47  ;;  %4947 = vmatpush.bf16.msrb.mxu0 %v7335_v55 }
  0x29   :  { %v6626_v52 = vld [vmem:[%s16307_s0] sm:$0xf]  ;;  %v10167_v57 = vld [vmem:[%s16306_s1 + $0x4ac] sm:$0xf0]  ;;  %v7719_v2 = vor.u32 %v10267_v51, %v7718_v50  ;;  %4961 = vmatpush.bf16.msrb.mxu1 %v7463_v60 }
  0x2a   :  { %v7318_v56 = vld [vmem:[%s16306_s1 + $0x4a0] sm:$0xf]  ;;  %v11121_v58 = vor.u32 %v10004_v53, %v6626_v52  ;;  %v10199_v63 = vld [vmem:[%s16306_s1 + $0x5ac] sm:$0xf0]  ;;  %4975 = vmatpush.bf16.msrb.mxu2 %v7591_v61 }
  0x2b   :  { %v7446_v62 = vld [vmem:[%s16306_s1 + $0x5a0] sm:$0xf]  ;;  %v10231_v3 = vld [vmem:[%s16306_s1 + $0x6ac] sm:$0xf0]  ;;  %v7319_v9 = vor.u32 %v10167_v57, %v7318_v56  ;;  %4989 = vmatpush.bf16.msrb.mxu3 %v7719_v2 }
  0x2c   :  { %v7574_v0 = vld [vmem:[%s16306_s1 + $0x6a0] sm:$0xf]  ;;  %v10263_v5 = vld [vmem:[%s16306_s1 + $0x7ac] sm:$0xf0]  ;;  %4898 = vmatmul.bf16.vlgmr.msra.gmra.mxu0 %v11121_v58  ;;  %v7447_v12 = vor.u32 %v10199_v63, %v7446_v62 }
  0x2d   :  { %v7702_v4 = vld [vmem:[%s16306_s1 + $0x7a0] sm:$0xf]  ;;  %v6636_v11 = vld [vmem:[%s16307_s0 + $0x6c] sm:$0xf0]  ;;  %v7575_v13 = vor.u32 %v10231_v3, %v7574_v0  ;;  %4948 = vmatpush.bf16.msrb.mxu0 %v7319_v9 }
  0x2e   :  { %v7302_v14 = vld [vmem:[%s16306_s1 + $0x480] sm:$0xf]  ;;  %v10163_v15 = vld [vmem:[%s16306_s1 + $0x48c] sm:$0xf0]  ;;  %v11171_v17 = vor.u32 %v9993_v8, %v6636_v11  ;;  %v7703_v18 = vor.u32 %v10263_v5, %v7702_v4  ;;  %4962 = vmatpush.bf16.msrb.mxu1 %v7447_v12 }
  0x2f   :  { %v7430_v16 = vld [vmem:[%s16306_s1 + $0x580] sm:$0xf]  ;;  %v10195_v19 = vld [vmem:[%s16306_s1 + $0x58c] sm:$0xf0]  ;;  %v7303_v24 = vor.u32 %v10163_v15, %v7302_v14  ;;  %4976 = vmatpush.bf16.msrb.mxu2 %v7575_v13 }
  0x30   :  { %v7558_v20 = vld [vmem:[%s16306_s1 + $0x680] sm:$0xf]  ;;  %v10227_v21 = vld [vmem:[%s16306_s1 + $0x68c] sm:$0xf0]  ;;  %4940 = vmatmul.bf16.vlgmr.msra.gmra.mxu3 %v11171_v17  ;;  %v7431_v25 = vor.u32 %v10195_v19, %v7430_v16 }
  0x31   :  { %v7686_v22 = vld [vmem:[%s16306_s1 + $0x780] sm:$0xf]  ;;  %v10259_v23 = vld [vmem:[%s16306_s1 + $0x78c] sm:$0xf0]  ;;  %v7559_v26 = vor.u32 %v10227_v21, %v7558_v20  ;;  %4990 = vmatpush.bf16.msrb.mxu3 %v7703_v18  ;;  %4949 = vmatpush.bf16.msrb.mxu0 %v7303_v24 }
  0x32   :  { %v7286_v27 = vld [vmem:[%s16306_s1 + $0x460] sm:$0xf]  ;;  %v10159_v28 = vld [vmem:[%s16306_s1 + $0x46c] sm:$0xf0]  ;;  %v7687_v30 = vor.u32 %v10259_v23, %v7686_v22  ;;  %4963 = vmatpush.bf16.msrb.mxu1 %v7431_v25  ;;  %v10006_v22 = vld [vmem:[%s16307_s0 + $0x70] sm:$0xf0] }
  0x33   :  { %v7414_v29 = vld [vmem:[%s16306_s1 + $0x560] sm:$0xf]  ;;  %v10191_v31 = vld [vmem:[%s16306_s1 + $0x56c] sm:$0xf0]  ;;  %v7287_v36 = vor.u32 %v10159_v28, %v7286_v27  ;;  %4977 = vmatpush.bf16.msrb.mxu2 %v7559_v26  ;;  %v6650_v25 = vld [vmem:[%s16307_s0 + $0x18] sm:$0xf] }
  0x34   :  { %v7542_v32 = vld [vmem:[%s16306_s1 + $0x660] sm:$0xf]  ;;  %v10223_v33 = vld [vmem:[%s16306_s1 + $0x66c] sm:$0xf0]  ;;  %v7415_v37 = vor.u32 %v10191_v31, %v7414_v29  ;;  %v10007_v26 = vld [vmem:[%s16307_s0 + $0x78] sm:$0xf0] }
  0x35   :  { %v7670_v34 = vld [vmem:[%s16306_s1 + $0x760] sm:$0xf]  ;;  %v10255_v35 = vld [vmem:[%s16306_s1 + $0x76c] sm:$0xf0]  ;;  %v7543_v38 = vor.u32 %v10223_v33, %v7542_v32  ;;  %4991 = vmatpush.bf16.msrb.mxu3 %v7687_v30  ;;  %4950 = vmatpush.bf16.msrb.mxu0 %v7287_v36  ;;  %v9994_v27 = vld [vmem:[%s16307_s0 + $0x14] sm:$0xf] }
  0x36   :  { %v7270_v39 = vld [vmem:[%s16306_s1 + $0x440] sm:$0xf]  ;;  %v10155_v40 = vld [vmem:[%s16306_s1 + $0x44c] sm:$0xf0]  ;;  %v7671_v42 = vor.u32 %v10255_v35, %v7670_v34  ;;  %4964 = vmatpush.bf16.msrb.mxu1 %v7415_v37  ;;  %v6644_v30 = vld [vmem:[%s16307_s0 + $0x74] sm:$0xf0] }
  0x37   :  { %v7398_v41 = vld [vmem:[%s16306_s1 + $0x540] sm:$0xf]  ;;  %v10187_v43 = vld [vmem:[%s16306_s1 + $0x54c] sm:$0xf0]  ;;  %v7271_v48 = vor.u32 %v10155_v40, %v7270_v39  ;;  %4978 = vmatpush.bf16.msrb.mxu2 %v7543_v38  ;;  %v9995_v31 = vld [vmem:[%s16307_s0 + $0x1c] sm:$0xf] }
  0x38   :  { %v7526_v44 = vld [vmem:[%s16306_s1 + $0x640] sm:$0xf]  ;;  %v10219_v45 = vld [vmem:[%s16306_s1 + $0x64c] sm:$0xf0]  ;;  %v7399_v50 = vor.u32 %v10187_v43, %v7398_v41  ;;  %v11354_v43 = vor.u32 %v10007_v26, %v6650_v25 }
  0x39   :  { %v7654_v46 = vld [vmem:[%s16306_s1 + $0x740] sm:$0xf]  ;;  %v10251_v47 = vld [vmem:[%s16306_s1 + $0x74c] sm:$0xf0]  ;;  %v7527_v51 = vor.u32 %v10219_v45, %v7526_v44  ;;  %4992 = vmatpush.bf16.msrb.mxu3 %v7671_v42  ;;  %4951 = vmatpush.bf16.msrb.mxu0 %v7271_v48  ;;  %v11356_v44 = vor.u32 %v9994_v27, %v6644_v30 }
  0x3a   :  { %v7254_v49 = vld [vmem:[%s16306_s1 + $0x420] sm:$0xf]  ;;  %v10151_v52 = vld [vmem:[%s16306_s1 + $0x42c] sm:$0xf0]  ;;  %v7655_v55 = vor.u32 %v10251_v47, %v7654_v46  ;;  %4965 = vmatpush.bf16.msrb.mxu1 %v7399_v50 }
  0x3b   :  { %v7382_v53 = vld [vmem:[%s16306_s1 + $0x520] sm:$0xf]  ;;  %v10183_v54 = vld [vmem:[%s16306_s1 + $0x52c] sm:$0xf0]  ;;  %v7255_v63 = vor.u32 %v10151_v52, %v7254_v49  ;;  %4979 = vmatpush.bf16.msrb.mxu2 %v7527_v51 }
  0x3c   :  { %v7510_v56 = vld [vmem:[%s16306_s1 + $0x620] sm:$0xf]  ;;  %v10215_v57 = vld [vmem:[%s16306_s1 + $0x62c] sm:$0xf0]  ;;  %v7383_v5 = vor.u32 %v10183_v54, %v7382_v53 }
  0x3d   :  { %v7638_v59 = vld [vmem:[%s16306_s1 + $0x720] sm:$0xf]  ;;  %v10247_v60 = vld [vmem:[%s16306_s1 + $0x72c] sm:$0xf0]  ;;  %v7511_v6 = vor.u32 %v10215_v57, %v7510_v56  ;;  %4993 = vmatpush.bf16.msrb.mxu3 %v7655_v55  ;;  %4952 = vmatpush.bf16.msrb.mxu0 %v7255_v63 }
  0x3e   :  { %v7238_v61 = vld [vmem:[%s16306_s1 + $0x400] sm:$0xf]  ;;  %v10147_v62 = vld [vmem:[%s16306_s1 + $0x40c] sm:$0xf0]  ;;  %v7639_v11 = vor.u32 %v10247_v60, %v7638_v59  ;;  %4966 = vmatpush.bf16.msrb.mxu1 %v7383_v5 }
  0x3f   :  { %v7366_v0 = vld [vmem:[%s16306_s1 + $0x500] sm:$0xf]  ;;  %v10179_v2 = vld [vmem:[%s16306_s1 + $0x50c] sm:$0xf0]  ;;  %v7239_v19 = vor.u32 %v10147_v62, %v7238_v61  ;;  %4980 = vmatpush.bf16.msrb.mxu2 %v7511_v6 }
  0x40   :  { %v7494_v3 = vld [vmem:[%s16306_s1 + $0x600] sm:$0xf]  ;;  %v10211_v4 = vld [vmem:[%s16306_s1 + $0x60c] sm:$0xf0]  ;;  %v7367_v23 = vor.u32 %v10179_v2, %v7366_v0 }
  0x41   :  { %v7622_v7 = vld [vmem:[%s16306_s1 + $0x700] sm:$0xf]  ;;  %v10243_v8 = vld [vmem:[%s16306_s1 + $0x70c] sm:$0xf0]  ;;  %v7495_v24 = vor.u32 %v10211_v4, %v7494_v3  ;;  %4994 = vmatpush.bf16.msrb.mxu3 %v7639_v11  ;;  %4953 = vmatpush.bf16.msrb.mxu0 %v7239_v19 }
  0x42   :  { %v7862_v9 = vld [vmem:[%s16306_s1 + $0x8e0] sm:$0xf]  ;;  %v10303_v12 = vld [vmem:[%s16306_s1 + $0x8ec] sm:$0xf0]  ;;  %v7623_v28 = vor.u32 %v10243_v8, %v7622_v7  ;;  %4967 = vmatpush.bf16.msrb.mxu1 %v7367_v23 }
  0x43   :  { %v7990_v13 = vld [vmem:[%s16306_s1 + $0x9e0] sm:$0xf]  ;;  %v10335_v14 = vld [vmem:[%s16306_s1 + $0x9ec] sm:$0xf0]  ;;  %v7863_v29 = vor.u32 %v10303_v12, %v7862_v9  ;;  %4981 = vmatpush.bf16.msrb.mxu2 %v7495_v24 }
  0x44   :  { %v8118_v15 = vld [vmem:[%s16306_s1 + $0xae0] sm:$0xf]  ;;  %v10367_v16 = vld [vmem:[%s16306_s1 + $0xaec] sm:$0xf0]  ;;  %v7991_v33 = vor.u32 %v10335_v14, %v7990_v13 }
  0x45   :  { %v8246_v18 = vld [vmem:[%s16306_s1 + $0xbe0] sm:$0xf]  ;;  %v10399_v20 = vld [vmem:[%s16306_s1 + $0xbec] sm:$0xf0]  ;;  %v8119_v34 = vor.u32 %v10367_v16, %v8118_v15  ;;  %4995 = vmatpush.bf16.msrb.mxu3 %v7623_v28  ;;  %5002 = vmatpush.bf16.msra.mxu0 %v7863_v29 }
  0x46   :  { %v6642_v21 = vld [vmem:[%s16307_s0 + $0x10] sm:$0xf]  ;;  %v6652_v32 = vld [vmem:[%s16307_s0 + $0x7c] sm:$0xf0]  ;;  %v8247_v38 = vor.u32 %v10399_v20, %v8246_v18  ;;  %5016 = vmatpush.bf16.msra.mxu1 %v7991_v33  ;;  %4982 = vmatmul.bf16.vlgmr.msrb.gmra.mxu2 %v11354_v43 }
  0x47   :  { %v7846_v35 = vld [vmem:[%s16306_s1 + $0x8c0] sm:$0xf]  ;;  %v10299_v36 = vld [vmem:[%s16306_s1 + $0x8cc] sm:$0xf0]  ;;  %v11343_v39 = vor.u32 %v10006_v22, %v6642_v21  ;;  %v11364_v47 = vor.u32 %v9995_v31, %v6652_v32  ;;  %5030 = vmatpush.bf16.msra.mxu2 %v8119_v34  ;;  %4968 = vmatmul.bf16.vlgmr.msrb.gmra.mxu1 %v11356_v44 }
  0x48   :  { %v7974_v37 = vld [vmem:[%s16306_s1 + $0x9c0] sm:$0xf]  ;;  %v10331_v40 = vld [vmem:[%s16306_s1 + $0x9cc] sm:$0xf0]  ;;  %v7847_v48 = vor.u32 %v10299_v36, %v7846_v35 }
  0x49   :  { %v8102_v41 = vld [vmem:[%s16306_s1 + $0xac0] sm:$0xf]  ;;  %v10363_v42 = vld [vmem:[%s16306_s1 + $0xacc] sm:$0xf0]  ;;  %v7975_v49 = vor.u32 %v10331_v40, %v7974_v37  ;;  %5044 = vmatpush.bf16.msra.mxu3 %v8247_v38  ;;  %4954 = vmatmul.bf16.vlgmr.msrb.gmra.mxu0 %v11343_v39 }
  0x4a   :  { %v8230_v45 = vld [vmem:[%s16306_s1 + $0xbc0] sm:$0xf]  ;;  %v10395_v46 = vld [vmem:[%s16306_s1 + $0xbcc] sm:$0xf0]  ;;  %v8103_v50 = vor.u32 %v10363_v42, %v8102_v41  ;;  %4996 = vmatmul.bf16.vlgmr.msrb.gmra.mxu3 %v11364_v47  ;;  %5003 = vmatpush.bf16.msra.mxu0 %v7847_v48 }
  0x4b   :  { %v7830_v51 = vld [vmem:[%s16306_s1 + $0x8a0] sm:$0xf]  ;;  %v10295_v52 = vld [vmem:[%s16306_s1 + $0x8ac] sm:$0xf0]  ;;  %v8231_v54 = vor.u32 %v10395_v46, %v8230_v45  ;;  %5017 = vmatpush.bf16.msra.mxu1 %v7975_v49 }
  0x4c   :  { %v7958_v53 = vld [vmem:[%s16306_s1 + $0x9a0] sm:$0xf]  ;;  %v10327_v55 = vld [vmem:[%s16306_s1 + $0x9ac] sm:$0xf0]  ;;  %v7831_v61 = vor.u32 %v10295_v52, %v7830_v51  ;;  %5031 = vmatpush.bf16.msra.mxu2 %v8103_v50 }
  0x4d   :  { %v8086_v56 = vld [vmem:[%s16306_s1 + $0xaa0] sm:$0xf]  ;;  %v10359_v57 = vld [vmem:[%s16306_s1 + $0xaac] sm:$0xf0]  ;;  %v7959_v62 = vor.u32 %v10327_v55, %v7958_v53  ;;  %5045 = vmatpush.bf16.msra.mxu3 %v8231_v54 }
  0x4e   :  { %v8214_v59 = vld [vmem:[%s16306_s1 + $0xba0] sm:$0xf]  ;;  %v10391_v60 = vld [vmem:[%s16306_s1 + $0xbac] sm:$0xf0]  ;;  %v8087_v63 = vor.u32 %v10359_v57, %v8086_v56  ;;  %5004 = vmatpush.bf16.msra.mxu0 %v7831_v61 }
  0x4f   :  { %v7814_v0 = vld [vmem:[%s16306_s1 + $0x880] sm:$0xf]  ;;  %v10291_v2 = vld [vmem:[%s16306_s1 + $0x88c] sm:$0xf0]  ;;  %v8215_v4 = vor.u32 %v10391_v60, %v8214_v59  ;;  %5018 = vmatpush.bf16.msra.mxu1 %v7959_v62 }
  0x50   :  { %v7942_v3 = vld [vmem:[%s16306_s1 + $0x980] sm:$0xf]  ;;  %v10323_v5 = vld [vmem:[%s16306_s1 + $0x98c] sm:$0xf0]  ;;  %v7815_v11 = vor.u32 %v10291_v2, %v7814_v0  ;;  %5032 = vmatpush.bf16.msra.mxu2 %v8087_v63 }
  0x51   :  { %v8070_v6 = vld [vmem:[%s16306_s1 + $0xa80] sm:$0xf]  ;;  %v10355_v7 = vld [vmem:[%s16306_s1 + $0xa8c] sm:$0xf0]  ;;  %v7943_v12 = vor.u32 %v10323_v5, %v7942_v3  ;;  %5046 = vmatpush.bf16.msra.mxu3 %v8215_v4 }
  0x52   :  { %v8198_v8 = vld [vmem:[%s16306_s1 + $0xb80] sm:$0xf]  ;;  %v10387_v9 = vld [vmem:[%s16306_s1 + $0xb8c] sm:$0xf0]  ;;  %v8071_v13 = vor.u32 %v10355_v7, %v8070_v6  ;;  %5005 = vmatpush.bf16.msra.mxu0 %v7815_v11 }
  0x53   :  { %v7798_v14 = vld [vmem:[%s16306_s1 + $0x860] sm:$0xf]  ;;  %v10287_v15 = vld [vmem:[%s16306_s1 + $0x86c] sm:$0xf0]  ;;  %v8199_v18 = vor.u32 %v10387_v9, %v8198_v8  ;;  %5019 = vmatpush.bf16.msra.mxu1 %v7943_v12 }
  0x54   :  { %v7926_v16 = vld [vmem:[%s16306_s1 + $0x960] sm:$0xf]  ;;  %v10319_v19 = vld [vmem:[%s16306_s1 + $0x96c] sm:$0xf0]  ;;  %v7799_v24 = vor.u32 %v10287_v15, %v7798_v14  ;;  %5033 = vmatpush.bf16.msra.mxu2 %v8071_v13  ;;  %v10008_v13 = vld [vmem:[%s16307_s0 + $0x80] sm:$0xf0] }
  0x55   :  { %v8054_v20 = vld [vmem:[%s16306_s1 + $0xa60] sm:$0xf]  ;;  %v10351_v21 = vld [vmem:[%s16306_s1 + $0xa6c] sm:$0xf0]  ;;  %v7927_v25 = vor.u32 %v10319_v19, %v7926_v16  ;;  %5047 = vmatpush.bf16.msra.mxu3 %v8199_v18  ;;  %v6666_v16 = vld [vmem:[%s16307_s0 + $0x28] sm:$0xf] }
  0x56   :  { %v8182_v22 = vld [vmem:[%s16306_s1 + $0xb60] sm:$0xf]  ;;  %v10383_v23 = vld [vmem:[%s16306_s1 + $0xb6c] sm:$0xf0]  ;;  %v8055_v26 = vor.u32 %v10351_v21, %v8054_v20  ;;  %5006 = vmatpush.bf16.msra.mxu0 %v7799_v24  ;;  %v10009_v18 = vld [vmem:[%s16307_s0 + $0x88] sm:$0xf0] }
  0x57   :  { %v7782_v27 = vld [vmem:[%s16306_s1 + $0x840] sm:$0xf]  ;;  %v10283_v28 = vld [vmem:[%s16306_s1 + $0x84c] sm:$0xf0]  ;;  %v8183_v30 = vor.u32 %v10383_v23, %v8182_v22  ;;  %5020 = vmatpush.bf16.msra.mxu1 %v7927_v25  ;;  %v9996_v19 = vld [vmem:[%s16307_s0 + $0x24] sm:$0xf] }
  0x58   :  { %v7910_v29 = vld [vmem:[%s16306_s1 + $0x940] sm:$0xf]  ;;  %v10315_v31 = vld [vmem:[%s16306_s1 + $0x94c] sm:$0xf0]  ;;  %v7783_v36 = vor.u32 %v10283_v28, %v7782_v27  ;;  %5034 = vmatpush.bf16.msra.mxu2 %v8055_v26  ;;  %v6660_v22 = vld [vmem:[%s16307_s0 + $0x84] sm:$0xf0] }
  0x59   :  { %v8038_v32 = vld [vmem:[%s16306_s1 + $0xa40] sm:$0xf]  ;;  %v10347_v33 = vld [vmem:[%s16306_s1 + $0xa4c] sm:$0xf0]  ;;  %v7911_v38 = vor.u32 %v10315_v31, %v7910_v29  ;;  %5048 = vmatpush.bf16.msra.mxu3 %v8183_v30  ;;  %v9997_v23 = vld [vmem:[%s16307_s0 + $0x2c] sm:$0xf] }
  0x5a   :  { %v8166_v34 = vld [vmem:[%s16306_s1 + $0xb40] sm:$0xf]  ;;  %v10379_v35 = vld [vmem:[%s16306_s1 + $0xb4c] sm:$0xf0]  ;;  %v8039_v40 = vor.u32 %v10347_v33, %v8038_v32  ;;  %5007 = vmatpush.bf16.msra.mxu0 %v7783_v36  ;;  %v11584_v36 = vor.u32 %v9996_v19, %v6660_v22 }
  0x5b   :  { %v7766_v37 = vld [vmem:[%s16306_s1 + $0x820] sm:$0xf]  ;;  %v10279_v41 = vld [vmem:[%s16306_s1 + $0x82c] sm:$0xf0]  ;;  %v8167_v46 = vor.u32 %v10379_v35, %v8166_v34  ;;  %5021 = vmatpush.bf16.msra.mxu1 %v7911_v38  ;;  %v11582_v35 = vor.u32 %v10009_v18, %v6666_v16 }
  0x5c   :  { %v7894_v42 = vld [vmem:[%s16306_s1 + $0x920] sm:$0xf]  ;;  %v10311_v45 = vld [vmem:[%s16306_s1 + $0x92c] sm:$0xf0]  ;;  %v7767_v54 = vor.u32 %v10279_v41, %v7766_v37  ;;  %5035 = vmatpush.bf16.msra.mxu2 %v8039_v40 }
  0x5d   :  { %v8022_v48 = vld [vmem:[%s16306_s1 + $0xa20] sm:$0xf]  ;;  %v10343_v49 = vld [vmem:[%s16306_s1 + $0xa2c] sm:$0xf0]  ;;  %v7895_v60 = vor.u32 %v10311_v45, %v7894_v42  ;;  %5049 = vmatpush.bf16.msra.mxu3 %v8167_v46 }
  0x5e   :  { %v8150_v50 = vld [vmem:[%s16306_s1 + $0xb20] sm:$0xf]  ;;  %v10375_v51 = vld [vmem:[%s16306_s1 + $0xb2c] sm:$0xf0]  ;;  %v8023_v61 = vor.u32 %v10343_v49, %v8022_v48  ;;  %5008 = vmatpush.bf16.msra.mxu0 %v7767_v54 }
  0x5f   :  { %v7750_v52 = vld [vmem:[%s16306_s1 + $0x800] sm:$0xf]  ;;  %v10275_v53 = vld [vmem:[%s16306_s1 + $0x80c] sm:$0xf0]  ;;  %v8151_v2 = vor.u32 %v10375_v51, %v8150_v50  ;;  %5022 = vmatpush.bf16.msra.mxu1 %v7895_v60 }
  0x60   :  { %v7878_v55 = vld [vmem:[%s16306_s1 + $0x900] sm:$0xf]  ;;  %v10307_v56 = vld [vmem:[%s16306_s1 + $0x90c] sm:$0xf0]  ;;  %v7751_v9 = vor.u32 %v10275_v53, %v7750_v52  ;;  %5036 = vmatpush.bf16.msra.mxu2 %v8023_v61 }
  0x61   :  { %v8006_v57 = vld [vmem:[%s16306_s1 + $0xa00] sm:$0xf]  ;;  %v10339_v59 = vld [vmem:[%s16306_s1 + $0xa0c] sm:$0xf0]  ;;  %v7879_v14 = vor.u32 %v10307_v56, %v7878_v55  ;;  %5050 = vmatpush.bf16.msra.mxu3 %v8151_v2 }
  0x62   :  { %v8134_v62 = vld [vmem:[%s16306_s1 + $0xb00] sm:$0xf]  ;;  %v10371_v63 = vld [vmem:[%s16306_s1 + $0xb0c] sm:$0xf0]  ;;  %v8007_v15 = vor.u32 %v10339_v59, %v8006_v57  ;;  %5009 = vmatpush.bf16.msra.mxu0 %v7751_v9 }
  0x63   :  { %v8374_v0 = vld [vmem:[%s16306_s1 + $0xce0] sm:$0xf]  ;;  %v10431_v3 = vld [vmem:[%s16306_s1 + $0xcec] sm:$0xf0]  ;;  %v8135_v20 = vor.u32 %v10371_v63, %v8134_v62  ;;  %5023 = vmatpush.bf16.msra.mxu1 %v7879_v14 }
  0x64   :  { %v8502_v4 = vld [vmem:[%s16306_s1 + $0xde0] sm:$0xf]  ;;  %v10463_v5 = vld [vmem:[%s16306_s1 + $0xdec] sm:$0xf0]  ;;  %v8375_v21 = vor.u32 %v10431_v3, %v8374_v0  ;;  %5037 = vmatpush.bf16.msra.mxu2 %v8007_v15 }
  0x65   :  { %v8630_v6 = vld [vmem:[%s16306_s1 + $0xee0] sm:$0xf]  ;;  %v10495_v7 = vld [vmem:[%s16306_s1 + $0xeec] sm:$0xf0]  ;;  %v8503_v25 = vor.u32 %v10463_v5, %v8502_v4  ;;  %5051 = vmatpush.bf16.msra.mxu3 %v8135_v20 }
  0x66   :  { %v8758_v8 = vld [vmem:[%s16306_s1 + $0xfe0] sm:$0xf]  ;;  %v10527_v11 = vld [vmem:[%s16306_s1 + $0xfec] sm:$0xf0]  ;;  %v8631_v26 = vor.u32 %v10495_v7, %v8630_v6  ;;  %5058 = vmatpush.bf16.msrb.mxu0 %v8375_v21  ;;  %5024 = vmatmul.bf16.vlgmr.msra.gmra.mxu1 %v11584_v36 }
  0x67   :  { %v6658_v12 = vld [vmem:[%s16307_s0 + $0x20] sm:$0xf]  ;;  %v6668_v24 = vld [vmem:[%s16307_s0 + $0x8c] sm:$0xf0]  ;;  %v8759_v30 = vor.u32 %v10527_v11, %v8758_v8  ;;  %5072 = vmatpush.bf16.msrb.mxu1 %v8503_v25  ;;  %5038 = vmatmul.bf16.vlgmr.msra.gmra.mxu2 %v11582_v35 }
  0x68   :  { %v8358_v27 = vld [vmem:[%s16306_s1 + $0xcc0] sm:$0xf]  ;;  %v10427_v28 = vld [vmem:[%s16306_s1 + $0xccc] sm:$0xf0]  ;;  %v11571_v31 = vor.u32 %v10008_v13, %v6658_v12  ;;  %v11592_v40 = vor.u32 %v9997_v23, %v6668_v24  ;;  %5086 = vmatpush.bf16.msrb.mxu2 %v8631_v26 }
  0x69   :  { %v8486_v29 = vld [vmem:[%s16306_s1 + $0xdc0] sm:$0xf]  ;;  %v10459_v32 = vld [vmem:[%s16306_s1 + $0xdcc] sm:$0xf0]  ;;  %v8359_v41 = vor.u32 %v10427_v28, %v8358_v27  ;;  %5100 = vmatpush.bf16.msrb.mxu3 %v8759_v30 }
  0x6a   :  { %v8614_v33 = vld [vmem:[%s16306_s1 + $0xec0] sm:$0xf]  ;;  %v10491_v34 = vld [vmem:[%s16306_s1 + $0xecc] sm:$0xf0]  ;;  %v8487_v42 = vor.u32 %v10459_v32, %v8486_v29  ;;  %5010 = vmatmul.bf16.vlgmr.msra.gmra.mxu0 %v11571_v31  ;;  %5052 = vmatmul.bf16.vlgmr.msra.gmra.mxu3 %v11592_v40 }
  0x6b   :  { %v8742_v37 = vld [vmem:[%s16306_s1 + $0xfc0] sm:$0xf]  ;;  %v10523_v38 = vld [vmem:[%s16306_s1 + $0xfcc] sm:$0xf0]  ;;  %v8615_v45 = vor.u32 %v10491_v34, %v8614_v33  ;;  %5059 = vmatpush.bf16.msrb.mxu0 %v8359_v41 }
  0x6c   :  { %v8342_v46 = vld [vmem:[%s16306_s1 + $0xca0] sm:$0xf]  ;;  %v10423_v48 = vld [vmem:[%s16306_s1 + $0xcac] sm:$0xf0]  ;;  %v8743_v50 = vor.u32 %v10523_v38, %v8742_v37  ;;  %5073 = vmatpush.bf16.msrb.mxu1 %v8487_v42 }
  0x6d   :  { %v8470_v49 = vld [vmem:[%s16306_s1 + $0xda0] sm:$0xf]  ;;  %v10455_v51 = vld [vmem:[%s16306_s1 + $0xdac] sm:$0xf0]  ;;  %v8343_v56 = vor.u32 %v10423_v48, %v8342_v46  ;;  %5087 = vmatpush.bf16.msrb.mxu2 %v8615_v45 }
  0x6e   :  { %v8598_v52 = vld [vmem:[%s16306_s1 + $0xea0] sm:$0xf]  ;;  %v10487_v53 = vld [vmem:[%s16306_s1 + $0xeac] sm:$0xf0]  ;;  %v8471_v57 = vor.u32 %v10455_v51, %v8470_v49  ;;  %5101 = vmatpush.bf16.msrb.mxu3 %v8743_v50 }
  0x6f   :  { %v8726_v54 = vld [vmem:[%s16306_s1 + $0xfa0] sm:$0xf]  ;;  %v10519_v55 = vld [vmem:[%s16306_s1 + $0xfac] sm:$0xf0]  ;;  %v8599_v59 = vor.u32 %v10487_v53, %v8598_v52  ;;  %5060 = vmatpush.bf16.msrb.mxu0 %v8343_v56 }
  0x70   :  { %v8326_v60 = vld [vmem:[%s16306_s1 + $0xc80] sm:$0xf]  ;;  %v10419_v61 = vld [vmem:[%s16306_s1 + $0xc8c] sm:$0xf0]  ;;  %v8727_v63 = vor.u32 %v10519_v55, %v8726_v54  ;;  %5074 = vmatpush.bf16.msrb.mxu1 %v8471_v57 }
  0x71   :  { %v8454_v62 = vld [vmem:[%s16306_s1 + $0xd80] sm:$0xf]  ;;  %v10451_v0 = vld [vmem:[%s16306_s1 + $0xd8c] sm:$0xf0]  ;;  %v8327_v6 = vor.u32 %v10419_v61, %v8326_v60  ;;  %5088 = vmatpush.bf16.msrb.mxu2 %v8599_v59 }
  0x72   :  { %v8582_v2 = vld [vmem:[%s16306_s1 + $0xe80] sm:$0xf]  ;;  %v10483_v3 = vld [vmem:[%s16306_s1 + $0xe8c] sm:$0xf0]  ;;  %v8455_v7 = vor.u32 %v10451_v0, %v8454_v62  ;;  %5102 = vmatpush.bf16.msrb.mxu3 %v8727_v63 }
  0x73   :  { %v8710_v4 = vld [vmem:[%s16306_s1 + $0xf80] sm:$0xf]  ;;  %v10515_v5 = vld [vmem:[%s16306_s1 + $0xf8c] sm:$0xf0]  ;;  %v8583_v8 = vor.u32 %v10483_v3, %v8582_v2  ;;  %5061 = vmatpush.bf16.msrb.mxu0 %v8327_v6 }
  0x74   :  { %v8310_v9 = vld [vmem:[%s16306_s1 + $0xc60] sm:$0xf]  ;;  %v10415_v11 = vld [vmem:[%s16306_s1 + $0xc6c] sm:$0xf0]  ;;  %v8711_v13 = vor.u32 %v10515_v5, %v8710_v4  ;;  %5075 = vmatpush.bf16.msrb.mxu1 %v8455_v7 }
  0x75   :  { %v8438_v12 = vld [vmem:[%s16306_s1 + $0xd60] sm:$0xf]  ;;  %v10447_v14 = vld [vmem:[%s16306_s1 + $0xd6c] sm:$0xf0]  ;;  %v8311_v20 = vor.u32 %v10415_v11, %v8310_v9  ;;  %5089 = vmatpush.bf16.msrb.mxu2 %v8583_v8 }
  0x76   :  { %v8566_v15 = vld [vmem:[%s16306_s1 + $0xe60] sm:$0xf]  ;;  %v10479_v16 = vld [vmem:[%s16306_s1 + $0xe6c] sm:$0xf0]  ;;  %v8439_v21 = vor.u32 %v10447_v14, %v8438_v12  ;;  %5103 = vmatpush.bf16.msrb.mxu3 %v8711_v13  ;;  %v10010_v13 = vld [vmem:[%s16307_s0 + $0x90] sm:$0xf0] }
  0x77   :  { %v8694_v18 = vld [vmem:[%s16306_s1 + $0xf60] sm:$0xf]  ;;  %v10511_v19 = vld [vmem:[%s16306_s1 + $0xf6c] sm:$0xf0]  ;;  %v8567_v22 = vor.u32 %v10479_v16, %v8566_v15  ;;  %5062 = vmatpush.bf16.msrb.mxu0 %v8311_v20  ;;  %v6682_v16 = vld [vmem:[%s16307_s0 + $0x38] sm:$0xf] }
  0x78   :  { %v8294_v23 = vld [vmem:[%s16306_s1 + $0xc40] sm:$0xf]  ;;  %v10411_v24 = vld [vmem:[%s16306_s1 + $0xc4c] sm:$0xf0]  ;;  %v8695_v26 = vor.u32 %v10511_v19, %v8694_v18  ;;  %5076 = vmatpush.bf16.msrb.mxu1 %v8439_v21  ;;  %v10011_v18 = vld [vmem:[%s16307_s0 + $0x98] sm:$0xf0] }
  0x79   :  { %v8422_v25 = vld [vmem:[%s16306_s1 + $0xd40] sm:$0xf]  ;;  %v10443_v27 = vld [vmem:[%s16306_s1 + $0xd4c] sm:$0xf0]  ;;  %v8295_v33 = vor.u32 %v10411_v24, %v8294_v23  ;;  %5090 = vmatpush.bf16.msrb.mxu2 %v8567_v22  ;;  %v9998_v19 = vld [vmem:[%s16307_s0 + $0x34] sm:$0xf] }
  0x7a   :  { %v8550_v28 = vld [vmem:[%s16306_s1 + $0xe40] sm:$0xf]  ;;  %v10475_v29 = vld [vmem:[%s16306_s1 + $0xe4c] sm:$0xf0]  ;;  %v8423_v37 = vor.u32 %v10443_v27, %v8422_v25  ;;  %5104 = vmatpush.bf16.msrb.mxu3 %v8695_v26  ;;  %v6676_v22 = vld [vmem:[%s16307_s0 + $0x94] sm:$0xf0] }
  0x7b   :  { %v8678_v30 = vld [vmem:[%s16306_s1 + $0xf40] sm:$0xf]  ;;  %v10507_v32 = vld [vmem:[%s16306_s1 + $0xf4c] sm:$0xf0]  ;;  %v8551_v38 = vor.u32 %v10475_v29, %v8550_v28  ;;  %5063 = vmatpush.bf16.msrb.mxu0 %v8295_v33  ;;  %v9999_v23 = vld [vmem:[%s16307_s0 + $0x3c] sm:$0xf] }
  0x7c   :  { %v8278_v34 = vld [vmem:[%s16306_s1 + $0xc20] sm:$0xf]  ;;  %v10407_v41 = vld [vmem:[%s16306_s1 + $0xc2c] sm:$0xf0]  ;;  %v8679_v46 = vor.u32 %v10507_v32, %v8678_v30  ;;  %5077 = vmatpush.bf16.msrb.mxu1 %v8423_v37 }
  0x7d   :  { %v8406_v42 = vld [vmem:[%s16306_s1 + $0xd20] sm:$0xf]  ;;  %v10439_v45 = vld [vmem:[%s16306_s1 + $0xd2c] sm:$0xf0]  ;;  %v8279_v54 = vor.u32 %v10407_v41, %v8278_v34  ;;  %5091 = vmatpush.bf16.msrb.mxu2 %v8551_v38  ;;  %v11810_v38 = vor.u32 %v10011_v18, %v6682_v16  ;;  %v11812_v41 = vor.u32 %v9998_v19, %v6676_v22 }
  0x7e   :  { %v8534_v48 = vld [vmem:[%s16306_s1 + $0xe20] sm:$0xf]  ;;  %v10471_v49 = vld [vmem:[%s16306_s1 + $0xe2c] sm:$0xf0]  ;;  %v8407_v60 = vor.u32 %v10439_v45, %v8406_v42  ;;  %5105 = vmatpush.bf16.msrb.mxu3 %v8679_v46 }
  0x7f   :  { %v8662_v50 = vld [vmem:[%s16306_s1 + $0xf20] sm:$0xf]  ;;  %v10503_v51 = vld [vmem:[%s16306_s1 + $0xf2c] sm:$0xf0]  ;;  %v8535_v61 = vor.u32 %v10471_v49, %v8534_v48  ;;  %5064 = vmatpush.bf16.msrb.mxu0 %v8279_v54 }
  0x80   :  { %v8262_v52 = vld [vmem:[%s16306_s1 + $0xc00] sm:$0xf]  ;;  %v10403_v53 = vld [vmem:[%s16306_s1 + $0xc0c] sm:$0xf0]  ;;  %v8663_v2 = vor.u32 %v10503_v51, %v8662_v50  ;;  %5078 = vmatpush.bf16.msrb.mxu1 %v8407_v60 }
  0x81   :  { %v8390_v55 = vld [vmem:[%s16306_s1 + $0xd00] sm:$0xf]  ;;  %v10435_v56 = vld [vmem:[%s16306_s1 + $0xd0c] sm:$0xf0]  ;;  %v8263_v9 = vor.u32 %v10403_v53, %v8262_v52  ;;  %5092 = vmatpush.bf16.msrb.mxu2 %v8535_v61 }
  0x82   :  { %v8518_v57 = vld [vmem:[%s16306_s1 + $0xe00] sm:$0xf]  ;;  %v10467_v59 = vld [vmem:[%s16306_s1 + $0xe0c] sm:$0xf0]  ;;  %v8391_v14 = vor.u32 %v10435_v56, %v8390_v55  ;;  %5106 = vmatpush.bf16.msrb.mxu3 %v8663_v2 }
  0x83   :  { %v8646_v62 = vld [vmem:[%s16306_s1 + $0xf00] sm:$0xf]  ;;  %v10499_v63 = vld [vmem:[%s16306_s1 + $0xf0c] sm:$0xf0]  ;;  %v8519_v15 = vor.u32 %v10467_v59, %v8518_v57  ;;  %5065 = vmatpush.bf16.msrb.mxu0 %v8263_v9 }
  0x84   :  { %v8886_v0 = vld [vmem:[%s16306_s1 + $0x10e0] sm:$0xf]  ;;  %v10559_v3 = vld [vmem:[%s16306_s1 + $0x10ec] sm:$0xf0]  ;;  %v8647_v20 = vor.u32 %v10499_v63, %v8646_v62  ;;  %5079 = vmatpush.bf16.msrb.mxu1 %v8391_v14 }
  0x85   :  { %v9014_v4 = vld [vmem:[%s16306_s1 + $0x11e0] sm:$0xf]  ;;  %v10591_v5 = vld [vmem:[%s16306_s1 + $0x11ec] sm:$0xf0]  ;;  %v8887_v21 = vor.u32 %v10559_v3, %v8886_v0  ;;  %5093 = vmatpush.bf16.msrb.mxu2 %v8519_v15 }
  0x86   :  { %v9142_v6 = vld [vmem:[%s16306_s1 + $0x12e0] sm:$0xf]  ;;  %v10623_v7 = vld [vmem:[%s16306_s1 + $0x12ec] sm:$0xf0]  ;;  %v9015_v25 = vor.u32 %v10591_v5, %v9014_v4  ;;  %5107 = vmatpush.bf16.msrb.mxu3 %v8647_v20 }
  0x87   :  { %v9270_v8 = vld [vmem:[%s16306_s1 + $0x13e0] sm:$0xf]  ;;  %v10655_v11 = vld [vmem:[%s16306_s1 + $0x13ec] sm:$0xf0]  ;;  %v9143_v26 = vor.u32 %v10623_v7, %v9142_v6  ;;  %5114 = vmatpush.bf16.msra.mxu0 %v8887_v21  ;;  %5080 = vmatmul.bf16.vlgmr.msrb.gmra.mxu1 %v11812_v41 }
  0x88   :  { %v6674_v12 = vld [vmem:[%s16307_s0 + $0x30] sm:$0xf]  ;;  %v6684_v24 = vld [vmem:[%s16307_s0 + $0x9c] sm:$0xf0]  ;;  %v9271_v30 = vor.u32 %v10655_v11, %v9270_v8  ;;  %5128 = vmatpush.bf16.msra.mxu1 %v9015_v25  ;;  %5094 = vmatmul.bf16.vlgmr.msrb.gmra.mxu2 %v11810_v38 }
  0x89   :  { %v8870_v27 = vld [vmem:[%s16306_s1 + $0x10c0] sm:$0xf]  ;;  %v10555_v28 = vld [vmem:[%s16306_s1 + $0x10cc] sm:$0xf0]  ;;  %v11799_v32 = vor.u32 %v10010_v13, %v6674_v12  ;;  %v11820_v46 = vor.u32 %v9999_v23, %v6684_v24  ;;  %5142 = vmatpush.bf16.msra.mxu2 %v9143_v26 }
  0x8a   :  { %v8998_v29 = vld [vmem:[%s16306_s1 + $0x11c0] sm:$0xf]  ;;  %v10587_v33 = vld [vmem:[%s16306_s1 + $0x11cc] sm:$0xf0]  ;;  %v8871_v48 = vor.u32 %v10555_v28, %v8870_v27  ;;  %5156 = vmatpush.bf16.msra.mxu3 %v9271_v30 }
  0x8b   :  { %v9126_v34 = vld [vmem:[%s16306_s1 + $0x12c0] sm:$0xf]  ;;  %v10619_v37 = vld [vmem:[%s16306_s1 + $0x12cc] sm:$0xf0]  ;;  %v8999_v49 = vor.u32 %v10587_v33, %v8998_v29  ;;  %5066 = vmatmul.bf16.vlgmr.msrb.gmra.mxu0 %v11799_v32  ;;  %5108 = vmatmul.bf16.vlgmr.msrb.gmra.mxu3 %v11820_v46 }
  0x8c   :  { %v9254_v42 = vld [vmem:[%s16306_s1 + $0x13c0] sm:$0xf]  ;;  %v10651_v45 = vld [vmem:[%s16306_s1 + $0x13cc] sm:$0xf0]  ;;  %v9127_v50 = vor.u32 %v10619_v37, %v9126_v34  ;;  %5115 = vmatpush.bf16.msra.mxu0 %v8871_v48 }
  0x8d   :  { %v8854_v51 = vld [vmem:[%s16306_s1 + $0x10a0] sm:$0xf]  ;;  %v10551_v52 = vld [vmem:[%s16306_s1 + $0x10ac] sm:$0xf0]  ;;  %v9255_v54 = vor.u32 %v10651_v45, %v9254_v42  ;;  %5129 = vmatpush.bf16.msra.mxu1 %v8999_v49 }
  0x8e   :  { %v8982_v53 = vld [vmem:[%s16306_s1 + $0x11a0] sm:$0xf]  ;;  %v10583_v55 = vld [vmem:[%s16306_s1 + $0x11ac] sm:$0xf0]  ;;  %v8855_v61 = vor.u32 %v10551_v52, %v8854_v51  ;;  %5143 = vmatpush.bf16.msra.mxu2 %v9127_v50 }
  0x8f   :  { %v9110_v56 = vld [vmem:[%s16306_s1 + $0x12a0] sm:$0xf]  ;;  %v10615_v57 = vld [vmem:[%s16306_s1 + $0x12ac] sm:$0xf0]  ;;  %v8983_v62 = vor.u32 %v10583_v55, %v8982_v53  ;;  %5157 = vmatpush.bf16.msra.mxu3 %v9255_v54 }
  0x90   :  { %v9238_v59 = vld [vmem:[%s16306_s1 + $0x13a0] sm:$0xf]  ;;  %v10647_v60 = vld [vmem:[%s16306_s1 + $0x13ac] sm:$0xf0]  ;;  %v9111_v63 = vor.u32 %v10615_v57, %v9110_v56  ;;  %5116 = vmatpush.bf16.msra.mxu0 %v8855_v61 }
  0x91   :  { %v8838_v0 = vld [vmem:[%s16306_s1 + $0x1080] sm:$0xf]  ;;  %v10547_v2 = vld [vmem:[%s16306_s1 + $0x108c] sm:$0xf0]  ;;  %v9239_v4 = vor.u32 %v10647_v60, %v9238_v59  ;;  %5130 = vmatpush.bf16.msra.mxu1 %v8983_v62 }
  0x92   :  { %v8966_v3 = vld [vmem:[%s16306_s1 + $0x1180] sm:$0xf]  ;;  %v10579_v5 = vld [vmem:[%s16306_s1 + $0x118c] sm:$0xf0]  ;;  %v8839_v11 = vor.u32 %v10547_v2, %v8838_v0  ;;  %5144 = vmatpush.bf16.msra.mxu2 %v9111_v63 }
  0x93   :  { %v9094_v6 = vld [vmem:[%s16306_s1 + $0x1280] sm:$0xf]  ;;  %v10611_v7 = vld [vmem:[%s16306_s1 + $0x128c] sm:$0xf0]  ;;  %v8967_v12 = vor.u32 %v10579_v5, %v8966_v3  ;;  %5158 = vmatpush.bf16.msra.mxu3 %v9239_v4 }
  0x94   :  { %v9222_v8 = vld [vmem:[%s16306_s1 + $0x1380] sm:$0xf]  ;;  %v10643_v9 = vld [vmem:[%s16306_s1 + $0x138c] sm:$0xf0]  ;;  %v9095_v13 = vor.u32 %v10611_v7, %v9094_v6  ;;  %5117 = vmatpush.bf16.msra.mxu0 %v8839_v11 }
  0x95   :  { %v8822_v14 = vld [vmem:[%s16306_s1 + $0x1060] sm:$0xf]  ;;  %v10543_v15 = vld [vmem:[%s16306_s1 + $0x106c] sm:$0xf0]  ;;  %v9223_v18 = vor.u32 %v10643_v9, %v9222_v8  ;;  %5131 = vmatpush.bf16.msra.mxu1 %v8967_v12 }
  0x96   :  { %v8950_v16 = vld [vmem:[%s16306_s1 + $0x1160] sm:$0xf]  ;;  %v10575_v19 = vld [vmem:[%s16306_s1 + $0x116c] sm:$0xf0]  ;;  %v8823_v24 = vor.u32 %v10543_v15, %v8822_v14  ;;  %5145 = vmatpush.bf16.msra.mxu2 %v9095_v13 }
  0x97   :  { %v9078_v20 = vld [vmem:[%s16306_s1 + $0x1260] sm:$0xf]  ;;  %v10607_v21 = vld [vmem:[%s16306_s1 + $0x126c] sm:$0xf0]  ;;  %v8951_v25 = vor.u32 %v10575_v19, %v8950_v16  ;;  %5159 = vmatpush.bf16.msra.mxu3 %v9223_v18 }
  0x98   :  { %v9206_v22 = vld [vmem:[%s16306_s1 + $0x1360] sm:$0xf]  ;;  %v10639_v23 = vld [vmem:[%s16306_s1 + $0x136c] sm:$0xf0]  ;;  %v9079_v26 = vor.u32 %v10607_v21, %v9078_v20  ;;  %5118 = vmatpush.bf16.msra.mxu0 %v8823_v24 }
  0x99   :  { %v8806_v27 = vld [vmem:[%s16306_s1 + $0x1040] sm:$0xf]  ;;  %v10539_v28 = vld [vmem:[%s16306_s1 + $0x104c] sm:$0xf0]  ;;  %v9207_v30 = vor.u32 %v10639_v23, %v9206_v22  ;;  %5132 = vmatpush.bf16.msra.mxu1 %v8951_v25  ;;  %v10012_v22 = vld [vmem:[%s16307_s0 + $0xa0] sm:$0xf0] }
  0x9a   :  { %v8934_v29 = vld [vmem:[%s16306_s1 + $0x1140] sm:$0xf]  ;;  %v10571_v33 = vld [vmem:[%s16306_s1 + $0x114c] sm:$0xf0]  ;;  %v8807_v48 = vor.u32 %v10539_v28, %v8806_v27  ;;  %5146 = vmatpush.bf16.msra.mxu2 %v9079_v26  ;;  %v6698_v25 = vld [vmem:[%s16307_s0 + $0x48] sm:$0xf] }
  0x9b   :  { %v9062_v34 = vld [vmem:[%s16306_s1 + $0x1240] sm:$0xf]  ;;  %v10603_v37 = vld [vmem:[%s16306_s1 + $0x124c] sm:$0xf0]  ;;  %v8935_v50 = vor.u32 %v10571_v33, %v8934_v29  ;;  %5160 = vmatpush.bf16.msra.mxu3 %v9207_v30  ;;  %v10013_v26 = vld [vmem:[%s16307_s0 + $0xa8] sm:$0xf0] }
  0x9c   :  { %v9190_v42 = vld [vmem:[%s16306_s1 + $0x1340] sm:$0xf]  ;;  %v10635_v45 = vld [vmem:[%s16306_s1 + $0x134c] sm:$0xf0]  ;;  %v9063_v51 = vor.u32 %v10603_v37, %v9062_v34  ;;  %5119 = vmatpush.bf16.msra.mxu0 %v8807_v48  ;;  %v10000_v27 = vld [vmem:[%s16307_s0 + $0x44] sm:$0xf] }
  0x9d   :  { %v8790_v49 = vld [vmem:[%s16306_s1 + $0x1020] sm:$0xf]  ;;  %v10535_v52 = vld [vmem:[%s16306_s1 + $0x102c] sm:$0xf0]  ;;  %v9191_v55 = vor.u32 %v10635_v45, %v9190_v42  ;;  %5133 = vmatpush.bf16.msra.mxu1 %v8935_v50  ;;  %v6692_v30 = vld [vmem:[%s16307_s0 + $0xa4] sm:$0xf0] }
  0x9e   :  { %v8918_v53 = vld [vmem:[%s16306_s1 + $0x1120] sm:$0xf]  ;;  %v10567_v54 = vld [vmem:[%s16306_s1 + $0x112c] sm:$0xf0]  ;;  %v8791_v63 = vor.u32 %v10535_v52, %v8790_v49  ;;  %5147 = vmatpush.bf16.msra.mxu2 %v9063_v51  ;;  %v10001_v33 = vld [vmem:[%s16307_s0 + $0x4c] sm:$0xf] }
  0x9f   :  { %v9046_v56 = vld [vmem:[%s16306_s1 + $0x1220] sm:$0xf]  ;;  %v10599_v57 = vld [vmem:[%s16306_s1 + $0x122c] sm:$0xf0]  ;;  %v8919_v5 = vor.u32 %v10567_v54, %v8918_v53  ;;  %5161 = vmatpush.bf16.msra.mxu3 %v9191_v55  ;;  %v12038_v55 = vor.u32 %v10013_v26, %v6698_v25 }
  0xa0   :  { %v9174_v59 = vld [vmem:[%s16306_s1 + $0x1320] sm:$0xf]  ;;  %v10631_v60 = vld [vmem:[%s16306_s1 + $0x132c] sm:$0xf0]  ;;  %v9047_v6 = vor.u32 %v10599_v57, %v9046_v56  ;;  %5120 = vmatpush.bf16.msra.mxu0 %v8791_v63  ;;  %v12040_v56 = vor.u32 %v10000_v27, %v6692_v30 }
  0xa1   :  { %v8774_v61 = vld [vmem:[%s16306_s1 + $0x1000] sm:$0xf]  ;;  %v10531_v62 = vld [vmem:[%s16306_s1 + $0x100c] sm:$0xf0]  ;;  %v9175_v11 = vor.u32 %v10631_v60, %v9174_v59  ;;  %5134 = vmatpush.bf16.msra.mxu1 %v8919_v5 }
  0xa2   :  { %v8902_v0 = vld [vmem:[%s16306_s1 + $0x1100] sm:$0xf]  ;;  %v10563_v2 = vld [vmem:[%s16306_s1 + $0x110c] sm:$0xf0]  ;;  %v8775_v19 = vor.u32 %v10531_v62, %v8774_v61  ;;  %5148 = vmatpush.bf16.msra.mxu2 %v9047_v6 }
  0xa3   :  { %v9030_v3 = vld [vmem:[%s16306_s1 + $0x1200] sm:$0xf]  ;;  %v10595_v4 = vld [vmem:[%s16306_s1 + $0x120c] sm:$0xf0]  ;;  %v8903_v23 = vor.u32 %v10563_v2, %v8902_v0  ;;  %5162 = vmatpush.bf16.msra.mxu3 %v9175_v11 }
  0xa4   :  { %v9158_v7 = vld [vmem:[%s16306_s1 + $0x1300] sm:$0xf]  ;;  %v10627_v8 = vld [vmem:[%s16306_s1 + $0x130c] sm:$0xf0]  ;;  %v9031_v24 = vor.u32 %v10595_v4, %v9030_v3  ;;  %5121 = vmatpush.bf16.msra.mxu0 %v8775_v19 }
  0xa5   :  { %v9398_v9 = vld [vmem:[%s16306_s1 + $0x14e0] sm:$0xf]  ;;  %v10687_v12 = vld [vmem:[%s16306_s1 + $0x14ec] sm:$0xf0]  ;;  %v9159_v28 = vor.u32 %v10627_v8, %v9158_v7  ;;  %5135 = vmatpush.bf16.msra.mxu1 %v8903_v23 }
  0xa6   :  { %v9526_v13 = vld [vmem:[%s16306_s1 + $0x15e0] sm:$0xf]  ;;  %v10719_v14 = vld [vmem:[%s16306_s1 + $0x15ec] sm:$0xf0]  ;;  %v9399_v29 = vor.u32 %v10687_v12, %v9398_v9  ;;  %5149 = vmatpush.bf16.msra.mxu2 %v9031_v24 }
  0xa7   :  { %v9654_v15 = vld [vmem:[%s16306_s1 + $0x16e0] sm:$0xf]  ;;  %v10751_v16 = vld [vmem:[%s16306_s1 + $0x16ec] sm:$0xf0]  ;;  %v9527_v37 = vor.u32 %v10719_v14, %v9526_v13  ;;  %5163 = vmatpush.bf16.msra.mxu3 %v9159_v28 }
  0xa8   :  { %v9782_v18 = vld [vmem:[%s16306_s1 + $0x17e0] sm:$0xf]  ;;  %v10783_v20 = vld [vmem:[%s16306_s1 + $0x17ec] sm:$0xf0]  ;;  %v9655_v42 = vor.u32 %v10751_v16, %v9654_v15  ;;  %5170 = vmatpush.bf16.msrb.mxu0 %v9399_v29  ;;  %5136 = vmatmul.bf16.vlgmr.msra.gmra.mxu1 %v12040_v56 }
  0xa9   :  { %v6690_v21 = vld [vmem:[%s16307_s0 + $0x40] sm:$0xf]  ;;  %v6700_v34 = vld [vmem:[%s16307_s0 + $0xac] sm:$0xf0]  ;;  %v9783_v50 = vor.u32 %v10783_v20, %v9782_v18  ;;  %5184 = vmatpush.bf16.msrb.mxu1 %v9527_v37  ;;  %5150 = vmatmul.bf16.vlgmr.msra.gmra.mxu2 %v12038_v55  ;;  %v4899_v26 = vpop.f32.mrf.mxu0 }
  0xaa   :  { %v9382_v45 = vld [vmem:[%s16306_s1 + $0x14c0] sm:$0xf]  ;;  %v10683_v48 = vld [vmem:[%s16306_s1 + $0x14cc] sm:$0xf0]  ;;  %v12027_v51 = vor.u32 %v10012_v22, %v6690_v21  ;;  %v12048_v60 = vor.u32 %v10001_v33, %v6700_v34  ;;  %5198 = vmatpush.bf16.msrb.mxu2 %v9655_v42 }
  0xab   :  { %v9510_v49 = vld [vmem:[%s16306_s1 + $0x15c0] sm:$0xf]  ;;  %v10715_v52 = vld [vmem:[%s16306_s1 + $0x15cc] sm:$0xf0]  ;;  %v9383_v61 = vor.u32 %v10683_v48, %v9382_v45  ;;  %5212 = vmatpush.bf16.msrb.mxu3 %v9783_v50 }
  0xac   :  { %v9638_v53 = vld [vmem:[%s16306_s1 + $0x16c0] sm:$0xf]  ;;  %v10747_v54 = vld [vmem:[%s16306_s1 + $0x16cc] sm:$0xf0]  ;;  %v9511_v63 = vor.u32 %v10715_v52, %v9510_v49  ;;  %5122 = vmatmul.bf16.vlgmr.msra.gmra.mxu0 %v12027_v51  ;;  %5164 = vmatmul.bf16.vlgmr.msra.gmra.mxu3 %v12048_v60 }
  0xad   :  { %v9766_v57 = vld [vmem:[%s16306_s1 + $0x17c0] sm:$0xf]  ;;  %v10779_v59 = vld [vmem:[%s16306_s1 + $0x17cc] sm:$0xf0]  ;;  %v9639_v0 = vor.u32 %v10747_v54, %v9638_v53  ;;  %5171 = vmatpush.bf16.msrb.mxu0 %v9383_v61  ;;  %v4913_v53 = vpop.f32.mrf.mxu1 }
  0xae   :  { %v9366_v62 = vld [vmem:[%s16306_s1 + $0x14a0] sm:$0xf]  ;;  %v10679_v2 = vld [vmem:[%s16306_s1 + $0x14ac] sm:$0xf0]  ;;  %v9767_v5 = vor.u32 %v10779_v59, %v9766_v57  ;;  %5185 = vmatpush.bf16.msrb.mxu1 %v9511_v63 }
  0xaf   :  { %v9494_v3 = vld [vmem:[%s16306_s1 + $0x15a0] sm:$0xf]  ;;  %v10711_v6 = vld [vmem:[%s16306_s1 + $0x15ac] sm:$0xf0]  ;;  %v9367_v12 = vor.u32 %v10679_v2, %v9366_v62  ;;  %5199 = vmatpush.bf16.msrb.mxu2 %v9639_v0 }
  0xb0   :  { %v12062_v4 = vld [vmem:[%s16308_s2] sm:$0xf]  ;;  %v10743_v8 = vld [vmem:[%s16306_s1 + $0x16ac] sm:$0xf0]  ;;  %v9495_v14 = vor.u32 %v10711_v6, %v9494_v3  ;;  %5213 = vmatpush.bf16.msrb.mxu3 %v9767_v5 }
  0xb1   :  { %v9622_v7 = vld [vmem:[%s16306_s1 + $0x16a0] sm:$0xf]  ;;  %v10775_v11 = vld [vmem:[%s16306_s1 + $0x17ac] sm:$0xf0]  ;;  %v16312_v13 = vperm.slane %v12062_v4, 0  ;;  %5172 = vmatpush.bf16.msrb.mxu0 %v9367_v12 }
  0xb2   :  { %v9750_v9 = vld [vmem:[%s16306_s1 + $0x17a0] sm:$0xf]  ;;  %v9623_v15 = vor.u32 %v10743_v8, %v9622_v7  ;;  %v10675_v18 = vld [vmem:[%s16306_s1 + $0x148c] sm:$0xf0]  ;;  %5186 = vmatpush.bf16.msrb.mxu1 %v9495_v14  ;;  %v4927_v7 = vpop.f32.mrf.mxu2 }
  0xb3   :  { %v9350_v16 = vld [vmem:[%s16306_s1 + $0x1480] sm:$0xf]  ;;  %v9751_v20 = vor.u32 %v10775_v11, %v9750_v9  ;;  %v10707_v21 = vld [vmem:[%s16306_s1 + $0x158c] sm:$0xf0]  ;;  %v4900_v28 = vadd.f32 %v4899_v26, %v16312_v13  ;;  %v10413_v13 = vld [vmem:[%s16306_s1 + $0xc64] sm:$0xf] }
  0xb4   :  { %v9478_v19 = vld [vmem:[%s16306_s1 + $0x1580] sm:$0xf]  ;;  %v10739_v23 = vld [vmem:[%s16306_s1 + $0x168c] sm:$0xf0]  ;;  %v9351_v27 = vor.u32 %v10675_v18, %v9350_v16  ;;  %5200 = vmatpush.bf16.msrb.mxu2 %v9623_v15 }
  0xb5   :  { %v9606_v22 = vld [vmem:[%s16306_s1 + $0x1680] sm:$0xf]  ;;  %v10771_v25 = vld [vmem:[%s16306_s1 + $0x178c] sm:$0xf0]  ;;  %v9479_v29 = vor.u32 %v10707_v21, %v9478_v19  ;;  %5214 = vmatpush.bf16.msrb.mxu3 %v9751_v20  ;;  %v4914_v57 = vadd.f32 %v4913_v53, %v4900_v28 }
  0xb6   :  { %v9734_v24 = vld [vmem:[%s16306_s1 + $0x1780] sm:$0xf]  ;;  %v9607_v30 = vor.u32 %v10739_v23, %v9606_v22  ;;  %v10671_v34 = vld [vmem:[%s16306_s1 + $0x146c] sm:$0xf0]  ;;  %5173 = vmatpush.bf16.msrb.mxu0 %v9351_v27 }
  0xb7   :  { %v9334_v33 = vld [vmem:[%s16306_s1 + $0x1460] sm:$0xf]  ;;  %v9735_v42 = vor.u32 %v10771_v25, %v9734_v24  ;;  %v10703_v45 = vld [vmem:[%s16306_s1 + $0x156c] sm:$0xf0]  ;;  %5187 = vmatpush.bf16.msrb.mxu1 %v9479_v29  ;;  %v4928_v11 = vadd.f32 %v4927_v7, %v4914_v57  ;;  %v4941_v25 = vpop.f32.mrf.mxu3  ;;  %v10045_v57 = vld [vmem:[%s16306_s1 + $0xe4] sm:$0xf] }
  0xb8   :  { %v9462_v37 = vld [vmem:[%s16306_s1 + $0x1560] sm:$0xf]  ;;  %v10735_v49 = vld [vmem:[%s16306_s1 + $0x166c] sm:$0xf0]  ;;  %v9335_v54 = vor.u32 %v10671_v34, %v9334_v33  ;;  %5201 = vmatpush.bf16.msrb.mxu2 %v9607_v30 }
  0xb9   :  { %v9590_v48 = vld [vmem:[%s16306_s1 + $0x1660] sm:$0xf]  ;;  %v10767_v52 = vld [vmem:[%s16306_s1 + $0x176c] sm:$0xf0]  ;;  %v9463_v59 = vor.u32 %v10703_v45, %v9462_v37  ;;  %5215 = vmatpush.bf16.msrb.mxu3 %v9735_v42  ;;  %v12188_v29 = vadd.f32 %v4941_v25, %v4928_v11  ;;  %v10002_v11 = vld [vmem:[%s16307_s0 + $0x54] sm:$0xf] }
  0xba   :  { %v9718_v50 = vld [vmem:[%s16306_s1 + $0x1760] sm:$0xf]  ;;  %v9591_v61 = vor.u32 %v10735_v49, %v9590_v48  ;;  %v10667_v63 = vld [vmem:[%s16306_s1 + $0x144c] sm:$0xf0]  ;;  %5174 = vmatpush.bf16.msrb.mxu0 %v9335_v54 }
  0xbb   :  { %v9318_v62 = vld [vmem:[%s16306_s1 + $0x1440] sm:$0xf]  ;;  %v9719_v2 = vor.u32 %v10767_v52, %v9718_v50  ;;  %v10699_v3 = vld [vmem:[%s16306_s1 + $0x154c] sm:$0xf0]  ;;  %5188 = vmatpush.bf16.msrb.mxu1 %v9463_v59  ;;  %v6840_v59 = vld [vmem:[%s16306_s1 + $0xf0] sm:$0xf0] }
  0xbc   :  { %v9446_v0 = vld [vmem:[%s16306_s1 + $0x1540] sm:$0xf]  ;;  %v10731_v6 = vld [vmem:[%s16306_s1 + $0x164c] sm:$0xf0]  ;;  %v9319_v12 = vor.u32 %v10667_v63, %v9318_v62  ;;  %5202 = vmatpush.bf16.msrb.mxu2 %v9591_v61  ;;  %v10077_v61 = vld [vmem:[%s16306_s1 + $0x1e4] sm:$0xf] }
  0xbd   :  { %v9574_v5 = vld [vmem:[%s16306_s1 + $0x1640] sm:$0xf]  ;;  %v10763_v9 = vld [vmem:[%s16306_s1 + $0x174c] sm:$0xf0]  ;;  %v9447_v15 = vor.u32 %v10699_v3, %v9446_v0  ;;  %5216 = vmatpush.bf16.msrb.mxu3 %v9719_v2  ;;  %v6968_v62 = vld [vmem:[%s16306_s1 + $0x1f0] sm:$0xf0] }
  0xbe   :  { %v9702_v8 = vld [vmem:[%s16306_s1 + $0x1740] sm:$0xf]  ;;  %v9575_v16 = vor.u32 %v10731_v6, %v9574_v5  ;;  %v10663_v18 = vld [vmem:[%s16306_s1 + $0x142c] sm:$0xf0]  ;;  %5175 = vmatpush.bf16.msrb.mxu0 %v9319_v12  ;;  %v10109_v63 = vld [vmem:[%s16306_s1 + $0x2e4] sm:$0xf] }
  0xbf   :  { %v9302_v14 = vld [vmem:[%s16306_s1 + $0x1420] sm:$0xf]  ;;  %v10695_v20 = vld [vmem:[%s16306_s1 + $0x152c] sm:$0xf0]  ;;  %v9703_v21 = vor.u32 %v10763_v9, %v9702_v8  ;;  %5189 = vmatpush.bf16.msrb.mxu1 %v9447_v15  ;;  %v7096_v2 = vld [vmem:[%s16306_s1 + $0x2f0] sm:$0xf0] }
  0xc0   :  { %v9430_v19 = vld [vmem:[%s16306_s1 + $0x1520] sm:$0xf]  ;;  %v10727_v23 = vld [vmem:[%s16306_s1 + $0x162c] sm:$0xf0]  ;;  %v9303_v30 = vor.u32 %v10663_v18, %v9302_v14  ;;  %5203 = vmatpush.bf16.msrb.mxu2 %v9575_v16  ;;  %v10014_v5 = vld [vmem:[%s16307_s0 + $0xb0] sm:$0xf0]  ;;  %v7099_v25 = vor.u32 %v10109_v63, %v7096_v2 }
  0xc1   :  { %v9558_v22 = vld [vmem:[%s16306_s1 + $0x1620] sm:$0xf]  ;;  %v10759_v26 = vld [vmem:[%s16306_s1 + $0x172c] sm:$0xf0]  ;;  %v9431_v45 = vor.u32 %v10695_v20, %v9430_v19  ;;  %5217 = vmatpush.bf16.msrb.mxu3 %v9703_v21  ;;  %v6714_v8 = vld [vmem:[%s16307_s0 + $0x58] sm:$0xf]  ;;  %v6843_v19 = vor.u32 %v10045_v57, %v6840_v59  ;;  %v6971_v20 = vor.u32 %v10077_v61, %v6968_v62  ;;  %v12256_v21 = vpop.f32.mrf.mxu0 }
  0xc2   :  { %v9686_v24 = vld [vmem:[%s16306_s1 + $0x1720] sm:$0xf]  ;;  %v10659_v28 = vld [vmem:[%s16306_s1 + $0x140c] sm:$0xf0]  ;;  %v9559_v48 = vor.u32 %v10727_v23, %v9558_v22  ;;  %5176 = vmatpush.bf16.msrb.mxu0 %v9303_v30  ;;  %v10015_v9 = vld [vmem:[%s16307_s0 + $0xb8] sm:$0xf0] }
  0xc3   :  { %v9286_v27 = vld [vmem:[%s16306_s1 + $0x1400] sm:$0xf]  ;;  %v10691_v34 = vld [vmem:[%s16306_s1 + $0x150c] sm:$0xf0]  ;;  %v9687_v53 = vor.u32 %v10759_v26, %v9686_v24  ;;  %5190 = vmatpush.bf16.msrb.mxu1 %v9431_v45  ;;  %v6708_v15 = vld [vmem:[%s16307_s0 + $0xb4] sm:$0xf0]  ;;  %v12288_v45 = vpop.f32.mrf.mxu1 }
  0xc4   :  { %v9414_v33 = vld [vmem:[%s16306_s1 + $0x1500] sm:$0xf]  ;;  %v10723_v42 = vld [vmem:[%s16306_s1 + $0x160c] sm:$0xf0]  ;;  %v9287_v0 = vor.u32 %v10659_v28, %v9286_v27  ;;  %5204 = vmatpush.bf16.msrb.mxu2 %v9559_v48  ;;  %v10003_v16 = vld [vmem:[%s16307_s0 + $0x5c] sm:$0xf] }
  0xc5   :  { %v9542_v37 = vld [vmem:[%s16306_s1 + $0x1600] sm:$0xf]  ;;  %v10755_v50 = vld [vmem:[%s16306_s1 + $0x170c] sm:$0xf0]  ;;  %v9415_v6 = vor.u32 %v10691_v34, %v9414_v33  ;;  %5218 = vmatpush.bf16.msrb.mxu3 %v9687_v53  ;;  %v10041_v24 = vld [vmem:[%s16306_s1 + $0xc4] sm:$0xf]  ;;  %v12278_v33 = vor.u32 %v10015_v9, %v6714_v8  ;;  %v12280_v34 = vor.u32 %v10002_v11, %v6708_v15  ;;  %v12334_v15 = vpop.f32.mrf.mxu3 }
  0xc6   :  { %v9670_v49 = vld [vmem:[%s16306_s1 + $0x1700] sm:$0xf]  ;;  %v10799_v54 = vld [vmem:[%s16306_s1 + $0x186c] sm:$0xf0]  ;;  %v9543_v7 = vor.u32 %v10723_v42, %v9542_v37  ;;  %5177 = vmatpush.bf16.msrb.mxu0 %v9287_v0  ;;  %v6824_v27 = vld [vmem:[%s16306_s1 + $0xd0] sm:$0xf0] }
  0xc7   :  { %v9846_v52 = vld [vmem:[%s16306_s1 + $0x1860] sm:$0xf]  ;;  %v6706_v3 = vld [vmem:[%s16307_s0 + $0x50] sm:$0xf]  ;;  %v9671_v12 = vor.u32 %v10755_v50, %v9670_v49  ;;  %v10073_v28 = vld [vmem:[%s16306_s1 + $0x1c4] sm:$0xf]  ;;  %5191 = vmatpush.bf16.msrb.mxu1 %v9415_v6  ;;  %v6827_v50 = vor.u32 %v10041_v24, %v6824_v27 }
  0xc8   :  { %v9847_v14 = vor.u32 %v10799_v54, %v9846_v52  ;;  %v6716_v18 = vld [vmem:[%s16307_s0 + $0xbc] sm:$0xf0]  ;;  %v10795_v23 = vld [vmem:[%s16306_s1 + $0x184c] sm:$0xf0]  ;;  %v12267_v26 = vor.u32 %v10014_v5, %v6706_v3  ;;  %v6952_v30 = vld [vmem:[%s16306_s1 + $0x1d0] sm:$0xf0]  ;;  %5205 = vmatpush.bf16.msrb.mxu2 %v9543_v7  ;;  %v12320_v5 = vpop.f32.mrf.mxu2 }
  0xc9   :  { %v9830_v22 = vld [vmem:[%s16306_s1 + $0x1840] sm:$0xf]  ;;  %v10105_v37 = vld [vmem:[%s16306_s1 + $0x2c4] sm:$0xf]  ;;  %v7080_v42 = vld [vmem:[%s16306_s1 + $0x2d0] sm:$0xf0]  ;;  %5219 = vmatpush.bf16.msrb.mxu3 %v9671_v12  ;;  %v12290_v48 = vor.u32 %v10003_v16, %v6716_v18  ;;  %v6955_v52 = vor.u32 %v10073_v28, %v6952_v30 }
  0xca   :  { %5230 = vmatpush.bf16.msra.mxu0 %v9847_v14  ;;  %v9831_v49 = vor.u32 %v10795_v23, %v9830_v22  ;;  %v9814_v53 = vld [vmem:[%s16306_s1 + $0x1820] sm:$0xf]  ;;  %v10791_v54 = vld [vmem:[%s16306_s1 + $0x182c] sm:$0xf0]  ;;  %v10037_v57 = vld [vmem:[%s16306_s1 + $0xa4] sm:$0xf]  ;;  %v7083_v59 = vor.u32 %v10105_v37, %v7080_v42  ;;  %5192 = vmatmul.bf16.vlgmr.msrb.gmra.mxu1 %v12280_v34 }
  0xcb   :  { %5240 = vmatpush.bf16.msra.mxu1 %v6843_v19  ;;  %5178 = vmatmul.bf16.vlgmr.msrb.gmra.mxu0 %v12267_v26  ;;  %v6808_v61 = vld [vmem:[%s16306_s1 + $0xb0] sm:$0xf0]  ;;  %v10069_v62 = vld [vmem:[%s16306_s1 + $0x1a4] sm:$0xf]  ;;  %v9815_v3 = vor.u32 %v10791_v54, %v9814_v53  ;;  %v9798_v6 = vld [vmem:[%s16306_s1 + $0x1800] sm:$0xf]  ;;  %v4969_v37 = vpop.f32.mrf.mxu1 }
  0xcc   :  { %5254 = vmatpush.bf16.msra.mxu2 %v6971_v20  ;;  %v6936_v63 = vld [vmem:[%s16306_s1 + $0x1b0] sm:$0xf0]  ;;  %v10101_v0 = vld [vmem:[%s16306_s1 + $0x2a4] sm:$0xf]  ;;  %5220 = vmatmul.bf16.vlgmr.msrb.gmra.mxu3 %v12290_v48  ;;  %v6811_v7 = vor.u32 %v10037_v57, %v6808_v61  ;;  %v10787_v9 = vld [vmem:[%s16306_s1 + $0x180c] sm:$0xf0]  ;;  %v4955_v20 = vpop.f32.mrf.mxu0 }
  0xcd   :  { %5268 = vmatpush.bf16.msra.mxu3 %v7099_v25  ;;  %5206 = vmatmul.bf16.vlgmr.msrb.gmra.mxu2 %v12278_v33  ;;  %v7064_v2 = vld [vmem:[%s16306_s1 + $0x2b0] sm:$0xf0]  ;;  %v6939_v8 = vor.u32 %v10069_v62, %v6936_v63  ;;  %v10033_v11 = vld [vmem:[%s16306_s1 + $0x84] sm:$0xf]  ;;  %v4956_v25 = vadd.f32 %v4955_v20, %v12188_v29  ;;  %v9799_v27 = vor.u32 %v10787_v9, %v9798_v6  ;;  %v6722_v63 = vld [vmem:[%s16307_s0 + $0x60] sm:$0xf] }
  0xce   :  { %5231 = vmatpush.bf16.msra.mxu0 %v9831_v49  ;;  %v6792_v12 = vld [vmem:[%s16306_s1 + $0x90] sm:$0xf0]  ;;  %v7067_v14 = vor.u32 %v10101_v0, %v7064_v2  ;;  %v10065_v16 = vld [vmem:[%s16306_s1 + $0x184] sm:$0xf] }
  0xcf   :  { %5241 = vmatpush.bf16.msra.mxu1 %v6827_v50  ;;  %v6920_v18 = vld [vmem:[%s16306_s1 + $0x190] sm:$0xf0]  ;;  %v10097_v19 = vld [vmem:[%s16306_s1 + $0x284] sm:$0xf]  ;;  %v6795_v28 = vor.u32 %v10033_v11, %v6792_v12 }
  0xd0   :  { %5255 = vmatpush.bf16.msra.mxu2 %v6955_v52  ;;  %v7048_v22 = vld [vmem:[%s16306_s1 + $0x290] sm:$0xf0]  ;;  %v10141_v23 = vld [vmem:[%s16306_s1 + $0x3e4] sm:$0xf]  ;;  %v6923_v30 = vor.u32 %v10065_v16, %v6920_v18  ;;  %v4970_v52 = vadd.f32 %v4969_v37, %v4956_v25  ;;  %v4983_v9 = vpop.f32.mrf.mxu2 }
  0xd1   :  { %5269 = vmatpush.bf16.msra.mxu3 %v7083_v59  ;;  %v7224_v24 = vld [vmem:[%s16306_s1 + $0x3f0] sm:$0xf0]  ;;  %v10029_v42 = vld [vmem:[%s16306_s1 + $0x64] sm:$0xf]  ;;  %v7051_v50 = vor.u32 %v10097_v19, %v7048_v22 }
  0xd2   :  { %5232 = vmatpush.bf16.msra.mxu0 %v9815_v3  ;;  %v6776_v49 = vld [vmem:[%s16306_s1 + $0x70] sm:$0xf0]  ;;  %v7227_v53 = vor.u32 %v10141_v23, %v7224_v24  ;;  %v10061_v29 = vld [vmem:[%s16306_s1 + $0x164] sm:$0xf]  ;;  %v4984_v18 = vadd.f32 %v4983_v9, %v4970_v52  ;;  %v4997_v24 = vpop.f32.mrf.mxu3 }
  0xd3   :  { %5242 = vmatpush.bf16.msra.mxu1 %v6811_v7  ;;  %v6904_v54 = vld [vmem:[%s16306_s1 + $0x170] sm:$0xf0]  ;;  %v10093_v57 = vld [vmem:[%s16306_s1 + $0x264] sm:$0xf]  ;;  %v6779_v2 = vor.u32 %v10029_v42, %v6776_v49 }
  0xd4   :  { %5256 = vmatpush.bf16.msra.mxu2 %v6939_v8  ;;  %v7032_v59 = vld [vmem:[%s16306_s1 + $0x270] sm:$0xf0]  ;;  %v10137_v61 = vld [vmem:[%s16306_s1 + $0x3c4] sm:$0xf]  ;;  %v6907_v3 = vor.u32 %v10061_v29, %v6904_v54  ;;  %v12411_v25 = vadd.f32 %v4997_v24, %v4984_v18 }
  0xd5   :  { %5270 = vmatpush.bf16.msra.mxu3 %v7067_v14  ;;  %v7208_v62 = vld [vmem:[%s16306_s1 + $0x3d0] sm:$0xf0]  ;;  %v10016_v0 = vld [vmem:[%s16307_s0 + $0xc0] sm:$0xf0]  ;;  %v7035_v8 = vor.u32 %v10093_v57, %v7032_v59 }
  0xd6   :  { %5233 = vmatpush.bf16.msra.mxu0 %v9799_v27  ;;  %v10025_v6 = vld [vmem:[%s16306_s1 + $0x44] sm:$0xf]  ;;  %v6760_v7 = vld [vmem:[%s16306_s1 + $0x50] sm:$0xf0]  ;;  %v7211_v11 = vor.u32 %v10137_v61, %v7208_v62  ;;  %v12400_v19 = vor.u32 %v10016_v0, %v6722_v63 }
  0xd7   :  { %5243 = vmatpush.bf16.msra.mxu1 %v6795_v28  ;;  %v10057_v12 = vld [vmem:[%s16306_s1 + $0x144] sm:$0xf]  ;;  %v6888_v14 = vld [vmem:[%s16306_s1 + $0x150] sm:$0xf0]  ;;  %v6763_v27 = vor.u32 %v10025_v6, %v6760_v7 }
  0xd8   :  { %5257 = vmatpush.bf16.msra.mxu2 %v6923_v30  ;;  %v10089_v16 = vld [vmem:[%s16306_s1 + $0x244] sm:$0xf]  ;;  %16315 = vst [vmem:[#allocation2_spill] sm:$0xff] %v12400_v19  ;;  %v7016_v20 = vld [vmem:[%s16306_s1 + $0x250] sm:$0xf0]  ;;  %v6891_v28 = vor.u32 %v10057_v12, %v6888_v14 }
  0xd9   :  { %5271 = vmatpush.bf16.msra.mxu3 %v7051_v50  ;;  %v10133_v22 = vld [vmem:[%s16306_s1 + $0x3a4] sm:$0xf]  ;;  %v7192_v23 = vld [vmem:[%s16306_s1 + $0x3b0] sm:$0xf0]  ;;  %v7019_v42 = vor.u32 %v10089_v16, %v7016_v20 }
  0xda   :  { %5282 = vmatpush.bf16.msrb.mxu0 %v7227_v53  ;;  %v10021_v30 = vld [vmem:[%s16306_s1 + $0x24] sm:$0xf]  ;;  %v6744_v37 = vld [vmem:[%s16306_s1 + $0x30] sm:$0xf0]  ;;  %v7195_v49 = vor.u32 %v10133_v22, %v7192_v23 }
  0xdb   :  { %5244 = vmatpush.bf16.msra.mxu1 %v6779_v2  ;;  %v10053_v50 = vld [vmem:[%s16306_s1 + $0x124] sm:$0xf]  ;;  %v6872_v52 = vld [vmem:[%s16306_s1 + $0x130] sm:$0xf0]  ;;  %9860 = vmatmul.msk.bf16.vlgmr.msra.gmra.mxu0 %vm4886_vm0, %v12400_v19  ;;  %v6747_v59 = vor.u32 %v10021_v30, %v6744_v37 }
  0xdc   :  { %5258 = vmatpush.bf16.msra.mxu2 %v6907_v3  ;;  %v10085_v53 = vld [vmem:[%s16306_s1 + $0x224] sm:$0xf]  ;;  %v7000_v29 = vld [vmem:[%s16306_s1 + $0x230] sm:$0xf0]  ;;  %v6875_v61 = vor.u32 %v10053_v50, %v6872_v52 }
  0xdd   :  { %5272 = vmatpush.bf16.msra.mxu3 %v7035_v8  ;;  %v10129_v54 = vld [vmem:[%s16306_s1 + $0x384] sm:$0xf]  ;;  %v7176_v57 = vld [vmem:[%s16306_s1 + $0x390] sm:$0xf0]  ;;  %v7003_v2 = vor.u32 %v10085_v53, %v7000_v29 }
  0xde   :  { %5283 = vmatpush.bf16.msrb.mxu0 %v7211_v11  ;;  %v10017_v62 = vld [vmem:[%s16306_s1 + $0x4] sm:$0xf]  ;;  %v6728_v63 = vld [vmem:[%s16306_s1 + $0x10] sm:$0xf0]  ;;  %v7179_v3 = vor.u32 %v10129_v54, %v7176_v57  ;;  %v12499_v57 = vpop.f32.mrf.mxu0 }
  0xdf   :  { %5245 = vmatpush.bf16.msra.mxu1 %v6763_v27  ;;  %v10049_v0 = vld [vmem:[%s16306_s1 + $0x104] sm:$0xf]  ;;  %v6856_v6 = vld [vmem:[%s16306_s1 + $0x110] sm:$0xf0]  ;;  %v6731_v20 = vor.u32 %v10017_v62, %v6728_v63  ;;  %v12507_v62 = vpop.f32.mrf.mxu1 }
  0xe0   :  { %5259 = vmatpush.bf16.msra.mxu2 %v6891_v28  ;;  %v10081_v7 = vld [vmem:[%s16306_s1 + $0x204] sm:$0xf]  ;;  %v6984_v8 = vld [vmem:[%s16306_s1 + $0x210] sm:$0xf0]  ;;  %v6859_v22 = vor.u32 %v10049_v0, %v6856_v6 }
  0xe1   :  { %5273 = vmatpush.bf16.msra.mxu3 %v7019_v42  ;;  %v10125_v9 = vld [vmem:[%s16306_s1 + $0x364] sm:$0xf]  ;;  %v7160_v11 = vld [vmem:[%s16306_s1 + $0x370] sm:$0xf0]  ;;  %v6987_v27 = vor.u32 %v10081_v7, %v6984_v8 }
  0xe2   :  { %5284 = vmatpush.bf16.msrb.mxu0 %v7195_v49  ;;  %v10173_v12 = vld [vmem:[%s16306_s1 + $0x4e4] sm:$0xf]  ;;  %v7352_v14 = vld [vmem:[%s16306_s1 + $0x4f0] sm:$0xf0]  ;;  %v7163_v28 = vor.u32 %v10125_v9, %v7160_v11 }
  0xe3   :  { %v10205_v16 = vld [vmem:[%s16306_s1 + $0x5e4] sm:$0xf]  ;;  %v7480_v18 = vld [vmem:[%s16306_s1 + $0x5f0] sm:$0xf0]  ;;  %5246 = vmatpush.bf16.msra.mxu1 %v6747_v59  ;;  %v7355_v30 = vor.u32 %v10173_v12, %v7352_v14 }
  0xe4   :  { %5260 = vmatpush.bf16.msra.mxu2 %v6875_v61  ;;  %v10237_v23 = vld [vmem:[%s16306_s1 + $0x6e4] sm:$0xf]  ;;  %v7608_v24 = vld [vmem:[%s16306_s1 + $0x6f0] sm:$0xf0]  ;;  %v7483_v37 = vor.u32 %v10205_v16, %v7480_v18 }
  0xe5   :  { %5274 = vmatpush.bf16.msra.mxu3 %v7003_v2  ;;  %v10121_v42 = vld [vmem:[%s16306_s1 + $0x344] sm:$0xf]  ;;  %v7144_v49 = vld [vmem:[%s16306_s1 + $0x350] sm:$0xf0]  ;;  %v7611_v52 = vor.u32 %v10237_v23, %v7608_v24 }
  0xe6   :  { %5285 = vmatpush.bf16.msrb.mxu0 %v7179_v3  ;;  %v10169_v50 = vld [vmem:[%s16306_s1 + $0x4c4] sm:$0xf]  ;;  %v7336_v53 = vld [vmem:[%s16306_s1 + $0x4d0] sm:$0xf0]  ;;  %v7147_v63 = vor.u32 %v10121_v42, %v7144_v49 }
  0xe7   :  { %v10201_v29 = vld [vmem:[%s16306_s1 + $0x5c4] sm:$0xf]  ;;  %v7464_v54 = vld [vmem:[%s16306_s1 + $0x5d0] sm:$0xf0]  ;;  %5247 = vmatpush.bf16.msra.mxu1 %v6731_v20  ;;  %v7339_v0 = vor.u32 %v10169_v50, %v7336_v53  ;;  %v5011_v53 = vpop.f32.mrf.mxu0 }
  0xe8   :  { %5261 = vmatpush.bf16.msra.mxu2 %v6859_v22  ;;  %v10233_v59 = vld [vmem:[%s16306_s1 + $0x6c4] sm:$0xf]  ;;  %v7592_v61 = vld [vmem:[%s16306_s1 + $0x6d0] sm:$0xf0]  ;;  %v7467_v2 = vor.u32 %v10201_v29, %v7464_v54 }
  0xe9   :  { %5275 = vmatpush.bf16.msra.mxu3 %v6987_v27  ;;  %v10117_v3 = vld [vmem:[%s16306_s1 + $0x324] sm:$0xf]  ;;  %v7128_v6 = vld [vmem:[%s16306_s1 + $0x330] sm:$0xf0]  ;;  %v7595_v8 = vor.u32 %v10233_v59, %v7592_v61  ;;  %v5012_v61 = vadd.f32 %v5011_v53, %v12411_v25 }
  0xea   :  { %5286 = vmatpush.bf16.msrb.mxu0 %v7163_v28  ;;  %v10165_v7 = vld [vmem:[%s16306_s1 + $0x4a4] sm:$0xf]  ;;  %v7320_v9 = vld [vmem:[%s16306_s1 + $0x4b0] sm:$0xf0]  ;;  %5248 = vmatmul.bf16.vlgmr.msra.gmra.mxu1 %v11121_v58  ;;  %v7131_v18 = vor.u32 %v10117_v3, %v7128_v6 }
  0xeb   :  { %5296 = vmatpush.bf16.msrb.mxu1 %v7355_v30  ;;  %v10197_v11 = vld [vmem:[%s16306_s1 + $0x5a4] sm:$0xf]  ;;  %v7448_v12 = vld [vmem:[%s16306_s1 + $0x5b0] sm:$0xf0]  ;;  %5262 = vmatmul.bf16.vlgmr.msra.gmra.mxu2 %v11157_v10  ;;  %v7323_v22 = vor.u32 %v10165_v7, %v7320_v9  ;;  %v12548_v30 = vpop.f32.mrf.mxu2 }
  0xec   :  { %5310 = vmatpush.bf16.msrb.mxu2 %v7483_v37  ;;  %v10229_v14 = vld [vmem:[%s16306_s1 + $0x6a4] sm:$0xf]  ;;  %v7576_v16 = vld [vmem:[%s16306_s1 + $0x6b0] sm:$0xf0]  ;;  %5276 = vmatmul.bf16.vlgmr.msra.gmra.mxu3 %v11135_v1  ;;  %v7451_v23 = vor.u32 %v10197_v11, %v7448_v12 }
  0xed   :  { %5324 = vmatpush.bf16.msrb.mxu3 %v7611_v52  ;;  %v10113_v20 = vld [vmem:[%s16306_s1 + $0x304] sm:$0xf]  ;;  %v7112_v24 = vld [vmem:[%s16306_s1 + $0x310] sm:$0xf0]  ;;  %v7579_v37 = vor.u32 %v10229_v14, %v7576_v16  ;;  %v12559_v52 = vpop.f32.mrf.mxu3 }
  0xee   :  { %5287 = vmatpush.bf16.msrb.mxu0 %v7147_v63  ;;  %v10161_v27 = vld [vmem:[%s16306_s1 + $0x484] sm:$0xf]  ;;  %v7304_v28 = vld [vmem:[%s16306_s1 + $0x490] sm:$0xf0]  ;;  %v7115_v63 = vor.u32 %v10113_v20, %v7112_v24 }
  0xef   :  { %5297 = vmatpush.bf16.msrb.mxu1 %v7339_v0  ;;  %v10193_v42 = vld [vmem:[%s16306_s1 + $0x584] sm:$0xf]  ;;  %v7432_v49 = vld [vmem:[%s16306_s1 + $0x590] sm:$0xf0]  ;;  %v5025_v0 = vpop.f32.mrf.mxu1 }
  0xf0   :  { %5311 = vmatpush.bf16.msrb.mxu2 %v7467_v2  ;;  %v10225_v50 = vld [vmem:[%s16306_s1 + $0x684] sm:$0xf]  ;;  %v7560_v29 = vld [vmem:[%s16306_s1 + $0x690] sm:$0xf0]  ;;  %v7307_v2 = vor.u32 %v10161_v27, %v7304_v28  ;;  %v7435_v3 = vor.u32 %v10193_v42, %v7432_v49  ;;  %v5026_v9 = vadd.f32 %v5025_v0, %v5012_v61 }
  0xf1   :  { %5325 = vmatpush.bf16.msrb.mxu3 %v7595_v8  ;;  %v10269_v54 = vld [vmem:[%s16306_s1 + $0x7e4] sm:$0xf]  ;;  %v7736_v59 = vld [vmem:[%s16306_s1 + $0x7f0] sm:$0xf0]  ;;  %v7563_v8 = vor.u32 %v10225_v50, %v7560_v29 }
  0xf2   :  { %5288 = vmatpush.bf16.msrb.mxu0 %v7131_v18  ;;  %v10157_v6 = vld [vmem:[%s16306_s1 + $0x464] sm:$0xf]  ;;  %v7288_v7 = vld [vmem:[%s16306_s1 + $0x470] sm:$0xf0]  ;;  %v7739_v11 = vor.u32 %v10269_v54, %v7736_v59 }
  0xf3   :  { %5298 = vmatpush.bf16.msrb.mxu1 %v7323_v22  ;;  %v10189_v25 = vld [vmem:[%s16306_s1 + $0x564] sm:$0xf]  ;;  %v7416_v12 = vld [vmem:[%s16306_s1 + $0x570] sm:$0xf0]  ;;  %v7291_v22 = vor.u32 %v10157_v6, %v7288_v7 }
  0xf4   :  { %5312 = vmatpush.bf16.msrb.mxu2 %v7451_v23  ;;  %v10221_v14 = vld [vmem:[%s16306_s1 + $0x664] sm:$0xf]  ;;  %v7544_v16 = vld [vmem:[%s16306_s1 + $0x670] sm:$0xf0]  ;;  %v7419_v23 = vor.u32 %v10189_v25, %v7416_v12 }
  0xf5   :  { %5326 = vmatpush.bf16.msrb.mxu3 %v7579_v37  ;;  %v10265_v18 = vld [vmem:[%s16306_s1 + $0x7c4] sm:$0xf]  ;;  %v7720_v20 = vld [vmem:[%s16306_s1 + $0x7d0] sm:$0xf0]  ;;  %v7547_v28 = vor.u32 %v10221_v14, %v7544_v16  ;;  %v5039_v37 = vpop.f32.mrf.mxu2  ;;  %v5053_v54 = vpop.f32.mrf.mxu3 }
  0xf6   :  { %5289 = vmatpush.bf16.msrb.mxu0 %v7115_v63  ;;  %v10153_v24 = vld [vmem:[%s16306_s1 + $0x444] sm:$0xf]  ;;  %v7272_v27 = vld [vmem:[%s16306_s1 + $0x450] sm:$0xf0]  ;;  %v7723_v42 = vor.u32 %v10265_v18, %v7720_v20  ;;  %v5040_v29 = vadd.f32 %v5039_v37, %v5026_v9 }
  0xf7   :  { %5299 = vmatpush.bf16.msrb.mxu1 %v7307_v2  ;;  %v10185_v49 = vld [vmem:[%s16306_s1 + $0x544] sm:$0xf]  ;;  %v7400_v50 = vld [vmem:[%s16306_s1 + $0x550] sm:$0xf0]  ;;  %v7275_v2 = vor.u32 %v10153_v24, %v7272_v27 }
  0xf8   :  { %5313 = vmatpush.bf16.msrb.mxu2 %v7435_v3  ;;  %v10217_v53 = vld [vmem:[%s16306_s1 + $0x644] sm:$0xf]  ;;  %v7528_v59 = vld [vmem:[%s16306_s1 + $0x650] sm:$0xf0]  ;;  %v12620_v0 = vadd.f32 %v5053_v54, %v5040_v29  ;;  %v7403_v3 = vor.u32 %v10185_v49, %v7400_v50 }
  0xf9   :  { %5327 = vmatpush.bf16.msrb.mxu3 %v7563_v8  ;;  %v10261_v61 = vld [vmem:[%s16306_s1 + $0x7a4] sm:$0xf]  ;;  %v7704_v63 = vld [vmem:[%s16306_s1 + $0x7b0] sm:$0xf0]  ;;  %5290 = vmatmul.bf16.vlgmr.msrb.gmra.mxu0 %v11171_v17  ;;  %v7531_v8 = vor.u32 %v10217_v53, %v7528_v59 }
  0xfa   :  { %5338 = vmatpush.bf16.msra.mxu0 %v7739_v11  ;;  %v10149_v6 = vld [vmem:[%s16306_s1 + $0x424] sm:$0xf]  ;;  %v7256_v7 = vld [vmem:[%s16306_s1 + $0x430] sm:$0xf0]  ;;  %v7707_v9 = vor.u32 %v10261_v61, %v7704_v63 }
  0xfb   :  { %5300 = vmatpush.bf16.msrb.mxu1 %v7291_v22  ;;  %v10181_v11 = vld [vmem:[%s16306_s1 + $0x524] sm:$0xf]  ;;  %v7384_v25 = vld [vmem:[%s16306_s1 + $0x530] sm:$0xf0]  ;;  %v7259_v20 = vor.u32 %v10149_v6, %v7256_v7 }
  0xfc   :  { %5314 = vmatpush.bf16.msrb.mxu2 %v7419_v23  ;;  %v10213_v12 = vld [vmem:[%s16306_s1 + $0x624] sm:$0xf]  ;;  %v7512_v14 = vld [vmem:[%s16306_s1 + $0x630] sm:$0xf0]  ;;  %v7387_v22 = vor.u32 %v10181_v11, %v7384_v25 }
  0xfd   :  { %5328 = vmatpush.bf16.msrb.mxu3 %v7547_v28  ;;  %v10257_v16 = vld [vmem:[%s16306_s1 + $0x784] sm:$0xf]  ;;  %v7688_v18 = vld [vmem:[%s16306_s1 + $0x790] sm:$0xf0]  ;;  %v7515_v28 = vor.u32 %v10213_v12, %v7512_v14 }
  0xfe   :  { %5339 = vmatpush.bf16.msra.mxu0 %v7723_v42  ;;  %v10145_v23 = vld [vmem:[%s16306_s1 + $0x404] sm:$0xf]  ;;  %v7240_v24 = vld [vmem:[%s16306_s1 + $0x410] sm:$0xf0]  ;;  %v7691_v37 = vor.u32 %v10257_v16, %v7688_v18 }
  0xff   :  { %5301 = vmatpush.bf16.msrb.mxu1 %v7275_v2  ;;  %v10177_v27 = vld [vmem:[%s16306_s1 + $0x504] sm:$0xf]  ;;  %v7368_v42 = vld [vmem:[%s16306_s1 + $0x510] sm:$0xf0]  ;;  %v7243_v2 = vor.u32 %v10145_v23, %v7240_v24  ;;  %v12706_v24 = vpop.f32.mrf.mxu0 }
 0x100   :  { %5315 = vmatpush.bf16.msrb.mxu2 %v7403_v3  ;;  %v10209_v49 = vld [vmem:[%s16306_s1 + $0x604] sm:$0xf]  ;;  %v7496_v50 = vld [vmem:[%s16306_s1 + $0x610] sm:$0xf0]  ;;  %v7371_v3 = vor.u32 %v10177_v27, %v7368_v42 }
 0x101   :  { %5329 = vmatpush.bf16.msrb.mxu3 %v7531_v8  ;;  %v10253_v53 = vld [vmem:[%s16306_s1 + $0x764] sm:$0xf]  ;;  %v7672_v29 = vld [vmem:[%s16306_s1 + $0x770] sm:$0xf0]  ;;  %v7499_v8 = vor.u32 %v10209_v49, %v7496_v50 }
 0x102   :  { %5340 = vmatpush.bf16.msra.mxu0 %v7707_v9  ;;  %v10301_v54 = vld [vmem:[%s16306_s1 + $0x8e4] sm:$0xf]  ;;  %v7864_v59 = vld [vmem:[%s16306_s1 + $0x8f0] sm:$0xf0]  ;;  %v7675_v9 = vor.u32 %v10253_v53, %v7672_v29 }
 0x103   :  { %v10333_v61 = vld [vmem:[%s16306_s1 + $0x9e4] sm:$0xf]  ;;  %v7992_v63 = vld [vmem:[%s16306_s1 + $0x9f0] sm:$0xf0]  ;;  %5302 = vmatpush.bf16.msrb.mxu1 %v7259_v20  ;;  %v7867_v11 = vor.u32 %v10301_v54, %v7864_v59 }
 0x104   :  { %5316 = vmatpush.bf16.msrb.mxu2 %v7387_v22  ;;  %v10365_v6 = vld [vmem:[%s16306_s1 + $0xae4] sm:$0xf]  ;;  %v8120_v7 = vld [vmem:[%s16306_s1 + $0xaf0] sm:$0xf0]  ;;  %v7995_v25 = vor.u32 %v10333_v61, %v7992_v63 }
 0x105   :  { %5330 = vmatpush.bf16.msrb.mxu3 %v7515_v28  ;;  %v10249_v12 = vld [vmem:[%s16306_s1 + $0x744] sm:$0xf]  ;;  %v7656_v14 = vld [vmem:[%s16306_s1 + $0x750] sm:$0xf0]  ;;  %v8123_v18 = vor.u32 %v10365_v6, %v8120_v7 }
 0x106   :  { %5341 = vmatpush.bf16.msra.mxu0 %v7691_v37  ;;  %v10297_v16 = vld [vmem:[%s16306_s1 + $0x8c4] sm:$0xf]  ;;  %v7848_v20 = vld [vmem:[%s16306_s1 + $0x8d0] sm:$0xf0]  ;;  %v12714_v37 = vpop.f32.mrf.mxu1  ;;  %v7659_v42 = vor.u32 %v10249_v12, %v7656_v14 }
 0x107   :  { %v10329_v22 = vld [vmem:[%s16306_s1 + $0x9c4] sm:$0xf]  ;;  %v7976_v23 = vld [vmem:[%s16306_s1 + $0x9d0] sm:$0xf0]  ;;  %5303 = vmatpush.bf16.msrb.mxu1 %v7243_v2  ;;  %16316 = vst [vmem:[#allocation3_spill] sm:$0xff] %v12714_v37  ;;  %v7851_v49 = vor.u32 %v10297_v16, %v7848_v20  ;;  %v12755_v16 = vpop.f32.mrf.mxu2 }
 0x108   :  { %5317 = vmatpush.bf16.msrb.mxu2 %v7371_v3  ;;  %v10361_v27 = vld [vmem:[%s16306_s1 + $0xac4] sm:$0xf]  ;;  %v8104_v28 = vld [vmem:[%s16306_s1 + $0xad0] sm:$0xf0]  ;;  %v7979_v50 = vor.u32 %v10329_v22, %v7976_v23  ;;  %16317 = vst [vmem:[#allocation4_spill] sm:$0xff] %v12755_v16 }
 0x109   :  { %5331 = vmatpush.bf16.msrb.mxu3 %v7499_v8  ;;  %v10245_v53 = vld [vmem:[%s16306_s1 + $0x724] sm:$0xf]  ;;  %v7640_v29 = vld [vmem:[%s16306_s1 + $0x730] sm:$0xf0]  ;;  %v8107_v59 = vor.u32 %v10361_v27, %v8104_v28  ;;  %v12766_v27 = vpop.f32.mrf.mxu3  ;;  %v5067_v28 = vpop.f32.mrf.mxu0 }
 0x10a   :  { %5342 = vmatpush.bf16.msra.mxu0 %v7675_v9  ;;  %v10293_v54 = vld [vmem:[%s16306_s1 + $0x8a4] sm:$0xf]  ;;  %5304 = vmatmul.bf16.vlgmr.msrb.gmra.mxu1 %v11343_v39  ;;  %v7832_v61 = vld [vmem:[%s16306_s1 + $0x8b0] sm:$0xf0]  ;;  %v7643_v7 = vor.u32 %v10245_v53, %v7640_v29  ;;  %16318 = vst [vmem:[#allocation5_spill] sm:$0xff] %v12766_v27  ;;  %v5068_v53 = vadd.f32 %v5067_v28, %v12620_v0 }
 0x10b   :  { %5352 = vmatpush.bf16.msra.mxu1 %v7867_v11  ;;  %v10325_v63 = vld [vmem:[%s16306_s1 + $0x9a4] sm:$0xf]  ;;  %v7960_v2 = vld [vmem:[%s16306_s1 + $0x9b0] sm:$0xf0]  ;;  %5318 = vmatmul.bf16.vlgmr.msrb.gmra.mxu2 %v11356_v44  ;;  %v7835_v9 = vor.u32 %v10293_v54, %v7832_v61 }
 0x10c   :  { %5366 = vmatpush.bf16.msra.mxu2 %v7995_v25  ;;  %5332 = vmatmul.bf16.vlgmr.msrb.gmra.mxu3 %v11354_v43  ;;  %v10357_v3 = vld [vmem:[%s16306_s1 + $0xaa4] sm:$0xf]  ;;  %v8088_v6 = vld [vmem:[%s16306_s1 + $0xab0] sm:$0xf0]  ;;  %v7963_v11 = vor.u32 %v10325_v63, %v7960_v2 }
 0x10d   :  { %5380 = vmatpush.bf16.msra.mxu3 %v8123_v18  ;;  %v10241_v8 = vld [vmem:[%s16306_s1 + $0x704] sm:$0xf]  ;;  %v7624_v25 = vld [vmem:[%s16306_s1 + $0x710] sm:$0xf0]  ;;  %v8091_v18 = vor.u32 %v10357_v3, %v8088_v6 }
 0x10e   :  { %5343 = vmatpush.bf16.msra.mxu0 %v7659_v42  ;;  %v10289_v12 = vld [vmem:[%s16306_s1 + $0x884] sm:$0xf]  ;;  %v7816_v14 = vld [vmem:[%s16306_s1 + $0x890] sm:$0xf0]  ;;  %v7627_v29 = vor.u32 %v10241_v8, %v7624_v25  ;;  %v5081_v54 = vpop.f32.mrf.mxu1 }
 0x10f   :  { %5353 = vmatpush.bf16.msra.mxu1 %v7851_v49  ;;  %v10321_v20 = vld [vmem:[%s16306_s1 + $0x984] sm:$0xf]  ;;  %v7944_v22 = vld [vmem:[%s16306_s1 + $0x990] sm:$0xf0]  ;;  %v5082_v6 = vadd.f32 %v5081_v54, %v5068_v53  ;;  %v5095_v28 = vpop.f32.mrf.mxu2 }
 0x110   :  { %5367 = vmatpush.bf16.msra.mxu2 %v7979_v50  ;;  %v10353_v23 = vld [vmem:[%s16306_s1 + $0xa84] sm:$0xf]  ;;  %v8072_v42 = vld [vmem:[%s16306_s1 + $0xa90] sm:$0xf0]  ;;  %v7947_v61 = vor.u32 %v10321_v20, %v7944_v22 }
 0x111   :  { %5381 = vmatpush.bf16.msra.mxu3 %v8107_v59  ;;  %v10397_v49 = vld [vmem:[%s16306_s1 + $0xbe4] sm:$0xf]  ;;  %v8248_v50 = vld [vmem:[%s16306_s1 + $0xbf0] sm:$0xf0]  ;;  %v7819_v59 = vor.u32 %v10289_v12, %v7816_v14  ;;  %v8075_v3 = vor.u32 %v10353_v23, %v8072_v42  ;;  %v5109_v54 = vpop.f32.mrf.mxu3 }
 0x112   :  { %5344 = vmatpush.bf16.msra.mxu0 %v7643_v7  ;;  %v10285_v63 = vld [vmem:[%s16306_s1 + $0x864] sm:$0xf]  ;;  %v7800_v2 = vld [vmem:[%s16306_s1 + $0x870] sm:$0xf0]  ;;  %v8251_v7 = vor.u32 %v10397_v49, %v8248_v50 }
 0x113   :  { %5354 = vmatpush.bf16.msra.mxu1 %v7835_v9  ;;  %v10317_v0 = vld [vmem:[%s16306_s1 + $0x964] sm:$0xf]  ;;  %v7928_v8 = vld [vmem:[%s16306_s1 + $0x970] sm:$0xf0]  ;;  %v7803_v14 = vor.u32 %v10285_v63, %v7800_v2 }
 0x114   :  { %5368 = vmatpush.bf16.msra.mxu2 %v7963_v11  ;;  %v10349_v9 = vld [vmem:[%s16306_s1 + $0xa64] sm:$0xf]  ;;  %v8056_v11 = vld [vmem:[%s16306_s1 + $0xa70] sm:$0xf0] }
 0x115   :  { %5382 = vmatpush.bf16.msra.mxu3 %v8091_v18  ;;  %v10393_v25 = vld [vmem:[%s16306_s1 + $0xbc4] sm:$0xf]  ;;  %v8232_v12 = vld [vmem:[%s16306_s1 + $0xbd0] sm:$0xf0]  ;;  %v7931_v18 = vor.u32 %v10317_v0, %v7928_v8  ;;  %v8059_v23 = vor.u32 %v10349_v9, %v8056_v11 }
 0x116   :  { %5345 = vmatpush.bf16.msra.mxu0 %v7627_v29  ;;  %v10281_v20 = vld [vmem:[%s16306_s1 + $0x844] sm:$0xf]  ;;  %v7784_v22 = vld [vmem:[%s16306_s1 + $0x850] sm:$0xf0]  ;;  %v8235_v42 = vor.u32 %v10393_v25, %v8232_v12  ;;  %v5096_v29 = vadd.f32 %v5095_v28, %v5082_v6 }
 0x117   :  { %5355 = vmatpush.bf16.msra.mxu1 %v7819_v59  ;;  %v10313_v49 = vld [vmem:[%s16306_s1 + $0x944] sm:$0xf]  ;;  %v7912_v50 = vld [vmem:[%s16306_s1 + $0x950] sm:$0xf0] }
 0x118   :  { %5369 = vmatpush.bf16.msra.mxu2 %v7947_v61  ;;  %v10345_v53 = vld [vmem:[%s16306_s1 + $0xa44] sm:$0xf]  ;;  %v8040_v59 = vld [vmem:[%s16306_s1 + $0xa50] sm:$0xf0]  ;;  %v12827_v2 = vadd.f32 %v5109_v54, %v5096_v29 }
 0x119   :  { %5383 = vmatpush.bf16.msra.mxu3 %v8075_v3  ;;  %5346 = vmatmul.bf16.vlgmr.msra.gmra.mxu0 %v11364_v47  ;;  %v10389_v61 = vld [vmem:[%s16306_s1 + $0xba4] sm:$0xf]  ;;  %v8216_v63 = vld [vmem:[%s16306_s1 + $0xbb0] sm:$0xf0]  ;;  %v7787_v3 = vor.u32 %v10281_v20, %v7784_v22  ;;  %v8043_v8 = vor.u32 %v10345_v53, %v8040_v59 }
 0x11a   :  { %5394 = vmatpush.bf16.msrb.mxu0 %v8251_v7  ;;  %v7915_v7 = vor.u32 %v10313_v49, %v7912_v50  ;;  %v10277_v6 = vld [vmem:[%s16306_s1 + $0x824] sm:$0xf]  ;;  %v7768_v0 = vld [vmem:[%s16306_s1 + $0x830] sm:$0xf0]  ;;  %v8219_v9 = vor.u32 %v10389_v61, %v8216_v63 }
 0x11b   :  { %5356 = vmatpush.bf16.msra.mxu1 %v7803_v14  ;;  %v10309_v11 = vld [vmem:[%s16306_s1 + $0x924] sm:$0xf]  ;;  %v7896_v25 = vld [vmem:[%s16306_s1 + $0x930] sm:$0xf0]  ;;  %v7771_v22 = vor.u32 %v10277_v6, %v7768_v0 }
 0x11c   :  { %5370 = vmatpush.bf16.msra.mxu2 %v7931_v18  ;;  %v10341_v12 = vld [vmem:[%s16306_s1 + $0xa24] sm:$0xf]  ;;  %v8024_v14 = vld [vmem:[%s16306_s1 + $0xa30] sm:$0xf0] }
 0x11d   :  { %5384 = vmatpush.bf16.msra.mxu3 %v8059_v23  ;;  %v10385_v18 = vld [vmem:[%s16306_s1 + $0xb84] sm:$0xf]  ;;  %v8200_v20 = vld [vmem:[%s16306_s1 + $0xb90] sm:$0xf0]  ;;  %v7899_v23 = vor.u32 %v10309_v11, %v7896_v25  ;;  %v8027_v50 = vor.u32 %v10341_v12, %v8024_v14 }
 0x11e   :  { %5395 = vmatpush.bf16.msrb.mxu0 %v8235_v42  ;;  %v10273_v28 = vld [vmem:[%s16306_s1 + $0x804] sm:$0xf]  ;;  %v7752_v42 = vld [vmem:[%s16306_s1 + $0x810] sm:$0xf0]  ;;  %v8203_v53 = vor.u32 %v10385_v18, %v8200_v20 }
 0x11f   :  { %5357 = vmatpush.bf16.msra.mxu1 %v7787_v3  ;;  %v10305_v49 = vld [vmem:[%s16306_s1 + $0x904] sm:$0xf]  ;;  %v7880_v29 = vld [vmem:[%s16306_s1 + $0x910] sm:$0xf0] }
 0x120   :  { %5371 = vmatpush.bf16.msra.mxu2 %v7915_v7  ;;  %v10337_v54 = vld [vmem:[%s16306_s1 + $0xa04] sm:$0xf]  ;;  %v8008_v59 = vld [vmem:[%s16306_s1 + $0xa10] sm:$0xf0] }
 0x121   :  { %5385 = vmatpush.bf16.msra.mxu3 %v8043_v8  ;;  %v10381_v61 = vld [vmem:[%s16306_s1 + $0xb64] sm:$0xf]  ;;  %v8184_v63 = vld [vmem:[%s16306_s1 + $0xb70] sm:$0xf0]  ;;  %v7755_v8 = vor.u32 %v10273_v28, %v7752_v42  ;;  %v8011_v12 = vor.u32 %v10337_v54, %v8008_v59 }
 0x122   :  { %5396 = vmatpush.bf16.msrb.mxu0 %v8219_v9  ;;  %v10429_v3 = vld [vmem:[%s16306_s1 + $0xce4] sm:$0xf]  ;;  %v8376_v7 = vld [vmem:[%s16306_s1 + $0xcf0] sm:$0xf0]  ;;  %v7883_v9 = vor.u32 %v10305_v49, %v7880_v29  ;;  %v8187_v14 = vor.u32 %v10381_v61, %v8184_v63  ;;  %v12913_v29 = vpop.f32.mrf.mxu0  ;;  %v12921_v61 = vpop.f32.mrf.mxu1 }
 0x123   :  { %v10461_v6 = vld [vmem:[%s16306_s1 + $0xde4] sm:$0xf]  ;;  %v8504_v0 = vld [vmem:[%s16306_s1 + $0xdf0] sm:$0xf0]  ;;  %5358 = vmatpush.bf16.msra.mxu1 %v7771_v22  ;;  %v8379_v18 = vor.u32 %v10429_v3, %v8376_v7  ;;  %16319 = vst [vmem:[#allocation6_spill] sm:$0xff] %v12913_v29 }
 0x124   :  { %5372 = vmatpush.bf16.msra.mxu2 %v7899_v23  ;;  %v10493_v11 = vld [vmem:[%s16306_s1 + $0xee4] sm:$0xf]  ;;  %v8632_v25 = vld [vmem:[%s16306_s1 + $0xef0] sm:$0xf0]  ;;  %v8507_v20 = vor.u32 %v10461_v6, %v8504_v0  ;;  %16320 = vst [vmem:[#allocation7_spill] sm:$0xff] %v12921_v61 }
 0x125   :  { %5386 = vmatpush.bf16.msra.mxu3 %v8027_v50  ;;  %v10377_v22 = vld [vmem:[%s16306_s1 + $0xb44] sm:$0xf]  ;;  %v8168_v23 = vld [vmem:[%s16306_s1 + $0xb50] sm:$0xf0]  ;;  %v8635_v42 = vor.u32 %v10493_v11, %v8632_v25 }
 0x126   :  { %5397 = vmatpush.bf16.msrb.mxu0 %v8203_v53  ;;  %v10425_v28 = vld [vmem:[%s16306_s1 + $0xcc4] sm:$0xf]  ;;  %v8360_v49 = vld [vmem:[%s16306_s1 + $0xcd0] sm:$0xf0]  ;;  %v8171_v63 = vor.u32 %v10377_v22, %v8168_v23 }
 0x127   :  { %v10457_v50 = vld [vmem:[%s16306_s1 + $0xdc4] sm:$0xf]  ;;  %v8488_v53 = vld [vmem:[%s16306_s1 + $0xdd0] sm:$0xf0]  ;;  %5359 = vmatpush.bf16.msra.mxu1 %v7755_v8  ;;  %v8363_v3 = vor.u32 %v10425_v28, %v8360_v49 }
 0x128   :  { %5373 = vmatpush.bf16.msra.mxu2 %v7883_v9  ;;  %v10489_v54 = vld [vmem:[%s16306_s1 + $0xec4] sm:$0xf]  ;;  %v8616_v59 = vld [vmem:[%s16306_s1 + $0xed0] sm:$0xf0]  ;;  %v8491_v7 = vor.u32 %v10457_v50, %v8488_v53  ;;  %v12962_v53 = vpop.f32.mrf.mxu2 }
 0x129   :  { %5387 = vmatpush.bf16.msra.mxu3 %v8011_v12  ;;  %v10373_v6 = vld [vmem:[%s16306_s1 + $0xb24] sm:$0xf]  ;;  %v8152_v0 = vld [vmem:[%s16306_s1 + $0xb30] sm:$0xf0]  ;;  %v8619_v9 = vor.u32 %v10489_v54, %v8616_v59  ;;  %16321 = vst [vmem:[#allocation8_spill] sm:$0xff] %v12962_v53 }
 0x12a   :  { %5398 = vmatpush.bf16.msrb.mxu0 %v8187_v14  ;;  %v10421_v8 = vld [vmem:[%s16306_s1 + $0xca4] sm:$0xf]  ;;  %5360 = vmatmul.bf16.vlgmr.msra.gmra.mxu1 %v11571_v31  ;;  %v8344_v11 = vld [vmem:[%s16306_s1 + $0xcb0] sm:$0xf0] }
 0x12b   :  { %5408 = vmatpush.bf16.msrb.mxu1 %v8379_v18  ;;  %v10453_v25 = vld [vmem:[%s16306_s1 + $0xda4] sm:$0xf]  ;;  %v8472_v12 = vld [vmem:[%s16306_s1 + $0xdb0] sm:$0xf0]  ;;  %5374 = vmatmul.bf16.vlgmr.msra.gmra.mxu2 %v11584_v36  ;;  %v8347_v23 = vor.u32 %v10421_v8, %v8344_v11 }
 0x12c   :  { %5422 = vmatpush.bf16.msrb.mxu2 %v8507_v20  ;;  %5388 = vmatmul.bf16.vlgmr.msra.gmra.mxu3 %v11582_v35  ;;  %v10485_v14 = vld [vmem:[%s16306_s1 + $0xea4] sm:$0xf]  ;;  %v8600_v18 = vld [vmem:[%s16306_s1 + $0xeb0] sm:$0xf0]  ;;  %v8155_v20 = vor.u32 %v10373_v6, %v8152_v0  ;;  %v8475_v28 = vor.u32 %v10453_v25, %v8472_v12  ;;  %v5123_v6 = vpop.f32.mrf.mxu0  ;;  %v5137_v12 = vpop.f32.mrf.mxu1 }
 0x12d   :  { %5436 = vmatpush.bf16.msrb.mxu3 %v8635_v42  ;;  %v10369_v22 = vld [vmem:[%s16306_s1 + $0xb04] sm:$0xf]  ;;  %v8136_v42 = vld [vmem:[%s16306_s1 + $0xb10] sm:$0xf0]  ;;  %v8603_v54 = vor.u32 %v10485_v14, %v8600_v18  ;;  %v5124_v11 = vadd.f32 %v5123_v6, %v12827_v2 }
 0x12e   :  { %5399 = vmatpush.bf16.msrb.mxu0 %v8171_v63  ;;  %v10417_v49 = vld [vmem:[%s16306_s1 + $0xc84] sm:$0xf]  ;;  %v8328_v50 = vld [vmem:[%s16306_s1 + $0xc90] sm:$0xf0]  ;;  %v8139_v25 = vor.u32 %v10369_v22, %v8136_v42 }
 0x12f   :  { %5409 = vmatpush.bf16.msrb.mxu1 %v8363_v3  ;;  %v10449_v59 = vld [vmem:[%s16306_s1 + $0xd84] sm:$0xf]  ;;  %v8456_v63 = vld [vmem:[%s16306_s1 + $0xd90] sm:$0xf0]  ;;  %v8331_v14 = vor.u32 %v10417_v49, %v8328_v50  ;;  %v5138_v61 = vadd.f32 %v5137_v12, %v5124_v11 }
 0x130   :  { %5423 = vmatpush.bf16.msrb.mxu2 %v8491_v7  ;;  %v10481_v3 = vld [vmem:[%s16306_s1 + $0xe84] sm:$0xf]  ;;  %v12973_v7 = vpop.f32.mrf.mxu3  ;;  %v8584_v0 = vld [vmem:[%s16306_s1 + $0xe90] sm:$0xf0]  ;;  %v8459_v18 = vor.u32 %v10449_v59, %v8456_v63  ;;  %v5151_v6 = vpop.f32.mrf.mxu2 }
 0x131   :  { %5437 = vmatpush.bf16.msrb.mxu3 %v8619_v9  ;;  %16322 = vst [vmem:[#allocation9_spill] sm:$0xff] %v12973_v7  ;;  %v10525_v8 = vld [vmem:[%s16306_s1 + $0xfe4] sm:$0xf]  ;;  %v8760_v9 = vld [vmem:[%s16306_s1 + $0xff0] sm:$0xf0]  ;;  %v8587_v53 = vor.u32 %v10481_v3, %v8584_v0 }
 0x132   :  { %5400 = vmatpush.bf16.msrb.mxu0 %v8155_v20  ;;  %v8312_v7 = vld [vmem:[%s16306_s1 + $0xc70] sm:$0xf0]  ;;  %v8763_v20 = vor.u32 %v10525_v8, %v8760_v9  ;;  %v10445_v2 = vld [vmem:[%s16306_s1 + $0xd64] sm:$0xf]  ;;  %v5152_v9 = vadd.f32 %v5151_v6, %v5138_v61 }
 0x133   :  { %5410 = vmatpush.bf16.msrb.mxu1 %v8347_v23  ;;  %v8440_v22 = vld [vmem:[%s16306_s1 + $0xd70] sm:$0xf0]  ;;  %v10477_v23 = vld [vmem:[%s16306_s1 + $0xe64] sm:$0xf]  ;;  %v8315_v50 = vor.u32 %v10413_v13, %v8312_v7 }
 0x134   :  { %5424 = vmatpush.bf16.msrb.mxu2 %v8475_v28  ;;  %v8568_v28 = vld [vmem:[%s16306_s1 + $0xe70] sm:$0xf0]  ;;  %v10521_v42 = vld [vmem:[%s16306_s1 + $0xfc4] sm:$0xf] }
 0x135   :  { %5438 = vmatpush.bf16.msrb.mxu3 %v8603_v54  ;;  %v8744_v49 = vld [vmem:[%s16306_s1 + $0xfd0] sm:$0xf0]  ;;  %v8443_v54 = vor.u32 %v10445_v2, %v8440_v22  ;;  %v10409_v59 = vld [vmem:[%s16306_s1 + $0xc44] sm:$0xf]  ;;  %v8571_v3 = vor.u32 %v10477_v23, %v8568_v28 }
 0x136   :  { %5401 = vmatpush.bf16.msrb.mxu0 %v8139_v25  ;;  %v8296_v63 = vld [vmem:[%s16306_s1 + $0xc50] sm:$0xf0]  ;;  %v8747_v0 = vor.u32 %v10521_v42, %v8744_v49  ;;  %v10441_v8 = vld [vmem:[%s16306_s1 + $0xd44] sm:$0xf] }
 0x137   :  { %5411 = vmatpush.bf16.msrb.mxu1 %v8331_v14  ;;  %v8424_v13 = vld [vmem:[%s16306_s1 + $0xd50] sm:$0xf0]  ;;  %v10473_v7 = vld [vmem:[%s16306_s1 + $0xe44] sm:$0xf] }
 0x138   :  { %5425 = vmatpush.bf16.msrb.mxu2 %v8459_v18  ;;  %v8552_v11 = vld [vmem:[%s16306_s1 + $0xe50] sm:$0xf0]  ;;  %v10517_v25 = vld [vmem:[%s16306_s1 + $0xfa4] sm:$0xf]  ;;  %v8299_v18 = vor.u32 %v10409_v59, %v8296_v63 }
 0x139   :  { %5439 = vmatpush.bf16.msrb.mxu3 %v8587_v53  ;;  %5402 = vmatmul.bf16.vlgmr.msrb.gmra.mxu0 %v11592_v40  ;;  %v5165_v53 = vpop.f32.mrf.mxu3  ;;  %v8728_v12 = vld [vmem:[%s16306_s1 + $0xfb0] sm:$0xf0]  ;;  %v10405_v61 = vld [vmem:[%s16306_s1 + $0xc24] sm:$0xf]  ;;  %v8555_v22 = vor.u32 %v10473_v7, %v8552_v11 }
 0x13a   :  { %5450 = vmatpush.bf16.msra.mxu0 %v8763_v20  ;;  %v13034_v14 = vadd.f32 %v5165_v53, %v5152_v9  ;;  %v8427_v20 = vor.u32 %v10441_v8, %v8424_v13  ;;  %v8280_v2 = vld [vmem:[%s16306_s1 + $0xc30] sm:$0xf0]  ;;  %v8731_v23 = vor.u32 %v10517_v25, %v8728_v12  ;;  %v10437_v28 = vld [vmem:[%s16306_s1 + $0xd24] sm:$0xf] }
 0x13b   :  { %5412 = vmatpush.bf16.msrb.mxu1 %v8315_v50  ;;  %v8408_v42 = vld [vmem:[%s16306_s1 + $0xd30] sm:$0xf0]  ;;  %v10469_v49 = vld [vmem:[%s16306_s1 + $0xe24] sm:$0xf]  ;;  %v8283_v63 = vor.u32 %v10405_v61, %v8280_v2 }
 0x13c   :  { %5426 = vmatpush.bf16.msrb.mxu2 %v8443_v54  ;;  %v8536_v50 = vld [vmem:[%s16306_s1 + $0xe30] sm:$0xf0]  ;;  %v10513_v54 = vld [vmem:[%s16306_s1 + $0xf84] sm:$0xf] }
 0x13d   :  { %5440 = vmatpush.bf16.msrb.mxu3 %v8571_v3  ;;  %v8712_v59 = vld [vmem:[%s16306_s1 + $0xf90] sm:$0xf0]  ;;  %v8411_v3 = vor.u32 %v10437_v28, %v8408_v42  ;;  %v10401_v6 = vld [vmem:[%s16306_s1 + $0xc04] sm:$0xf]  ;;  %v8539_v13 = vor.u32 %v10469_v49, %v8536_v50 }
 0x13e   :  { %5451 = vmatpush.bf16.msra.mxu0 %v8747_v0  ;;  %v8264_v0 = vld [vmem:[%s16306_s1 + $0xc10] sm:$0xf0]  ;;  %v10433_v8 = vld [vmem:[%s16306_s1 + $0xd04] sm:$0xf]  ;;  %v8715_v7 = vor.u32 %v10513_v54, %v8712_v59 }
 0x13f   :  { %5413 = vmatpush.bf16.msrb.mxu1 %v8299_v18  ;;  %v8392_v9 = vld [vmem:[%s16306_s1 + $0xd10] sm:$0xf0]  ;;  %v10465_v53 = vld [vmem:[%s16306_s1 + $0xe04] sm:$0xf] }
 0x140   :  { %5427 = vmatpush.bf16.msrb.mxu2 %v8427_v20  ;;  %v8520_v11 = vld [vmem:[%s16306_s1 + $0xe10] sm:$0xf0]  ;;  %v10509_v25 = vld [vmem:[%s16306_s1 + $0xf64] sm:$0xf] }
 0x141   :  { %5441 = vmatpush.bf16.msrb.mxu3 %v8555_v22  ;;  %v8696_v12 = vld [vmem:[%s16306_s1 + $0xf70] sm:$0xf0]  ;;  %v10557_v18 = vld [vmem:[%s16306_s1 + $0x10e4] sm:$0xf]  ;;  %v8267_v22 = vor.u32 %v10401_v6, %v8264_v0  ;;  %v8523_v49 = vor.u32 %v10465_v53, %v8520_v11 }
 0x142   :  { %5452 = vmatpush.bf16.msra.mxu0 %v8731_v23  ;;  %v8888_v20 = vld [vmem:[%s16306_s1 + $0x10f0] sm:$0xf0]  ;;  %v10589_v61 = vld [vmem:[%s16306_s1 + $0x11e4] sm:$0xf]  ;;  %v8395_v23 = vor.u32 %v10433_v8, %v8392_v9  ;;  %v8699_v50 = vor.u32 %v10509_v25, %v8696_v12  ;;  %v13120_v9 = vpop.f32.mrf.mxu0  ;;  %v13128_v25 = vpop.f32.mrf.mxu1 }
 0x143   :  { %v9016_v2 = vld [vmem:[%s16306_s1 + $0x11f0] sm:$0xf0]  ;;  %5414 = vmatpush.bf16.msrb.mxu1 %v8283_v63  ;;  %v10621_v28 = vld [vmem:[%s16306_s1 + $0x12e4] sm:$0xf]  ;;  %v8891_v54 = vor.u32 %v10557_v18, %v8888_v20  ;;  %16323 = vst [vmem:[#allocation10_spill] sm:$0xff] %v13120_v9 }
 0x144   :  { %5428 = vmatpush.bf16.msrb.mxu2 %v8411_v3  ;;  %v9144_v42 = vld [vmem:[%s16306_s1 + $0x12f0] sm:$0xf0]  ;;  %v9019_v59 = vor.u32 %v10589_v61, %v9016_v2  ;;  %v10505_v63 = vld [vmem:[%s16306_s1 + $0xf44] sm:$0xf]  ;;  %16324 = vst [vmem:[#allocation11_spill] sm:$0xff] %v13128_v25 }
 0x145   :  { %5442 = vmatpush.bf16.msrb.mxu3 %v8539_v13  ;;  %v8680_v3 = vld [vmem:[%s16306_s1 + $0xf50] sm:$0xf0]  ;;  %v10553_v6 = vld [vmem:[%s16306_s1 + $0x10c4] sm:$0xf]  ;;  %v9147_v0 = vor.u32 %v10621_v28, %v9144_v42 }
 0x146   :  { %5453 = vmatpush.bf16.msra.mxu0 %v8715_v7  ;;  %v8872_v8 = vld [vmem:[%s16306_s1 + $0x10d0] sm:$0xf0]  ;;  %v10585_v13 = vld [vmem:[%s16306_s1 + $0x11c4] sm:$0xf]  ;;  %v8683_v12 = vor.u32 %v10505_v63, %v8680_v3 }
 0x147   :  { %v9000_v7 = vld [vmem:[%s16306_s1 + $0x11d0] sm:$0xf0]  ;;  %5415 = vmatpush.bf16.msrb.mxu1 %v8267_v22  ;;  %v10617_v53 = vld [vmem:[%s16306_s1 + $0x12c4] sm:$0xf]  ;;  %v8875_v18 = vor.u32 %v10553_v6, %v8872_v8 }
 0x148   :  { %5429 = vmatpush.bf16.msrb.mxu2 %v8395_v23  ;;  %v9128_v11 = vld [vmem:[%s16306_s1 + $0x12d0] sm:$0xf0]  ;;  %v9003_v20 = vor.u32 %v10585_v13, %v9000_v7  ;;  %v10501_v61 = vld [vmem:[%s16306_s1 + $0xf24] sm:$0xf]  ;;  %v13169_v7 = vpop.f32.mrf.mxu2 }
 0x149   :  { %5443 = vmatpush.bf16.msrb.mxu3 %v8523_v49  ;;  %v8664_v2 = vld [vmem:[%s16306_s1 + $0xf30] sm:$0xf0]  ;;  %v10549_v22 = vld [vmem:[%s16306_s1 + $0x10a4] sm:$0xf]  ;;  %v9131_v23 = vor.u32 %v10617_v53, %v9128_v11  ;;  %16325 = vst [vmem:[#allocation12_spill] sm:$0xff] %v13169_v7 }
 0x14a   :  { %5454 = vmatpush.bf16.msra.mxu0 %v8699_v50  ;;  %5416 = vmatmul.bf16.vlgmr.msrb.gmra.mxu1 %v11799_v32  ;;  %v8856_v28 = vld [vmem:[%s16306_s1 + $0x10b0] sm:$0xf0]  ;;  %v10581_v42 = vld [vmem:[%s16306_s1 + $0x11a4] sm:$0xf] }
 0x14b   :  { %5464 = vmatpush.bf16.msra.mxu1 %v8891_v54  ;;  %v8984_v49 = vld [vmem:[%s16306_s1 + $0x11b0] sm:$0xf0]  ;;  %5430 = vmatmul.bf16.vlgmr.msrb.gmra.mxu2 %v11812_v41  ;;  %v10613_v50 = vld [vmem:[%s16306_s1 + $0x12a4] sm:$0xf]  ;;  %v8859_v3 = vor.u32 %v10549_v22, %v8856_v28 }
 0x14c   :  { %5478 = vmatpush.bf16.msra.mxu2 %v9019_v59  ;;  %5444 = vmatmul.bf16.vlgmr.msrb.gmra.mxu3 %v11810_v38  ;;  %v9112_v54 = vld [vmem:[%s16306_s1 + $0x12b0] sm:$0xf0]  ;;  %v8667_v59 = vor.u32 %v10501_v61, %v8664_v2  ;;  %v10497_v63 = vld [vmem:[%s16306_s1 + $0xf04] sm:$0xf]  ;;  %v8987_v6 = vor.u32 %v10581_v42, %v8984_v49  ;;  %v5179_v61 = vpop.f32.mrf.mxu0  ;;  %v5193_v49 = vpop.f32.mrf.mxu1 }
 0x14d   :  { %5492 = vmatpush.bf16.msra.mxu3 %v9147_v0  ;;  %v8648_v0 = vld [vmem:[%s16306_s1 + $0xf10] sm:$0xf0]  ;;  %v10545_v8 = vld [vmem:[%s16306_s1 + $0x1084] sm:$0xf]  ;;  %v9115_v53 = vor.u32 %v10613_v50, %v9112_v54  ;;  %v5180_v28 = vadd.f32 %v5179_v61, %v13034_v14 }
 0x14e   :  { %5455 = vmatpush.bf16.msra.mxu0 %v8683_v12  ;;  %v8840_v13 = vld [vmem:[%s16306_s1 + $0x1090] sm:$0xf0]  ;;  %v10577_v11 = vld [vmem:[%s16306_s1 + $0x1184] sm:$0xf]  ;;  %v8651_v42 = vor.u32 %v10497_v63, %v8648_v0 }
 0x14f   :  { %5465 = vmatpush.bf16.msra.mxu1 %v8875_v18  ;;  %v8968_v12 = vld [vmem:[%s16306_s1 + $0x1190] sm:$0xf0]  ;;  %v10609_v18 = vld [vmem:[%s16306_s1 + $0x1284] sm:$0xf]  ;;  %v8843_v50 = vor.u32 %v10545_v8, %v8840_v13  ;;  %v5194_v9 = vadd.f32 %v5193_v49, %v5180_v28 }
 0x150   :  { %5479 = vmatpush.bf16.msra.mxu2 %v9003_v20  ;;  %v13180_v20 = vpop.f32.mrf.mxu3  ;;  %v9096_v2 = vld [vmem:[%s16306_s1 + $0x1290] sm:$0xf0]  ;;  %v10653_v22 = vld [vmem:[%s16306_s1 + $0x13e4] sm:$0xf]  ;;  %v8971_v54 = vor.u32 %v10577_v11, %v8968_v12  ;;  %v5207_v61 = vpop.f32.mrf.mxu2 }
 0x151   :  { %5493 = vmatpush.bf16.msra.mxu3 %v9131_v23  ;;  %16326 = vst [vmem:[#allocation13_spill] sm:$0xff] %v13180_v20  ;;  %v9272_v23 = vld [vmem:[%s16306_s1 + $0x13f0] sm:$0xf0]  ;;  %v10541_v20 = vld [vmem:[%s16306_s1 + $0x1064] sm:$0xf]  ;;  %v9099_v25 = vor.u32 %v10609_v18, %v9096_v2 }
 0x152   :  { %5456 = vmatpush.bf16.msra.mxu0 %v8667_v59  ;;  %v8824_v7 = vld [vmem:[%s16306_s1 + $0x1070] sm:$0xf0]  ;;  %v9275_v59 = vor.u32 %v10653_v22, %v9272_v23  ;;  %v10573_v14 = vld [vmem:[%s16306_s1 + $0x1164] sm:$0xf]  ;;  %v5208_v23 = vadd.f32 %v5207_v61, %v5194_v9 }
 0x153   :  { %5466 = vmatpush.bf16.msra.mxu1 %v8859_v3  ;;  %v8952_v63 = vld [vmem:[%s16306_s1 + $0x1170] sm:$0xf0]  ;;  %v10605_v3 = vld [vmem:[%s16306_s1 + $0x1264] sm:$0xf]  ;;  %v8827_v13 = vor.u32 %v10541_v20, %v8824_v7 }
 0x154   :  { %5480 = vmatpush.bf16.msra.mxu2 %v8987_v6  ;;  %v9080_v6 = vld [vmem:[%s16306_s1 + $0x1270] sm:$0xf0]  ;;  %v10649_v0 = vld [vmem:[%s16306_s1 + $0x13c4] sm:$0xf] }
 0x155   :  { %5494 = vmatpush.bf16.msra.mxu3 %v9115_v53  ;;  %v9256_v8 = vld [vmem:[%s16306_s1 + $0x13d0] sm:$0xf0]  ;;  %v8955_v53 = vor.u32 %v10573_v14, %v8952_v63  ;;  %v10537_v11 = vld [vmem:[%s16306_s1 + $0x1044] sm:$0xf]  ;;  %v9083_v18 = vor.u32 %v10605_v3, %v9080_v6 }
 0x156   :  { %5457 = vmatpush.bf16.msra.mxu0 %v8651_v42  ;;  %v8808_v12 = vld [vmem:[%s16306_s1 + $0x1050] sm:$0xf0]  ;;  %v9259_v2 = vor.u32 %v10649_v0, %v9256_v8  ;;  %v10569_v22 = vld [vmem:[%s16306_s1 + $0x1144] sm:$0xf] }
 0x157   :  { %5467 = vmatpush.bf16.msra.mxu1 %v8843_v50  ;;  %v8936_v7 = vld [vmem:[%s16306_s1 + $0x1150] sm:$0xf0]  ;;  %v10601_v20 = vld [vmem:[%s16306_s1 + $0x1244] sm:$0xf] }
 0x158   :  { %5481 = vmatpush.bf16.msra.mxu2 %v8971_v54  ;;  %v5221_v28 = vpop.f32.mrf.mxu3  ;;  %v9064_v42 = vld [vmem:[%s16306_s1 + $0x1250] sm:$0xf0]  ;;  %v10645_v49 = vld [vmem:[%s16306_s1 + $0x13a4] sm:$0xf]  ;;  %v8939_v9 = vor.u32 %v10569_v22, %v8936_v7 }
 0x159   :  { %5495 = vmatpush.bf16.msra.mxu3 %v9099_v25  ;;  %5458 = vmatmul.bf16.vlgmr.msra.gmra.mxu0 %v11820_v46  ;;  %v13232_v25 = vpop.f32.mrf.mxu0  ;;  %v9240_v50 = vld [vmem:[%s16306_s1 + $0x13b0] sm:$0xf0]  ;;  %v5222_v54 = vadd.f32 %v5221_v28, %v5208_v23  ;;  %v10533_v14 = vld [vmem:[%s16306_s1 + $0x1024] sm:$0xf]  ;;  %v9067_v3 = vor.u32 %v10601_v20, %v9064_v42 }
 0x15a   :  { %5506 = vmatpush.bf16.msrb.mxu0 %v9275_v59  ;;  %16327 = vst [vmem:[#allocation14_spill] sm:$0xff] %v13232_v25  ;;  %v8811_v59 = vor.u32 %v10537_v11, %v8808_v12  ;;  %v8792_v63 = vld [vmem:[%s16306_s1 + $0x1030] sm:$0xf0]  ;;  %v9243_v6 = vor.u32 %v10645_v49, %v9240_v50  ;;  %v10565_v0 = vld [vmem:[%s16306_s1 + $0x1124] sm:$0xf] }
 0x15b   :  { %5468 = vmatpush.bf16.msra.mxu1 %v8827_v13  ;;  %v8920_v8 = vld [vmem:[%s16306_s1 + $0x1130] sm:$0xf0]  ;;  %v10597_v13 = vld [vmem:[%s16306_s1 + $0x1224] sm:$0xf] }
 0x15c   :  { %5482 = vmatpush.bf16.msra.mxu2 %v8955_v53  ;;  %v9048_v53 = vld [vmem:[%s16306_s1 + $0x1230] sm:$0xf0]  ;;  %v10641_v11 = vld [vmem:[%s16306_s1 + $0x1384] sm:$0xf]  ;;  %v8923_v61 = vor.u32 %v10565_v0, %v8920_v8 }
 0x15d   :  { %5496 = vmatpush.bf16.msra.mxu3 %v9083_v18  ;;  %v9224_v12 = vld [vmem:[%s16306_s1 + $0x1390] sm:$0xf0]  ;;  %v8795_v18 = vor.u32 %v10533_v14, %v8792_v63  ;;  %v10561_v7 = vld [vmem:[%s16306_s1 + $0x1104] sm:$0xf]  ;;  %v9051_v20 = vor.u32 %v10597_v13, %v9048_v53 }
 0x15e   :  { %5507 = vmatpush.bf16.msrb.mxu0 %v9259_v2  ;;  %v10529_v2 = vld [vmem:[%s16306_s1 + $0x1004] sm:$0xf]  ;;  %v8776_v22 = vld [vmem:[%s16306_s1 + $0x1010] sm:$0xf0]  ;;  %v9227_v23 = vor.u32 %v10641_v11, %v9224_v12 }
 0x15f   :  { %5469 = vmatpush.bf16.msra.mxu1 %v8811_v59  ;;  %v8904_v28 = vld [vmem:[%s16306_s1 + $0x1110] sm:$0xf0]  ;;  %v10593_v42 = vld [vmem:[%s16306_s1 + $0x1204] sm:$0xf]  ;;  %v8779_v8 = vor.u32 %v10529_v2, %v8776_v22 }
 0x160   :  { %5483 = vmatpush.bf16.msra.mxu2 %v8939_v9  ;;  %v9032_v49 = vld [vmem:[%s16306_s1 + $0x1210] sm:$0xf0]  ;;  %v10637_v50 = vld [vmem:[%s16306_s1 + $0x1364] sm:$0xf]  ;;  %v8907_v13 = vor.u32 %v10561_v7, %v8904_v28 }
 0x161   :  { %5497 = vmatpush.bf16.msra.mxu3 %v9067_v3  ;;  %v9208_v59 = vld [vmem:[%s16306_s1 + $0x1370] sm:$0xf0]  ;;  %v10685_v9 = vld [vmem:[%s16306_s1 + $0x14e4] sm:$0xf]  ;;  %v5235_v14 = vpop.f32.mrf.mxu0  ;;  %v9035_v12 = vor.u32 %v10593_v42, %v9032_v49 }
 0x162   :  { %5508 = vmatpush.bf16.msrb.mxu0 %v9243_v6  ;;  %v9400_v63 = vld [vmem:[%s16306_s1 + $0x14f0] sm:$0xf0]  ;;  %v10717_v3 = vld [vmem:[%s16306_s1 + $0x15e4] sm:$0xf]  ;;  %v13303_v0 = vadd.f32 %v5235_v14, %v5222_v54  ;;  %v9211_v25 = vor.u32 %v10637_v50, %v9208_v59 }
 0x163   :  { %v9528_v6 = vld [vmem:[%s16306_s1 + $0x15f0] sm:$0xf0]  ;;  %5470 = vmatpush.bf16.msra.mxu1 %v8795_v18  ;;  %v10749_v53 = vld [vmem:[%s16306_s1 + $0x16e4] sm:$0xf]  ;;  %v9403_v29 = vor.u32 %v10685_v9, %v9400_v63  ;;  %v13344_v63 = vpop.f32.mrf.mxu1 }
 0x164   :  { %5484 = vmatpush.bf16.msra.mxu2 %v8923_v61  ;;  %16328 = vst [vmem:[#allocation15_spill] sm:$0xff] %v13303_v0  ;;  %v9656_v11 = vld [vmem:[%s16306_s1 + $0x16f0] sm:$0xf0]  ;;  %v9531_v27 = vor.u32 %v10717_v3, %v9528_v6  ;;  %v10633_v54 = vld [vmem:[%s16306_s1 + $0x1344] sm:$0xf] }
 0x165   :  { %5498 = vmatpush.bf16.msra.mxu3 %v9051_v20  ;;  %v9192_v18 = vld [vmem:[%s16306_s1 + $0x1350] sm:$0xf0]  ;;  %v10681_v61 = vld [vmem:[%s16306_s1 + $0x14c4] sm:$0xf]  ;;  %v9659_v2 = vor.u32 %v10749_v53, %v9656_v11  ;;  %16329 = vst [vmem:[#allocation16_spill] sm:$0xff] %v13344_v63 }
 0x166   :  { %5509 = vmatpush.bf16.msrb.mxu0 %v9227_v23  ;;  %v9384_v22 = vld [vmem:[%s16306_s1 + $0x14d0] sm:$0xf0]  ;;  %v10713_v7 = vld [vmem:[%s16306_s1 + $0x15c4] sm:$0xf]  ;;  %v9195_v42 = vor.u32 %v10633_v54, %v9192_v18 }
 0x167   :  { %v9512_v20 = vld [vmem:[%s16306_s1 + $0x15d0] sm:$0xf0]  ;;  %5471 = vmatpush.bf16.msra.mxu1 %v8779_v8  ;;  %v10745_v23 = vld [vmem:[%s16306_s1 + $0x16c4] sm:$0xf]  ;;  %v9387_v49 = vor.u32 %v10681_v61, %v9384_v22  ;;  %v13379_v22 = vpop.f32.mrf.mxu2 }
 0x168   :  { %5485 = vmatpush.bf16.msra.mxu2 %v8907_v13  ;;  %v9640_v28 = vld [vmem:[%s16306_s1 + $0x16d0] sm:$0xf0]  ;;  %v9515_v50 = vor.u32 %v10713_v7, %v9512_v20  ;;  %v10629_v59 = vld [vmem:[%s16306_s1 + $0x1324] sm:$0xf]  ;;  %16330 = vst [vmem:[#allocation17_spill] sm:$0xff] %v13379_v22 }
 0x169   :  { %5499 = vmatpush.bf16.msra.mxu3 %v9035_v12  ;;  %v9176_v9 = vld [vmem:[%s16306_s1 + $0x1330] sm:$0xf0]  ;;  %v10677_v14 = vld [vmem:[%s16306_s1 + $0x14a4] sm:$0xf] }
 0x16a   :  { %5510 = vmatpush.bf16.msrb.mxu0 %v9211_v25  ;;  %5472 = vmatmul.bf16.vlgmr.msra.gmra.mxu1 %v12027_v51  ;;  %v10709_v25 = vld [vmem:[%s16306_s1 + $0x15a4] sm:$0xf]  ;;  %v9496_v3 = vld [vmem:[%s16306_s1 + $0x15b0] sm:$0xf0]  ;;  %v9179_v13 = vor.u32 %v10629_v59, %v9176_v9  ;;  %v13402_v9 = vpop.f32.mrf.mxu3 }
 0x16b   :  { %5520 = vmatpush.bf16.msrb.mxu1 %v9403_v29  ;;  %v9368_v29 = vld [vmem:[%s16306_s1 + $0x14b0] sm:$0xf0]  ;;  %5486 = vmatmul.bf16.vlgmr.msra.gmra.mxu2 %v12040_v56  ;;  %v10741_v6 = vld [vmem:[%s16306_s1 + $0x16a4] sm:$0xf]  ;;  %v9499_v54 = vor.u32 %v10709_v25, %v9496_v3  ;;  %16331 = vst [vmem:[#allocation18_spill] sm:$0xff] %v13402_v9 }
 0x16c   :  { %5534 = vmatpush.bf16.msrb.mxu2 %v9531_v27  ;;  %v9643_v27 = vor.u32 %v10745_v23, %v9640_v28  ;;  %5500 = vmatmul.bf16.vlgmr.msra.gmra.mxu3 %v12038_v55  ;;  %v9624_v8 = vld [vmem:[%s16306_s1 + $0x16b0] sm:$0xf0]  ;;  %v10625_v53 = vld [vmem:[%s16306_s1 + $0x1304] sm:$0xf]  ;;  %v9371_v12 = vor.u32 %v10677_v14, %v9368_v29 }
 0x16d   :  { %5548 = vmatpush.bf16.msrb.mxu3 %v9659_v2  ;;  %v9160_v11 = vld [vmem:[%s16306_s1 + $0x1310] sm:$0xf0]  ;;  %v10673_v18 = vld [vmem:[%s16306_s1 + $0x1484] sm:$0xf]  ;;  %v9627_v7 = vor.u32 %v10741_v6, %v9624_v8 }
 0x16e   :  { %5511 = vmatpush.bf16.msrb.mxu0 %v9195_v42  ;;  %v9352_v61 = vld [vmem:[%s16306_s1 + $0x1490] sm:$0xf0]  ;;  %v10705_v2 = vld [vmem:[%s16306_s1 + $0x1584] sm:$0xf]  ;;  %v9163_v14 = vor.u32 %v10625_v53, %v9160_v11 }
 0x16f   :  { %5521 = vmatpush.bf16.msrb.mxu1 %v9387_v49  ;;  %v9480_v20 = vld [vmem:[%s16306_s1 + $0x1590] sm:$0xf0]  ;;  %v10737_v23 = vld [vmem:[%s16306_s1 + $0x1684] sm:$0xf] }
 0x170   :  { %5535 = vmatpush.bf16.msrb.mxu2 %v9515_v50  ;;  %v9608_v28 = vld [vmem:[%s16306_s1 + $0x1690] sm:$0xf0]  ;;  %v10781_v42 = vld [vmem:[%s16306_s1 + $0x17e4] sm:$0xf]  ;;  %v13399_v50 = vld [vmem:[%s16308_s2] sm:$0xf]  ;;  %v9483_v29 = vor.u32 %v10705_v2, %v9480_v20 }
 0x171   :  { %5549 = vmatpush.bf16.msrb.mxu3 %v9643_v27  ;;  %v9784_v49 = vld [vmem:[%s16306_s1 + $0x17f0] sm:$0xf0]  ;;  %v16313_v59 = vperm.slane %v13399_v50, 1  ;;  %v9355_v27 = vor.u32 %v10673_v18, %v9352_v61  ;;  %v10669_v25 = vld [vmem:[%s16306_s1 + $0x1464] sm:$0xf]  ;;  %v9611_v6 = vor.u32 %v10737_v23, %v9608_v28 }
 0x172   :  { %5512 = vmatpush.bf16.msrb.mxu0 %v9179_v13  ;;  %v9336_v3 = vld [vmem:[%s16306_s1 + $0x1470] sm:$0xf0]  ;;  %v9787_v8 = vor.u32 %v10781_v42, %v9784_v49  ;;  %v10701_v13 = vld [vmem:[%s16306_s1 + $0x1564] sm:$0xf] }
 0x173   :  { %5522 = vmatpush.bf16.msrb.mxu1 %v9371_v12  ;;  %v9464_v53 = vld [vmem:[%s16306_s1 + $0x1570] sm:$0xf0]  ;;  %v10733_v11 = vld [vmem:[%s16306_s1 + $0x1664] sm:$0xf]  ;;  %v5249_v12 = vpop.f32.mrf.mxu1  ;;  %v9339_v20 = vor.u32 %v10669_v25, %v9336_v3  ;;  %v5263_v25 = vpop.f32.mrf.mxu2 }
 0x174   :  { %5536 = vmatpush.bf16.msrb.mxu2 %v9499_v54  ;;  %v9592_v54 = vld [vmem:[%s16306_s1 + $0x1670] sm:$0xf0]  ;;  %v10777_v18 = vld [vmem:[%s16306_s1 + $0x17c4] sm:$0xf]  ;;  %v5250_v2 = vadd.f32 %v5249_v12, %v16313_v59  ;;  %v9467_v23 = vor.u32 %v10701_v13, %v9464_v53  ;;  %v5277_v53 = vpop.f32.mrf.mxu3 }
 0x175   :  { %5550 = vmatpush.bf16.msrb.mxu3 %v9627_v7  ;;  %v9768_v61 = vld [vmem:[%s16306_s1 + $0x17d0] sm:$0xf0]  ;;  %v13430_v7 = vpop.f32.mrf.mxu0  ;;  %v10665_v28 = vld [vmem:[%s16306_s1 + $0x1444] sm:$0xf]  ;;  %v9595_v49 = vor.u32 %v10733_v11, %v9592_v54 }
 0x176   :  { %16332 = vst [vmem:[#allocation19_spill] sm:$0xff] %v13430_v7  ;;  %5513 = vmatpush.bf16.msrb.mxu0 %v9163_v14  ;;  %v9320_v42 = vld [vmem:[%s16306_s1 + $0x1450] sm:$0xf0]  ;;  %v9771_v0 = vor.u32 %v10777_v18, %v9768_v61  ;;  %v10697_v14 = vld [vmem:[%s16306_s1 + $0x1544] sm:$0xf]  ;;  %v5264_v13 = vadd.f32 %v5263_v25, %v5250_v2 }
 0x177   :  { %5523 = vmatpush.bf16.msrb.mxu1 %v9355_v27  ;;  %v9448_v27 = vld [vmem:[%s16306_s1 + $0x1550] sm:$0xf0]  ;;  %v9323_v11 = vor.u32 %v10665_v28, %v9320_v42  ;;  %v10661_v54 = vld [vmem:[%s16306_s1 + $0x1424] sm:$0xf] }
 0x178   :  { %5537 = vmatpush.bf16.msrb.mxu2 %v9483_v29  ;;  %v10729_v29 = vld [vmem:[%s16306_s1 + $0x1644] sm:$0xf]  ;;  %v9576_v3 = vld [vmem:[%s16306_s1 + $0x1650] sm:$0xf0]  ;;  %v9451_v12 = vor.u32 %v10697_v14, %v9448_v27  ;;  %v5278_v61 = vadd.f32 %v5277_v53, %v5264_v13 }
 0x179   :  { %5551 = vmatpush.bf16.msrb.mxu3 %v9611_v6  ;;  %5514 = vmatmul.bf16.vlgmr.msrb.gmra.mxu0 %v12048_v60  ;;  %v10773_v6 = vld [vmem:[%s16306_s1 + $0x17a4] sm:$0xf]  ;;  %v9304_v18 = vld [vmem:[%s16306_s1 + $0x1430] sm:$0xf0]  ;;  %v9579_v59 = vor.u32 %v10729_v29, %v9576_v3 }
 0x17a   :  { %5562 = vmatpush.bf16.msra.mxu0 %v9787_v8  ;;  %v9752_v8 = vld [vmem:[%s16306_s1 + $0x17b0] sm:$0xf0]  ;;  %v10693_v2 = vld [vmem:[%s16306_s1 + $0x1524] sm:$0xf]  ;;  %v9307_v14 = vor.u32 %v10661_v54, %v9304_v18 }
 0x17b   :  { %5524 = vmatpush.bf16.msrb.mxu1 %v9339_v20  ;;  %v9755_v7 = vor.u32 %v10773_v6, %v9752_v8  ;;  %v9432_v20 = vld [vmem:[%s16306_s1 + $0x1530] sm:$0xf0]  ;;  %v10657_v29 = vld [vmem:[%s16306_s1 + $0x1404] sm:$0xf]  ;;  %v13525_v63 = vpop.f32.mrf.mxu1 }
 0x17c   :  { %5538 = vmatpush.bf16.msrb.mxu2 %v9467_v23  ;;  %v10725_v23 = vld [vmem:[%s16306_s1 + $0x1624] sm:$0xf]  ;;  %v9560_v28 = vld [vmem:[%s16306_s1 + $0x1630] sm:$0xf0]  ;;  %v9435_v27 = vor.u32 %v10693_v2, %v9432_v20  ;;  %v10048_v2 = vld [vmem:[%s16306_s1 + $0xf4] sm:$0xf0] }
 0x17d   :  { %5552 = vmatpush.bf16.msrb.mxu3 %v9595_v49  ;;  %v9736_v42 = vld [vmem:[%s16306_s1 + $0x1790] sm:$0xf0]  ;;  %v5291_v49 = vpop.f32.mrf.mxu0  ;;  %v10689_v3 = vld [vmem:[%s16306_s1 + $0x1504] sm:$0xf]  ;;  %v9563_v8 = vor.u32 %v10725_v23, %v9560_v28  ;;  %v6974_v28 = vld [vmem:[%s16306_s1 + $0x1e8] sm:$0xf] }
 0x17e   :  { %5563 = vmatpush.bf16.msra.mxu0 %v9771_v0  ;;  %v10769_v0 = vld [vmem:[%s16306_s1 + $0x1784] sm:$0xf]  ;;  %v9288_v25 = vld [vmem:[%s16306_s1 + $0x1410] sm:$0xf0]  ;;  %v13490_v6 = vadd.f32 %v5291_v49, %v5278_v61  ;;  %v6846_v61 = vld [vmem:[%s16306_s1 + $0xe8] sm:$0xf] }
 0x17f   :  { %5525 = vmatpush.bf16.msrb.mxu1 %v9323_v11  ;;  %v9739_v13 = vor.u32 %v10769_v0, %v9736_v42  ;;  %v9416_v53 = vld [vmem:[%s16306_s1 + $0x1510] sm:$0xf0]  ;;  %v10721_v11 = vld [vmem:[%s16306_s1 + $0x1604] sm:$0xf]  ;;  %v9291_v20 = vor.u32 %v10657_v29, %v9288_v25  ;;  %v10080_v0 = vld [vmem:[%s16306_s1 + $0x1f4] sm:$0xf0]  ;;  %v6847_v22 = vor.u32 %v10048_v2, %v6846_v61 }
 0x180   :  { %5539 = vmatpush.bf16.msrb.mxu2 %v9451_v12  ;;  %v9544_v12 = vld [vmem:[%s16306_s1 + $0x1610] sm:$0xf0]  ;;  %v10765_v54 = vld [vmem:[%s16306_s1 + $0x1764] sm:$0xf]  ;;  %v9419_v23 = vor.u32 %v10689_v3, %v9416_v53  ;;  %v6975_v25 = vor.u32 %v10080_v0, %v6974_v28  ;;  %v6958_v53 = vld [vmem:[%s16306_s1 + $0x1c8] sm:$0xf] }
 0x181   :  { %5553 = vmatpush.bf16.msrb.mxu3 %v9579_v59  ;;  %v9720_v59 = vld [vmem:[%s16306_s1 + $0x1770] sm:$0xf0]  ;;  %v9547_v42 = vor.u32 %v10721_v11, %v9544_v12  ;;  %v10793_v29 = vld [vmem:[%s16306_s1 + $0x1844] sm:$0xf]  ;;  %v10076_v11 = vld [vmem:[%s16306_s1 + $0x1d4] sm:$0xf0] }
 0x182   :  { %5564 = vmatpush.bf16.msra.mxu0 %v9755_v7  ;;  %v10797_v7 = vld [vmem:[%s16306_s1 + $0x1864] sm:$0xf]  ;;  %v9848_v18 = vld [vmem:[%s16306_s1 + $0x1870] sm:$0xf0]  ;;  %v9723_v49 = vor.u32 %v10765_v54, %v9720_v59  ;;  %v6959_v2 = vor.u32 %v10076_v11, %v6958_v53  ;;  %v10072_v28 = vld [vmem:[%s16306_s1 + $0x1b4] sm:$0xf0] }
 0x183   :  { %5526 = vmatpush.bf16.msrb.mxu1 %v9307_v14  ;;  %v9851_v9 = vor.u32 %v10797_v7, %v9848_v18  ;;  %v10761_v14 = vld [vmem:[%s16306_s1 + $0x1744] sm:$0xf]  ;;  %v9832_v3 = vld [vmem:[%s16306_s1 + $0x1850] sm:$0xf0]  ;;  %v6798_v53 = vld [vmem:[%s16306_s1 + $0x88] sm:$0xf] }
 0x184   :  { %5540 = vmatpush.bf16.msrb.mxu2 %v9435_v27  ;;  %v9704_v27 = vld [vmem:[%s16306_s1 + $0x1750] sm:$0xf0]  ;;  %v9835_v54 = vor.u32 %v10793_v29, %v9832_v3  ;;  %v10757_v7 = vld [vmem:[%s16306_s1 + $0x1724] sm:$0xf]  ;;  %v10036_v11 = vld [vmem:[%s16306_s1 + $0x94] sm:$0xf0] }
 0x185   :  { %5554 = vmatpush.bf16.msrb.mxu3 %v9563_v8  ;;  %v6830_v8 = vld [vmem:[%s16306_s1 + $0xc8] sm:$0xf]  ;;  %v9707_v12 = vor.u32 %v10761_v14, %v9704_v27  ;;  %v9688_v18 = vld [vmem:[%s16306_s1 + $0x1730] sm:$0xf0]  ;;  %v10789_v61 = vld [vmem:[%s16306_s1 + $0x1824] sm:$0xf]  ;;  %v13619_v37 = vpop.f32.mrf.mxu0 }
 0x186   :  { %5565 = vmatpush.bf16.msra.mxu0 %v9739_v13  ;;  %v10044_v13 = vld [vmem:[%s16306_s1 + $0xd4] sm:$0xf0]  ;;  %v9691_v0 = vor.u32 %v10757_v7, %v9688_v18  ;;  %v9672_v29 = vld [vmem:[%s16306_s1 + $0x1710] sm:$0xf0]  ;;  %v7102_v7 = vld [vmem:[%s16306_s1 + $0x2e8] sm:$0xf] }
 0x187   :  { %5527 = vmatpush.bf16.msrb.mxu1 %v9291_v20  ;;  %v6831_v59 = vor.u32 %v10044_v13, %v6830_v8  ;;  %v10040_v20 = vld [vmem:[%s16306_s1 + $0xb4] sm:$0xf0]  ;;  %v9800_v3 = vld [vmem:[%s16306_s1 + $0x1810] sm:$0xf0]  ;;  %v13592_v13 = vpop.f32.mrf.mxu3 }
 0x188   :  { %5541 = vmatpush.bf16.msrb.mxu2 %v9419_v23  ;;  %v6942_v23 = vld [vmem:[%s16306_s1 + $0x1a8] sm:$0xf]  ;;  %v10112_v18 = vld [vmem:[%s16306_s1 + $0x2f4] sm:$0xf0] }
 0x189   :  { %5555 = vmatpush.bf16.msrb.mxu3 %v9547_v42  ;;  %v13578_v42 = vpop.f32.mrf.mxu2  ;;  %v6943_v8 = vor.u32 %v10072_v28, %v6942_v23  ;;  %v6799_v23 = vor.u32 %v10036_v11, %v6798_v53  ;;  %v7103_v16 = vor.u32 %v10112_v18, %v7102_v7  ;;  %v10028_v7 = vld [vmem:[%s16306_s1 + $0x54] sm:$0xf0]  ;;  %v6894_v18 = vld [vmem:[%s16306_s1 + $0x148] sm:$0xf] }
 0x18a   :  { %5566 = vmatpush.bf16.msra.mxu0 %v9723_v49  ;;  %5528 = vmatmul.bf16.vlgmr.msrb.gmra.mxu1 %v12267_v26  ;;  %v10753_v49 = vld [vmem:[%s16306_s1 + $0x1704] sm:$0xf] }
 0x18b   :  { %5580 = vmatpush.bf16.msra.mxu1 %v9851_v9  ;;  %v6814_v9 = vld [vmem:[%s16306_s1 + $0xa8] sm:$0xf]  ;;  %5542 = vmatmul.bf16.vlgmr.msrb.gmra.mxu2 %v12280_v34 }
 0x18c   :  { %5590 = vmatpush.bf16.msra.mxu2 %v6847_v22  ;;  %v9816_v22 = vld [vmem:[%s16306_s1 + $0x1830] sm:$0xf0]  ;;  %5556 = vmatmul.bf16.vlgmr.msrb.gmra.mxu3 %v12278_v33  ;;  %v6815_v27 = vor.u32 %v10040_v20, %v6814_v9  ;;  %v10144_v9 = vld [vmem:[%s16306_s1 + $0x3f4] sm:$0xf0] }
 0x18d   :  { %5604 = vmatpush.bf16.msra.mxu3 %v6975_v25  ;;  %v9819_v14 = vor.u32 %v10789_v61, %v9816_v22  ;;  %v10785_v25 = vld [vmem:[%s16306_s1 + $0x1804] sm:$0xf]  ;;  %v7230_v22 = vld [vmem:[%s16306_s1 + $0x3e8] sm:$0xf] }
 0x18e   :  { %5567 = vmatpush.bf16.msra.mxu0 %v9707_v12  ;;  %v6926_v12 = vld [vmem:[%s16306_s1 + $0x188] sm:$0xf]  ;;  %v9803_v20 = vor.u32 %v10785_v25, %v9800_v3  ;;  %v10108_v25 = vld [vmem:[%s16306_s1 + $0x2d4] sm:$0xf0] }
 0x18f   :  { %5581 = vmatpush.bf16.msra.mxu1 %v9835_v54  ;;  %v5305_v54 = vpop.f32.mrf.mxu1  ;;  %v7214_v3 = vld [vmem:[%s16306_s1 + $0x3c8] sm:$0xf] }
 0x190   :  { %5591 = vmatpush.bf16.msra.mxu2 %v6831_v59  ;;  %v10068_v59 = vld [vmem:[%s16306_s1 + $0x194] sm:$0xf0]  ;;  %v5306_v61 = vadd.f32 %v5305_v54, %v13490_v6  ;;  %v6782_v6 = vld [vmem:[%s16306_s1 + $0x68] sm:$0xf] }
 0x191   :  { %5605 = vmatpush.bf16.msra.mxu3 %v6959_v2  ;;  %v9675_v2 = vor.u32 %v10753_v49, %v9672_v29  ;;  %v6927_v28 = vor.u32 %v10068_v59, %v6926_v12  ;;  %v6910_v49 = vld [vmem:[%s16306_s1 + $0x168] sm:$0xf]  ;;  %v5319_v12 = vpop.f32.mrf.mxu2 }
 0x192   :  { %5568 = vmatpush.bf16.msra.mxu0 %v9691_v0  ;;  %v10032_v0 = vld [vmem:[%s16306_s1 + $0x74] sm:$0xf0]  ;;  %v7086_v29 = vld [vmem:[%s16306_s1 + $0x2c8] sm:$0xf] }
 0x193   :  { %5582 = vmatpush.bf16.msra.mxu1 %v9819_v14  ;;  %v7231_v14 = vor.u32 %v10144_v9, %v7230_v22  ;;  %v6783_v53 = vor.u32 %v10032_v0, %v6782_v6  ;;  %v7087_v54 = vor.u32 %v10108_v25, %v7086_v29  ;;  %v6766_v59 = vld [vmem:[%s16306_s1 + $0x48] sm:$0xf]  ;;  %v10060_v22 = vld [vmem:[%s16306_s1 + $0x154] sm:$0xf0] }
 0x194   :  { %5592 = vmatpush.bf16.msra.mxu2 %v6815_v27  ;;  %v10064_v27 = vld [vmem:[%s16306_s1 + $0x174] sm:$0xf0]  ;;  %v7070_v9 = vld [vmem:[%s16306_s1 + $0x2a8] sm:$0xf]  ;;  %v6767_v0 = vor.u32 %v10028_v7, %v6766_v59 }
 0x195   :  { %5606 = vmatpush.bf16.msra.mxu3 %v6943_v8  ;;  %v10140_v8 = vld [vmem:[%s16306_s1 + $0x3d4] sm:$0xf0]  ;;  %v6911_v11 = vor.u32 %v10064_v27, %v6910_v49  ;;  %v6895_v49 = vor.u32 %v10060_v22, %v6894_v18  ;;  %v6750_v27 = vld [vmem:[%s16306_s1 + $0x28] sm:$0xf] }
 0x196   :  { %5569 = vmatpush.bf16.msra.mxu0 %v9675_v2  ;;  %v5320_v2 = vadd.f32 %v5319_v12, %v5306_v61  ;;  %v10136_v61 = vld [vmem:[%s16306_s1 + $0x3b4] sm:$0xf0]  ;;  %v6878_v25 = vld [vmem:[%s16306_s1 + $0x128] sm:$0xf]  ;;  %v5347_v12 = vpop.f32.mrf.mxu0 }
 0x197   :  { %5583 = vmatpush.bf16.msra.mxu1 %v9803_v20  ;;  %v10104_v20 = vld [vmem:[%s16306_s1 + $0x2b4] sm:$0xf0] }
 0x198   :  { %5593 = vmatpush.bf16.msra.mxu2 %v6799_v23  ;;  %v5333_v23 = vpop.f32.mrf.mxu3  ;;  %v10024_v29 = vld [vmem:[%s16306_s1 + $0x34] sm:$0xf0] }
 0x199   :  { %5607 = vmatpush.bf16.msra.mxu3 %v6927_v28  ;;  %5570 = vmatmul.bf16.vlgmr.msra.gmra.mxu0 %v12290_v48  ;;  %v7198_v28 = vld [vmem:[%s16306_s1 + $0x3a8] sm:$0xf]  ;;  %v5334_v6 = vadd.f32 %v5333_v23, %v5320_v2  ;;  %v10132_v59 = vld [vmem:[%s16306_s1 + $0x394] sm:$0xf0]  ;;  %v6751_v18 = vor.u32 %v10024_v29, %v6750_v27 }
 0x19a   :  { %5618 = vmatpush.bf16.msrb.mxu0 %v7103_v16  ;;  %v7215_v16 = vor.u32 %v10140_v8, %v7214_v3  ;;  %v7199_v3 = vor.u32 %v10136_v61, %v7198_v28  ;;  %v10056_v8 = vld [vmem:[%s16306_s1 + $0x134] sm:$0xf0]  ;;  %9861 = vmatmul.msk.bf16.vlgmr.msra.gmra.mxu1 %vm4886_vm0, %v12400_v19  ;;  %v6734_v2 = vld [vmem:[%s16306_s1 + $0x8] sm:$0xf] }
 0x19b   :  { %5632 = vmatpush.bf16.msrb.mxu1 %v7231_v14  ;;  %v7071_v14 = vor.u32 %v10104_v20, %v7070_v9  ;;  %v13696_v7 = vadd.f32 %v5347_v12, %v5334_v6  ;;  %v10020_v9 = vld [vmem:[%s16306_s1 + $0x14] sm:$0xf0]  ;;  %v6862_v20 = vld [vmem:[%s16306_s1 + $0x108] sm:$0xf] }
 0x19c   :  { %5594 = vmatpush.bf16.msra.mxu2 %v6783_v53  ;;  %v7054_v53 = vld [vmem:[%s16306_s1 + $0x288] sm:$0xf]  ;;  %v10052_v23 = vld [vmem:[%s16306_s1 + $0x114] sm:$0xf0]  ;;  %v6735_v29 = vor.u32 %v10020_v9, %v6734_v2 }
 0x19d   :  { %5608 = vmatpush.bf16.msra.mxu3 %v6911_v11  ;;  %v10100_v11 = vld [vmem:[%s16306_s1 + $0x294] sm:$0xf0]  ;;  %v7038_v61 = vld [vmem:[%s16306_s1 + $0x268] sm:$0xf] }
 0x19e   :  { %5619 = vmatpush.bf16.msrb.mxu0 %v7087_v54  ;;  %v7182_v54 = vld [vmem:[%s16306_s1 + $0x388] sm:$0xf]  ;;  %v7055_v22 = vor.u32 %v10100_v11, %v7054_v53  ;;  %v10096_v6 = vld [vmem:[%s16306_s1 + $0x274] sm:$0xf0] }
 0x19f   :  { %5633 = vmatpush.bf16.msrb.mxu1 %v7215_v16  ;;  %v6879_v16 = vor.u32 %v10056_v8, %v6878_v25  ;;  %v7183_v28 = vor.u32 %v10132_v59, %v7182_v54  ;;  %v10176_v27 = vld [vmem:[%s16306_s1 + $0x4f4] sm:$0xf0]  ;;  %v7486_v25 = vld [vmem:[%s16306_s1 + $0x5e8] sm:$0xf]  ;;  %v6863_v8 = vor.u32 %v10052_v23, %v6862_v20  ;;  %v7039_v53 = vor.u32 %v10096_v6, %v7038_v61  ;;  %v13752_v20 = vpop.f32.mrf.mxu1 }
 0x1a0   :  { %5595 = vmatpush.bf16.msra.mxu2 %v6767_v0  ;;  %v7166_v0 = vld [vmem:[%s16306_s1 + $0x368] sm:$0xf]  ;;  %v10092_v59 = vld [vmem:[%s16306_s1 + $0x254] sm:$0xf0]  ;;  %16333 = vst [vmem:[#allocation20_spill] sm:$0xff] %v13752_v20 }
 0x1a1   :  { %5609 = vmatpush.bf16.msra.mxu3 %v6895_v49  ;;  %v10128_v49 = vld [vmem:[%s16306_s1 + $0x374] sm:$0xf0]  ;;  %v7022_v54 = vld [vmem:[%s16306_s1 + $0x248] sm:$0xf] }
 0x1a2   :  { %5620 = vmatpush.bf16.msrb.mxu0 %v7071_v14  ;;  %v7358_v14 = vld [vmem:[%s16306_s1 + $0x4e8] sm:$0xf]  ;;  %v7167_v11 = vor.u32 %v10128_v49, %v7166_v0  ;;  %v10172_v9 = vld [vmem:[%s16306_s1 + $0x4d4] sm:$0xf0]  ;;  %v7023_v61 = vor.u32 %v10092_v59, %v7022_v54 }
 0x1a3   :  { %5634 = vmatpush.bf16.msrb.mxu1 %v7199_v3  ;;  %v10208_v3 = vld [vmem:[%s16306_s1 + $0x5f4] sm:$0xf0]  ;;  %v7359_v12 = vor.u32 %v10176_v27, %v7358_v14  ;;  %v7470_v23 = vld [vmem:[%s16306_s1 + $0x5c8] sm:$0xf] }
 0x1a4   :  { %5596 = vmatpush.bf16.msra.mxu2 %v6751_v18  ;;  %v7150_v18 = vld [vmem:[%s16306_s1 + $0x348] sm:$0xf]  ;;  %v7487_v2 = vor.u32 %v10208_v3, %v7486_v25  ;;  %v10088_v14 = vld [vmem:[%s16306_s1 + $0x234] sm:$0xf0] }
 0x1a5   :  { %5610 = vmatpush.bf16.msra.mxu3 %v6879_v16  ;;  %v10124_v16 = vld [vmem:[%s16306_s1 + $0x354] sm:$0xf0]  ;;  %v7006_v49 = vld [vmem:[%s16306_s1 + $0x228] sm:$0xf] }
 0x1a6   :  { %5621 = vmatpush.bf16.msrb.mxu0 %v7055_v22  ;;  %v7342_v22 = vld [vmem:[%s16306_s1 + $0x4c8] sm:$0xf]  ;;  %v7151_v6 = vor.u32 %v10124_v16, %v7150_v18  ;;  %v10120_v25 = vld [vmem:[%s16306_s1 + $0x334] sm:$0xf0] }
 0x1a7   :  { %5635 = vmatpush.bf16.msrb.mxu1 %v7183_v28  ;;  %v10204_v28 = vld [vmem:[%s16306_s1 + $0x5d4] sm:$0xf0]  ;;  %v7343_v0 = vor.u32 %v10172_v9, %v7342_v22  ;;  %v7134_v27 = vld [vmem:[%s16306_s1 + $0x328] sm:$0xf]  ;;  %v13798_v9 = vpop.f32.mrf.mxu2 }
 0x1a8   :  { %5597 = vmatpush.bf16.msra.mxu2 %v6735_v29  ;;  %v7471_v29 = vor.u32 %v10204_v28, %v7470_v23  ;;  %v7326_v3 = vld [vmem:[%s16306_s1 + $0x4a8] sm:$0xf]  ;;  %v7135_v59 = vor.u32 %v10120_v25, %v7134_v27  ;;  %v10116_v22 = vld [vmem:[%s16306_s1 + $0x314] sm:$0xf0]  ;;  %16334 = vst [vmem:[#allocation21_spill] sm:$0xff] %v13798_v9  ;;  %v13800_v23 = vpop.f32.mrf.mxu3 }
 0x1a9   :  { %5611 = vmatpush.bf16.msra.mxu3 %v6863_v8  ;;  %v10168_v8 = vld [vmem:[%s16306_s1 + $0x4b4] sm:$0xf0]  ;;  %v6990_v54 = vld [vmem:[%s16306_s1 + $0x208] sm:$0xf]  ;;  %16335 = vst [vmem:[#allocation22_spill] sm:$0xff] %v13800_v23 }
 0x1aa   :  { %5622 = vmatpush.bf16.msrb.mxu0 %v7039_v53  ;;  %v7454_v53 = vld [vmem:[%s16306_s1 + $0x5a8] sm:$0xf]  ;;  %v7327_v18 = vor.u32 %v10168_v8, %v7326_v3 }
 0x1ab   :  { %5636 = vmatpush.bf16.msrb.mxu1 %v7167_v11  ;;  %5598 = vmatmul.bf16.vlgmr.msra.gmra.mxu2 %v11121_v58  ;;  %v10200_v11 = vld [vmem:[%s16306_s1 + $0x5b4] sm:$0xf0]  ;;  %v7118_v16 = vld [vmem:[%s16306_s1 + $0x308] sm:$0xf] }
 0x1ac   :  { %5646 = vmatpush.bf16.msrb.mxu2 %v7359_v12  ;;  %5612 = vmatmul.bf16.vlgmr.msra.gmra.mxu3 %v11157_v10  ;;  %v7007_v12 = vor.u32 %v10088_v14, %v7006_v49  ;;  %v7455_v28 = vor.u32 %v10200_v11, %v7454_v53  ;;  %v5361_v49 = vpop.f32.mrf.mxu1  ;;  %v10196_v14 = vld [vmem:[%s16306_s1 + $0x594] sm:$0xf0]  ;;  %v7614_v27 = vld [vmem:[%s16306_s1 + $0x6e8] sm:$0xf]  ;;  %v7119_v11 = vor.u32 %v10116_v22, %v7118_v16  ;;  %v13845_v22 = vpop.f32.mrf.mxu0 }
 0x1ad   :  { %5660 = vmatpush.bf16.msrb.mxu3 %v7487_v2  ;;  %v10084_v2 = vld [vmem:[%s16306_s1 + $0x214] sm:$0xf0]  ;;  %v5362_v25 = vadd.f32 %v5361_v49, %v13696_v7  ;;  %v7742_v8 = vld [vmem:[%s16306_s1 + $0x7e8] sm:$0xf]  ;;  %16336 = vst [vmem:[#allocation23_spill] sm:$0xff] %v13845_v22 }
 0x1ae   :  { %5623 = vmatpush.bf16.msrb.mxu0 %v7023_v61  ;;  %v7310_v61 = vld [vmem:[%s16306_s1 + $0x488] sm:$0xf]  ;;  %v6991_v3 = vor.u32 %v10084_v2, %v6990_v54  ;;  %v10272_v53 = vld [vmem:[%s16306_s1 + $0x7f4] sm:$0xf0] }
 0x1af   :  { %5637 = vmatpush.bf16.msrb.mxu1 %v7151_v6  ;;  %v10164_v6 = vld [vmem:[%s16306_s1 + $0x494] sm:$0xf0]  ;;  %v7294_v7 = vld [vmem:[%s16306_s1 + $0x468] sm:$0xf]  ;;  %v7743_v2 = vor.u32 %v10272_v53, %v7742_v8  ;;  %v5375_v49 = vpop.f32.mrf.mxu2 }
 0x1b0   :  { %5647 = vmatpush.bf16.msrb.mxu2 %v7343_v0  ;;  %v7438_v0 = vld [vmem:[%s16306_s1 + $0x588] sm:$0xf]  ;;  %v7311_v23 = vor.u32 %v10164_v6, %v7310_v61  ;;  %v10236_v16 = vld [vmem:[%s16306_s1 + $0x6d4] sm:$0xf0] }
 0x1b1   :  { %5661 = vmatpush.bf16.msrb.mxu3 %v7471_v29  ;;  %v10240_v29 = vld [vmem:[%s16306_s1 + $0x6f4] sm:$0xf0]  ;;  %v7439_v9 = vor.u32 %v10196_v14, %v7438_v0  ;;  %v7422_v54 = vld [vmem:[%s16306_s1 + $0x568] sm:$0xf] }
 0x1b2   :  { %5624 = vmatpush.bf16.msrb.mxu0 %v7007_v12  ;;  %v7615_v20 = vor.u32 %v10240_v29, %v7614_v27  ;;  %v10160_v12 = vld [vmem:[%s16306_s1 + $0x474] sm:$0xf0]  ;;  %v5389_v27 = vpop.f32.mrf.mxu3  ;;  %v7278_v29 = vld [vmem:[%s16306_s1 + $0x448] sm:$0xf] }
 0x1b3   :  { %5638 = vmatpush.bf16.msrb.mxu1 %v7135_v59  ;;  %v10192_v59 = vld [vmem:[%s16306_s1 + $0x574] sm:$0xf0]  ;;  %v7295_v6 = vor.u32 %v10160_v12, %v7294_v7  ;;  %v7406_v8 = vld [vmem:[%s16306_s1 + $0x548] sm:$0xf] }
 0x1b4   :  { %5648 = vmatpush.bf16.msrb.mxu2 %v7327_v18  ;;  %v7598_v18 = vld [vmem:[%s16306_s1 + $0x6c8] sm:$0xf]  ;;  %v10268_v61 = vld [vmem:[%s16306_s1 + $0x7d4] sm:$0xf0]  ;;  %v7423_v0 = vor.u32 %v10192_v59, %v7422_v54 }
 0x1b5   :  { %5662 = vmatpush.bf16.msrb.mxu3 %v7455_v28  ;;  %v7726_v28 = vld [vmem:[%s16306_s1 + $0x7c8] sm:$0xf]  ;;  %v7599_v14 = vor.u32 %v10236_v16, %v7598_v18  ;;  %v10152_v16 = vld [vmem:[%s16306_s1 + $0x434] sm:$0xf0] }
 0x1b6   :  { %5625 = vmatpush.bf16.msrb.mxu0 %v6991_v3  ;;  %v10156_v3 = vld [vmem:[%s16306_s1 + $0x454] sm:$0xf0]  ;;  %v7582_v53 = vld [vmem:[%s16306_s1 + $0x6a8] sm:$0xf] }
 0x1b7   :  { %5639 = vmatpush.bf16.msrb.mxu1 %v7119_v11  ;;  %v10232_v11 = vld [vmem:[%s16306_s1 + $0x6b4] sm:$0xf0]  ;;  %v7710_v7 = vld [vmem:[%s16306_s1 + $0x7a8] sm:$0xf]  ;;  %v7279_v54 = vor.u32 %v10156_v3, %v7278_v29 }
 0x1b8   :  { %5649 = vmatpush.bf16.msrb.mxu2 %v7311_v23  ;;  %v5376_v23 = vadd.f32 %v5375_v49, %v5362_v25  ;;  %v10264_v25 = vld [vmem:[%s16306_s1 + $0x7b4] sm:$0xf0]  ;;  %v7583_v59 = vor.u32 %v10232_v11, %v7582_v53  ;;  %v7262_v18 = vld [vmem:[%s16306_s1 + $0x428] sm:$0xf] }
 0x1b9   :  { %5663 = vmatpush.bf16.msrb.mxu3 %v7439_v9  ;;  %v7727_v9 = vor.u32 %v10268_v61, %v7726_v28  ;;  %5626 = vmatmul.bf16.vlgmr.msrb.gmra.mxu0 %v11135_v1  ;;  %v7390_v28 = vld [vmem:[%s16306_s1 + $0x528] sm:$0xf]  ;;  %v7711_v61 = vor.u32 %v10264_v25, %v7710_v7  ;;  %v10228_v49 = vld [vmem:[%s16306_s1 + $0x694] sm:$0xf0] }
 0x1ba   :  { %5674 = vmatpush.bf16.msra.mxu0 %v7615_v20  ;;  %v10188_v20 = vld [vmem:[%s16306_s1 + $0x554] sm:$0xf0]  ;;  %5640 = vmatmul.bf16.vlgmr.msrb.gmra.mxu1 %v11171_v17  ;;  %v5390_v12 = vadd.f32 %v5389_v27, %v5376_v23  ;;  %v7694_v27 = vld [vmem:[%s16306_s1 + $0x788] sm:$0xf] }
 0x1bb   :  { %5688 = vmatpush.bf16.msra.mxu1 %v7743_v2  ;;  %v7407_v2 = vor.u32 %v10188_v20, %v7406_v8  ;;  %v10260_v29 = vld [vmem:[%s16306_s1 + $0x794] sm:$0xf0]  ;;  %v7263_v8 = vor.u32 %v10152_v16, %v7262_v18  ;;  %v7246_v23 = vld [vmem:[%s16306_s1 + $0x408] sm:$0xf] }
 0x1bc   :  { %5650 = vmatpush.bf16.msrb.mxu2 %v7295_v6  ;;  %v10184_v6 = vld [vmem:[%s16306_s1 + $0x534] sm:$0xf0]  ;;  %v7374_v11 = vld [vmem:[%s16306_s1 + $0x508] sm:$0xf]  ;;  %v7695_v25 = vor.u32 %v10260_v29, %v7694_v27 }
 0x1bd   :  { %5664 = vmatpush.bf16.msrb.mxu3 %v7423_v0  ;;  %v7566_v0 = vld [vmem:[%s16306_s1 + $0x688] sm:$0xf]  ;;  %v10148_v53 = vld [vmem:[%s16306_s1 + $0x414] sm:$0xf0] }
 0x1be   :  { %5675 = vmatpush.bf16.msra.mxu0 %v7599_v14  ;;  %v5403_v14 = vpop.f32.mrf.mxu0  ;;  %v7567_v20 = vor.u32 %v10228_v49, %v7566_v0  ;;  %v10180_v7 = vld [vmem:[%s16306_s1 + $0x514] sm:$0xf0]  ;;  %v7870_v18 = vld [vmem:[%s16306_s1 + $0x8e8] sm:$0xf] }
 0x1bf   :  { %5689 = vmatpush.bf16.msra.mxu1 %v7727_v9  ;;  %v13903_v3 = vadd.f32 %v5403_v14, %v5390_v12  ;;  %v7391_v9 = vor.u32 %v10184_v6, %v7390_v28  ;;  %v7550_v12 = vld [vmem:[%s16306_s1 + $0x668] sm:$0xf]  ;;  %v10304_v16 = vld [vmem:[%s16306_s1 + $0x8f4] sm:$0xf0]  ;;  %v7247_v28 = vor.u32 %v10148_v53, %v7246_v23  ;;  %v7375_v0 = vor.u32 %v10180_v7, %v7374_v11  ;;  %v13959_v7 = vpop.f32.mrf.mxu1 }
 0x1c0   :  { %5651 = vmatpush.bf16.msrb.mxu2 %v7279_v54  ;;  %v10224_v54 = vld [vmem:[%s16306_s1 + $0x674] sm:$0xf0]  ;;  %v7871_v27 = vor.u32 %v10304_v16, %v7870_v18  ;;  %v7534_v29 = vld [vmem:[%s16306_s1 + $0x648] sm:$0xf]  ;;  %16337 = vst [vmem:[#allocation24_spill] sm:$0xff] %v13959_v7 }
 0x1c1   :  { %5665 = vmatpush.bf16.msrb.mxu3 %v7407_v2  ;;  %v7678_v2 = vld [vmem:[%s16306_s1 + $0x768] sm:$0xf]  ;;  %v10336_v6 = vld [vmem:[%s16306_s1 + $0x9f4] sm:$0xf0]  ;;  %v7551_v49 = vor.u32 %v10224_v54, %v7550_v12 }
 0x1c2   :  { %5676 = vmatpush.bf16.msra.mxu0 %v7583_v59  ;;  %v10256_v59 = vld [vmem:[%s16306_s1 + $0x774] sm:$0xf0]  ;;  %v7662_v23 = vld [vmem:[%s16306_s1 + $0x748] sm:$0xf] }
 0x1c3   :  { %5690 = vmatpush.bf16.msra.mxu1 %v7711_v61  ;;  %v7998_v61 = vld [vmem:[%s16306_s1 + $0x9e8] sm:$0xf]  ;;  %v7679_v14 = vor.u32 %v10256_v59, %v7678_v2  ;;  %v10300_v11 = vld [vmem:[%s16306_s1 + $0x8d4] sm:$0xf0] }
 0x1c4   :  { %5652 = vmatpush.bf16.msrb.mxu2 %v7263_v8  ;;  %v10220_v8 = vld [vmem:[%s16306_s1 + $0x654] sm:$0xf0]  ;;  %v7999_v53 = vor.u32 %v10336_v6, %v7998_v61  ;;  %v7518_v18 = vld [vmem:[%s16306_s1 + $0x628] sm:$0xf] }
 0x1c5   :  { %5666 = vmatpush.bf16.msrb.mxu3 %v7391_v9  ;;  %v10252_v9 = vld [vmem:[%s16306_s1 + $0x754] sm:$0xf0]  ;;  %v7535_v54 = vor.u32 %v10220_v8, %v7534_v29  ;;  %v7502_v8 = vld [vmem:[%s16306_s1 + $0x608] sm:$0xf] }
 0x1c6   :  { %5677 = vmatpush.bf16.msra.mxu0 %v7567_v20  ;;  %v7854_v20 = vld [vmem:[%s16306_s1 + $0x8c8] sm:$0xf]  ;;  %v10332_v12 = vld [vmem:[%s16306_s1 + $0x9d4] sm:$0xf0]  ;;  %v7663_v2 = vor.u32 %v10252_v9, %v7662_v23 }
 0x1c7   :  { %5691 = vmatpush.bf16.msra.mxu1 %v7695_v25  ;;  %v7982_v25 = vld [vmem:[%s16306_s1 + $0x9c8] sm:$0xf]  ;;  %v7855_v59 = vor.u32 %v10300_v11, %v7854_v20  ;;  %v10216_v16 = vld [vmem:[%s16306_s1 + $0x634] sm:$0xf0] }
 0x1c8   :  { %5653 = vmatpush.bf16.msrb.mxu2 %v7247_v28  ;;  %v7646_v28 = vld [vmem:[%s16306_s1 + $0x728] sm:$0xf]  ;;  %v7983_v61 = vor.u32 %v10332_v12, %v7982_v25  ;;  %v10248_v6 = vld [vmem:[%s16306_s1 + $0x734] sm:$0xf0]  ;;  %v7519_v29 = vor.u32 %v10216_v16, %v7518_v18  ;;  %v14005_v25 = vpop.f32.mrf.mxu2  ;;  %v14007_v12 = vpop.f32.mrf.mxu3 }
 0x1c9   :  { %5667 = vmatpush.bf16.msrb.mxu3 %v7375_v0  ;;  %v7838_v0 = vld [vmem:[%s16306_s1 + $0x8a8] sm:$0xf]  ;;  %v7647_v23 = vor.u32 %v10248_v6, %v7646_v28  ;;  %v10212_v9 = vld [vmem:[%s16306_s1 + $0x614] sm:$0xf0]  ;;  %16338 = vst [vmem:[#allocation25_spill] sm:$0xff] %v14005_v25  ;;  %v5417_v16 = vpop.f32.mrf.mxu1 }
 0x1ca   :  { %5678 = vmatpush.bf16.msra.mxu0 %v7551_v49  ;;  %v10296_v49 = vld [vmem:[%s16306_s1 + $0x8b4] sm:$0xf0]  ;;  %v7630_v20 = vld [vmem:[%s16306_s1 + $0x708] sm:$0xf]  ;;  %16339 = vst [vmem:[#allocation26_spill] sm:$0xff] %v14007_v12 }
 0x1cb   :  { %5692 = vmatpush.bf16.msra.mxu1 %v7679_v14  ;;  %5654 = vmatmul.bf16.vlgmr.msrb.gmra.mxu2 %v11343_v39  ;;  %v7966_v14 = vld [vmem:[%s16306_s1 + $0x9a8] sm:$0xf]  ;;  %v10244_v11 = vld [vmem:[%s16306_s1 + $0x714] sm:$0xf0] }
 0x1cc   :  { %5702 = vmatpush.bf16.msra.mxu2 %v7871_v27  ;;  %5668 = vmatmul.bf16.vlgmr.msrb.gmra.mxu3 %v11356_v44  ;;  %v10328_v27 = vld [vmem:[%s16306_s1 + $0x9b4] sm:$0xf0]  ;;  %v7950_v18 = vld [vmem:[%s16306_s1 + $0x988] sm:$0xf]  ;;  %v7631_v12 = vor.u32 %v10244_v11, %v7630_v20  ;;  %v14052_v11 = vpop.f32.mrf.mxu0 }
 0x1cd   :  { %5716 = vmatpush.bf16.msra.mxu3 %v7999_v53  ;;  %v7839_v53 = vor.u32 %v10296_v49, %v7838_v0  ;;  %v10324_v28 = vld [vmem:[%s16306_s1 + $0x994] sm:$0xf0]  ;;  %v5418_v0 = vadd.f32 %v5417_v16, %v13903_v3  ;;  %v7503_v49 = vor.u32 %v10212_v9, %v7502_v8  ;;  %v7806_v3 = vld [vmem:[%s16306_s1 + $0x868] sm:$0xf]  ;;  %16340 = vst [vmem:[#allocation27_spill] sm:$0xff] %v14052_v11 }
 0x1ce   :  { %5679 = vmatpush.bf16.msra.mxu0 %v7535_v54  ;;  %v7967_v54 = vor.u32 %v10328_v27, %v7966_v14  ;;  %v10368_v6 = vld [vmem:[%s16306_s1 + $0xaf4] sm:$0xf0]  ;;  %v8254_v14 = vld [vmem:[%s16306_s1 + $0xbe8] sm:$0xf]  ;;  %v7951_v7 = vor.u32 %v10324_v28, %v7950_v18 }
 0x1cf   :  { %5693 = vmatpush.bf16.msra.mxu1 %v7663_v2  ;;  %v7822_v2 = vld [vmem:[%s16306_s1 + $0x888] sm:$0xf]  ;;  %v10400_v27 = vld [vmem:[%s16306_s1 + $0xbf4] sm:$0xf0] }
 0x1d0   :  { %5703 = vmatpush.bf16.msra.mxu2 %v7855_v59  ;;  %v10292_v59 = vld [vmem:[%s16306_s1 + $0x894] sm:$0xf0]  ;;  %v7934_v8 = vld [vmem:[%s16306_s1 + $0x968] sm:$0xf]  ;;  %v8255_v9 = vor.u32 %v10400_v27, %v8254_v14  ;;  %v5431_v16 = vpop.f32.mrf.mxu2 }
 0x1d1   :  { %5717 = vmatpush.bf16.msra.mxu3 %v7983_v61  ;;  %v8126_v61 = vld [vmem:[%s16306_s1 + $0xae8] sm:$0xf]  ;;  %v7823_v25 = vor.u32 %v10292_v59, %v7822_v2  ;;  %v10364_v20 = vld [vmem:[%s16306_s1 + $0xad4] sm:$0xf0] }
 0x1d2   :  { %5680 = vmatpush.bf16.msra.mxu0 %v7519_v29  ;;  %v8127_v22 = vor.u32 %v10368_v6, %v8126_v61  ;;  %v10288_v29 = vld [vmem:[%s16306_s1 + $0x874] sm:$0xf0]  ;;  %v5445_v61 = vpop.f32.mrf.mxu3  ;;  %v7790_v6 = vld [vmem:[%s16306_s1 + $0x848] sm:$0xf] }
 0x1d3   :  { %5694 = vmatpush.bf16.msra.mxu1 %v7647_v23  ;;  %v10320_v23 = vld [vmem:[%s16306_s1 + $0x974] sm:$0xf0]  ;;  %v7807_v59 = vor.u32 %v10288_v29, %v7806_v3  ;;  %v8094_v14 = vld [vmem:[%s16306_s1 + $0xaa8] sm:$0xf] }
 0x1d4   :  { %5704 = vmatpush.bf16.msra.mxu2 %v7839_v53  ;;  %v8110_v53 = vld [vmem:[%s16306_s1 + $0xac8] sm:$0xf]  ;;  %v10396_v2 = vld [vmem:[%s16306_s1 + $0xbd4] sm:$0xf0]  ;;  %v7935_v18 = vor.u32 %v10320_v23, %v7934_v8 }
 0x1d5   :  { %5718 = vmatpush.bf16.msra.mxu3 %v7967_v54  ;;  %v8238_v54 = vld [vmem:[%s16306_s1 + $0xbc8] sm:$0xf]  ;;  %v8111_v28 = vor.u32 %v10364_v20, %v8110_v53  ;;  %v10360_v27 = vld [vmem:[%s16306_s1 + $0xab4] sm:$0xf0] }
 0x1d6   :  { %5681 = vmatpush.bf16.msra.mxu0 %v7503_v49  ;;  %v10284_v49 = vld [vmem:[%s16306_s1 + $0x854] sm:$0xf0]  ;;  %v8222_v3 = vld [vmem:[%s16306_s1 + $0xba8] sm:$0xf]  ;;  %v8095_v23 = vor.u32 %v10360_v27, %v8094_v14 }
 0x1d7   :  { %5695 = vmatpush.bf16.msra.mxu1 %v7631_v12  ;;  %v7918_v12 = vld [vmem:[%s16306_s1 + $0x948] sm:$0xf]  ;;  %v7791_v8 = vor.u32 %v10284_v49, %v7790_v6  ;;  %v10280_v20 = vld [vmem:[%s16306_s1 + $0x834] sm:$0xf0] }
 0x1d8   :  { %5705 = vmatpush.bf16.msra.mxu2 %v7823_v25  ;;  %v10316_v25 = vld [vmem:[%s16306_s1 + $0x954] sm:$0xf0]  ;;  %v7774_v53 = vld [vmem:[%s16306_s1 + $0x828] sm:$0xf] }
 0x1d9   :  { %5719 = vmatpush.bf16.msra.mxu3 %v7951_v7  ;;  %5682 = vmatmul.bf16.vlgmr.msra.gmra.mxu0 %v11354_v43  ;;  %v8239_v7 = vor.u32 %v10396_v2, %v8238_v54  ;;  %v7902_v54 = vld [vmem:[%s16306_s1 + $0x928] sm:$0xf]  ;;  %v10388_v6 = vld [vmem:[%s16306_s1 + $0xb94] sm:$0xf0] }
 0x1da   :  { %5730 = vmatpush.bf16.msrb.mxu0 %v8127_v22  ;;  %v5432_v22 = vadd.f32 %v5431_v16, %v5418_v0  ;;  %5696 = vmatmul.bf16.vlgmr.msra.gmra.mxu1 %v11364_v47  ;;  %v10392_v0 = vld [vmem:[%s16306_s1 + $0xbb4] sm:$0xf0]  ;;  %v7886_v27 = vld [vmem:[%s16306_s1 + $0x908] sm:$0xf] }
 0x1db   :  { %5744 = vmatpush.bf16.msrb.mxu1 %v8255_v9  ;;  %v7919_v9 = vor.u32 %v10316_v25, %v7918_v12  ;;  %v8223_v2 = vor.u32 %v10392_v0, %v8222_v3  ;;  %v10356_v16 = vld [vmem:[%s16306_s1 + $0xa94] sm:$0xf0]  ;;  %v7775_v12 = vor.u32 %v10280_v20, %v7774_v53  ;;  %v8382_v53 = vld [vmem:[%s16306_s1 + $0xce8] sm:$0xf] }
 0x1dc   :  { %5706 = vmatpush.bf16.msra.mxu2 %v7807_v59  ;;  %v5446_v29 = vadd.f32 %v5445_v61, %v5432_v22  ;;  %v10312_v59 = vld [vmem:[%s16306_s1 + $0x934] sm:$0xf0]  ;;  %v8206_v61 = vld [vmem:[%s16306_s1 + $0xb88] sm:$0xf] }
 0x1dd   :  { %5720 = vmatpush.bf16.msra.mxu3 %v7935_v18  ;;  %v8078_v18 = vld [vmem:[%s16306_s1 + $0xa88] sm:$0xf]  ;;  %v10276_v14 = vld [vmem:[%s16306_s1 + $0x814] sm:$0xf0]  ;;  %v8207_v0 = vor.u32 %v10388_v6, %v8206_v61 }
 0x1de   :  { %5731 = vmatpush.bf16.msrb.mxu0 %v8111_v28  ;;  %v5459_v28 = vpop.f32.mrf.mxu0  ;;  %v7758_v22 = vld [vmem:[%s16306_s1 + $0x808] sm:$0xf]  ;;  %v8079_v25 = vor.u32 %v10356_v16, %v8078_v18  ;;  %v10308_v3 = vld [vmem:[%s16306_s1 + $0x914] sm:$0xf0] }
 0x1df   :  { %5745 = vmatpush.bf16.msrb.mxu1 %v8239_v7  ;;  %v14110_v49 = vadd.f32 %v5459_v28, %v5446_v29  ;;  %v7903_v7 = vor.u32 %v10312_v59, %v7902_v54  ;;  %v8062_v29 = vld [vmem:[%s16306_s1 + $0xa68] sm:$0xf]  ;;  %v10432_v20 = vld [vmem:[%s16306_s1 + $0xcf4] sm:$0xf0]  ;;  %v7759_v54 = vor.u32 %v10276_v14, %v7758_v22  ;;  %v7887_v18 = vor.u32 %v10308_v3, %v7886_v27  ;;  %v14166_v3 = vpop.f32.mrf.mxu1 }
 0x1e0   :  { %5707 = vmatpush.bf16.msra.mxu2 %v7791_v8  ;;  %v10352_v8 = vld [vmem:[%s16306_s1 + $0xa74] sm:$0xf0]  ;;  %v8383_v61 = vor.u32 %v10432_v20, %v8382_v53  ;;  %v8046_v6 = vld [vmem:[%s16306_s1 + $0xa48] sm:$0xf]  ;;  %16341 = vst [vmem:[#allocation28_spill] sm:$0xff] %v14166_v3 }
 0x1e1   :  { %5721 = vmatpush.bf16.msra.mxu3 %v7919_v9  ;;  %v8190_v9 = vld [vmem:[%s16306_s1 + $0xb68] sm:$0xf]  ;;  %v10464_v59 = vld [vmem:[%s16306_s1 + $0xdf4] sm:$0xf0]  ;;  %v8063_v16 = vor.u32 %v10352_v8, %v8062_v29 }
 0x1e2   :  { %5732 = vmatpush.bf16.msrb.mxu0 %v8095_v23  ;;  %v10384_v23 = vld [vmem:[%s16306_s1 + $0xb74] sm:$0xf0]  ;;  %v8174_v22 = vld [vmem:[%s16306_s1 + $0xb48] sm:$0xf] }
 0x1e3   :  { %5746 = vmatpush.bf16.msrb.mxu1 %v8223_v2  ;;  %v8510_v2 = vld [vmem:[%s16306_s1 + $0xde8] sm:$0xf]  ;;  %v8191_v28 = vor.u32 %v10384_v23, %v8190_v9  ;;  %v10428_v27 = vld [vmem:[%s16306_s1 + $0xcd4] sm:$0xf0] }
 0x1e4   :  { %5708 = vmatpush.bf16.msra.mxu2 %v7775_v12  ;;  %v10348_v12 = vld [vmem:[%s16306_s1 + $0xa54] sm:$0xf0]  ;;  %v8511_v14 = vor.u32 %v10464_v59, %v8510_v2  ;;  %v8030_v53 = vld [vmem:[%s16306_s1 + $0xa28] sm:$0xf] }
 0x1e5   :  { %5722 = vmatpush.bf16.msra.mxu3 %v7903_v7  ;;  %v10380_v7 = vld [vmem:[%s16306_s1 + $0xb54] sm:$0xf0]  ;;  %v8047_v8 = vor.u32 %v10348_v12, %v8046_v6  ;;  %v8014_v12 = vld [vmem:[%s16306_s1 + $0xa08] sm:$0xf] }
 0x1e6   :  { %5733 = vmatpush.bf16.msrb.mxu0 %v8079_v25  ;;  %v8366_v25 = vld [vmem:[%s16306_s1 + $0xcc8] sm:$0xf]  ;;  %v10460_v29 = vld [vmem:[%s16306_s1 + $0xdd4] sm:$0xf0]  ;;  %v8175_v9 = vor.u32 %v10380_v7, %v8174_v22 }
 0x1e7   :  { %5747 = vmatpush.bf16.msrb.mxu1 %v8207_v0  ;;  %v8494_v0 = vld [vmem:[%s16306_s1 + $0xdc8] sm:$0xf]  ;;  %v8367_v23 = vor.u32 %v10428_v27, %v8366_v25  ;;  %v10344_v20 = vld [vmem:[%s16306_s1 + $0xa34] sm:$0xf0] }
 0x1e8   :  { %5709 = vmatpush.bf16.msra.mxu2 %v7759_v54  ;;  %v8158_v54 = vld [vmem:[%s16306_s1 + $0xb28] sm:$0xf]  ;;  %v8495_v2 = vor.u32 %v10460_v29, %v8494_v0  ;;  %v10376_v59 = vld [vmem:[%s16306_s1 + $0xb34] sm:$0xf0]  ;;  %v8031_v6 = vor.u32 %v10344_v20, %v8030_v53  ;;  %v14212_v0 = vpop.f32.mrf.mxu2  ;;  %v14214_v29 = vpop.f32.mrf.mxu3 }
 0x1e9   :  { %5723 = vmatpush.bf16.msra.mxu3 %v7887_v18  ;;  %v8350_v18 = vld [vmem:[%s16306_s1 + $0xca8] sm:$0xf]  ;;  %v8159_v22 = vor.u32 %v10376_v59, %v8158_v54  ;;  %v10340_v7 = vld [vmem:[%s16306_s1 + $0xa14] sm:$0xf0]  ;;  %16342 = vst [vmem:[#allocation29_spill] sm:$0xff] %v14212_v0  ;;  %v5473_v20 = vpop.f32.mrf.mxu1 }
 0x1ea   :  { %5734 = vmatpush.bf16.msrb.mxu0 %v8063_v16  ;;  %v10424_v16 = vld [vmem:[%s16306_s1 + $0xcb4] sm:$0xf0]  ;;  %v8142_v25 = vld [vmem:[%s16306_s1 + $0xb08] sm:$0xf]  ;;  %16343 = vst [vmem:[#allocation30_spill] sm:$0xff] %v14214_v29 }
 0x1eb   :  { %5748 = vmatpush.bf16.msrb.mxu1 %v8191_v28  ;;  %5710 = vmatmul.bf16.vlgmr.msra.gmra.mxu2 %v11571_v31  ;;  %v8478_v28 = vld [vmem:[%s16306_s1 + $0xda8] sm:$0xf]  ;;  %v10372_v27 = vld [vmem:[%s16306_s1 + $0xb14] sm:$0xf0] }
 0x1ec   :  { %5758 = vmatpush.bf16.msrb.mxu2 %v8383_v61  ;;  %5724 = vmatmul.bf16.vlgmr.msra.gmra.mxu3 %v11584_v36  ;;  %v10456_v61 = vld [vmem:[%s16306_s1 + $0xdb4] sm:$0xf0]  ;;  %v8462_v53 = vld [vmem:[%s16306_s1 + $0xd88] sm:$0xf]  ;;  %v8143_v29 = vor.u32 %v10372_v27, %v8142_v25  ;;  %v14259_v27 = vpop.f32.mrf.mxu0 }
 0x1ed   :  { %5772 = vmatpush.bf16.msrb.mxu3 %v8511_v14  ;;  %v8351_v14 = vor.u32 %v10424_v16, %v8350_v18  ;;  %v10452_v54 = vld [vmem:[%s16306_s1 + $0xd94] sm:$0xf0]  ;;  %v5474_v18 = vadd.f32 %v5473_v20, %v14110_v49  ;;  %v8015_v16 = vor.u32 %v10340_v7, %v8014_v12  ;;  %v8318_v49 = vld [vmem:[%s16306_s1 + $0xc68] sm:$0xf]  ;;  %16344 = vst [vmem:[#allocation31_spill] sm:$0xff] %v14259_v27 }
 0x1ee   :  { %5735 = vmatpush.bf16.msrb.mxu0 %v8047_v8  ;;  %v8479_v8 = vor.u32 %v10456_v61, %v8478_v28  ;;  %v10496_v59 = vld [vmem:[%s16306_s1 + $0xef4] sm:$0xf0]  ;;  %v8766_v28 = vld [vmem:[%s16306_s1 + $0xfe8] sm:$0xf]  ;;  %v8463_v3 = vor.u32 %v10452_v54, %v8462_v53 }
 0x1ef   :  { %5749 = vmatpush.bf16.msrb.mxu1 %v8175_v9  ;;  %v8334_v9 = vld [vmem:[%s16306_s1 + $0xc88] sm:$0xf]  ;;  %v10528_v61 = vld [vmem:[%s16306_s1 + $0xff4] sm:$0xf0] }
 0x1f0   :  { %5759 = vmatpush.bf16.msrb.mxu2 %v8367_v23  ;;  %v10420_v23 = vld [vmem:[%s16306_s1 + $0xc94] sm:$0xf0]  ;;  %v8446_v12 = vld [vmem:[%s16306_s1 + $0xd68] sm:$0xf]  ;;  %v8767_v7 = vor.u32 %v10528_v61, %v8766_v28  ;;  %v5487_v20 = vpop.f32.mrf.mxu2 }
 0x1f1   :  { %5773 = vmatpush.bf16.msrb.mxu3 %v8495_v2  ;;  %v8638_v2 = vld [vmem:[%s16306_s1 + $0xee8] sm:$0xf]  ;;  %v8335_v0 = vor.u32 %v10420_v23, %v8334_v9  ;;  %v10492_v25 = vld [vmem:[%s16306_s1 + $0xed4] sm:$0xf0] }
 0x1f2   :  { %5736 = vmatpush.bf16.msrb.mxu0 %v8031_v6  ;;  %v8639_v11 = vor.u32 %v10496_v59, %v8638_v2  ;;  %v10416_v6 = vld [vmem:[%s16306_s1 + $0xc74] sm:$0xf0]  ;;  %v5501_v2 = vpop.f32.mrf.mxu3  ;;  %v8302_v59 = vld [vmem:[%s16306_s1 + $0xc48] sm:$0xf] }
 0x1f3   :  { %5750 = vmatpush.bf16.msrb.mxu1 %v8159_v22  ;;  %v10448_v22 = vld [vmem:[%s16306_s1 + $0xd74] sm:$0xf0]  ;;  %v8319_v23 = vor.u32 %v10416_v6, %v8318_v49  ;;  %v8606_v28 = vld [vmem:[%s16306_s1 + $0xea8] sm:$0xf] }
 0x1f4   :  { %5760 = vmatpush.bf16.msrb.mxu2 %v8351_v14  ;;  %v8622_v14 = vld [vmem:[%s16306_s1 + $0xec8] sm:$0xf]  ;;  %v10524_v9 = vld [vmem:[%s16306_s1 + $0xfd4] sm:$0xf0]  ;;  %v8447_v53 = vor.u32 %v10448_v22, %v8446_v12 }
 0x1f5   :  { %5774 = vmatpush.bf16.msrb.mxu3 %v8479_v8  ;;  %v8750_v8 = vld [vmem:[%s16306_s1 + $0xfc8] sm:$0xf]  ;;  %v8623_v54 = vor.u32 %v10492_v25, %v8622_v14  ;;  %v10488_v61 = vld [vmem:[%s16306_s1 + $0xeb4] sm:$0xf0] }
 0x1f6   :  { %5737 = vmatpush.bf16.msrb.mxu0 %v8015_v16  ;;  %v10412_v16 = vld [vmem:[%s16306_s1 + $0xc54] sm:$0xf0]  ;;  %v8734_v49 = vld [vmem:[%s16306_s1 + $0xfa8] sm:$0xf]  ;;  %v8607_v22 = vor.u32 %v10488_v61, %v8606_v28 }
 0x1f7   :  { %5751 = vmatpush.bf16.msrb.mxu1 %v8143_v29  ;;  %v8430_v29 = vld [vmem:[%s16306_s1 + $0xd48] sm:$0xf]  ;;  %v8303_v12 = vor.u32 %v10412_v16, %v8302_v59  ;;  %v10408_v25 = vld [vmem:[%s16306_s1 + $0xc34] sm:$0xf0] }
 0x1f8   :  { %5761 = vmatpush.bf16.msrb.mxu2 %v8335_v0  ;;  %v10444_v0 = vld [vmem:[%s16306_s1 + $0xd54] sm:$0xf0]  ;;  %v8286_v14 = vld [vmem:[%s16306_s1 + $0xc28] sm:$0xf] }
 0x1f9   :  { %5775 = vmatpush.bf16.msrb.mxu3 %v8463_v3  ;;  %5738 = vmatmul.bf16.vlgmr.msrb.gmra.mxu0 %v11582_v35  ;;  %v8751_v3 = vor.u32 %v10524_v9, %v8750_v8  ;;  %v8414_v8 = vld [vmem:[%s16306_s1 + $0xd28] sm:$0xf]  ;;  %v10516_v59 = vld [vmem:[%s16306_s1 + $0xf94] sm:$0xf0] }
 0x1fa   :  { %5786 = vmatpush.bf16.msra.mxu0 %v8639_v11  ;;  %v5488_v11 = vadd.f32 %v5487_v20, %v5474_v18  ;;  %5752 = vmatmul.bf16.vlgmr.msrb.gmra.mxu1 %v11592_v40  ;;  %v10520_v18 = vld [vmem:[%s16306_s1 + $0xfb4] sm:$0xf0]  ;;  %v8398_v61 = vld [vmem:[%s16306_s1 + $0xd08] sm:$0xf] }
 0x1fb   :  { %5800 = vmatpush.bf16.msra.mxu1 %v8767_v7  ;;  %v8431_v7 = vor.u32 %v10444_v0, %v8430_v29  ;;  %v8735_v9 = vor.u32 %v10520_v18, %v8734_v49  ;;  %v10484_v20 = vld [vmem:[%s16306_s1 + $0xe94] sm:$0xf0]  ;;  %v8287_v29 = vor.u32 %v10408_v25, %v8286_v14  ;;  %v8894_v14 = vld [vmem:[%s16306_s1 + $0x10e8] sm:$0xf] }
 0x1fc   :  { %5762 = vmatpush.bf16.msrb.mxu2 %v8319_v23  ;;  %v5502_v6 = vadd.f32 %v5501_v2, %v5488_v11  ;;  %v10440_v23 = vld [vmem:[%s16306_s1 + $0xd34] sm:$0xf0]  ;;  %v8718_v2 = vld [vmem:[%s16306_s1 + $0xf88] sm:$0xf] }
 0x1fd   :  { %5776 = vmatpush.bf16.msrb.mxu3 %v8447_v53  ;;  %v8590_v53 = vld [vmem:[%s16306_s1 + $0xe88] sm:$0xf]  ;;  %v10404_v28 = vld [vmem:[%s16306_s1 + $0xc14] sm:$0xf0]  ;;  %v8719_v18 = vor.u32 %v10516_v59, %v8718_v2 }
 0x1fe   :  { %5787 = vmatpush.bf16.msra.mxu0 %v8623_v54  ;;  %v5515_v54 = vpop.f32.mrf.mxu0  ;;  %v8270_v11 = vld [vmem:[%s16306_s1 + $0xc08] sm:$0xf]  ;;  %v8591_v0 = vor.u32 %v10484_v20, %v8590_v53  ;;  %v10436_v49 = vld [vmem:[%s16306_s1 + $0xd14] sm:$0xf0] }
 0x1ff   :  { %5801 = vmatpush.bf16.msra.mxu1 %v8751_v3  ;;  %v14317_v16 = vadd.f32 %v5515_v54, %v5502_v6  ;;  %v8415_v3 = vor.u32 %v10440_v23, %v8414_v8  ;;  %v8574_v6 = vld [vmem:[%s16306_s1 + $0xe68] sm:$0xf]  ;;  %v10560_v25 = vld [vmem:[%s16306_s1 + $0x10f4] sm:$0xf0]  ;;  %v8271_v8 = vor.u32 %v10404_v28, %v8270_v11  ;;  %v8399_v53 = vor.u32 %v10436_v49, %v8398_v61  ;;  %v14373_v49 = vpop.f32.mrf.mxu1 }
 0x200   :  { %5763 = vmatpush.bf16.msrb.mxu2 %v8303_v12  ;;  %v10480_v12 = vld [vmem:[%s16306_s1 + $0xe74] sm:$0xf0]  ;;  %v8895_v2 = vor.u32 %v10560_v25, %v8894_v14  ;;  %v8558_v59 = vld [vmem:[%s16306_s1 + $0xe48] sm:$0xf]  ;;  %16345 = vst [vmem:[#allocation32_spill] sm:$0xff] %v14373_v49 }
 0x201   :  { %5777 = vmatpush.bf16.msrb.mxu3 %v8431_v7  ;;  %v8702_v7 = vld [vmem:[%s16306_s1 + $0xf68] sm:$0xf]  ;;  %v10592_v23 = vld [vmem:[%s16306_s1 + $0x11f4] sm:$0xf0]  ;;  %v8575_v20 = vor.u32 %v10480_v12, %v8574_v6 }
 0x202   :  { %5788 = vmatpush.bf16.msra.mxu0 %v8607_v22  ;;  %v10512_v22 = vld [vmem:[%s16306_s1 + $0xf74] sm:$0xf0]  ;;  %v8686_v11 = vld [vmem:[%s16306_s1 + $0xf48] sm:$0xf] }
 0x203   :  { %5802 = vmatpush.bf16.msra.mxu1 %v8735_v9  ;;  %v9022_v9 = vld [vmem:[%s16306_s1 + $0x11e8] sm:$0xf]  ;;  %v8703_v54 = vor.u32 %v10512_v22, %v8702_v7  ;;  %v10556_v61 = vld [vmem:[%s16306_s1 + $0x10d4] sm:$0xf0] }
 0x204   :  { %5764 = vmatpush.bf16.msrb.mxu2 %v8287_v29  ;;  %v10476_v29 = vld [vmem:[%s16306_s1 + $0xe54] sm:$0xf0]  ;;  %v9023_v28 = vor.u32 %v10592_v23, %v9022_v9  ;;  %v8542_v14 = vld [vmem:[%s16306_s1 + $0xe28] sm:$0xf] }
 0x205   :  { %5778 = vmatpush.bf16.msrb.mxu3 %v8415_v3  ;;  %v10508_v3 = vld [vmem:[%s16306_s1 + $0xf54] sm:$0xf0]  ;;  %v8559_v12 = vor.u32 %v10476_v29, %v8558_v59  ;;  %v8526_v29 = vld [vmem:[%s16306_s1 + $0xe08] sm:$0xf] }
 0x206   :  { %5789 = vmatpush.bf16.msra.mxu0 %v8591_v0  ;;  %v8878_v0 = vld [vmem:[%s16306_s1 + $0x10c8] sm:$0xf]  ;;  %v10588_v6 = vld [vmem:[%s16306_s1 + $0x11d4] sm:$0xf0]  ;;  %v8687_v7 = vor.u32 %v10508_v3, %v8686_v11 }
 0x207   :  { %5803 = vmatpush.bf16.msra.mxu1 %v8719_v18  ;;  %v9006_v18 = vld [vmem:[%s16306_s1 + $0x11c8] sm:$0xf]  ;;  %v8879_v22 = vor.u32 %v10556_v61, %v8878_v0  ;;  %v10472_v25 = vld [vmem:[%s16306_s1 + $0xe34] sm:$0xf0] }
 0x208   :  { %5765 = vmatpush.bf16.msrb.mxu2 %v8271_v8  ;;  %v8670_v8 = vld [vmem:[%s16306_s1 + $0xf28] sm:$0xf]  ;;  %v9007_v9 = vor.u32 %v10588_v6, %v9006_v18  ;;  %v10504_v23 = vld [vmem:[%s16306_s1 + $0xf34] sm:$0xf0]  ;;  %v8543_v59 = vor.u32 %v10472_v25, %v8542_v14  ;;  %v14419_v18 = vpop.f32.mrf.mxu2  ;;  %v14421_v6 = vpop.f32.mrf.mxu3 }
 0x209   :  { %5779 = vmatpush.bf16.msrb.mxu3 %v8399_v53  ;;  %v8862_v53 = vld [vmem:[%s16306_s1 + $0x10a8] sm:$0xf]  ;;  %v8671_v11 = vor.u32 %v10504_v23, %v8670_v8  ;;  %v10468_v3 = vld [vmem:[%s16306_s1 + $0xe14] sm:$0xf0]  ;;  %16346 = vst [vmem:[#allocation33_spill] sm:$0xff] %v14419_v18  ;;  %v5529_v25 = vpop.f32.mrf.mxu1 }
 0x20a   :  { %5790 = vmatpush.bf16.msra.mxu0 %v8575_v20  ;;  %v10552_v20 = vld [vmem:[%s16306_s1 + $0x10b4] sm:$0xf0]  ;;  %v8654_v0 = vld [vmem:[%s16306_s1 + $0xf08] sm:$0xf]  ;;  %16347 = vst [vmem:[#allocation34_spill] sm:$0xff] %v14421_v6 }
 0x20b   :  { %5804 = vmatpush.bf16.msra.mxu1 %v8703_v54  ;;  %5766 = vmatmul.bf16.vlgmr.msrb.gmra.mxu2 %v11799_v32  ;;  %v8990_v54 = vld [vmem:[%s16306_s1 + $0x11a8] sm:$0xf]  ;;  %v10500_v61 = vld [vmem:[%s16306_s1 + $0xf14] sm:$0xf0] }
 0x20c   :  { %5814 = vmatpush.bf16.msra.mxu2 %v8895_v2  ;;  %5780 = vmatmul.bf16.vlgmr.msrb.gmra.mxu3 %v11812_v41  ;;  %v10584_v2 = vld [vmem:[%s16306_s1 + $0x11b4] sm:$0xf0]  ;;  %v8974_v14 = vld [vmem:[%s16306_s1 + $0x1188] sm:$0xf]  ;;  %v8655_v6 = vor.u32 %v10500_v61, %v8654_v0  ;;  %v14466_v61 = vpop.f32.mrf.mxu0 }
 0x20d   :  { %5828 = vmatpush.bf16.msra.mxu3 %v9023_v28  ;;  %v8863_v28 = vor.u32 %v10552_v20, %v8862_v53  ;;  %v10580_v8 = vld [vmem:[%s16306_s1 + $0x1194] sm:$0xf0]  ;;  %v5530_v53 = vadd.f32 %v5529_v25, %v14317_v16  ;;  %v8527_v20 = vor.u32 %v10468_v3, %v8526_v29  ;;  %v8830_v16 = vld [vmem:[%s16306_s1 + $0x1068] sm:$0xf]  ;;  %16348 = vst [vmem:[#allocation35_spill] sm:$0xff] %v14466_v61 }
 0x20e   :  { %5791 = vmatpush.bf16.msra.mxu0 %v8559_v12  ;;  %v8991_v12 = vor.u32 %v10584_v2, %v8990_v54  ;;  %v10624_v23 = vld [vmem:[%s16306_s1 + $0x12f4] sm:$0xf0]  ;;  %v9278_v54 = vld [vmem:[%s16306_s1 + $0x13e8] sm:$0xf]  ;;  %v8975_v49 = vor.u32 %v10580_v8, %v8974_v14 }
 0x20f   :  { %5805 = vmatpush.bf16.msra.mxu1 %v8687_v7  ;;  %v8846_v7 = vld [vmem:[%s16306_s1 + $0x1088] sm:$0xf]  ;;  %v10656_v2 = vld [vmem:[%s16306_s1 + $0x13f4] sm:$0xf0] }
 0x210   :  { %5815 = vmatpush.bf16.msra.mxu2 %v8879_v22  ;;  %v10548_v22 = vld [vmem:[%s16306_s1 + $0x1094] sm:$0xf0]  ;;  %v8958_v29 = vld [vmem:[%s16306_s1 + $0x1168] sm:$0xf]  ;;  %v9279_v3 = vor.u32 %v10656_v2, %v9278_v54  ;;  %v5543_v25 = vpop.f32.mrf.mxu2 }
 0x211   :  { %5829 = vmatpush.bf16.msra.mxu3 %v9007_v9  ;;  %v9150_v9 = vld [vmem:[%s16306_s1 + $0x12e8] sm:$0xf]  ;;  %v8847_v18 = vor.u32 %v10548_v22, %v8846_v7  ;;  %v10620_v0 = vld [vmem:[%s16306_s1 + $0x12d4] sm:$0xf0] }
 0x212   :  { %5792 = vmatpush.bf16.msra.mxu0 %v8543_v59  ;;  %v9151_v27 = vor.u32 %v10624_v23, %v9150_v9  ;;  %v10544_v59 = vld [vmem:[%s16306_s1 + $0x1074] sm:$0xf0]  ;;  %v5557_v9 = vpop.f32.mrf.mxu3  ;;  %v8814_v23 = vld [vmem:[%s16306_s1 + $0x1048] sm:$0xf] }
 0x213   :  { %5806 = vmatpush.bf16.msra.mxu1 %v8671_v11  ;;  %v10576_v11 = vld [vmem:[%s16306_s1 + $0x1174] sm:$0xf0]  ;;  %v8831_v22 = vor.u32 %v10544_v59, %v8830_v16  ;;  %v9118_v2 = vld [vmem:[%s16306_s1 + $0x12a8] sm:$0xf] }
 0x214   :  { %5816 = vmatpush.bf16.msra.mxu2 %v8863_v28  ;;  %v9134_v28 = vld [vmem:[%s16306_s1 + $0x12c8] sm:$0xf]  ;;  %v10652_v7 = vld [vmem:[%s16306_s1 + $0x13d4] sm:$0xf0]  ;;  %v8959_v14 = vor.u32 %v10576_v11, %v8958_v29 }
 0x215   :  { %5830 = vmatpush.bf16.msra.mxu3 %v8991_v12  ;;  %v9262_v12 = vld [vmem:[%s16306_s1 + $0x13c8] sm:$0xf]  ;;  %v9135_v8 = vor.u32 %v10620_v0, %v9134_v28  ;;  %v10572_v54 = vld [vmem:[%s16306_s1 + $0x1154] sm:$0xf0] }
 0x216   :  { %5793 = vmatpush.bf16.msra.mxu0 %v8527_v20  ;;  %v10540_v20 = vld [vmem:[%s16306_s1 + $0x1054] sm:$0xf0]  ;;  %v8798_v0 = vld [vmem:[%s16306_s1 + $0x1028] sm:$0xf] }
 0x217   :  { %5807 = vmatpush.bf16.msra.mxu1 %v8655_v6  ;;  %v8942_v6 = vld [vmem:[%s16306_s1 + $0x1148] sm:$0xf]  ;;  %v10616_v16 = vld [vmem:[%s16306_s1 + $0x12b4] sm:$0xf0] }
 0x218   :  { %5817 = vmatpush.bf16.msra.mxu2 %v8847_v18  ;;  %v14484_v18 = vpop.f32.mrf.mxu1  ;;  %v10648_v59 = vld [vmem:[%s16306_s1 + $0x13b4] sm:$0xf0]  ;;  %v8943_v11 = vor.u32 %v10572_v54, %v8942_v6  ;;  %v9119_v28 = vor.u32 %v10616_v16, %v9118_v2 }
 0x219   :  { %5831 = vmatpush.bf16.msra.mxu3 %v8975_v49  ;;  %5794 = vmatmul.bf16.vlgmr.msra.gmra.mxu0 %v11810_v38  ;;  %v9263_v49 = vor.u32 %v10652_v7, %v9262_v12  ;;  %16349 = vst [vmem:[#allocation36_spill] sm:$0xff] %v14484_v18  ;;  %v10536_v12 = vld [vmem:[%s16306_s1 + $0x1034] sm:$0xf0]  ;;  %v8926_v7 = vld [vmem:[%s16306_s1 + $0x1128] sm:$0xf] }
 0x21a   :  { %5842 = vmatpush.bf16.msrb.mxu0 %v9151_v27  ;;  %v5544_v27 = vadd.f32 %v5543_v25, %v5530_v53  ;;  %5808 = vmatmul.bf16.vlgmr.msra.gmra.mxu1 %v11820_v46  ;;  %v9246_v53 = vld [vmem:[%s16306_s1 + $0x13a8] sm:$0xf]  ;;  %v10532_v16 = vld [vmem:[%s16306_s1 + $0x1014] sm:$0xf0] }
 0x21b   :  { %5856 = vmatpush.bf16.msrb.mxu1 %v9279_v3  ;;  %v8815_v3 = vor.u32 %v10540_v20, %v8814_v23  ;;  %v9102_v25 = vld [vmem:[%s16306_s1 + $0x1288] sm:$0xf]  ;;  %v10644_v20 = vld [vmem:[%s16306_s1 + $0x1394] sm:$0xf0] }
 0x21c   :  { %5818 = vmatpush.bf16.msra.mxu2 %v8831_v22  ;;  %v5558_v29 = vadd.f32 %v5557_v9, %v5544_v27  ;;  %v9247_v22 = vor.u32 %v10648_v59, %v9246_v53  ;;  %v5571_v9 = vpop.f32.mrf.mxu0  ;;  %v9230_v23 = vld [vmem:[%s16306_s1 + $0x1388] sm:$0xf]  ;;  %v8799_v27 = vor.u32 %v10536_v12, %v8798_v0  ;;  %v10564_v59 = vld [vmem:[%s16306_s1 + $0x1114] sm:$0xf0] }
 0x21d   :  { %5832 = vmatpush.bf16.msra.mxu3 %v8959_v14  ;;  %v10568_v14 = vld [vmem:[%s16306_s1 + $0x1134] sm:$0xf0]  ;;  %v8910_v53 = vld [vmem:[%s16306_s1 + $0x1108] sm:$0xf] }
 0x21e   :  { %5843 = vmatpush.bf16.msrb.mxu0 %v9135_v8  ;;  %v10612_v8 = vld [vmem:[%s16306_s1 + $0x1294] sm:$0xf0]  ;;  %v5572_v6 = vadd.f32 %v5571_v9, %v5558_v29  ;;  %v8927_v54 = vor.u32 %v10568_v14, %v8926_v7  ;;  %v9231_v29 = vor.u32 %v10644_v20, %v9230_v23  ;;  %v9406_v12 = vld [vmem:[%s16306_s1 + $0x14e8] sm:$0xf]  ;;  %v8911_v23 = vor.u32 %v10564_v59, %v8910_v53 }
 0x21f   :  { %5857 = vmatpush.bf16.msrb.mxu1 %v9263_v49  ;;  %v8782_v49 = vld [vmem:[%s16306_s1 + $0x1008] sm:$0xf]  ;;  %v9103_v2 = vor.u32 %v10612_v8, %v9102_v25  ;;  %v10640_v0 = vld [vmem:[%s16306_s1 + $0x1374] sm:$0xf0] }
 0x220   :  { %5819 = vmatpush.bf16.msra.mxu2 %v8815_v3  ;;  %v9086_v3 = vld [vmem:[%s16306_s1 + $0x1268] sm:$0xf]  ;;  %v10688_v7 = vld [vmem:[%s16306_s1 + $0x14f4] sm:$0xf0]  ;;  %v8783_v14 = vor.u32 %v10532_v16, %v8782_v49 }
 0x221   :  { %5833 = vmatpush.bf16.msra.mxu3 %v8943_v11  ;;  %v10608_v11 = vld [vmem:[%s16306_s1 + $0x1274] sm:$0xf0]  ;;  %v9534_v25 = vld [vmem:[%s16306_s1 + $0x15e8] sm:$0xf]  ;;  %v9407_v61 = vor.u32 %v10688_v7, %v9406_v12 }
 0x222   :  { %5844 = vmatpush.bf16.msrb.mxu0 %v9119_v28  ;;  %v9214_v28 = vld [vmem:[%s16306_s1 + $0x1368] sm:$0xf]  ;;  %v10720_v8 = vld [vmem:[%s16306_s1 + $0x15f4] sm:$0xf0]  ;;  %v9087_v20 = vor.u32 %v10608_v11, %v9086_v3 }
 0x223   :  { %5858 = vmatpush.bf16.msrb.mxu1 %v9247_v22  ;;  %v5585_v22 = vpop.f32.mrf.mxu1  ;;  %v9215_v18 = vor.u32 %v10640_v0, %v9214_v28  ;;  %v10604_v49 = vld [vmem:[%s16306_s1 + $0x1254] sm:$0xf0]  ;;  %v9390_v16 = vld [vmem:[%s16306_s1 + $0x14c8] sm:$0xf] }
 0x224   :  { %5820 = vmatpush.bf16.msra.mxu2 %v8799_v27  ;;  %v14562_v9 = vadd.f32 %v5585_v22, %v5572_v6  ;;  %v9070_v27 = vld [vmem:[%s16306_s1 + $0x1248] sm:$0xf]  ;;  %v10636_v6 = vld [vmem:[%s16306_s1 + $0x1354] sm:$0xf0] }
 0x225   :  { %5834 = vmatpush.bf16.msra.mxu3 %v8927_v54  ;;  %v9198_v54 = vld [vmem:[%s16306_s1 + $0x1348] sm:$0xf]  ;;  %v10684_v53 = vld [vmem:[%s16306_s1 + $0x14d4] sm:$0xf0]  ;;  %v9071_v3 = vor.u32 %v10604_v49, %v9070_v27 }
 0x226   :  { %5845 = vmatpush.bf16.msrb.mxu0 %v9103_v2  ;;  %16350 = vst [vmem:[#allocation37_spill] sm:$0xff] %v14562_v9  ;;  %v9535_v2 = vor.u32 %v10720_v8, %v9534_v25  ;;  %v9518_v59 = vld [vmem:[%s16306_s1 + $0x15c8] sm:$0xf]  ;;  %v9199_v11 = vor.u32 %v10636_v6, %v9198_v54  ;;  %v9391_v28 = vor.u32 %v10684_v53, %v9390_v16  ;;  %v10600_v12 = vld [vmem:[%s16306_s1 + $0x1234] sm:$0xf0] }
 0x227   :  { %5859 = vmatpush.bf16.msrb.mxu1 %v9231_v29  ;;  %v10716_v29 = vld [vmem:[%s16306_s1 + $0x15d4] sm:$0xf0]  ;;  %v9054_v0 = vld [vmem:[%s16306_s1 + $0x1228] sm:$0xf] }
 0x228   :  { %5821 = vmatpush.bf16.msra.mxu2 %v8783_v14  ;;  %v9182_v7 = vld [vmem:[%s16306_s1 + $0x1328] sm:$0xf]  ;;  %v9519_v22 = vor.u32 %v10716_v29, %v9518_v59  ;;  %v10680_v14 = vld [vmem:[%s16306_s1 + $0x14b4] sm:$0xf0] }
 0x229   :  { %5835 = vmatpush.bf16.msra.mxu3 %v8911_v23  ;;  %v9502_v25 = vld [vmem:[%s16306_s1 + $0x15a8] sm:$0xf]  ;;  %v10712_v8 = vld [vmem:[%s16306_s1 + $0x15b4] sm:$0xf0]  ;;  %v9055_v23 = vor.u32 %v10600_v12, %v9054_v0 }
 0x22a   :  { %5846 = vmatpush.bf16.msrb.mxu0 %v9087_v20  ;;  %v9038_v20 = vld [vmem:[%s16306_s1 + $0x1208] sm:$0xf]  ;;  %v10596_v54 = vld [vmem:[%s16306_s1 + $0x1214] sm:$0xf0]  ;;  %v9503_v16 = vor.u32 %v10712_v8, %v9502_v25 }
 0x22b   :  { %5860 = vmatpush.bf16.msrb.mxu1 %v9215_v18  ;;  %5822 = vmatmul.bf16.vlgmr.msra.gmra.mxu2 %v12027_v51  ;;  %v9374_v18 = vld [vmem:[%s16306_s1 + $0x14a8] sm:$0xf]  ;;  %v10628_v6 = vld [vmem:[%s16306_s1 + $0x1314] sm:$0xf0]  ;;  %v9039_v0 = vor.u32 %v10596_v54, %v9038_v20 }
 0x22c   :  { %5870 = vmatpush.bf16.msrb.mxu2 %v9407_v61  ;;  %v10632_v61 = vld [vmem:[%s16306_s1 + $0x1334] sm:$0xf0]  ;;  %5836 = vmatmul.bf16.vlgmr.msra.gmra.mxu3 %v12040_v56  ;;  %v9375_v49 = vor.u32 %v10680_v14, %v9374_v18  ;;  %v9358_v53 = vld [vmem:[%s16306_s1 + $0x1488] sm:$0xf] }
 0x22d   :  { %5884 = vmatpush.bf16.msrb.mxu3 %v9535_v2  ;;  %v9183_v27 = vor.u32 %v10632_v61, %v9182_v7  ;;  %v9166_v2 = vld [vmem:[%s16306_s1 + $0x1308] sm:$0xf]  ;;  %v10676_v59 = vld [vmem:[%s16306_s1 + $0x1494] sm:$0xf0] }
 0x22e   :  { %5847 = vmatpush.bf16.msrb.mxu0 %v9071_v3  ;;  %v9486_v29 = vld [vmem:[%s16306_s1 + $0x1588] sm:$0xf]  ;;  %v10708_v3 = vld [vmem:[%s16306_s1 + $0x1594] sm:$0xf0]  ;;  %v9359_v61 = vor.u32 %v10676_v59, %v9358_v53 }
 0x22f   :  { %5861 = vmatpush.bf16.msrb.mxu1 %v9199_v11  ;;  %v9662_v11 = vld [vmem:[%s16306_s1 + $0x16e8] sm:$0xf]  ;;  %v10784_v7 = vld [vmem:[%s16306_s1 + $0x17f4] sm:$0xf0]  ;;  %v9487_v18 = vor.u32 %v10708_v3, %v9486_v29 }
 0x230   :  { %5871 = vmatpush.bf16.msrb.mxu2 %v9391_v28  ;;  %v10752_v28 = vld [vmem:[%s16306_s1 + $0x16f4] sm:$0xf0]  ;;  %v9790_v12 = vld [vmem:[%s16306_s1 + $0x17e8] sm:$0xf] }
 0x231   :  { %5885 = vmatpush.bf16.msrb.mxu3 %v9519_v22  ;;  %v9167_v22 = vor.u32 %v10628_v6, %v9166_v2  ;;  %v9663_v14 = vor.u32 %v10752_v28, %v9662_v11  ;;  %v9342_v25 = vld [vmem:[%s16306_s1 + $0x1468] sm:$0xf]  ;;  %v10672_v8 = vld [vmem:[%s16306_s1 + $0x1474] sm:$0xf0]  ;;  %v9791_v20 = vor.u32 %v10784_v7, %v9790_v12 }
 0x232   :  { %5848 = vmatpush.bf16.msrb.mxu0 %v9055_v23  ;;  %v9470_v23 = vld [vmem:[%s16306_s1 + $0x1568] sm:$0xf]  ;;  %v10748_v54 = vld [vmem:[%s16306_s1 + $0x16d4] sm:$0xf0] }
 0x233   :  { %5862 = vmatpush.bf16.msrb.mxu1 %v9183_v27  ;;  %v10704_v27 = vld [vmem:[%s16306_s1 + $0x1574] sm:$0xf0]  ;;  %v9774_v2 = vld [vmem:[%s16306_s1 + $0x17c8] sm:$0xf] }
 0x234   :  { %5872 = vmatpush.bf16.msrb.mxu2 %v9375_v49  ;;  %v9646_v49 = vld [vmem:[%s16306_s1 + $0x16c8] sm:$0xf]  ;;  %v10780_v6 = vld [vmem:[%s16306_s1 + $0x17d4] sm:$0xf0]  ;;  %v9471_v53 = vor.u32 %v10704_v27, %v9470_v23 }
 0x235   :  { %5886 = vmatpush.bf16.msrb.mxu3 %v9503_v16  ;;  %v9343_v16 = vor.u32 %v10672_v8, %v9342_v25  ;;  %v9647_v59 = vor.u32 %v10748_v54, %v9646_v49  ;;  %v9326_v29 = vld [vmem:[%s16306_s1 + $0x1448] sm:$0xf]  ;;  %v10668_v3 = vld [vmem:[%s16306_s1 + $0x1454] sm:$0xf0]  ;;  %v9775_v28 = vor.u32 %v10780_v6, %v9774_v2 }
 0x236   :  { %5849 = vmatpush.bf16.msrb.mxu0 %v9039_v0  ;;  %v9454_v11 = vld [vmem:[%s16306_s1 + $0x1548] sm:$0xf]  ;;  %v10700_v0 = vld [vmem:[%s16306_s1 + $0x1554] sm:$0xf0] }
 0x237   :  { %5863 = vmatpush.bf16.msrb.mxu1 %v9167_v22  ;;  %v9630_v12 = vld [vmem:[%s16306_s1 + $0x16a8] sm:$0xf]  ;;  %v10744_v7 = vld [vmem:[%s16306_s1 + $0x16b4] sm:$0xf0] }
 0x238   :  { %5873 = vmatpush.bf16.msrb.mxu2 %v9359_v61  ;;  %v9758_v22 = vld [vmem:[%s16306_s1 + $0x17a8] sm:$0xf]  ;;  %v10776_v61 = vld [vmem:[%s16306_s1 + $0x17b4] sm:$0xf0]  ;;  %v9631_v25 = vor.u32 %v10744_v7, %v9630_v12 }
 0x239   :  { %5887 = vmatpush.bf16.msrb.mxu3 %v9487_v18  ;;  %5850 = vmatmul.bf16.vlgmr.msrb.gmra.mxu0 %v12038_v55  ;;  %v9327_v18 = vor.u32 %v10668_v3, %v9326_v29  ;;  %v9310_v8 = vld [vmem:[%s16306_s1 + $0x1428] sm:$0xf]  ;;  %v10664_v23 = vld [vmem:[%s16306_s1 + $0x1434] sm:$0xf0]  ;;  %v9759_v27 = vor.u32 %v10776_v61, %v9758_v22 }
 0x23a   :  { %5898 = vmatpush.bf16.msra.mxu0 %v9663_v14  ;;  %5864 = vmatmul.bf16.vlgmr.msrb.gmra.mxu1 %v12048_v60  ;;  %v9455_v14 = vor.u32 %v10700_v0, %v9454_v11  ;;  %v10696_v49 = vld [vmem:[%s16306_s1 + $0x1534] sm:$0xf0]  ;;  %v9614_v54 = vld [vmem:[%s16306_s1 + $0x1688] sm:$0xf] }
 0x23b   :  { %5912 = vmatpush.bf16.msra.mxu1 %v9791_v20  ;;  %v9438_v20 = vld [vmem:[%s16306_s1 + $0x1528] sm:$0xf]  ;;  %v10740_v2 = vld [vmem:[%s16306_s1 + $0x1694] sm:$0xf0] }
 0x23c   :  { %5874 = vmatpush.bf16.msrb.mxu2 %v9343_v16  ;;  %v9742_v6 = vld [vmem:[%s16306_s1 + $0x1788] sm:$0xf]  ;;  %v10772_v16 = vld [vmem:[%s16306_s1 + $0x1794] sm:$0xf0]  ;;  %v9439_v29 = vor.u32 %v10696_v49, %v9438_v20  ;;  %v9615_v3 = vor.u32 %v10740_v2, %v9614_v54  ;;  %v6848_v20 = vld [vmem:[%s16306_s1 + $0xf8] sm:$0xf0] }
 0x23d   :  { %5888 = vmatpush.bf16.msrb.mxu3 %v9471_v53  ;;  %v9311_v53 = vor.u32 %v10664_v23, %v9310_v8  ;;  %v10660_v11 = vld [vmem:[%s16306_s1 + $0x1414] sm:$0xf0]  ;;  %v9743_v12 = vor.u32 %v10772_v16, %v9742_v6  ;;  %v9598_v7 = vld [vmem:[%s16306_s1 + $0x1668] sm:$0xf]  ;;  %v10046_v23 = vld [vmem:[%s16306_s1 + $0xec] sm:$0xf] }
 0x23e   :  { %5899 = vmatpush.bf16.msra.mxu0 %v9647_v59  ;;  %v9294_v59 = vld [vmem:[%s16306_s1 + $0x1408] sm:$0xf]  ;;  %v10692_v0 = vld [vmem:[%s16306_s1 + $0x1514] sm:$0xf0] }
 0x23f   :  { %5913 = vmatpush.bf16.msra.mxu1 %v9775_v28  ;;  %v9422_v28 = vld [vmem:[%s16306_s1 + $0x1508] sm:$0xf]  ;;  %v10736_v22 = vld [vmem:[%s16306_s1 + $0x1674] sm:$0xf0]  ;;  %v9295_v8 = vor.u32 %v10660_v11, %v9294_v59  ;;  %v6851_v59 = vor.u32 %v10046_v23, %v6848_v20 }
 0x240   :  { %5875 = vmatpush.bf16.msrb.mxu2 %v9327_v18  ;;  %v9726_v61 = vld [vmem:[%s16306_s1 + $0x1768] sm:$0xf]  ;;  %v10768_v18 = vld [vmem:[%s16306_s1 + $0x1774] sm:$0xf0]  ;;  %v9599_v49 = vor.u32 %v10736_v22, %v9598_v7 }
 0x241   :  { %5889 = vmatpush.bf16.msrb.mxu3 %v9455_v14  ;;  %v9854_v14 = vld [vmem:[%s16306_s1 + $0x1868] sm:$0xf]  ;;  %v9727_v54 = vor.u32 %v10768_v18, %v9726_v61  ;;  %v10732_v16 = vld [vmem:[%s16306_s1 + $0x1654] sm:$0xf0] }
 0x242   :  { %5900 = vmatpush.bf16.msra.mxu0 %v9631_v25  ;;  %v10800_v25 = vld [vmem:[%s16306_s1 + $0x1874] sm:$0xf0]  ;;  %v9582_v6 = vld [vmem:[%s16306_s1 + $0x1648] sm:$0xf] }
 0x243   :  { %5914 = vmatpush.bf16.msra.mxu1 %v9759_v27  ;;  %v9423_v27 = vor.u32 %v10692_v0, %v9422_v28  ;;  %v9855_v2 = vor.u32 %v10800_v25, %v9854_v14  ;;  %v10796_v11 = vld [vmem:[%s16306_s1 + $0x1854] sm:$0xf0]  ;;  %v10042_v28 = vld [vmem:[%s16306_s1 + $0xcc] sm:$0xf]  ;;  %v6832_v0 = vld [vmem:[%s16306_s1 + $0xd8] sm:$0xf0] }
 0x244   :  { %5876 = vmatpush.bf16.msrb.mxu2 %v9311_v53  ;;  %v9710_v53 = vld [vmem:[%s16306_s1 + $0x1748] sm:$0xf]  ;;  %v10728_v18 = vld [vmem:[%s16306_s1 + $0x1634] sm:$0xf0]  ;;  %v6835_v25 = vor.u32 %v10042_v28, %v6832_v0  ;;  %v10034_v0 = vld [vmem:[%s16306_s1 + $0x8c] sm:$0xf] }
 0x245   :  { %5890 = vmatpush.bf16.msrb.mxu3 %v9439_v29  ;;  %v10764_v29 = vld [vmem:[%s16306_s1 + $0x1754] sm:$0xf0]  ;;  %v9566_v61 = vld [vmem:[%s16306_s1 + $0x1628] sm:$0xf] }
 0x246   :  { %5901 = vmatpush.bf16.msra.mxu0 %v9615_v3  ;;  %v9838_v3 = vld [vmem:[%s16306_s1 + $0x1848] sm:$0xf]  ;;  %v9711_v7 = vor.u32 %v10764_v29, %v9710_v53  ;;  %v10792_v20 = vld [vmem:[%s16306_s1 + $0x1834] sm:$0xf0] }
 0x247   :  { %5915 = vmatpush.bf16.msra.mxu1 %v9743_v12  ;;  %v9583_v12 = vor.u32 %v10732_v16, %v9582_v6  ;;  %v9839_v22 = vor.u32 %v10796_v11, %v9838_v3  ;;  %v9694_v14 = vld [vmem:[%s16306_s1 + $0x1728] sm:$0xf]  ;;  %v10724_v6 = vld [vmem:[%s16306_s1 + $0x1614] sm:$0xf0] }
 0x248   :  { %5877 = vmatpush.bf16.msrb.mxu2 %v9295_v8  ;;  %v10760_v8 = vld [vmem:[%s16306_s1 + $0x1734] sm:$0xf0]  ;;  %v9822_v23 = vld [vmem:[%s16306_s1 + $0x1828] sm:$0xf] }
 0x249   :  { %5891 = vmatpush.bf16.msrb.mxu3 %v9423_v27  ;;  %v10038_v27 = vld [vmem:[%s16306_s1 + $0xac] sm:$0xf]  ;;  %v9695_v16 = vor.u32 %v10760_v8, %v9694_v14  ;;  %v9823_v53 = vor.u32 %v10792_v20, %v9822_v23  ;;  %v10756_v29 = vld [vmem:[%s16306_s1 + $0x1714] sm:$0xf0]  ;;  %v9806_v3 = vld [vmem:[%s16306_s1 + $0x1808] sm:$0xf] }
 0x24a   :  { %5902 = vmatpush.bf16.msra.mxu0 %v9599_v49  ;;  %v6816_v49 = vld [vmem:[%s16306_s1 + $0xb8] sm:$0xf0]  ;;  %v10788_v28 = vld [vmem:[%s16306_s1 + $0x1814] sm:$0xf0] }
 0x24b   :  { %5916 = vmatpush.bf16.msra.mxu1 %v9727_v54  ;;  %5878 = vmatmul.bf16.vlgmr.msrb.gmra.mxu2 %v12267_v26  ;;  %v9567_v54 = vor.u32 %v10728_v18, %v9566_v61  ;;  %v6819_v11 = vor.u32 %v10038_v27, %v6816_v49  ;;  %v10110_v61 = vld [vmem:[%s16306_s1 + $0x2ec] sm:$0xf]  ;;  %v7104_v14 = vld [vmem:[%s16306_s1 + $0x2f8] sm:$0xf0]  ;;  %v9807_v20 = vor.u32 %v10788_v28, %v9806_v3 }
 0x24c   :  { %5930 = vmatpush.bf16.msra.mxu2 %v9855_v2  ;;  %5892 = vmatmul.bf16.vlgmr.msrb.gmra.mxu3 %v12280_v34  ;;  %v9550_v2 = vld [vmem:[%s16306_s1 + $0x1608] sm:$0xf]  ;;  %v7232_v8 = vld [vmem:[%s16306_s1 + $0x3f8] sm:$0xf0]  ;;  %v10138_v3 = vld [vmem:[%s16306_s1 + $0x3cc] sm:$0xf] }
 0x24d   :  { %5940 = vmatpush.bf16.msra.mxu3 %v6851_v59  ;;  %v9678_v59 = vld [vmem:[%s16306_s1 + $0x1708] sm:$0xf]  ;;  %v9551_v18 = vor.u32 %v10724_v6, %v9550_v2  ;;  %v6784_v2 = vld [vmem:[%s16306_s1 + $0x78] sm:$0xf0]  ;;  %v7107_v6 = vor.u32 %v10110_v61, %v7104_v14 }
 0x24e   :  { %5903 = vmatpush.bf16.msra.mxu0 %v9583_v12  ;;  %v6800_v12 = vld [vmem:[%s16306_s1 + $0x98] sm:$0xf0]  ;;  %v9679_v23 = vor.u32 %v10756_v29, %v9678_v59  ;;  %v10106_v59 = vld [vmem:[%s16306_s1 + $0x2cc] sm:$0xf] }
 0x24f   :  { %5917 = vmatpush.bf16.msra.mxu1 %v9711_v7  ;;  %v10078_v7 = vld [vmem:[%s16306_s1 + $0x1ec] sm:$0xf]  ;;  %v6803_v27 = vor.u32 %v10034_v0, %v6800_v12  ;;  %v7088_v29 = vld [vmem:[%s16306_s1 + $0x2d8] sm:$0xf0] }
 0x250   :  { %5931 = vmatpush.bf16.msra.mxu2 %v9839_v22  ;;  %v6976_v22 = vld [vmem:[%s16306_s1 + $0x1f8] sm:$0xf0]  ;;  %v10026_v12 = vld [vmem:[%s16306_s1 + $0x4c] sm:$0xf] }
 0x251   :  { %5941 = vmatpush.bf16.msra.mxu3 %v6835_v25  ;;  %v10142_v25 = vld [vmem:[%s16306_s1 + $0x3ec] sm:$0xf]  ;;  %v6979_v49 = vor.u32 %v10078_v7, %v6976_v22  ;;  %v6768_v7 = vld [vmem:[%s16306_s1 + $0x58] sm:$0xf0]  ;;  %v7091_v22 = vor.u32 %v10106_v59, %v7088_v29 }
 0x252   :  { %5904 = vmatpush.bf16.msra.mxu0 %v9567_v54  ;;  %v10030_v54 = vld [vmem:[%s16306_s1 + $0x6c] sm:$0xf]  ;;  %v7235_v9 = vor.u32 %v10142_v25, %v7232_v8  ;;  %v6944_v14 = vld [vmem:[%s16306_s1 + $0x1b8] sm:$0xf0] }
 0x253   :  { %5918 = vmatpush.bf16.msra.mxu1 %v9695_v16  ;;  %v10074_v16 = vld [vmem:[%s16306_s1 + $0x1cc] sm:$0xf]  ;;  %v6787_v28 = vor.u32 %v10030_v54, %v6784_v2  ;;  %v6752_v54 = vld [vmem:[%s16306_s1 + $0x38] sm:$0xf0] }
 0x254   :  { %5932 = vmatpush.bf16.msra.mxu2 %v9823_v53  ;;  %v6960_v53 = vld [vmem:[%s16306_s1 + $0x1d8] sm:$0xf0]  ;;  %v10102_v25 = vld [vmem:[%s16306_s1 + $0x2ac] sm:$0xf] }
 0x255   :  { %5942 = vmatpush.bf16.msra.mxu3 %v6819_v11  ;;  %v7216_v11 = vld [vmem:[%s16306_s1 + $0x3d8] sm:$0xf0]  ;;  %v6963_v0 = vor.u32 %v10074_v16, %v6960_v53  ;;  %v10134_v8 = vld [vmem:[%s16306_s1 + $0x3ac] sm:$0xf] }
 0x256   :  { %5905 = vmatpush.bf16.msra.mxu0 %v9551_v18  ;;  %v7219_v61 = vor.u32 %v10138_v3, %v7216_v11  ;;  %v10070_v18 = vld [vmem:[%s16306_s1 + $0x1ac] sm:$0xf]  ;;  %v6928_v53 = vld [vmem:[%s16306_s1 + $0x198] sm:$0xf0] }
 0x257   :  { %5919 = vmatpush.bf16.msra.mxu1 %v9679_v23  ;;  %v7200_v23 = vld [vmem:[%s16306_s1 + $0x3b8] sm:$0xf0]  ;;  %v10066_v16 = vld [vmem:[%s16306_s1 + $0x18c] sm:$0xf] }
 0x258   :  { %5933 = vmatpush.bf16.msra.mxu2 %v9807_v20  ;;  %v6771_v20 = vor.u32 %v10026_v12, %v6768_v7  ;;  %v10098_v59 = vld [vmem:[%s16306_s1 + $0x28c] sm:$0xf]  ;;  %v7056_v29 = vld [vmem:[%s16306_s1 + $0x298] sm:$0xf0] }
 0x259   :  { %5943 = vmatpush.bf16.msra.mxu3 %v6803_v27  ;;  %5906 = vmatmul.bf16.vlgmr.msra.gmra.mxu0 %v12278_v33  ;;  %v6947_v27 = vor.u32 %v10070_v18, %v6944_v14  ;;  %v10130_v3 = vld [vmem:[%s16306_s1 + $0x38c] sm:$0xf]  ;;  %v7184_v11 = vld [vmem:[%s16306_s1 + $0x398] sm:$0xf0] }
 0x25a   :  { %5954 = vmatpush.bf16.msrb.mxu0 %v6979_v49  ;;  %5920 = vmatmul.bf16.vlgmr.msra.gmra.mxu1 %v12290_v48  ;;  %v10022_v49 = vld [vmem:[%s16306_s1 + $0x2c] sm:$0xf]  ;;  %v6736_v7 = vld [vmem:[%s16306_s1 + $0x18] sm:$0xf0] }
 0x25b   :  { %5968 = vmatpush.bf16.msrb.mxu1 %v7107_v6  ;;  %v7203_v6 = vor.u32 %v10134_v8, %v7200_v23  ;;  %9862 = vmatmul.msk.bf16.vlgmr.msra.gmra.mxu2 %vm4886_vm0, %v12400_v19  ;;  %v10018_v12 = vld [vmem:[%s16306_s1 + $0xc] sm:$0xf]  ;;  %v6912_v14 = vld [vmem:[%s16306_s1 + $0x178] sm:$0xf0] }
 0x25c   :  { %5982 = vmatpush.bf16.msrb.mxu2 %v7235_v9  ;;  %v7072_v9 = vld [vmem:[%s16306_s1 + $0x2b8] sm:$0xf0]  ;;  %v10062_v18 = vld [vmem:[%s16306_s1 + $0x16c] sm:$0xf] }
 0x25d   :  { %5944 = vmatpush.bf16.msra.mxu3 %v6787_v28  ;;  %v7075_v2 = vor.u32 %v10102_v25, %v7072_v9  ;;  %v6755_v28 = vor.u32 %v10022_v49, %v6752_v54  ;;  %v10094_v25 = vld [vmem:[%s16306_s1 + $0x26c] sm:$0xf]  ;;  %v7040_v9 = vld [vmem:[%s16306_s1 + $0x278] sm:$0xf0]  ;;  %v6739_v49 = vor.u32 %v10018_v12, %v6736_v7  ;;  %v6915_v54 = vor.u32 %v10062_v18, %v6912_v14 }
 0x25e   :  { %5955 = vmatpush.bf16.msrb.mxu0 %v6963_v0  ;;  %v6931_v0 = vor.u32 %v10066_v16, %v6928_v53  ;;  %v10126_v8 = vld [vmem:[%s16306_s1 + $0x36c] sm:$0xf]  ;;  %v7168_v23 = vld [vmem:[%s16306_s1 + $0x378] sm:$0xf0] }
 0x25f   :  { %5969 = vmatpush.bf16.msrb.mxu1 %v7091_v22  ;;  %v7059_v22 = vor.u32 %v10098_v59, %v7056_v29  ;;  %v10058_v16 = vld [vmem:[%s16306_s1 + $0x14c] sm:$0xf]  ;;  %v6896_v53 = vld [vmem:[%s16306_s1 + $0x158] sm:$0xf0] }
 0x260   :  { %5983 = vmatpush.bf16.msrb.mxu2 %v7219_v61  ;;  %v7187_v61 = vor.u32 %v10130_v3, %v7184_v11  ;;  %v10090_v59 = vld [vmem:[%s16306_s1 + $0x24c] sm:$0xf]  ;;  %v7024_v3 = vld [vmem:[%s16306_s1 + $0x258] sm:$0xf0]  ;;  %v6899_v7 = vor.u32 %v10058_v16, %v6896_v53 }
 0x261   :  { %5945 = vmatpush.bf16.msra.mxu3 %v6771_v20  ;;  %v10174_v20 = vld [vmem:[%s16306_s1 + $0x4ec] sm:$0xf]  ;;  %v7344_v12 = vld [vmem:[%s16306_s1 + $0x4d8] sm:$0xf0] }
 0x262   :  { %5956 = vmatpush.bf16.msrb.mxu0 %v6947_v27  ;;  %v7360_v27 = vld [vmem:[%s16306_s1 + $0x4f8] sm:$0xf0]  ;;  %v10122_v11 = vld [vmem:[%s16306_s1 + $0x34c] sm:$0xf] }
 0x263   :  { %5970 = vmatpush.bf16.msrb.mxu1 %v7075_v2  ;;  %v7043_v2 = vor.u32 %v10094_v25, %v7040_v9  ;;  %v7363_v29 = vor.u32 %v10174_v20, %v7360_v27  ;;  %v10054_v18 = vld [vmem:[%s16306_s1 + $0x12c] sm:$0xf]  ;;  %v6880_v14 = vld [vmem:[%s16306_s1 + $0x138] sm:$0xf0] }
 0x264   :  { %5984 = vmatpush.bf16.msrb.mxu2 %v7203_v6  ;;  %v7171_v6 = vor.u32 %v10126_v8, %v7168_v23  ;;  %v10086_v25 = vld [vmem:[%s16306_s1 + $0x22c] sm:$0xf]  ;;  %v7008_v8 = vld [vmem:[%s16306_s1 + $0x238] sm:$0xf0] }
 0x265   :  { %5946 = vmatpush.bf16.msra.mxu3 %v6755_v28  ;;  %v7152_v28 = vld [vmem:[%s16306_s1 + $0x358] sm:$0xf0]  ;;  %v10118_v23 = vld [vmem:[%s16306_s1 + $0x32c] sm:$0xf]  ;;  %v7011_v16 = vor.u32 %v10086_v25, %v7008_v8 }
 0x266   :  { %5957 = vmatpush.bf16.msrb.mxu0 %v6931_v0  ;;  %v10170_v0 = vld [vmem:[%s16306_s1 + $0x4cc] sm:$0xf]  ;;  %v7136_v20 = vld [vmem:[%s16306_s1 + $0x338] sm:$0xf0] }
 0x267   :  { %5971 = vmatpush.bf16.msrb.mxu1 %v7059_v22  ;;  %v7027_v22 = vor.u32 %v10090_v59, %v7024_v3  ;;  %v7347_v9 = vor.u32 %v10170_v0, %v7344_v12  ;;  %v10166_v27 = vld [vmem:[%s16306_s1 + $0x4ac] sm:$0xf]  ;;  %v7139_v53 = vor.u32 %v10118_v23, %v7136_v20  ;;  %v7312_v0 = vld [vmem:[%s16306_s1 + $0x498] sm:$0xf0] }
 0x268   :  { %5985 = vmatpush.bf16.msrb.mxu2 %v7187_v61  ;;  %v7155_v61 = vor.u32 %v10122_v11, %v7152_v28  ;;  %v10082_v59 = vld [vmem:[%s16306_s1 + $0x20c] sm:$0xf]  ;;  %v7120_v11 = vld [vmem:[%s16306_s1 + $0x318] sm:$0xf0] }
 0x269   :  { %5947 = vmatpush.bf16.msra.mxu3 %v6739_v49  ;;  %v7328_v49 = vld [vmem:[%s16306_s1 + $0x4b8] sm:$0xf0]  ;;  %v10162_v28 = vld [vmem:[%s16306_s1 + $0x48c] sm:$0xf] }
 0x26a   :  { %5958 = vmatpush.bf16.msrb.mxu0 %v6915_v54  ;;  %v6883_v54 = vor.u32 %v10054_v18, %v6880_v14  ;;  %v7331_v3 = vor.u32 %v10166_v27, %v7328_v49  ;;  %v10206_v12 = vld [vmem:[%s16306_s1 + $0x5ec] sm:$0xf]  ;;  %v7616_v18 = vld [vmem:[%s16306_s1 + $0x6f8] sm:$0xf0]  ;;  %v7315_v23 = vor.u32 %v10162_v28, %v7312_v0 }
 0x26b   :  { %5972 = vmatpush.bf16.msrb.mxu1 %v7043_v2  ;;  %v10050_v2 = vld [vmem:[%s16306_s1 + $0x10c] sm:$0xf]  ;;  %v7744_v25 = vld [vmem:[%s16306_s1 + $0x7f8] sm:$0xf0] }
 0x26c   :  { %5986 = vmatpush.bf16.msrb.mxu2 %v7171_v6  ;;  %5948 = vmatmul.bf16.vlgmr.msra.gmra.mxu3 %v11121_v58  ;;  %v6864_v6 = vld [vmem:[%s16306_s1 + $0x118] sm:$0xf0]  ;;  %v10270_v14 = vld [vmem:[%s16306_s1 + $0x7ec] sm:$0xf] }
 0x26d   :  { %5996 = vmatpush.bf16.msrb.mxu3 %v7363_v29  ;;  %v6992_v58 = vld [vmem:[%s16306_s1 + $0x218] sm:$0xf0]  ;;  %v10114_v29 = vld [vmem:[%s16306_s1 + $0x30c] sm:$0xf] }
 0x26e   :  { %5959 = vmatpush.bf16.msrb.mxu0 %v6899_v7  ;;  %v7488_v7 = vld [vmem:[%s16306_s1 + $0x5f8] sm:$0xf0]  ;;  %v7123_v8 = vor.u32 %v10114_v29, %v7120_v11  ;;  %v10158_v27 = vld [vmem:[%s16306_s1 + $0x46c] sm:$0xf] }
 0x26f   :  { %5973 = vmatpush.bf16.msrb.mxu1 %v7027_v22  ;;  %v10238_v22 = vld [vmem:[%s16306_s1 + $0x6ec] sm:$0xf]  ;;  %v7491_v20 = vor.u32 %v10206_v12, %v7488_v7  ;;  %v7296_v49 = vld [vmem:[%s16306_s1 + $0x478] sm:$0xf0] }
 0x270   :  { %5987 = vmatpush.bf16.msrb.mxu2 %v7155_v61  ;;  %v6867_v61 = vor.u32 %v10050_v2, %v6864_v6  ;;  %v7747_v2 = vor.u32 %v10270_v14, %v7744_v25  ;;  %v10202_v6 = vld [vmem:[%s16306_s1 + $0x5cc] sm:$0xf]  ;;  %v7728_v29 = vld [vmem:[%s16306_s1 + $0x7d8] sm:$0xf0] }
 0x271   :  { %5997 = vmatpush.bf16.msrb.mxu3 %v7347_v9  ;;  %v6995_v9 = vor.u32 %v10082_v59, %v6992_v58  ;;  %v7600_v59 = vld [vmem:[%s16306_s1 + $0x6d8] sm:$0xf0]  ;;  %v10266_v58 = vld [vmem:[%s16306_s1 + $0x7cc] sm:$0xf] }
 0x272   :  { %5960 = vmatpush.bf16.msrb.mxu0 %v6883_v54  ;;  %v7619_v54 = vor.u32 %v10238_v22, %v7616_v18  ;;  %v10154_v28 = vld [vmem:[%s16306_s1 + $0x44c] sm:$0xf]  ;;  %v7280_v0 = vld [vmem:[%s16306_s1 + $0x458] sm:$0xf0]  ;;  %v7731_v7 = vor.u32 %v10266_v58, %v7728_v29 }
 0x273   :  { %5974 = vmatpush.bf16.msrb.mxu1 %v7011_v16  ;;  %v7472_v16 = vld [vmem:[%s16306_s1 + $0x5d8] sm:$0xf0]  ;;  %v10198_v22 = vld [vmem:[%s16306_s1 + $0x5ac] sm:$0xf] }
 0x274   :  { %5988 = vmatpush.bf16.msrb.mxu2 %v7139_v53  ;;  %v10234_v53 = vld [vmem:[%s16306_s1 + $0x6cc] sm:$0xf]  ;;  %v7475_v11 = vor.u32 %v10202_v6, %v7472_v16  ;;  %v7584_v14 = vld [vmem:[%s16306_s1 + $0x6b8] sm:$0xf0] }
 0x275   :  { %5998 = vmatpush.bf16.msrb.mxu3 %v7331_v3  ;;  %v7299_v3 = vor.u32 %v10158_v27, %v7296_v49  ;;  %v7603_v12 = vor.u32 %v10234_v53, %v7600_v59  ;;  %v10230_v18 = vld [vmem:[%s16306_s1 + $0x6ac] sm:$0xf]  ;;  %v7264_v27 = vld [vmem:[%s16306_s1 + $0x438] sm:$0xf0] }
 0x276   :  { %5961 = vmatpush.bf16.msrb.mxu0 %v6867_v61  ;;  %v7456_v61 = vld [vmem:[%s16306_s1 + $0x5b8] sm:$0xf0]  ;;  %v10262_v25 = vld [vmem:[%s16306_s1 + $0x7ac] sm:$0xf]  ;;  %v7587_v49 = vor.u32 %v10230_v18, %v7584_v14 }
 0x277   :  { %5975 = vmatpush.bf16.msrb.mxu1 %v6995_v9  ;;  %v7712_v9 = vld [vmem:[%s16306_s1 + $0x7b8] sm:$0xf0]  ;;  %v10258_v6 = vld [vmem:[%s16306_s1 + $0x78c] sm:$0xf] }
 0x278   :  { %5989 = vmatpush.bf16.msrb.mxu2 %v7123_v8  ;;  %v7283_v8 = vor.u32 %v10154_v28, %v7280_v0  ;;  %v7696_v16 = vld [vmem:[%s16306_s1 + $0x798] sm:$0xf0]  ;;  %v10146_v58 = vld [vmem:[%s16306_s1 + $0x40c] sm:$0xf] }
 0x279   :  { %5999 = vmatpush.bf16.msrb.mxu3 %v7315_v23  ;;  %5962 = vmatmul.bf16.vlgmr.msrb.gmra.mxu0 %v11157_v10  ;;  %v7459_v23 = vor.u32 %v10198_v22, %v7456_v61  ;;  %v7440_v10 = vld [vmem:[%s16306_s1 + $0x598] sm:$0xf0]  ;;  %v10190_v28 = vld [vmem:[%s16306_s1 + $0x56c] sm:$0xf] }
 0x27a   :  { %6010 = vmatpush.bf16.msra.mxu0 %v7491_v20  ;;  %5976 = vmatmul.bf16.vlgmr.msrb.gmra.mxu1 %v11135_v1  ;;  %v10150_v20 = vld [vmem:[%s16306_s1 + $0x42c] sm:$0xf]  ;;  %v7248_v29 = vld [vmem:[%s16306_s1 + $0x418] sm:$0xf0] }
 0x27b   :  { %6024 = vmatpush.bf16.msra.mxu1 %v7619_v54  ;;  %5990 = vmatmul.bf16.vlgmr.msrb.gmra.mxu2 %v11171_v17  ;;  %v7715_v17 = vor.u32 %v10262_v25, %v7712_v9  ;;  %v10194_v1 = vld [vmem:[%s16306_s1 + $0x58c] sm:$0xf]  ;;  %v7267_v53 = vor.u32 %v10150_v20, %v7264_v27  ;;  %v7424_v0 = vld [vmem:[%s16306_s1 + $0x578] sm:$0xf0]  ;;  %v7251_v25 = vor.u32 %v10146_v58, %v7248_v29 }
 0x27c   :  { %6038 = vmatpush.bf16.msra.mxu2 %v7747_v2  ;;  %v10226_v54 = vld [vmem:[%s16306_s1 + $0x68c] sm:$0xf]  ;;  %v7568_v2 = vld [vmem:[%s16306_s1 + $0x698] sm:$0xf0]  ;;  %v7443_v59 = vor.u32 %v10194_v1, %v7440_v10  ;;  %v7427_v9 = vor.u32 %v10190_v28, %v7424_v0 }
 0x27d   :  { %6000 = vmatpush.bf16.msrb.mxu3 %v7299_v3  ;;  %v7571_v3 = vor.u32 %v10226_v54, %v7568_v2  ;;  %v10254_v22 = vld [vmem:[%s16306_s1 + $0x76c] sm:$0xf]  ;;  %v7680_v61 = vld [vmem:[%s16306_s1 + $0x778] sm:$0xf0] }
 0x27e   :  { %6011 = vmatpush.bf16.msra.mxu0 %v7475_v11  ;;  %v7699_v11 = vor.u32 %v10258_v6, %v7696_v16  ;;  %v10302_v18 = vld [vmem:[%s16306_s1 + $0x8ec] sm:$0xf]  ;;  %v7872_v14 = vld [vmem:[%s16306_s1 + $0x8f8] sm:$0xf0] }
 0x27f   :  { %6025 = vmatpush.bf16.msra.mxu1 %v7603_v12  ;;  %v10222_v12 = vld [vmem:[%s16306_s1 + $0x66c] sm:$0xf]  ;;  %v7408_v27 = vld [vmem:[%s16306_s1 + $0x558] sm:$0xf0] }
 0x280   :  { %6039 = vmatpush.bf16.msra.mxu2 %v7731_v7  ;;  %v7552_v7 = vld [vmem:[%s16306_s1 + $0x678] sm:$0xf0]  ;;  %v10186_v20 = vld [vmem:[%s16306_s1 + $0x54c] sm:$0xf] }
 0x281   :  { %6001 = vmatpush.bf16.msrb.mxu3 %v7283_v8  ;;  %v7555_v8 = vor.u32 %v10222_v12, %v7552_v7  ;;  %v7536_v1 = vld [vmem:[%s16306_s1 + $0x658] sm:$0xf0]  ;;  %v10250_v10 = vld [vmem:[%s16306_s1 + $0x74c] sm:$0xf]  ;;  %v7411_v16 = vor.u32 %v10186_v20, %v7408_v27 }
 0x282   :  { %6012 = vmatpush.bf16.msra.mxu0 %v7459_v23  ;;  %v7683_v23 = vor.u32 %v10254_v22, %v7680_v61  ;;  %v7664_v54 = vld [vmem:[%s16306_s1 + $0x758] sm:$0xf0]  ;;  %v10298_v2 = vld [vmem:[%s16306_s1 + $0x8cc] sm:$0xf] }
 0x283   :  { %6026 = vmatpush.bf16.msra.mxu1 %v7587_v49  ;;  %v10218_v49 = vld [vmem:[%s16306_s1 + $0x64c] sm:$0xf]  ;;  %v7856_v6 = vld [vmem:[%s16306_s1 + $0x8d8] sm:$0xf0] }
 0x284   :  { %6040 = vmatpush.bf16.msra.mxu2 %v7715_v17  ;;  %v7875_v17 = vor.u32 %v10302_v18, %v7872_v14  ;;  %v10182_v58 = vld [vmem:[%s16306_s1 + $0x52c] sm:$0xf]  ;;  %v7392_v29 = vld [vmem:[%s16306_s1 + $0x538] sm:$0xf0] }
 0x285   :  { %6002 = vmatpush.bf16.msrb.mxu3 %v7267_v53  ;;  %v7539_v53 = vor.u32 %v10218_v49, %v7536_v1  ;;  %v7520_v28 = vld [vmem:[%s16306_s1 + $0x638] sm:$0xf0]  ;;  %v10246_v0 = vld [vmem:[%s16306_s1 + $0x72c] sm:$0xf]  ;;  %v7395_v61 = vor.u32 %v10182_v58, %v7392_v29 }
 0x286   :  { %6013 = vmatpush.bf16.msra.mxu0 %v7443_v59  ;;  %v7667_v59 = vor.u32 %v10250_v10, %v7664_v54  ;;  %v7648_v12 = vld [vmem:[%s16306_s1 + $0x738] sm:$0xf0]  ;;  %v10294_v7 = vld [vmem:[%s16306_s1 + $0x8ac] sm:$0xf] }
 0x287   :  { %6027 = vmatpush.bf16.msra.mxu1 %v7571_v3  ;;  %v10214_v3 = vld [vmem:[%s16306_s1 + $0x62c] sm:$0xf]  ;;  %v7840_v22 = vld [vmem:[%s16306_s1 + $0x8b8] sm:$0xf0] }
 0x288   :  { %6041 = vmatpush.bf16.msra.mxu2 %v7699_v11  ;;  %v7859_v11 = vor.u32 %v10298_v2, %v7856_v6  ;;  %v10178_v18 = vld [vmem:[%s16306_s1 + $0x50c] sm:$0xf]  ;;  %v7376_v14 = vld [vmem:[%s16306_s1 + $0x518] sm:$0xf0]  ;;  %v7843_v20 = vor.u32 %v10294_v7, %v7840_v22 }
 0x289   :  { %6003 = vmatpush.bf16.msrb.mxu3 %v7251_v25  ;;  %v7651_v25 = vor.u32 %v10246_v0, %v7648_v12  ;;  %v7632_v27 = vld [vmem:[%s16306_s1 + $0x718] sm:$0xf0]  ;;  %v10290_v49 = vld [vmem:[%s16306_s1 + $0x88c] sm:$0xf]  ;;  %v7379_v2 = vor.u32 %v10178_v18, %v7376_v14 }
 0x28a   :  { %6014 = vmatpush.bf16.msra.mxu0 %v7427_v9  ;;  %v10210_v9 = vld [vmem:[%s16306_s1 + $0x60c] sm:$0xf]  ;;  %v8000_v10 = vld [vmem:[%s16306_s1 + $0x9f8] sm:$0xf0] }
 0x28b   :  { %6028 = vmatpush.bf16.msra.mxu1 %v7555_v8  ;;  %v7504_v8 = vld [vmem:[%s16306_s1 + $0x618] sm:$0xf0]  ;;  %v10334_v1 = vld [vmem:[%s16306_s1 + $0x9ec] sm:$0xf] }
 0x28c   :  { %6042 = vmatpush.bf16.msra.mxu2 %v7683_v23  ;;  %6004 = vmatmul.bf16.vlgmr.msrb.gmra.mxu3 %v11343_v39  ;;  %v7523_v39 = vor.u32 %v10214_v3, %v7520_v28  ;;  %v10242_v23 = vld [vmem:[%s16306_s1 + $0x70c] sm:$0xf]  ;;  %v8128_v6 = vld [vmem:[%s16306_s1 + $0xaf8] sm:$0xf0]  ;;  %v8003_v3 = vor.u32 %v10334_v1, %v8000_v10 }
 0x28d   :  { %6052 = vmatpush.bf16.msra.mxu3 %v7875_v17  ;;  %v7824_v17 = vld [vmem:[%s16306_s1 + $0x898] sm:$0xf0]  ;;  %v10366_v54 = vld [vmem:[%s16306_s1 + $0xaec] sm:$0xf]  ;;  %v7635_v58 = vor.u32 %v10242_v23, %v7632_v27 }
 0x28e   :  { %6015 = vmatpush.bf16.msra.mxu0 %v7411_v16  ;;  %v10398_v16 = vld [vmem:[%s16306_s1 + $0xbec] sm:$0xf]  ;;  %v7827_v29 = vor.u32 %v10290_v49, %v7824_v17  ;;  %v7808_v28 = vld [vmem:[%s16306_s1 + $0x878] sm:$0xf0]  ;;  %v8131_v0 = vor.u32 %v10366_v54, %v8128_v6 }
 0x28f   :  { %6029 = vmatpush.bf16.msra.mxu1 %v7539_v53  ;;  %v8256_v53 = vld [vmem:[%s16306_s1 + $0xbf8] sm:$0xf0]  ;;  %v10330_v7 = vld [vmem:[%s16306_s1 + $0x9cc] sm:$0xf] }
 0x290   :  { %6043 = vmatpush.bf16.msra.mxu2 %v7667_v59  ;;  %v7507_v59 = vor.u32 %v10210_v9, %v7504_v8  ;;  %v8259_v12 = vor.u32 %v10398_v16, %v8256_v53  ;;  %v7984_v22 = vld [vmem:[%s16306_s1 + $0x9d8] sm:$0xf0]  ;;  %v10394_v14 = vld [vmem:[%s16306_s1 + $0xbcc] sm:$0xf] }
 0x291   :  { %6053 = vmatpush.bf16.msra.mxu3 %v7859_v11  ;;  %v10286_v11 = vld [vmem:[%s16306_s1 + $0x86c] sm:$0xf]  ;;  %v8112_v18 = vld [vmem:[%s16306_s1 + $0xad8] sm:$0xf0]  ;;  %v7987_v9 = vor.u32 %v10330_v7, %v7984_v22 }
 0x292   :  { %6016 = vmatpush.bf16.msra.mxu0 %v7395_v61  ;;  %v10362_v61 = vld [vmem:[%s16306_s1 + $0xacc] sm:$0xf]  ;;  %v7792_v23 = vld [vmem:[%s16306_s1 + $0x858] sm:$0xf0] }
 0x293   :  { %6030 = vmatpush.bf16.msra.mxu1 %v7523_v39  ;;  %v8240_v39 = vld [vmem:[%s16306_s1 + $0xbd8] sm:$0xf0]  ;;  %v10282_v8 = vld [vmem:[%s16306_s1 + $0x84c] sm:$0xf] }
 0x294   :  { %6044 = vmatpush.bf16.msra.mxu2 %v7651_v25  ;;  %v7811_v25 = vor.u32 %v10286_v11, %v7808_v28  ;;  %v8243_v27 = vor.u32 %v10394_v14, %v8240_v39  ;;  %v10326_v49 = vld [vmem:[%s16306_s1 + $0x9ac] sm:$0xf]  ;;  %v7968_v17 = vld [vmem:[%s16306_s1 + $0x9b8] sm:$0xf0]  ;;  %v7795_v6 = vor.u32 %v10282_v8, %v7792_v23 }
 0x295   :  { %6054 = vmatpush.bf16.msra.mxu3 %v7843_v20  ;;  %v8115_v20 = vor.u32 %v10362_v61, %v8112_v18  ;;  %v10358_v1 = vld [vmem:[%s16306_s1 + $0xaac] sm:$0xf]  ;;  %v8096_v10 = vld [vmem:[%s16306_s1 + $0xab8] sm:$0xf0]  ;;  %v15326_v61 = vpop.f32.mrf.mxu2 }
 0x296   :  { %6017 = vmatpush.bf16.msra.mxu0 %v7379_v2  ;;  %v10390_v54 = vld [vmem:[%s16306_s1 + $0xbac] sm:$0xf]  ;;  %v8224_v2 = vld [vmem:[%s16306_s1 + $0xbb8] sm:$0xf0]  ;;  %v8099_v53 = vor.u32 %v10358_v1, %v8096_v10  ;;  %16351 = vst [vmem:[#allocation38_spill] sm:$0xff] %v15326_v61 }
 0x297   :  { %6031 = vmatpush.bf16.msra.mxu1 %v7507_v59  ;;  %v7776_v16 = vld [vmem:[%s16306_s1 + $0x838] sm:$0xf0]  ;;  %v8227_v59 = vor.u32 %v10390_v54, %v8224_v2  ;;  %v10386_v11 = vld [vmem:[%s16306_s1 + $0xb8c] sm:$0xf] }
 0x298   :  { %6045 = vmatpush.bf16.msra.mxu2 %v7635_v58  ;;  %v7952_v58 = vld [vmem:[%s16306_s1 + $0x998] sm:$0xf0]  ;;  %v10274_v7 = vld [vmem:[%s16306_s1 + $0x80c] sm:$0xf] }
 0x299   :  { %6055 = vmatpush.bf16.msra.mxu3 %v7827_v29  ;;  %6018 = vmatmul.bf16.vlgmr.msra.gmra.mxu0 %v11356_v44  ;;  %v7971_v44 = vor.u32 %v10326_v49, %v7968_v17  ;;  %v10354_v29 = vld [vmem:[%s16306_s1 + $0xa8c] sm:$0xf]  ;;  %v8208_v28 = vld [vmem:[%s16306_s1 + $0xb98] sm:$0xf0] }
 0x29a   :  { %6066 = vmatpush.bf16.msrb.mxu0 %v8003_v3  ;;  %6032 = vmatmul.bf16.vlgmr.msra.gmra.mxu1 %v11354_v43  ;;  %v10322_v43 = vld [vmem:[%s16306_s1 + $0x98c] sm:$0xf]  ;;  %v8080_v3 = vld [vmem:[%s16306_s1 + $0xa98] sm:$0xf0]  ;;  %v8211_v14 = vor.u32 %v10386_v11, %v8208_v28 }
 0x29b   :  { %6080 = vmatpush.bf16.msrb.mxu1 %v8131_v0  ;;  %6046 = vmatmul.bf16.vlgmr.msra.gmra.mxu2 %v11364_v47  ;;  %v10278_v47 = vld [vmem:[%s16306_s1 + $0x82c] sm:$0xf]  ;;  %v7760_v22 = vld [vmem:[%s16306_s1 + $0x818] sm:$0xf0]  ;;  %v8083_v18 = vor.u32 %v10354_v29, %v8080_v3 }
 0x29c   :  { %6094 = vmatpush.bf16.msrb.mxu2 %v8259_v12  ;;  %v7779_v0 = vor.u32 %v10278_v47, %v7776_v16  ;;  %v7955_v12 = vor.u32 %v10322_v43, %v7952_v58  ;;  %v10318_v39 = vld [vmem:[%s16306_s1 + $0x96c] sm:$0xf]  ;;  %v8064_v8 = vld [vmem:[%s16306_s1 + $0xa78] sm:$0xf0]  ;;  %v7763_v17 = vor.u32 %v10274_v7, %v7760_v22 }
 0x29d   :  { %6056 = vmatpush.bf16.msra.mxu3 %v7811_v25  ;;  %v7936_v25 = vld [vmem:[%s16306_s1 + $0x978] sm:$0xf0]  ;;  %v10382_v23 = vld [vmem:[%s16306_s1 + $0xb6c] sm:$0xf]  ;;  %v15376_v3 = vpop.f32.mrf.mxu2 }
 0x29e   :  { %6067 = vmatpush.bf16.msrb.mxu0 %v7987_v9  ;;  %v10350_v9 = vld [vmem:[%s16306_s1 + $0xa6c] sm:$0xf]  ;;  %v8384_v49 = vld [vmem:[%s16306_s1 + $0xcf8] sm:$0xf0]  ;;  %v7939_v1 = vor.u32 %v10318_v39, %v7936_v25 }
 0x29f   :  { %6081 = vmatpush.bf16.msrb.mxu1 %v8115_v20  ;;  %v8192_v20 = vld [vmem:[%s16306_s1 + $0xb78] sm:$0xf0]  ;;  %v8067_v10 = vor.u32 %v10350_v9, %v8064_v8  ;;  %v10314_v2 = vld [vmem:[%s16306_s1 + $0x94c] sm:$0xf] }
 0x2a0   :  { %6095 = vmatpush.bf16.msrb.mxu2 %v8243_v27  ;;  %v10430_v27 = vld [vmem:[%s16306_s1 + $0xcec] sm:$0xf]  ;;  %v8195_v54 = vor.u32 %v10382_v23, %v8192_v20  ;;  %v8048_v16 = vld [vmem:[%s16306_s1 + $0xa58] sm:$0xf0] }
 0x2a1   :  { %6057 = vmatpush.bf16.msra.mxu3 %v7795_v6  ;;  %v7920_v6 = vld [vmem:[%s16306_s1 + $0x958] sm:$0xf0]  ;;  %v8387_v47 = vor.u32 %v10430_v27, %v8384_v49  ;;  %v10426_v43 = vld [vmem:[%s16306_s1 + $0xccc] sm:$0xf]  ;;  %v15409_v27 = vpop.f32.mrf.mxu3 }
 0x2a2   :  { %6068 = vmatpush.bf16.msrb.mxu0 %v7971_v44  ;;  %v10346_v44 = vld [vmem:[%s16306_s1 + $0xa4c] sm:$0xf]  ;;  %v8368_v58 = vld [vmem:[%s16306_s1 + $0xcd8] sm:$0xf0]  ;;  %v7923_v29 = vor.u32 %v10314_v2, %v7920_v6  ;;  %16352 = vst [vmem:[#allocation39_spill] sm:$0xff] %v15409_v27 }
 0x2a3   :  { %6082 = vmatpush.bf16.msrb.mxu1 %v8099_v53  ;;  %v10378_v53 = vld [vmem:[%s16306_s1 + $0xb4c] sm:$0xf]  ;;  %v8051_v11 = vor.u32 %v10346_v44, %v8048_v16  ;;  %v8371_v22 = vor.u32 %v10426_v43, %v8368_v58  ;;  %v8160_v39 = vld [vmem:[%s16306_s1 + $0xb38] sm:$0xf0] }
 0x2a4   :  { %6096 = vmatpush.bf16.msrb.mxu2 %v8227_v59  ;;  %v8176_v59 = vld [vmem:[%s16306_s1 + $0xb58] sm:$0xf0]  ;;  %v10342_v7 = vld [vmem:[%s16306_s1 + $0xa2c] sm:$0xf] }
 0x2a5   :  { %6058 = vmatpush.bf16.msra.mxu3 %v7779_v0  ;;  %v8179_v28 = vor.u32 %v10378_v53, %v8176_v59  ;;  %v10310_v0 = vld [vmem:[%s16306_s1 + $0x92c] sm:$0xf]  ;;  %v8352_v9 = vld [vmem:[%s16306_s1 + $0xcb8] sm:$0xf0] }
 0x2a6   :  { %6069 = vmatpush.bf16.msrb.mxu0 %v7955_v12  ;;  %v7904_v12 = vld [vmem:[%s16306_s1 + $0x938] sm:$0xf0]  ;;  %v10422_v25 = vld [vmem:[%s16306_s1 + $0xcac] sm:$0xf] }
 0x2a7   :  { %6083 = vmatpush.bf16.msrb.mxu1 %v8083_v18  ;;  %v8032_v18 = vld [vmem:[%s16306_s1 + $0xa38] sm:$0xf0]  ;;  %v7907_v8 = vor.u32 %v10310_v0, %v7904_v12  ;;  %v10306_v23 = vld [vmem:[%s16306_s1 + $0x90c] sm:$0xf] }
 0x2a8   :  { %6097 = vmatpush.bf16.msrb.mxu2 %v8211_v14  ;;  %v10374_v14 = vld [vmem:[%s16306_s1 + $0xb2c] sm:$0xf]  ;;  %v7888_v20 = vld [vmem:[%s16306_s1 + $0x918] sm:$0xf0] }
 0x2a9   :  { %6059 = vmatpush.bf16.msra.mxu3 %v7763_v17  ;;  %v8163_v49 = vor.u32 %v10374_v14, %v8160_v39  ;;  %v10338_v17 = vld [vmem:[%s16306_s1 + $0xa0c] sm:$0xf]  ;;  %v8144_v2 = vld [vmem:[%s16306_s1 + $0xb18] sm:$0xf0]  ;;  %v7891_v43 = vor.u32 %v10306_v23, %v7888_v20  ;;  %v15455_v14 = vpop.f32.mrf.mxu1  ;;  %v15457_v39 = vpop.f32.mrf.mxu2 }
 0x2aa   :  { %6070 = vmatpush.bf16.msrb.mxu0 %v7939_v1  ;;  %v8016_v1 = vld [vmem:[%s16306_s1 + $0xa18] sm:$0xf0]  ;;  %v10418_v6 = vld [vmem:[%s16306_s1 + $0xc8c] sm:$0xf]  ;;  %16354 = vst [vmem:[#allocation41_spill] sm:$0xff] %v15455_v14 }
 0x2ab   :  { %6084 = vmatpush.bf16.msrb.mxu1 %v8067_v10  ;;  %v10370_v10 = vld [vmem:[%s16306_s1 + $0xb0c] sm:$0xf]  ;;  %v8336_v44 = vld [vmem:[%s16306_s1 + $0xc98] sm:$0xf0] }
 0x2ac   :  { %6098 = vmatpush.bf16.msrb.mxu2 %v8195_v54  ;;  %6060 = vmatmul.bf16.vlgmr.msra.gmra.mxu3 %v11571_v31  ;;  %v8035_v31 = vor.u32 %v10342_v7, %v8032_v18  ;;  %v8355_v54 = vor.u32 %v10422_v25, %v8352_v9  ;;  %v10462_v16 = vld [vmem:[%s16306_s1 + $0xdec] sm:$0xf]  ;;  %v8512_v53 = vld [vmem:[%s16306_s1 + $0xdf8] sm:$0xf0]  ;;  %v8147_v0 = vor.u32 %v10370_v10, %v8144_v2 }
 0x2ad   :  { %6108 = vmatpush.bf16.msrb.mxu3 %v8387_v47  ;;  %v15429_v47 = vpop.f32.mrf.mxu0  ;;  %v10494_v59 = vld [vmem:[%s16306_s1 + $0xeec] sm:$0xf]  ;;  %v8640_v58 = vld [vmem:[%s16306_s1 + $0xef8] sm:$0xf0]  ;;  %v8339_v12 = vor.u32 %v10418_v6, %v8336_v44  ;;  %v8515_v7 = vor.u32 %v10462_v16, %v8512_v53 }
 0x2ae   :  { %6071 = vmatpush.bf16.msrb.mxu0 %v7923_v29  ;;  %16353 = vst [vmem:[#allocation40_spill] sm:$0xff] %v15429_v47  ;;  %v10526_v29 = vld [vmem:[%s16306_s1 + $0xfec] sm:$0xf]  ;;  %v8320_v18 = vld [vmem:[%s16306_s1 + $0xc78] sm:$0xf0]  ;;  %v8643_v25 = vor.u32 %v10494_v59, %v8640_v58 }
 0x2af   :  { %6085 = vmatpush.bf16.msrb.mxu1 %v8051_v11  ;;  %v8768_v11 = vld [vmem:[%s16306_s1 + $0xff8] sm:$0xf0]  ;;  %v10490_v20 = vld [vmem:[%s16306_s1 + $0xecc] sm:$0xf] }
 0x2b0   :  { %6099 = vmatpush.bf16.msrb.mxu2 %v8179_v28  ;;  %v8019_v28 = vor.u32 %v10338_v17, %v8016_v1  ;;  %v8771_v9 = vor.u32 %v10526_v29, %v8768_v11  ;;  %v8496_v23 = vld [vmem:[%s16306_s1 + $0xdd8] sm:$0xf0]  ;;  %v15477_v1 = vpop.f32.mrf.mxu3  ;;  %v10410_v2 = vld [vmem:[%s16306_s1 + $0xc4c] sm:$0xf] }
 0x2b1   :  { %6109 = vmatpush.bf16.msrb.mxu3 %v8371_v22  ;;  %v10414_v22 = vld [vmem:[%s16306_s1 + $0xc6c] sm:$0xf]  ;;  %v8752_v17 = vld [vmem:[%s16306_s1 + $0xfd8] sm:$0xf0] }
 0x2b2   :  { %6072 = vmatpush.bf16.msrb.mxu0 %v7907_v8  ;;  %v10458_v8 = vld [vmem:[%s16306_s1 + $0xdcc] sm:$0xf]  ;;  %v8323_v10 = vor.u32 %v10414_v22, %v8320_v18  ;;  %v8304_v6 = vld [vmem:[%s16306_s1 + $0xc58] sm:$0xf0] }
 0x2b3   :  { %6086 = vmatpush.bf16.msrb.mxu1 %v8035_v31  ;;  %v8624_v31 = vld [vmem:[%s16306_s1 + $0xed8] sm:$0xf0]  ;;  %v10454_v59 = vld [vmem:[%s16306_s1 + $0xdac] sm:$0xf] }
 0x2b4   :  { %6100 = vmatpush.bf16.msrb.mxu2 %v8163_v49  ;;  %v10522_v49 = vld [vmem:[%s16306_s1 + $0xfcc] sm:$0xf]  ;;  %v8627_v16 = vor.u32 %v10490_v20, %v8624_v31  ;;  %v8608_v29 = vld [vmem:[%s16306_s1 + $0xeb8] sm:$0xf0]  ;;  %v15534_v31 = vpop.f32.mrf.mxu2 }
 0x2b5   :  { %6110 = vmatpush.bf16.msrb.mxu3 %v8355_v54  ;;  %v8499_v54 = vor.u32 %v10458_v8, %v8496_v23  ;;  %v15485_v44 = vpop.f32.mrf.mxu0  ;;  %v8755_v53 = vor.u32 %v10522_v49, %v8752_v17  ;;  %v10486_v58 = vld [vmem:[%s16306_s1 + $0xeac] sm:$0xf]  ;;  %v8592_v8 = vld [vmem:[%s16306_s1 + $0xe98] sm:$0xf0] }
 0x2b6   :  { %6073 = vmatpush.bf16.msrb.mxu0 %v7891_v43  ;;  %v8480_v43 = vld [vmem:[%s16306_s1 + $0xdb8] sm:$0xf0]  ;;  %v10518_v11 = vld [vmem:[%s16306_s1 + $0xfac] sm:$0xf]  ;;  %v8611_v22 = vor.u32 %v10486_v58, %v8608_v29 }
 0x2b7   :  { %6087 = vmatpush.bf16.msrb.mxu1 %v8019_v28  ;;  %v8736_v28 = vld [vmem:[%s16306_s1 + $0xfb8] sm:$0xf0]  ;;  %v10514_v23 = vld [vmem:[%s16306_s1 + $0xf8c] sm:$0xf] }
 0x2b8   :  { %6101 = vmatpush.bf16.msrb.mxu2 %v8147_v0  ;;  %v8307_v0 = vor.u32 %v10410_v2, %v8304_v6  ;;  %v8739_v18 = vor.u32 %v10518_v11, %v8736_v28  ;;  %v8720_v20 = vld [vmem:[%s16306_s1 + $0xf98] sm:$0xf0]  ;;  %v15542_v2 = vpop.f32.mrf.mxu3  ;;  %v10510_v29 = vld [vmem:[%s16306_s1 + $0xf6c] sm:$0xf] }
 0x2b9   :  { %6111 = vmatpush.bf16.msrb.mxu3 %v8339_v12  ;;  %6074 = vmatmul.bf16.vlgmr.msrb.gmra.mxu0 %v11584_v36  ;;  %v8483_v36 = vor.u32 %v10454_v59, %v8480_v43  ;;  %v8288_v12 = vld [vmem:[%s16306_s1 + $0xc38] sm:$0xf0]  ;;  %v10478_v43 = vld [vmem:[%s16306_s1 + $0xe6c] sm:$0xf] }
 0x2ba   :  { %6122 = vmatpush.bf16.msra.mxu0 %v8515_v7  ;;  %6088 = vmatmul.bf16.vlgmr.msrb.gmra.mxu1 %v11582_v35  ;;  %v15514_v7 = vpop.f32.mrf.mxu1  ;;  %v10450_v35 = vld [vmem:[%s16306_s1 + $0xd8c] sm:$0xf]  ;;  %v8448_v59 = vld [vmem:[%s16306_s1 + $0xd78] sm:$0xf0] }
 0x2bb   :  { %6136 = vmatpush.bf16.msra.mxu1 %v8643_v25  ;;  %6102 = vmatmul.bf16.vlgmr.msrb.gmra.mxu2 %v11592_v40  ;;  %v10406_v40 = vld [vmem:[%s16306_s1 + $0xc2c] sm:$0xf]  ;;  %v8464_v25 = vld [vmem:[%s16306_s1 + $0xd98] sm:$0xf0] }
 0x2bc   :  { %6150 = vmatpush.bf16.msra.mxu2 %v8771_v9  ;;  %v10482_v9 = vld [vmem:[%s16306_s1 + $0xe8c] sm:$0xf]  ;;  %v8291_v49 = vor.u32 %v10406_v40, %v8288_v12  ;;  %v8467_v17 = vor.u32 %v10450_v35, %v8464_v25  ;;  %v8576_v58 = vld [vmem:[%s16306_s1 + $0xe78] sm:$0xf0] }
 0x2bd   :  { %6112 = vmatpush.bf16.msrb.mxu3 %v8323_v10  ;;  %v10402_v10 = vld [vmem:[%s16306_s1 + $0xc0c] sm:$0xf]  ;;  %v8595_v6 = vor.u32 %v10482_v9, %v8592_v8  ;;  %v8704_v11 = vld [vmem:[%s16306_s1 + $0xf78] sm:$0xf0]  ;;  %v15562_v28 = vpop.f32.mrf.mxu0 }
 0x2be   :  { %6123 = vmatpush.bf16.msra.mxu0 %v8499_v54  ;;  %v8272_v54 = vld [vmem:[%s16306_s1 + $0xc18] sm:$0xf0]  ;;  %v10442_v35 = vld [vmem:[%s16306_s1 + $0xd4c] sm:$0xf] }
 0x2bf   :  { %6137 = vmatpush.bf16.msra.mxu1 %v8627_v16  ;;  %v8723_v16 = vor.u32 %v10514_v23, %v8720_v20  ;;  %v8275_v40 = vor.u32 %v10402_v10, %v8272_v54  ;;  %v8432_v25 = vld [vmem:[%s16306_s1 + $0xd58] sm:$0xf0]  ;;  %v10474_v9 = vld [vmem:[%s16306_s1 + $0xe4c] sm:$0xf] }
 0x2c0   :  { %6151 = vmatpush.bf16.msra.mxu2 %v8755_v53  ;;  %v10446_v53 = vld [vmem:[%s16306_s1 + $0xd6c] sm:$0xf]  ;;  %v8560_v23 = vld [vmem:[%s16306_s1 + $0xe58] sm:$0xf0] }
 0x2c1   :  { %6113 = vmatpush.bf16.msrb.mxu3 %v8307_v0  ;;  %v10558_v0 = vld [vmem:[%s16306_s1 + $0x10ec] sm:$0xf]  ;;  %v8451_v12 = vor.u32 %v10446_v53, %v8448_v59  ;;  %v8880_v54 = vld [vmem:[%s16306_s1 + $0x10d8] sm:$0xf0]  ;;  %v8563_v53 = vor.u32 %v10474_v9, %v8560_v23 }
 0x2c2   :  { %6124 = vmatpush.bf16.msra.mxu0 %v8483_v36  ;;  %v8896_v36 = vld [vmem:[%s16306_s1 + $0x10f8] sm:$0xf0]  ;;  %v10506_v20 = vld [vmem:[%s16306_s1 + $0xf4c] sm:$0xf] }
 0x2c3   :  { %6138 = vmatpush.bf16.msra.mxu1 %v8611_v22  ;;  %v8579_v22 = vor.u32 %v10478_v43, %v8576_v58  ;;  %v8899_v8 = vor.u32 %v10558_v0, %v8896_v36  ;;  %v10554_v10 = vld [vmem:[%s16306_s1 + $0x10cc] sm:$0xf]  ;;  %v8416_v58 = vld [vmem:[%s16306_s1 + $0xd38] sm:$0xf0] }
 0x2c4   :  { %6152 = vmatpush.bf16.msra.mxu2 %v8739_v18  ;;  %v8707_v18 = vor.u32 %v10510_v29, %v8704_v11  ;;  %v10438_v43 = vld [vmem:[%s16306_s1 + $0xd2c] sm:$0xf]  ;;  %v8883_v11 = vor.u32 %v10554_v10, %v8880_v54  ;;  %v8544_v0 = vld [vmem:[%s16306_s1 + $0xe38] sm:$0xf0] }
 0x2c5   :  { %6114 = vmatpush.bf16.msrb.mxu3 %v8291_v49  ;;  %v8688_v49 = vld [vmem:[%s16306_s1 + $0xf58] sm:$0xf0]  ;;  %v10470_v29 = vld [vmem:[%s16306_s1 + $0xe2c] sm:$0xf] }
 0x2c6   :  { %6125 = vmatpush.bf16.msra.mxu0 %v8467_v17  ;;  %v15588_v17 = vpop.f32.mrf.mxu1  ;;  %v8691_v59 = vor.u32 %v10506_v20, %v8688_v49  ;;  %v10502_v36 = vld [vmem:[%s16306_s1 + $0xf2c] sm:$0xf]  ;;  %v8400_v9 = vld [vmem:[%s16306_s1 + $0xd18] sm:$0xf0] }
 0x2c7   :  { %6139 = vmatpush.bf16.msra.mxu1 %v8595_v6  ;;  %v8435_v6 = vor.u32 %v10442_v35, %v8432_v25  ;;  %v8419_v35 = vor.u32 %v10438_v43, %v8416_v58  ;;  %v10434_v25 = vld [vmem:[%s16306_s1 + $0xd0c] sm:$0xf]  ;;  %v8528_v49 = vld [vmem:[%s16306_s1 + $0xe18] sm:$0xf0] }
 0x2c8   :  { %6153 = vmatpush.bf16.msra.mxu2 %v8723_v16  ;;  %v15596_v16 = vpop.f32.mrf.mxu2  ;;  %v10466_v20 = vld [vmem:[%s16306_s1 + $0xe0c] sm:$0xf]  ;;  %v9024_v58 = vld [vmem:[%s16306_s1 + $0x11f8] sm:$0xf0] }
 0x2c9   :  { %6115 = vmatpush.bf16.msrb.mxu3 %v8275_v40  ;;  %v8672_v40 = vld [vmem:[%s16306_s1 + $0xf38] sm:$0xf0]  ;;  %v10498_v10 = vld [vmem:[%s16306_s1 + $0xf0c] sm:$0xf] }
 0x2ca   :  { %6126 = vmatpush.bf16.msra.mxu0 %v8451_v12  ;;  %v15616_v12 = vpop.f32.mrf.mxu3  ;;  %v8675_v23 = vor.u32 %v10502_v36, %v8672_v40  ;;  %v10590_v43 = vld [vmem:[%s16306_s1 + $0x11ec] sm:$0xf]  ;;  %v9280_v40 = vld [vmem:[%s16306_s1 + $0x13f8] sm:$0xf0] }
 0x2cb   :  { %6140 = vmatpush.bf16.msra.mxu1 %v8579_v22  ;;  %v10550_v22 = vld [vmem:[%s16306_s1 + $0x10ac] sm:$0xf]  ;;  %v9027_v14 = vor.u32 %v10590_v43, %v9024_v58  ;;  %v8832_v27 = vld [vmem:[%s16306_s1 + $0x1078] sm:$0xf0]  ;;  %v15705_v43 = vld [vmem:[%s16308_s2] sm:$0xf] }
 0x2cc   :  { %6154 = vmatpush.bf16.msra.mxu2 %v8707_v18  ;;  %6116 = vmatmul.bf16.vlgmr.msrb.gmra.mxu3 %v11799_v32  ;;  %v8864_v18 = vld [vmem:[%s16306_s1 + $0x10b8] sm:$0xf0]  ;;  %v8547_v32 = vor.u32 %v10470_v29, %v8544_v0  ;;  %v10622_v29 = vld [vmem:[%s16306_s1 + $0x12ec] sm:$0xf]  ;;  %v835_v58 = vperm.slane %v15705_v43, 2 }
 0x2cd   :  { %6164 = vmatpush.bf16.msra.mxu3 %v8899_v8  ;;  %v15631_v8 = vpop.f32.mrf.mxu0  ;;  %v8867_v54 = vor.u32 %v10550_v22, %v8864_v18  ;;  %v9152_v0 = vld [vmem:[%s16306_s1 + $0x12f8] sm:$0xf0]  ;;  %v10654_v36 = vld [vmem:[%s16306_s1 + $0x13ec] sm:$0xf] }
 0x2ce   :  { %6127 = vmatpush.bf16.msra.mxu0 %v8435_v6  ;;  %v8656_v6 = vld [vmem:[%s16306_s1 + $0xf18] sm:$0xf0]  ;;  %v15669_v22 = vpop.f32.mrf.mxu1  ;;  %v10542_v47 = vld [vmem:[%s16306_s1 + $0x106c] sm:$0xf]  ;;  %v9155_v61 = vor.u32 %v10622_v29, %v9152_v0  ;;  %v9283_v19 = vor.u32 %v10654_v36, %v9280_v40 }
 0x2cf   :  { %6141 = vmatpush.bf16.msra.mxu1 %v8563_v53  ;;  %v10546_v53 = vld [vmem:[%s16306_s1 + $0x108c] sm:$0xf]  ;;  %v8835_v29 = vor.u32 %v10542_v47, %v8832_v27  ;;  %v8992_v27 = vld [vmem:[%s16306_s1 + $0x11b8] sm:$0xf0] }
 0x2d0   :  { %6155 = vmatpush.bf16.msra.mxu2 %v8691_v59  ;;  %v8848_v59 = vld [vmem:[%s16306_s1 + $0x1098] sm:$0xf0]  ;;  %v15671_v18 = vpop.f32.mrf.mxu2  ;;  %v10614_v47 = vld [vmem:[%s16306_s1 + $0x12ac] sm:$0xf] }
 0x2d1   :  { %6165 = vmatpush.bf16.msra.mxu3 %v8883_v11  ;;  %v8403_v11 = vor.u32 %v10434_v25, %v8400_v9  ;;  %v8659_v25 = vor.u32 %v10498_v10, %v8656_v6  ;;  %v8851_v9 = vor.u32 %v10546_v53, %v8848_v59  ;;  %v10650_v10 = vld [vmem:[%s16306_s1 + $0x13cc] sm:$0xf]  ;;  %v16355_v6 = vperm.slane %v12062_v4, 0 }
 0x2d2   :  { %6128 = vmatpush.bf16.msra.mxu0 %v8419_v35  ;;  %v8531_v35 = vor.u32 %v10466_v20, %v8528_v49  ;;  %v10618_v20 = vld [vmem:[%s16306_s1 + $0x12cc] sm:$0xf]  ;;  %v9136_v49 = vld [vmem:[%s16306_s1 + $0x12d8] sm:$0xf0]  ;;  %v15700_v59 = vpop.f32.mrf.mxu3 }
 0x2d3   :  { %6142 = vmatpush.bf16.msra.mxu1 %v8547_v32  ;;  %v10586_v32 = vld [vmem:[%s16306_s1 + $0x11cc] sm:$0xf]  ;;  %v4902_v53 = vadd.f32 %v12256_v21, %v16355_v6  ;;  %v8816_v21 = vld [vmem:[%s16306_s1 + $0x1058] sm:$0xf0]  ;;  %v9139_v36 = vor.u32 %v10618_v20, %v9136_v49 }
 0x2d4   :  { %6156 = vmatpush.bf16.msra.mxu2 %v8675_v23  ;;  %v9008_v23 = vld [vmem:[%s16306_s1 + $0x11d8] sm:$0xf0]  ;;  %v10538_v4 = vld [vmem:[%s16306_s1 + $0x104c] sm:$0xf] }
 0x2d5   :  { %6166 = vmatpush.bf16.msra.mxu3 %v8867_v54  ;;  %v9264_v54 = vld [vmem:[%s16306_s1 + $0x13d8] sm:$0xf0]  ;;  %v15714_v0 = vpop.f32.mrf.mxu0 }
 0x2d6   :  { %6129 = vmatpush.bf16.msra.mxu0 %v8403_v11  ;;  %v9011_v11 = vor.u32 %v10586_v32, %v9008_v23  ;;  %v9267_v40 = vor.u32 %v10650_v10, %v9264_v54  ;;  %v8800_v32 = vld [vmem:[%s16306_s1 + $0x1038] sm:$0xf0]  ;;  %v5600_v23 = vadd.f32 %v15376_v3, %v835_v58  ;;  %v15745_v20 = vpop.f32.mrf.mxu1  ;;  %v10578_v10 = vld [vmem:[%s16306_s1 + $0x118c] sm:$0xf] }
 0x2d7   :  { %6143 = vmatpush.bf16.msra.mxu1 %v8531_v35  ;;  %v9248_v35 = vld [vmem:[%s16306_s1 + $0x13b8] sm:$0xf0]  ;;  %v10610_v3 = vld [vmem:[%s16306_s1 + $0x128c] sm:$0xf] }
 0x2d8   :  { %6157 = vmatpush.bf16.msra.mxu2 %v8659_v25  ;;  %v4916_v25 = vadd.f32 %v12288_v45, %v4902_v53  ;;  %v15747_v49 = vpop.f32.mrf.mxu2  ;;  %v8976_v54 = vld [vmem:[%s16306_s1 + $0x1198] sm:$0xf0]  ;;  %v10642_v53 = vld [vmem:[%s16306_s1 + $0x138c] sm:$0xf] }
 0x2d9   :  { %6167 = vmatpush.bf16.msra.mxu3 %v8851_v9  ;;  %6130 = vmatmul.bf16.vlgmr.msra.gmra.mxu0 %v11812_v41  ;;  %v8819_v41 = vor.u32 %v10538_v4, %v8816_v21  ;;  %v10534_v9 = vld [vmem:[%s16306_s1 + $0x102c] sm:$0xf]  ;;  %v9104_v6 = vld [vmem:[%s16306_s1 + $0x1298] sm:$0xf0]  ;;  %v5602_v21 = vadd.f32 %v15457_v39, %v835_v58 }
 0x2da   :  { %6178 = vmatpush.bf16.msrb.mxu0 %v9027_v14  ;;  %v10582_v14 = vld [vmem:[%s16306_s1 + $0x11ac] sm:$0xf]  ;;  %6144 = vmatmul.bf16.vlgmr.msra.gmra.mxu1 %v11810_v38  ;;  %v15768_v4 = vpop.f32.mrf.mxu3 }
 0x2db   :  { %6192 = vmatpush.bf16.msrb.mxu1 %v9155_v61  ;;  %6158 = vmatmul.bf16.vlgmr.msra.gmra.mxu2 %v11820_v46  ;;  %v10646_v61 = vld [vmem:[%s16306_s1 + $0x13ac] sm:$0xf]  ;;  %v8995_v46 = vor.u32 %v10582_v14, %v8992_v27  ;;  %v8784_v27 = vld [vmem:[%s16306_s1 + $0x1018] sm:$0xf0] }
 0x2dc   :  { %6206 = vmatpush.bf16.msrb.mxu2 %v9283_v19  ;;  %v9120_v19 = vld [vmem:[%s16306_s1 + $0x12b8] sm:$0xf0]  ;;  %v9251_v45 = vor.u32 %v10646_v61, %v9248_v35  ;;  %v10530_v14 = vld [vmem:[%s16306_s1 + $0x100c] sm:$0xf] }
 0x2dd   :  { %6168 = vmatpush.bf16.msra.mxu3 %v8835_v29  ;;  %v9123_v38 = vor.u32 %v10614_v47, %v9120_v19  ;;  %v9232_v29 = vld [vmem:[%s16306_s1 + $0x1398] sm:$0xf0]  ;;  %v5614_v47 = vadd.f32 %v15477_v1, %v5600_v23  ;;  %v15778_v19 = vpop.f32.mrf.mxu0  ;;  %v10574_v58 = vld [vmem:[%s16306_s1 + $0x116c] sm:$0xf] }
 0x2de   :  { %6179 = vmatpush.bf16.msrb.mxu0 %v9011_v11  ;;  %v4930_v11 = vadd.f32 %v12320_v5, %v4916_v25  ;;  %v9107_v5 = vor.u32 %v10610_v3, %v9104_v6  ;;  %v9235_v39 = vor.u32 %v10642_v53, %v9232_v29  ;;  %v8960_v61 = vld [vmem:[%s16306_s1 + $0x1178] sm:$0xf0]  ;;  %v10606_v35 = vld [vmem:[%s16306_s1 + $0x126c] sm:$0xf]  ;;  %v15810_v3 = vpop.f32.mrf.mxu1 }
 0x2df   :  { %6193 = vmatpush.bf16.msrb.mxu1 %v9139_v36  ;;  %v8803_v36 = vor.u32 %v10534_v9, %v8800_v32  ;;  %v9088_v1 = vld [vmem:[%s16306_s1 + $0x1278] sm:$0xf0]  ;;  %v10638_v25 = vld [vmem:[%s16306_s1 + $0x136c] sm:$0xf]  ;;  %v16356_v9 = vperm.slane %v13399_v50, 1 }
 0x2e0   :  { %6207 = vmatpush.bf16.msrb.mxu2 %v9267_v40  ;;  %v8979_v40 = vor.u32 %v10578_v10, %v8976_v54  ;;  %v10686_v23 = vld [vmem:[%s16306_s1 + $0x14ec] sm:$0xf]  ;;  %v8787_v10 = vor.u32 %v10530_v14, %v8784_v27  ;;  %v8963_v54 = vor.u32 %v10574_v58, %v8960_v61  ;;  %v15812_v50 = vpop.f32.mrf.mxu2  ;;  %v9392_v27 = vld [vmem:[%s16306_s1 + $0x14d8] sm:$0xf0] }
 0x2e1   :  { %6169 = vmatpush.bf16.msra.mxu3 %v8819_v41  ;;  %v9216_v41 = vld [vmem:[%s16306_s1 + $0x1378] sm:$0xf0]  ;;  %v5252_v32 = vadd.f32 %v13525_v63, %v16356_v9  ;;  %v9091_v63 = vor.u32 %v10606_v35, %v9088_v1  ;;  %v10570_v53 = vld [vmem:[%s16306_s1 + $0x114c] sm:$0xf] }
 0x2e2   :  { %6180 = vmatpush.bf16.msrb.mxu0 %v8995_v46  ;;  %v4944_v46 = vadd.f32 %v12334_v15, %v4930_v11  ;;  %v5628_v15 = vadd.f32 %v15485_v44, %v5614_v47  ;;  %v9219_v6 = vor.u32 %v10638_v25, %v9216_v41  ;;  %v10602_v44 = vld [vmem:[%s16306_s1 + $0x124c] sm:$0xf]  ;;  %v9072_v11 = vld [vmem:[%s16306_s1 + $0x1258] sm:$0xf0]  ;;  %v15842_v61 = vpop.f32.mrf.mxu3 }
 0x2e3   :  { %6194 = vmatpush.bf16.msrb.mxu1 %v9123_v38  ;;  %v9408_v38 = vld [vmem:[%s16306_s1 + $0x14f8] sm:$0xf0]  ;;  %v10682_v14 = vld [vmem:[%s16306_s1 + $0x14cc] sm:$0xf]  ;;  %v5266_v47 = vadd.f32 %v13578_v42, %v5252_v32 }
 0x2e4   :  { %6208 = vmatpush.bf16.msrb.mxu2 %v9251_v45  ;;  %v5616_v45 = vadd.f32 %v15542_v2, %v5602_v21  ;;  %v8944_v2 = vld [vmem:[%s16306_s1 + $0x1158] sm:$0xf0]  ;;  %v9411_v29 = vor.u32 %v10686_v23, %v9408_v38  ;;  %v10634_v21 = vld [vmem:[%s16306_s1 + $0x134c] sm:$0xf]  ;;  %v5642_v58 = vadd.f32 %v15514_v7, %v5628_v15  ;;  %v9395_v7 = vor.u32 %v10682_v14, %v9392_v27 }
 0x2e5   :  { %6170 = vmatpush.bf16.msra.mxu3 %v8803_v36  ;;  %v9200_v36 = vld [vmem:[%s16306_s1 + $0x1358] sm:$0xf0]  ;;  %v10566_v1 = vld [vmem:[%s16306_s1 + $0x112c] sm:$0xf]  ;;  %v15862_v9 = vpop.f32.mrf.mxu0 }
 0x2e6   :  { %6181 = vmatpush.bf16.msrb.mxu0 %v8979_v40  ;;  %v4958_v40 = vadd.f32 %v12499_v57, %v4944_v46  ;;  %v9075_v57 = vor.u32 %v10602_v44, %v9072_v11  ;;  %v9203_v35 = vor.u32 %v10634_v21, %v9200_v36  ;;  %v8928_v42 = vld [vmem:[%s16306_s1 + $0x1138] sm:$0xf0]  ;;  %v10630_v41 = vld [vmem:[%s16306_s1 + $0x132c] sm:$0xf]  ;;  %v15901_v36 = vpop.f32.mrf.mxu1 }
 0x2e7   :  { %6195 = vmatpush.bf16.msrb.mxu1 %v9107_v5  ;;  %v5630_v5 = vadd.f32 %v15562_v28, %v5616_v45  ;;  %v10598_v28 = vld [vmem:[%s16306_s1 + $0x122c] sm:$0xf]  ;;  %v9056_v25 = vld [vmem:[%s16306_s1 + $0x1238] sm:$0xf0]  ;;  %v5280_v45 = vadd.f32 %v13592_v13, %v5266_v47 }
 0x2e8   :  { %6209 = vmatpush.bf16.msrb.mxu2 %v9235_v39  ;;  %v8947_v39 = vor.u32 %v10570_v53, %v8944_v2  ;;  %v9184_v46 = vld [vmem:[%s16306_s1 + $0x1338] sm:$0xf0]  ;;  %v10678_v32 = vld [vmem:[%s16306_s1 + $0x14ac] sm:$0xf]  ;;  %v4972_v38 = vadd.f32 %v12507_v62, %v4958_v40  ;;  %v15903_v40 = vpop.f32.mrf.mxu2 }
 0x2e9   :  { %6171 = vmatpush.bf16.msra.mxu3 %v8787_v10  ;;  %v9376_v23 = vld [vmem:[%s16306_s1 + $0x14b8] sm:$0xf0]  ;;  %v5644_v10 = vadd.f32 %v15588_v17, %v5630_v5  ;;  %v9187_v62 = vor.u32 %v10630_v41, %v9184_v46  ;;  %v10594_v13 = vld [vmem:[%s16306_s1 + $0x120c] sm:$0xf]  ;;  %v5294_v47 = vadd.f32 %v13619_v37, %v5280_v45 }
 0x2ea   :  { %6182 = vmatpush.bf16.msrb.mxu0 %v8963_v54  ;;  %v8931_v54 = vor.u32 %v10566_v1, %v8928_v42  ;;  %v8912_v15 = vld [vmem:[%s16306_s1 + $0x1118] sm:$0xf0]  ;;  %v10626_v53 = vld [vmem:[%s16306_s1 + $0x130c] sm:$0xf]  ;;  %v4986_v21 = vadd.f32 %v12548_v30, %v4972_v38 }
 0x2eb   :  { %6196 = vmatpush.bf16.msrb.mxu1 %v9091_v63  ;;  %v5656_v63 = vadd.f32 %v15534_v31, %v5642_v58  ;;  %v9040_v17 = vld [vmem:[%s16306_s1 + $0x1218] sm:$0xf0]  ;;  %v5658_v2 = vadd.f32 %v15596_v16, %v5644_v10  ;;  %v9379_v31 = vor.u32 %v10678_v32, %v9376_v23  ;;  %v10718_v16 = vld [vmem:[%s16306_s1 + $0x15ec] sm:$0xf] }
 0x2ec   :  { %6210 = vmatpush.bf16.msrb.mxu2 %v9219_v6  ;;  %6172 = vmatmul.bf16.vlgmr.msra.gmra.mxu3 %v12027_v51  ;;  %v10562_v51 = vld [vmem:[%s16306_s1 + $0x110c] sm:$0xf]  ;;  %v9059_v6 = vor.u32 %v10598_v28, %v9056_v25  ;;  %v9168_v44 = vld [vmem:[%s16306_s1 + $0x1318] sm:$0xf0]  ;;  %v9043_v37 = vor.u32 %v10594_v13, %v9040_v17 }
 0x2ed   :  { %6220 = vmatpush.bf16.msrb.mxu3 %v9411_v29  ;;  %v10674_v29 = vld [vmem:[%s16306_s1 + $0x148c] sm:$0xf]  ;;  %v9360_v11 = vld [vmem:[%s16306_s1 + $0x1498] sm:$0xf0]  ;;  %v8915_v30 = vor.u32 %v10562_v51, %v8912_v15  ;;  %v9171_v1 = vor.u32 %v10626_v53, %v9168_v44  ;;  %v5672_v42 = vadd.f32 %v15700_v59, %v5658_v2  ;;  %v15935_v46 = vpop.f32.mrf.mxu0 }
 0x2ee   :  { %6183 = vmatpush.bf16.msrb.mxu0 %v8947_v39  ;;  %v9536_v14 = vld [vmem:[%s16306_s1 + $0x15f8] sm:$0xf0]  ;;  %v10750_v27 = vld [vmem:[%s16306_s1 + $0x16ec] sm:$0xf]  ;;  %v9363_v28 = vor.u32 %v10674_v29, %v9360_v11 }
 0x2ef   :  { %6197 = vmatpush.bf16.msrb.mxu1 %v9075_v57  ;;  %v9664_v5 = vld [vmem:[%s16306_s1 + $0x16f8] sm:$0xf0]  ;;  %v10782_v39 = vld [vmem:[%s16306_s1 + $0x17ec] sm:$0xf]  ;;  %v5670_v57 = vadd.f32 %v15616_v12, %v5656_v63  ;;  %v5000_v12 = vadd.f32 %v12559_v52, %v4986_v21  ;;  %v5686_v10 = vadd.f32 %v15714_v0, %v5672_v42  ;;  %v16357_v63 = vld [vmem:[#allocation20_spill] sm:$0xff] }
 0x2f0   :  { %6211 = vmatpush.bf16.msrb.mxu2 %v9203_v35  ;;  %v9792_v58 = vld [vmem:[%s16306_s1 + $0x17f8] sm:$0xf0]  ;;  %v15925_v35 = vpop.f32.mrf.mxu3  ;;  %v10670_v25 = vld [vmem:[%s16306_s1 + $0x146c] sm:$0xf]  ;;  %v9667_v32 = vor.u32 %v10750_v27, %v9664_v5  ;;  %v15968_v44 = vpop.f32.mrf.mxu2 }
 0x2f1   :  { %6221 = vmatpush.bf16.msrb.mxu3 %v9395_v7  ;;  %v9539_v7 = vor.u32 %v10718_v16, %v9536_v14  ;;  %v9344_v41 = vld [vmem:[%s16306_s1 + $0x1478] sm:$0xf0]  ;;  %v9795_v23 = vor.u32 %v10782_v39, %v9792_v58  ;;  %v10714_v59 = vld [vmem:[%s16306_s1 + $0x15cc] sm:$0xf]  ;;  %v5014_v15 = vadd.f32 %v12706_v24, %v5000_v12  ;;  %v5700_v14 = vadd.f32 %v15745_v20, %v5686_v10 }
 0x2f2   :  { %6184 = vmatpush.bf16.msrb.mxu0 %v8931_v54  ;;  %v9520_v38 = vld [vmem:[%s16306_s1 + $0x15d8] sm:$0xf0]  ;;  %v10746_v45 = vld [vmem:[%s16306_s1 + $0x16cc] sm:$0xf]  ;;  %v9347_v0 = vor.u32 %v10670_v25, %v9344_v41 }
 0x2f3   :  { %6198 = vmatpush.bf16.msrb.mxu1 %v9059_v6  ;;  %v9648_v52 = vld [vmem:[%s16306_s1 + $0x16d8] sm:$0xf0]  ;;  %v10778_v54 = vld [vmem:[%s16306_s1 + $0x17cc] sm:$0xf]  ;;  %v5308_v6 = vadd.f32 %v16357_v63, %v5294_v47  ;;  %v9523_v13 = vor.u32 %v10714_v59, %v9520_v38  ;;  %v16361_v59 = vld [vmem:[#allocation4_spill] sm:$0xff] }
 0x2f4   :  { %6212 = vmatpush.bf16.msrb.mxu2 %v9187_v62  ;;  %v9776_v51 = vld [vmem:[%s16306_s1 + $0x17d8] sm:$0xf0]  ;;  %v5684_v62 = vadd.f32 %v15631_v8, %v5670_v57  ;;  %v10666_v17 = vld [vmem:[%s16306_s1 + $0x144c] sm:$0xf]  ;;  %v9651_v8 = vor.u32 %v10746_v45, %v9648_v52 }
 0x2f5   :  { %6222 = vmatpush.bf16.msrb.mxu3 %v9379_v31  ;;  %v9328_v53 = vld [vmem:[%s16306_s1 + $0x1458] sm:$0xf0]  ;;  %v15966_v31 = vpop.f32.mrf.mxu1  ;;  %v9779_v29 = vor.u32 %v10778_v54, %v9776_v51  ;;  %v10710_v11 = vld [vmem:[%s16306_s1 + $0x15ac] sm:$0xf]  ;;  %v16025_v52 = vpop.f32.mrf.mxu0 }
 0x2f6   :  { %6185 = vmatpush.bf16.msrb.mxu0 %v8915_v30  ;;  %v16358_v2 = vld [vmem:[#allocation21_spill] sm:$0xff]  ;;  %v10742_v16 = vld [vmem:[%s16306_s1 + $0x16ac] sm:$0xf]  ;;  %v5698_v20 = vadd.f32 %v15669_v22, %v5684_v62 }
 0x2f7   :  { %6199 = vmatpush.bf16.msrb.mxu1 %v9043_v37  ;;  %v5322_v24 = vadd.f32 %v16358_v2, %v5308_v6  ;;  %v9504_v21 = vld [vmem:[%s16306_s1 + $0x15b8] sm:$0xf0]  ;;  %v10774_v47 = vld [vmem:[%s16306_s1 + $0x17ac] sm:$0xf]  ;;  %v16363_v6 = vld [vmem:[#allocation24_spill] sm:$0xff] }
 0x2f8   :  { %6213 = vmatpush.bf16.msrb.mxu2 %v9171_v1  ;;  %v9632_v27 = vld [vmem:[%s16306_s1 + $0x16b8] sm:$0xf0]  ;;  %v16359_v5 = vld [vmem:[#allocation3_spill] sm:$0xff]  ;;  %v9507_v58 = vor.u32 %v10710_v11, %v9504_v21  ;;  %v16360_v1 = vld [vmem:[#allocation22_spill] sm:$0xff]  ;;  %v5712_v41 = vadd.f32 %v15671_v18, %v5698_v20 }
 0x2f9   :  { %6223 = vmatpush.bf16.msrb.mxu3 %v9363_v28  ;;  %6186 = vmatmul.bf16.vlgmr.msrb.gmra.mxu0 %v12040_v56  ;;  %v9760_v30 = vld [vmem:[%s16306_s1 + $0x17b8] sm:$0xf0]  ;;  %v5028_v39 = vadd.f32 %v16359_v5, %v5014_v15  ;;  %v5714_v56 = vadd.f32 %v15747_v49, %v5700_v14  ;;  %v10662_v57 = vld [vmem:[%s16306_s1 + $0x142c] sm:$0xf]  ;;  %v5336_v42 = vadd.f32 %v16360_v1, %v5322_v24  ;;  %v16002_v28 = vpop.f32.mrf.mxu3  ;;  %v16366_v1 = vld [vmem:[#allocation6_spill] sm:$0xff] }
 0x2fa   :  { %6234 = vmatpush.bf16.msra.mxu0 %v9539_v7  ;;  %6200 = vmatmul.bf16.vlgmr.msrb.gmra.mxu1 %v12038_v55  ;;  %v9312_v37 = vld [vmem:[%s16306_s1 + $0x1438] sm:$0xf0]  ;;  %v9635_v55 = vor.u32 %v10742_v16, %v9632_v27  ;;  %v9763_v22 = vor.u32 %v10774_v47, %v9760_v30  ;;  %v10706_v49 = vld [vmem:[%s16306_s1 + $0x158c] sm:$0xf]  ;;  %v5726_v2 = vadd.f32 %v15768_v4, %v5712_v41  ;;  %v16059_v4 = vpop.f32.mrf.mxu2  ;;  %v16367_v41 = vld [vmem:[#allocation26_spill] sm:$0xff] }
 0x2fb   :  { %6248 = vmatpush.bf16.msra.mxu1 %v9667_v32  ;;  %6214 = vmatmul.bf16.vlgmr.msrb.gmra.mxu2 %v12048_v60  ;;  %v9331_v60 = vor.u32 %v10666_v17, %v9328_v53  ;;  %v9488_v7 = vld [vmem:[%s16306_s1 + $0x1598] sm:$0xf0]  ;;  %v10738_v25 = vld [vmem:[%s16306_s1 + $0x168c] sm:$0xf]  ;;  %v5042_v38 = vadd.f32 %v16361_v59, %v5028_v39  ;;  %v5728_v18 = vadd.f32 %v15842_v61, %v5714_v56 }
 0x2fc   :  { %6262 = vmatpush.bf16.msra.mxu2 %v9795_v23  ;;  %v9616_v12 = vld [vmem:[%s16306_s1 + $0x1698] sm:$0xf0]  ;;  %v10770_v32 = vld [vmem:[%s16306_s1 + $0x178c] sm:$0xf]  ;;  %v9315_v54 = vor.u32 %v10662_v57, %v9312_v37  ;;  %v9491_v51 = vor.u32 %v10706_v49, %v9488_v7  ;;  %v5740_v5 = vadd.f32 %v15778_v19, %v5726_v2 }
 0x2fd   :  { %6224 = vmatpush.bf16.msrb.mxu3 %v9347_v0  ;;  %v9744_v23 = vld [vmem:[%s16306_s1 + $0x1798] sm:$0xf0]  ;;  %v16362_v45 = vld [vmem:[#allocation23_spill] sm:$0xff]  ;;  %v9619_v0 = vor.u32 %v10738_v25, %v9616_v12  ;;  %v5742_v24 = vadd.f32 %v15862_v9, %v5728_v18  ;;  %v16057_v47 = vpop.f32.mrf.mxu1 }
 0x2fe   :  { %6235 = vmatpush.bf16.msra.mxu0 %v9523_v13  ;;  %v5350_v10 = vadd.f32 %v16362_v45, %v5336_v42  ;;  %v10658_v15 = vld [vmem:[%s16306_s1 + $0x140c] sm:$0xf]  ;;  %v9296_v63 = vld [vmem:[%s16306_s1 + $0x1418] sm:$0xf0]  ;;  %v9747_v13 = vor.u32 %v10770_v32, %v9744_v23  ;;  %v16091_v32 = vpop.f32.mrf.mxu0  ;;  %v5754_v59 = vadd.f32 %v15810_v3, %v5740_v5 }
 0x2ff   :  { %6249 = vmatpush.bf16.msra.mxu1 %v9651_v8  ;;  %v10702_v61 = vld [vmem:[%s16306_s1 + $0x156c] sm:$0xf]  ;;  %v9472_v17 = vld [vmem:[%s16306_s1 + $0x1578] sm:$0xf0]  ;;  %v9299_v39 = vor.u32 %v10658_v15, %v9296_v63 }
 0x300   :  { %6263 = vmatpush.bf16.msra.mxu2 %v9779_v29  ;;  %v5364_v62 = vadd.f32 %v16363_v6, %v5350_v10  ;;  %v10734_v53 = vld [vmem:[%s16306_s1 + $0x166c] sm:$0xf]  ;;  %v9600_v8 = vld [vmem:[%s16306_s1 + $0x1678] sm:$0xf0]  ;;  %v9475_v20 = vor.u32 %v10702_v61, %v9472_v17 }
 0x301   :  { %6225 = vmatpush.bf16.msrb.mxu3 %v9331_v60  ;;  %v10766_v29 = vld [vmem:[%s16306_s1 + $0x176c] sm:$0xf]  ;;  %v9728_v11 = vld [vmem:[%s16306_s1 + $0x1778] sm:$0xf0]  ;;  %v16068_v56 = vpop.f32.mrf.mxu3  ;;  %v9603_v60 = vor.u32 %v10734_v53, %v9600_v8  ;;  %v16370_v53 = vld [vmem:[#allocation28_spill] sm:$0xff] }
 0x302   :  { %6236 = vmatpush.bf16.msra.mxu0 %v9507_v58  ;;  %v16364_v21 = vld [vmem:[#allocation5_spill] sm:$0xff]  ;;  %v10798_v9 = vld [vmem:[%s16306_s1 + $0x186c] sm:$0xf]  ;;  %v9731_v58 = vor.u32 %v10766_v29, %v9728_v11  ;;  %v16125_v8 = vpop.f32.mrf.mxu2  ;;  %v16371_v11 = vld [vmem:[#allocation8_spill] sm:$0xff] }
 0x303   :  { %6250 = vmatpush.bf16.msra.mxu1 %v9635_v55  ;;  %v5056_v16 = vadd.f32 %v16364_v21, %v5042_v38  ;;  %v16365_v14 = vld [vmem:[#allocation25_spill] sm:$0xff]  ;;  %v10698_v57 = vld [vmem:[%s16306_s1 + $0x154c] sm:$0xf]  ;;  %v5756_v55 = vadd.f32 %v15901_v36, %v5742_v24 }
 0x304   :  { %6264 = vmatpush.bf16.msra.mxu2 %v9763_v22  ;;  %v5378_v27 = vadd.f32 %v16365_v14, %v5364_v62  ;;  %v9856_v30 = vld [vmem:[%s16306_s1 + $0x1878] sm:$0xf0]  ;;  %v10730_v19 = vld [vmem:[%s16306_s1 + $0x164c] sm:$0xf]  ;;  %v5768_v62 = vadd.f32 %v15812_v50, %v5754_v59 }
 0x305   :  { %6226 = vmatpush.bf16.msrb.mxu3 %v9315_v54  ;;  %v9456_v37 = vld [vmem:[%s16306_s1 + $0x1558] sm:$0xf0]  ;;  %v5070_v42 = vadd.f32 %v16366_v1, %v5056_v16  ;;  %v9859_v22 = vor.u32 %v10798_v9, %v9856_v30  ;;  %v10762_v7 = vld [vmem:[%s16306_s1 + $0x174c] sm:$0xf]  ;;  %v5770_v38 = vadd.f32 %v15903_v40, %v5756_v55  ;;  %v16123_v24 = vpop.f32.mrf.mxu1 }
 0x306   :  { %6237 = vmatpush.bf16.msra.mxu0 %v9491_v51  ;;  %v9584_v49 = vld [vmem:[%s16306_s1 + $0x1658] sm:$0xf0]  ;;  %v5392_v12 = vadd.f32 %v16367_v41, %v5378_v27  ;;  %v10794_v36 = vld [vmem:[%s16306_s1 + $0x184c] sm:$0xf]  ;;  %v9459_v45 = vor.u32 %v10698_v57, %v9456_v37  ;;  %v5853_v41 = vpop.f32.mrf.mxu0 }
 0x307   :  { %6251 = vmatpush.bf16.msra.mxu1 %v9619_v0  ;;  %v9712_v25 = vld [vmem:[%s16306_s1 + $0x1758] sm:$0xf0]  ;;  %v16368_v10 = vld [vmem:[#allocation27_spill] sm:$0xff]  ;;  %v9587_v54 = vor.u32 %v10730_v19, %v9584_v49  ;;  %v5784_v16 = vadd.f32 %v16002_v28, %v5770_v38  ;;  %v16375_v38 = vld [vmem:[#allocation10_spill] sm:$0xff] }
 0x308   :  { %6265 = vmatpush.bf16.msra.mxu2 %v9747_v13  ;;  %v9840_v23 = vld [vmem:[%s16306_s1 + $0x1858] sm:$0xf0]  ;;  %v5406_v18 = vadd.f32 %v16368_v10, %v5392_v12  ;;  %v9715_v51 = vor.u32 %v10762_v7, %v9712_v25  ;;  %v10694_v15 = vld [vmem:[%s16306_s1 + $0x152c] sm:$0xf]  ;;  %v16374_v7 = vld [vmem:[#allocation30_spill] sm:$0xff] }
 0x309   :  { %6227 = vmatpush.bf16.msrb.mxu3 %v9299_v39  ;;  %v9440_v63 = vld [vmem:[%s16306_s1 + $0x1538] sm:$0xf0]  ;;  %v10726_v3 = vld [vmem:[%s16306_s1 + $0x162c] sm:$0xf]  ;;  %v9843_v0 = vor.u32 %v10794_v36, %v9840_v23  ;;  %v5839_v1 = vpop.f32.mrf.mxu3 }
 0x30a   :  { %6238 = vmatpush.bf16.msra.mxu0 %v9475_v20  ;;  %v16369_v40 = vld [vmem:[#allocation7_spill] sm:$0xff]  ;;  %v9568_v13 = vld [vmem:[%s16306_s1 + $0x1638] sm:$0xf0]  ;;  %v5420_v2 = vadd.f32 %v16370_v53, %v5406_v18  ;;  %v9443_v14 = vor.u32 %v10694_v15, %v9440_v63  ;;  %v5782_v20 = vadd.f32 %v15925_v35, %v5768_v62  ;;  %v16377_v63 = vld [vmem:[#allocation32_spill] sm:$0xff] }
 0x30b   :  { %6252 = vmatpush.bf16.msra.mxu1 %v9603_v60  ;;  %v5084_v6 = vadd.f32 %v16369_v40, %v5070_v42  ;;  %v10758_v61 = vld [vmem:[%s16306_s1 + $0x172c] sm:$0xf]  ;;  %v9696_v17 = vld [vmem:[%s16306_s1 + $0x1738] sm:$0xf0]  ;;  %v9571_v30 = vor.u32 %v10726_v3, %v9568_v13  ;;  %v5798_v60 = vadd.f32 %v16025_v52, %v5784_v16 }
 0x30c   :  { %6266 = vmatpush.bf16.msra.mxu2 %v9731_v58  ;;  %6228 = vmatmul.bf16.vlgmr.msrb.gmra.mxu3 %v12267_v26  ;;  %v10790_v50 = vld [vmem:[%s16306_s1 + $0x182c] sm:$0xf]  ;;  %v9824_v29 = vld [vmem:[%s16306_s1 + $0x1838] sm:$0xf0]  ;;  %v9699_v26 = vor.u32 %v10758_v61, %v9696_v17  ;;  %v5796_v35 = vadd.f32 %v15935_v46, %v5782_v20 }
 0x30d   :  { %6280 = vmatpush.bf16.msra.mxu3 %v9859_v22  ;;  %v5098_v21 = vadd.f32 %v16371_v11, %v5084_v6  ;;  %v16372_v27 = vld [vmem:[#allocation29_spill] sm:$0xff]  ;;  %v10690_v5 = vld [vmem:[%s16306_s1 + $0x150c] sm:$0xf]  ;;  %v9827_v58 = vor.u32 %v10790_v50, %v9824_v29  ;;  %v5812_v23 = vadd.f32 %v16057_v47, %v5798_v60  ;;  %v5867_v40 = vpop.f32.mrf.mxu1  ;;  %v5881_v6 = vpop.f32.mrf.mxu2  ;;  %v16380_v50 = vld [vmem:[#allocation12_spill] sm:$0xff] }
 0x30e   :  { %6239 = vmatpush.bf16.msra.mxu0 %v9459_v45  ;;  %v5434_v9 = vadd.f32 %v16372_v27, %v5420_v2  ;;  %v9424_v39 = vld [vmem:[%s16306_s1 + $0x1518] sm:$0xf0]  ;;  %v10722_v28 = vld [vmem:[%s16306_s1 + $0x160c] sm:$0xf]  ;;  %v5810_v47 = vadd.f32 %v15966_v31, %v5796_v35  ;;  %v10815_v31 = vld [vmem:[%s16309_s3 + $0x70] sm:$0xff]  ;;  %v5907_v11 = vpop.f32.mrf.mxu0 }
 0x30f   :  { %6253 = vmatpush.bf16.msra.mxu1 %v9587_v54  ;;  %v9552_v57 = vld [vmem:[%s16306_s1 + $0x1618] sm:$0xf0]  ;;  %v10754_v37 = vld [vmem:[%s16306_s1 + $0x170c] sm:$0xf]  ;;  %v9427_v52 = vor.u32 %v10690_v5, %v9424_v39  ;;  %v5826_v15 = vadd.f32 %v16059_v4, %v5812_v23  ;;  %v16381_v27 = vld [vmem:[#allocation34_spill] sm:$0xff] }
 0x310   :  { %6267 = vmatpush.bf16.msra.mxu2 %v9715_v51  ;;  %v9680_v19 = vld [vmem:[%s16306_s1 + $0x1718] sm:$0xf0]  ;;  %v10786_v22 = vld [vmem:[%s16306_s1 + $0x180c] sm:$0xf]  ;;  %v5448_v25 = vadd.f32 %v16374_v7, %v5434_v9  ;;  %v9555_v12 = vor.u32 %v10722_v28, %v9552_v57  ;;  %v5824_v62 = vadd.f32 %v15968_v44, %v5810_v47  ;;  %v10823_v44 = vld [vmem:[%s16309_s3 + $0xb0] sm:$0xff] }
 0x311   :  { %6281 = vmatpush.bf16.msra.mxu3 %v9843_v0  ;;  %v16373_v42 = vld [vmem:[#allocation9_spill] sm:$0xff]  ;;  %v9683_v36 = vor.u32 %v10754_v37, %v9680_v19  ;;  %v16376_v10 = vld [vmem:[#allocation31_spill] sm:$0xff]  ;;  %v10807_v0 = vld [vmem:[%s16309_s3 + $0x30] sm:$0xff]  ;;  %v5893_v53 = vpop.f32.mrf.mxu3  ;;  %v5840_v2 = vadd.f32 %v5839_v1, %v5826_v15 }
 0x312   :  { %v5112_v55 = vadd.f32 %v16373_v42, %v5098_v21  ;;  %6240 = vmatpush.bf16.msra.mxu0 %v9443_v14  ;;  %v9808_v49 = vld [vmem:[%s16306_s1 + $0x1818] sm:$0xf0]  ;;  %v5462_v18 = vadd.f32 %v16376_v10, %v5448_v25  ;;  %v16378_v4 = vld [vmem:[#allocation11_spill] sm:$0xff]  ;;  %v5838_v21 = vadd.f32 %v16068_v56, %v5824_v62  ;;  %v16382_v9 = vld [vmem:[#allocation2_spill] sm:$0xff] }
 0x313   :  { %6254 = vmatpush.bf16.msra.mxu1 %v9571_v30  ;;  %v10808_v46 = vld [vmem:[%s16309_s3 + $0x38] sm:$0xff]  ;;  %v9811_v51 = vor.u32 %v10786_v22, %v9808_v49  ;;  %v5854_v16 = vadd.f32 %v5853_v41, %v5840_v2  ;;  %v10806_v14 = vld [vmem:[%s16309_s3 + $0x28] sm:$0xff]  ;;  %v10805_v60 = vld [vmem:[%s16309_s3 + $0x20] sm:$0xff] }
 0x314   :  { %6268 = vmatpush.bf16.msra.mxu2 %v9699_v26  ;;  %v10816_v59 = vld [vmem:[%s16309_s3 + $0x78] sm:$0xff]  ;;  %v5126_v45 = vadd.f32 %v16375_v38, %v5112_v55  ;;  %v5476_v3 = vadd.f32 %v16377_v63, %v5462_v18  ;;  %v5852_v56 = vadd.f32 %v16091_v32, %v5838_v21  ;;  %v16384_v5 = vld [vmem:[#allocation35_spill] sm:$0xff]  ;;  %v16385_v57 = vld [vmem:[#allocation14_spill] sm:$0xff] }
 0x315   :  { %6282 = vmatpush.bf16.msra.mxu3 %v9827_v58  ;;  %v10824_v54 = vld [vmem:[%s16309_s3 + $0xb8] sm:$0xff]  ;;  %v5921_v28 = vpop.f32.mrf.mxu1  ;;  %v5868_v20 = vadd.f32 %v5867_v40, %v5854_v16  ;;  %v10813_v58 = vld [vmem:[%s16309_s3 + $0x60] sm:$0xff]  ;;  %v16386_v19 = vld [vmem:[#allocation36_spill] sm:$0xff]  ;;  %v5935_v1 = vpop.f32.mrf.mxu2 }
 0x316   :  { %6241 = vmatpush.bf16.msra.mxu0 %v9427_v52  ;;  %v5140_v13 = vadd.f32 %v16378_v4, %v5126_v45  ;;  %v16379_v61 = vld [vmem:[#allocation33_spill] sm:$0xff]  ;;  %v10821_v42 = vld [vmem:[%s16309_s3 + $0xa0] sm:$0xff]  ;;  %v5866_v55 = vadd.f32 %v16123_v24, %v5852_v56  ;;  %v5909_v23 = vpop.f32.mrf.mxu0  ;;  %v16390_v38 = vld [vmem:[#allocation39_spill] sm:$0xff] }
 0x317   :  { %6255 = vmatpush.bf16.msra.mxu1 %v9555_v12  ;;  %v5490_v17 = vadd.f32 %v16379_v61, %v5476_v3  ;;  %v16383_v30 = vld [vmem:[#allocation13_spill] sm:$0xff]  ;;  %v5882_v35 = vadd.f32 %v5881_v6, %v5868_v20  ;;  %v16387_v52 = vld [vmem:[#allocation38_spill] sm:$0xff]  ;;  %v16388_v12 = vld [vmem:[#allocation16_spill] sm:$0xff] }
 0x318   :  { %6269 = vmatpush.bf16.msra.mxu2 %v9683_v36  ;;  %v5154_v29 = vadd.f32 %v16380_v50, %v5140_v13  ;;  %v5880_v7 = vadd.f32 %v16125_v8, %v5866_v55  ;;  %v10804_v25 = vld [vmem:[%s16309_s3 + $0x18] sm:$0xff]  ;;  %v16391_v47 = vld [vmem:[#allocation40_spill] sm:$0xff]  ;;  %v16392_v6 = vld [vmem:[#allocation18_spill] sm:$0xff] }
 0x319   :  { %6283 = vmatpush.bf16.msra.mxu3 %v9811_v51  ;;  %6242 = vmatmul.bf16.vlgmr.msra.gmra.mxu0 %v12280_v34  ;;  %v10814_v34 = vld [vmem:[%s16309_s3 + $0x68] sm:$0xff]  ;;  %v5895_v49 = vpop.f32.mrf.mxu3  ;;  %v10812_v41 = vld [vmem:[%s16309_s3 + $0x58] sm:$0xff]  ;;  %v10811_v51 = vld [vmem:[%s16309_s3 + $0x50] sm:$0xff] }
 0x31a   :  { %6562 = vmatpush.bf16.msrb.mxu0 %v10808_v46  ;;  %6256 = vmatmul.bf16.vlgmr.msra.gmra.mxu1 %v12278_v33  ;;  %v5504_v33 = vadd.f32 %v16381_v27, %v5490_v17  ;;  %v5168_v26 = vadd.f32 %v16383_v30, %v5154_v29  ;;  %v10820_v24 = vld [vmem:[%s16309_s3 + $0x98] sm:$0xff]  ;;  %v5896_v46 = vadd.f32 %v5895_v49, %v5882_v35  ;;  %v10819_v3 = vld [vmem:[%s16309_s3 + $0x90] sm:$0xff]  ;;  %v10802_v4 = vld [vmem:[%s16309_s3 + $0x8] sm:$0xff] }
 0x31b   :  { %6576 = vmatpush.bf16.msrb.mxu1 %v10816_v59  ;;  %6270 = vmatmul.bf16.vlgmr.msra.gmra.mxu2 %v12290_v48  ;;  %v10822_v48 = vld [vmem:[%s16309_s3 + $0xa8] sm:$0xff]  ;;  %v16389_v8 = vld [vmem:[#allocation17_spill] sm:$0xff]  ;;  %v5894_v10 = vadd.f32 %v5893_v53, %v5880_v7  ;;  %v10801_v21 = vld [vmem:[%s16309_s3] sm:$0xff] }
 0x31c   :  { %6590 = vmatpush.bf16.msrb.mxu2 %v10824_v54  ;;  %9863 = vmatmul.msk.bf16.vlgmr.msra.gmra.mxu3 %vm4886_vm0, %v16382_v9  ;;  %v5518_v39 = vadd.f32 %v16384_v5, %v5504_v33  ;;  %v5182_v37 = vadd.f32 %v16385_v57, %v5168_v26  ;;  %v5910_v18 = vadd.f32 %v5909_v23, %v5896_v46  ;;  %v10803_v54 = vld [vmem:[%s16309_s3 + $0x10] sm:$0xff]  ;;  %v10810_v13 = vld [vmem:[%s16309_s3 + $0x48] sm:$0xff]  ;;  %v16394_v53 = vld [vmem:[#allocation41_spill] sm:$0xff] }
 0x31d   :  { %v5923_v63 = vpop.f32.mrf.mxu1  ;;  %v5908_v40 = vadd.f32 %v5907_v11, %v5894_v10  ;;  %v16393_v61 = vld [vmem:[#allocation19_spill] sm:$0xff]  ;;  %v10809_v16 = vld [vmem:[%s16309_s3 + $0x40] sm:$0xff]  ;;  %v16396_v56 = vld [vmem:[#allocation37_spill] sm:$0xff] }
 0x31e   :  { %6563 = vmatpush.bf16.msrb.mxu0 %v10807_v0  ;;  %v5532_v32 = vadd.f32 %v16386_v19, %v5518_v39  ;;  %v5196_v36 = vadd.f32 %v16388_v12, %v5182_v37  ;;  %v5937_v0 = vpop.f32.mrf.mxu2  ;;  %v10818_v2 = vld [vmem:[%s16309_s3 + $0x88] sm:$0xff]  ;;  %v10817_v27 = vld [vmem:[%s16309_s3 + $0x80] sm:$0xff]  ;;  %v6291_v30 = vmax.f32 %v16396_v56, 0.0 }
 0x31f   :  { %6577 = vmatpush.bf16.msrb.mxu1 %v10815_v31  ;;  %v5924_v31 = vadd.f32 %v5923_v63, %v5910_v18  ;;  %v5922_v50 = vadd.f32 %v5921_v28, %v5908_v40  ;;  %v16395_v9 = vld [vmem:[#allocation15_spill] sm:$0xff] }
 0x320   :  { %6591 = vmatpush.bf16.msrb.mxu2 %v10823_v44  ;;  %v5546_v22 = vadd.f32 %v16387_v52, %v5532_v32  ;;  %v5210_v59 = vadd.f32 %v16389_v8, %v5196_v36 }
 0x321   :  { %v5938_v29 = vadd.f32 %v5937_v0, %v5924_v31  ;;  %v5936_v11 = vadd.f32 %v5935_v1, %v5922_v50  ;;  %v5949_v5 = vpop.f32.mrf.mxu3 }
 0x322   :  { %6564 = vmatpush.bf16.msrb.mxu0 %v10806_v14  ;;  %v5560_v45 = vadd.f32 %v16390_v38, %v5546_v22  ;;  %v5224_v62 = vadd.f32 %v16392_v6, %v5210_v59 }
 0x323   :  { %6578 = vmatpush.bf16.msrb.mxu1 %v10814_v34  ;;  %v6296_v33 = vmax.f32 %v5938_v29, 0.0  ;;  %v6292_v26 = vmax.f32 %v5936_v11, 0.0 }
 0x324   :  { %6592 = vmatpush.bf16.msrb.mxu2 %v10822_v48  ;;  %v5574_v15 = vadd.f32 %v16391_v47, %v5560_v45  ;;  %v5238_v17 = vadd.f32 %v16393_v61, %v5224_v62  ;;  %v6290_v48 = vmax.f32 %v16395_v9, 0.0 }
 0x325   :  { %v6300_v20 = vpack.c.bf16 %v6296_v33, %v6292_v26  ;;  %v5977_v57 = vpop.f32.mrf.mxu1 }
 0x326   :  { %6565 = vmatpush.bf16.msrb.mxu0 %v10805_v60  ;;  %v5588_v44 = vadd.f32 %v16394_v53, %v5574_v15  ;;  %v6294_v14 = vmax.f32 %v5238_v17, 0.0  ;;  %v5963_v60 = vpop.f32.mrf.mxu0  ;;  %v5991_v37 = vpop.f32.mrf.mxu2  ;;  %v10830_v17 = vld [vmem:[%s16309_s3 + $0xe8] sm:$0xff] }
 0x327   :  { %6579 = vmatpush.bf16.msrb.mxu1 %v10813_v58 }
 0x328   :  { %6593 = vmatpush.bf16.msrb.mxu2 %v10821_v42  ;;  %v6295_v34 = vmax.f32 %v5588_v44, 0.0  ;;  %v6298_v39 = vpack.c.bf16 %v6294_v14, %v6290_v48 }
 0x329   :  { %v5951_v58 = vpop.f32.mrf.mxu3 }
 0x32a   :  { %6566 = vmatpush.bf16.msrb.mxu0 %v10804_v25  ;;  %v6299_v28 = vpack.c.bf16 %v6295_v34, %v6291_v30  ;;  %v836_v25 = vperm.slane %v15705_v43, 3  ;;  %v10832_v43 = vld [vmem:[%s16309_s3 + $0xf8] sm:$0xff]  ;;  %v10827_v30 = vld [vmem:[%s16309_s3 + $0xd0] sm:$0xff] }
 0x32b   :  { %6580 = vmatpush.bf16.msrb.mxu1 %v10812_v41  ;;  %6604 = vmatpush.bf16.msrb.mxu3 %v10832_v43 }
 0x32c   :  { %6594 = vmatpush.bf16.msrb.mxu2 %v10820_v24  ;;  %v5950_v12 = vadd.f32 %v5949_v5, %v836_v25  ;;  %v5952_v45 = vadd.f32 %v5951_v58, %v836_v25 }
 0x32d   :  { %v5979_v1 = vpop.f32.mrf.mxu1 }
 0x32e   :  { %6567 = vmatpush.bf16.msrb.mxu0 %v10803_v54  ;;  %v5965_v19 = vpop.f32.mrf.mxu0  ;;  %v5993_v42 = vpop.f32.mrf.mxu2  ;;  %v5964_v24 = vadd.f32 %v5963_v60, %v5950_v12  ;;  %v10826_v60 = vld [vmem:[%s16309_s3 + $0xc8] sm:$0xff] }
 0x32f   :  { %6581 = vmatpush.bf16.msrb.mxu1 %v10811_v51  ;;  %v5966_v51 = vadd.f32 %v5965_v19, %v5952_v45 }
 0x330   :  { %6595 = vmatpush.bf16.msrb.mxu2 %v10819_v3  ;;  %v5978_v59 = vadd.f32 %v5977_v57, %v5964_v24  ;;  %v10831_v3 = vld [vmem:[%s16309_s3 + $0xf0] sm:$0xff] }
 0x331   :  { %v6005_v32 = vpop.f32.mrf.mxu3  ;;  %v5980_v63 = vadd.f32 %v5979_v1, %v5966_v51  ;;  %6605 = vmatpush.bf16.msrb.mxu3 %v10831_v3  ;;  %v10825_v1 = vld [vmem:[%s16309_s3 + $0xc0] sm:$0xff] }
 0x332   :  { %6568 = vmatpush.bf16.msrb.mxu0 %v10802_v4  ;;  %v5992_v10 = vadd.f32 %v5991_v37, %v5978_v59 }
 0x333   :  { %6582 = vmatpush.bf16.msrb.mxu1 %v10810_v13  ;;  %v5994_v0 = vadd.f32 %v5993_v42, %v5980_v63 }
 0x334   :  { %6596 = vmatpush.bf16.msrb.mxu2 %v10818_v2  ;;  %v6006_v15 = vadd.f32 %v6005_v32, %v5992_v10  ;;  %v10829_v2 = vld [vmem:[%s16309_s3 + $0xe0] sm:$0xff] }
 0x335   :  { %v6033_v52 = vpop.f32.mrf.mxu1  ;;  %6606 = vmatpush.bf16.msrb.mxu3 %v10830_v17 }
 0x336   :  { %6569 = vmatpush.bf16.msrb.mxu0 %v10801_v21  ;;  %v6019_v55 = vpop.f32.mrf.mxu0  ;;  %v6047_v22 = vpop.f32.mrf.mxu2 }
 0x337   :  { %6583 = vmatpush.bf16.msrb.mxu1 %v10809_v16  ;;  %v6020_v6 = vadd.f32 %v6019_v55, %v6006_v15 }
 0x338   :  { %6597 = vmatpush.bf16.msrb.mxu2 %v10817_v27  ;;  %v10828_v27 = vld [vmem:[%s16309_s3 + $0xd8] sm:$0xff] }
 0x339   :  { %6570 = vmatmul.bf16.vlgmr.msrb.gmra.mxu0 %v6298_v39  ;;  %v6007_v35 = vpop.f32.mrf.mxu3  ;;  %v6034_v61 = vadd.f32 %v6033_v52, %v6020_v6  ;;  %6607 = vmatpush.bf16.msrb.mxu3 %v10829_v2 }
 0x33a   :  { %6584 = vmatmul.bf16.vlgmr.msrb.gmra.mxu1 %v6299_v28  ;;  %v6008_v13 = vadd.f32 %v6007_v35, %v5994_v0 }
 0x33b   :  { %6598 = vmatmul.bf16.vlgmr.msrb.gmra.mxu2 %v6300_v20  ;;  %v6048_v50 = vadd.f32 %v6047_v22, %v6034_v61 }
 0x33d   :  { %v6035_v41 = vpop.f32.mrf.mxu1  ;;  %6608 = vmatpush.bf16.msrb.mxu3 %v10828_v27 }
 0x33e   :  { %v6021_v49 = vpop.f32.mrf.mxu0  ;;  %v6049_v36 = vpop.f32.mrf.mxu2 }
 0x33f   :  { %v6022_v53 = vadd.f32 %v6021_v49, %v6008_v13 }
 0x341   :  { %v6061_v7 = vpop.f32.mrf.mxu3  ;;  %v6036_v29 = vadd.f32 %v6035_v41, %v6022_v53  ;;  %6609 = vmatpush.bf16.msrb.mxu3 %v10827_v30 }
 0x342   :  { %v6062_v11 = vadd.f32 %v6061_v7, %v6048_v50 }
 0x343   :  { %v6050_v14 = vadd.f32 %v6049_v36, %v6036_v29 }
 0x345   :  { %v6089_v8 = vpop.f32.mrf.mxu1  ;;  %6610 = vmatpush.bf16.msrb.mxu3 %v10826_v60 }
 0x346   :  { %v6075_v23 = vpop.f32.mrf.mxu0  ;;  %v6103_v38 = vpop.f32.mrf.mxu2 }
 0x347   :  { %v6076_v34 = vadd.f32 %v6075_v23, %v6062_v11  ;;  %v10833_v11 = vld [vmem:[%s16310_s4] ss:$0 sm:$0xff] }
 0x349   :  { %v6063_v46 = vpop.f32.mrf.mxu3  ;;  %v6090_v48 = vadd.f32 %v6089_v8, %v6076_v34  ;;  %6611 = vmatpush.bf16.msrb.mxu3 %v10825_v1 }
 0x34a   :  { %v6064_v9 = vadd.f32 %v6063_v46, %v6050_v14 }
 0x34b   :  { %v6104_v5 = vadd.f32 %v6103_v38, %v6090_v48 }
 0x34d   :  { %v6091_v47 = vpop.f32.mrf.mxu1 }
 0x34e   :  { %v6077_v18 = vpop.f32.mrf.mxu0  ;;  %v6105_v40 = vpop.f32.mrf.mxu2 }
 0x34f   :  { %v6078_v56 = vadd.f32 %v6077_v18, %v6064_v9 }
 0x351   :  { %v6117_v54 = vpop.f32.mrf.mxu3  ;;  %v6092_v28 = vadd.f32 %v6091_v47, %v6078_v56 }
 0x352   :  { %v6118_v20 = vadd.f32 %v6117_v54, %v6104_v5 }
 0x353   :  { %v6106_v37 = vadd.f32 %v6105_v40, %v6092_v28 }
 0x356   :  { %v6131_v62 = vpop.f32.mrf.mxu0 }
 0x357   :  { %v6145_v4 = vpop.f32.mrf.mxu1  ;;  %v6132_v19 = vadd.f32 %v6131_v62, %v6118_v20 }
 0x359   :  { %v6119_v31 = vpop.f32.mrf.mxu3  ;;  %v6146_v55 = vadd.f32 %v6145_v4, %v6132_v19 }
 0x35a   :  { %v6120_v32 = vadd.f32 %v6119_v31, %v6106_v37 }
 0x35e   :  { %v6159_v44 = vpop.f32.mrf.mxu2  ;;  %v6133_v21 = vpop.f32.mrf.mxu0 }
 0x35f   :  { %v6147_v33 = vpop.f32.mrf.mxu1  ;;  %v6134_v35 = vadd.f32 %v6133_v21, %v6120_v32  ;;  %v6160_v52 = vadd.f32 %v6159_v44, %v6146_v55 }
 0x361   :  { %v6148_v7 = vadd.f32 %v6147_v33, %v6134_v35 }
 0x366   :  { %v6161_v26 = vpop.f32.mrf.mxu2 }
 0x367   :  { %v6162_v12 = vadd.f32 %v6161_v26, %v6148_v7 }
 0x36f   :  { %v6173_v16 = vpop.f32.mrf.mxu3 }
 0x370   :  { %v6174_v25 = vadd.f32 %v6173_v16, %v6160_v52 }
 0x376   :  { %v6187_v39 = vpop.f32.mrf.mxu0 }
 0x377   :  { %v6175_v58 = vpop.f32.mrf.mxu3  ;;  %v6201_v57 = vpop.f32.mrf.mxu1  ;;  %v6188_v36 = vadd.f32 %v6187_v39, %v6174_v25 }
 0x378   :  { %v6176_v23 = vadd.f32 %v6175_v58, %v6162_v12 }
 0x379   :  { %v6202_v46 = vadd.f32 %v6201_v57, %v6188_v36 }
 0x37e   :  { %v6215_v42 = vpop.f32.mrf.mxu2  ;;  %v6189_v22 = vpop.f32.mrf.mxu0 }
 0x37f   :  { %v6203_v41 = vpop.f32.mrf.mxu1  ;;  %v6190_v8 = vadd.f32 %v6189_v22, %v6176_v23  ;;  %v6216_v45 = vadd.f32 %v6215_v42, %v6202_v46 }
 0x381   :  { %v6204_v18 = vadd.f32 %v6203_v41, %v6190_v8 }
 0x386   :  { %v6217_v24 = vpop.f32.mrf.mxu2 }
 0x387   :  { %v6218_v51 = vadd.f32 %v6217_v24, %v6204_v18 }
 0x38f   :  { %v6229_v49 = vpop.f32.mrf.mxu3 }
 0x390   :  { %v6230_v54 = vadd.f32 %v6229_v49, %v6216_v45 }
 0x396   :  { %v6243_v59 = vpop.f32.mrf.mxu0 }
 0x397   :  { %v6231_v38 = vpop.f32.mrf.mxu3  ;;  %v6257_v10 = vpop.f32.mrf.mxu1  ;;  %v6244_v47 = vadd.f32 %v6243_v59, %v6230_v54 }
 0x398   :  { %v6232_v43 = vadd.f32 %v6231_v38, %v6218_v51 }
 0x399   :  { %v6258_v40 = vadd.f32 %v6257_v10, %v6244_v47 }
 0x39e   :  { %v6271_v15 = vpop.f32.mrf.mxu2  ;;  %v6245_v63 = vpop.f32.mrf.mxu0 }
 0x39f   :  { %v6285_v3 = vpop.f32.mrf.mxu3  ;;  %v6246_v6 = vadd.f32 %v6245_v63, %v6232_v43  ;;  %v6272_v62 = vadd.f32 %v6271_v15, %v6258_v40  ;;  %v6259_v0 = vpop.f32.mrf.mxu1 }
 0x3a1   :  { %v6260_v31 = vadd.f32 %v6259_v0, %v6246_v6  ;;  %v6286_v13 = vadd.f32 %v6285_v3, %v6272_v62 }
 0x3a3   :  { %v6293_v44 = vmax.f32 %v6286_v13, 0.0 }
 0x3a6   :  { %v6273_v4 = vpop.f32.mrf.mxu2 }
 0x3a7   :  { %v6274_v61 = vadd.f32 %v6273_v4, %v6260_v31  ;;  %v6287_v17 = vpop.f32.mrf.mxu3 }
 0x3a9   :  { %v6288_v53 = vadd.f32 %v6287_v17, %v6274_v61 }
 0x3ab   :  { %v6297_v2 = vmax.f32 %v6288_v53, 0.0 }
 0x3ad   :  { %v6301_v50 = vpack.c.bf16 %v6297_v2, %v6293_v44 }
 0x3af   :  { %6612 = vmatmul.bf16.vlgmr.msrb.gmra.mxu3 %v6301_v50 }
 0x3b6   :  { %v6571_v29 = vpop.f32.mrf.mxu0 }
 0x3b7   :  { %v6572_v21 = vadd.f32 %v10833_v11, %v6571_v29  ;;  %v6585_v16 = vpop.f32.mrf.mxu1 }
 0x3b9   :  { %v6586_v34 = vadd.f32 %v6585_v16, %v6572_v21 }
 0x3be   :  { %v6599_v14 = vpop.f32.mrf.mxu2  ;;  %v6573_v27 = vpop.f32.mrf.mxu0 }
 0x3bf   :  { %v6600_v33 = vadd.f32 %v6599_v14, %v6586_v34  ;;  %v6574_v48 = vadd.f32 %v10833_v11, %v6573_v27  ;;  %v6587_v30 = vpop.f32.mrf.mxu1 }
 0x3c1   :  { %v6588_v5 = vadd.f32 %v6587_v30, %v6574_v48 }
 0x3c6   :  { %v6601_v26 = vpop.f32.mrf.mxu2 }
 0x3c7   :  { %v6602_v39 = vadd.f32 %v6601_v26, %v6588_v5 }
 0x432   :  { %v6613_v9 = vpop.f32.mrf.mxu3 }
 0x433   :  { %v6614_v56 = vadd.f32 %v6613_v9, %v6600_v33 }
 0x435   :  { %6618 = vst [vmem:[%s16311_s5] sm:$0xff] %v6614_v56 }
 0x43a   :  { %v6615_v28 = vpop.f32.mrf.mxu3 }
 0x43b   :  { %v6616_v20 = vadd.f32 %v6615_v28, %v6602_v39 }
 0x43d   :  { %6619 = vst [vmem:[%s16311_s5 + $0x8] sm:$0xff] %v6616_v20 }

</bundles_post_ra>
